<compile_context>
chip_gen: v7x
topology: tpu7x:2x2x1
jax: 0.10.0
libtpu: 0.0.40
codegen_flags: <defaults>
</compile_context>

<pallas_src>
import functools

import jax
import jax.numpy as jnp
import numpy as np
from jax import lax
from jax.experimental import pallas as pl
from jax.experimental.pallas import tpu as pltpu

C_IN1 = 160            # efficientnet-b4 'reduction_4' channels (downsample=8)
C_IN2 = 56             # 'reduction_3' channels
C_MID = 128            # upsampling_out_channels
EPS = 1e-5             # InstanceNorm2d default eps (affine=False, biased var)


def _encoder_tail_kernel(x2_ref, x1_ref, w1a_ref, w1b_ref, w2_ref, w3t_ref,
                         b3_ref, xcol_ref, out_ref, acc_ref, hbuf_ref, *, H, W):
    """Per-sample tail: conv3x3+IN+ReLU, conv3x3+IN+ReLU, conv1x1(+bias).

    x2_ref  : (1, (H+4)*W, 56)   bf16  reduction_3, 2 zero rows above/below,
                                       flattened row-major over (row, W)
    x1_ref  : (1, (H+4)*W, 160)  bf16  upsampled reduction_4, same layout
    w1a/w1b : (3, 3, Cin, 128)   bf16  conv1 weight split along input channels
    w2_ref  : (3, 3, 128, 128)   bf16
    w3t_ref : (C, 128), b3: (C,1) f32  depth_layer weight/bias
    xcol_ref: (H*W, 1) f32             x coordinate of every output pixel
    out_ref : (1, C, H*W) f32          lane-dense output
    acc_ref : (H*W, 128) f32 VMEM      conv accumulator (shared by both convs)
    hbuf_ref: ((H+4)*W, 128) bf16 VMEM h1 staging buffer (same flat layout)
    """
    HW = H * W
    cmid = hbuf_ref.shape[-1]
    f32 = jnp.float32

    # Masks for the two horizontal-halo taps (kx==0 wraps at x==0, kx==2 wraps
    # at x==W-1 in the flattened layout; those rows must receive zero).
    xcol = xcol_ref[...]                       # (HW, 1), exact small integers
    keep_l = xcol > 0.0                        # rows valid for kx == 0 taps
    keep_r = xcol < float(W - 1)               # rows valid for kx == 2 taps

    def mask_edge(kx, t):
        if kx == 0:
            return jnp.where(keep_l, t, 0.0)
        if kx == 2:
            return jnp.where(keep_r, t, 0.0)
        return t

    def tap_start(ky, kx):
        # output pixel p = y*W + x needs img[y+ky-1, x+kx-1]; with the image
        # stored at padded rows [2, H+2) this is flat index p + (ky+1)*W + kx-1.
        return (ky + 1) * W + (kx - 1)

    # ---------------- conv1: 3x3, (56 | 160) -> 128, pad=1, no bias ----------
    for kx in range(3):
        t = None
        for ky in range(3):
            s = tap_start(ky, kx)
            p2 = x2_ref[0, pl.ds(s, HW), :]              # (HW, 56)  bf16
            p1 = x1_ref[0, pl.ds(s, HW), :]              # (HW, 160) bf16
            d = (jnp.dot(p2, w1a_ref[ky, kx], preferred_element_type=f32)
                 + jnp.dot(p1, w1b_ref[ky, kx], preferred_element_type=f32))
            t = d if t is None else t + d
        t = mask_edge(kx, t)
        if kx == 0:
            acc_ref[...] = t
        else:
            acc_ref[...] += t

    # InstanceNorm2d (affine=False, biased variance, single pass) + ReLU
    a1 = acc_ref[...]
    m1 = jnp.mean(a1, axis=0, keepdims=True)
    v1 = jnp.mean(a1 * a1, axis=0, keepdims=True) - m1 * m1
    h1 = jnp.maximum((a1 - m1) * lax.rsqrt(v1 + EPS), 0.0)

    # Stage h1 into the flat halo buffer (bf16): 2 zero rows above / below,
    # data in the middle.  All three stores are contiguous & aligned and only
    # the halo rows are rewritten each step (no full-buffer clear).
    zrows = jnp.zeros((2 * W, cmid), jnp.bfloat16)
    hbuf_ref[pl.ds(0, 2 * W), :] = zrows
    hbuf_ref[pl.ds((H + 2) * W, 2 * W), :] = zrows
    hbuf_ref[pl.ds(2 * W, HW), :] = h1.astype(jnp.bfloat16)

    # ---------------- conv2: 3x3, 128 -> 128, pad=1, no bias -----------------
    for kx in range(3):
        t = None
        for ky in range(3):
            s = tap_start(ky, kx)
            p = hbuf_ref[pl.ds(s, HW), :]                # (HW, 128) bf16
            d = jnp.dot(p, w2_ref[ky, kx], preferred_element_type=f32)
            t = d if t is None else t + d
        t = mask_edge(kx, t)
        if kx == 0:
            acc_ref[...] = t
        else:
            acc_ref[...] += t

    a2 = acc_ref[...]
    m2 = jnp.mean(a2, axis=0, keepdims=True)
    v2 = jnp.mean(a2 * a2, axis=0, keepdims=True) - m2 * m2
    h2 = jnp.maximum((a2 - m2) * lax.rsqrt(v2 + EPS), 0.0)

    # ---------------- depth_layer: 1x1 conv 128 -> C, with bias --------------
    # Emit (C, H*W) directly (contract the 128-dim of both operands) so the
    # output tile is lane-dense; the NCHW reshape outside is free.
    out_t = lax.dot_general(w3t_ref[...], h2,
                            dimension_numbers=(((1,), (1,)), ((), ())),
                            preferred_element_type=f32)
    out_ref[0, :, :] = out_t + b3_ref[...]


def upsample2x_bilinear_nhwc(x):
    """2x bilinear upsample matching torch nn.Upsample(scale_factor=2,
    mode='bilinear', align_corners=False)."""
    def up_axis(a, ax):
        n = a.shape[ax]
        prev = jnp.concatenate([lax.slice_in_dim(a, 0, 1, axis=ax),
                                lax.slice_in_dim(a, 0, n - 1, axis=ax)], axis=ax)
        nxt = jnp.concatenate([lax.slice_in_dim(a, 1, n, axis=ax),
                               lax.slice_in_dim(a, n - 1, n, axis=ax)], axis=ax)
        even = 0.25 * prev + 0.75 * a   # out[2k]   <- src coord k - 0.25
        odd = 0.75 * a + 0.25 * nxt     # out[2k+1] <- src coord k + 0.25
        stacked = jnp.stack([even, odd], axis=ax + 1)
        new_shape = list(a.shape)
        new_shape[ax] = 2 * n
        return stacked.reshape(new_shape)
    return up_axis(up_axis(x, 1), 2)


def encoder_eff_tail(input_1_nchw, input_2_nchw, params):
    """input_1 = backbone 'reduction_4' feature map (B, 160, H/2, W/2),
       input_2 = backbone 'reduction_3' feature map (B, 56,  H,   W)."""
    # TODO(synk): the EfficientNet-b4 backbone (external pretrained model) is
    # not translated; this consumes its two endpoint feature maps.  The x2
    # bilinear upsample and NCHW<->NHWC layout shuffles remain XLA glue.
    w1, w2, w3, b3 = params
    c2 = input_2_nchw.shape[1]
    c1 = input_1_nchw.shape[1]
    cmid = w1.shape[-1]
    c_out = w3.shape[-1]

    x1 = jnp.transpose(input_1_nchw, (0, 2, 3, 1)).astype(jnp.float32)  # NHWC
    x2 = jnp.transpose(input_2_nchw, (0, 2, 3, 1)).astype(jnp.float32)  # NHWC
    x1u = upsample2x_bilinear_nhwc(x1)                                  # (B,H,W,160)
    B, H, W, _ = x1u.shape
    assert x2.shape == (B, H, W, c2)
    HW = H * W
    rows = (H + 4) * W  # 2 zero halo rows above + below the image rows

    def pad_flatten(x):   # (B,H,W,C) f32 -> (B,(H+4)*W,C) bf16, zero halo rows
        xb = jnp.pad(x.astype(jnp.bfloat16), ((0, 0), (2, 2), (0, 0), (0, 0)))
        return xb.reshape(B, rows, x.shape[-1])

    x2f = pad_flatten(x2)     # (B, (H+4)*W, 56)
    x1f = pad_flatten(x1u)    # (B, (H+4)*W, 160)

    # conv1 weight split along input channels == the fused channel concat
    # (torch.cat([x2, up(x1)], dim=1): first 56 channels are x2's).
    w1a = w1[:, :, :c2, :].astype(jnp.bfloat16)           # (3,3,56,128)
    w1b = w1[:, :, c2:, :].astype(jnp.bfloat16)           # (3,3,160,128)
    w2b = w2.astype(jnp.bfloat16)                         # (3,3,128,128)
    w3t = jnp.transpose(w3).astype(jnp.float32)           # (C,128)
    b3c = b3.reshape(c_out, 1).astype(jnp.float32)        # (C,1)
    xcol = jnp.tile(jnp.arange(W, dtype=jnp.float32), H).reshape(HW, 1)

    kernel = functools.partial(_encoder_tail_kernel, H=H, W=W)
    out_flat = pl.pallas_call(
        kernel,
        out_shape=jax.ShapeDtypeStruct((B, c_out, HW), jnp.float32),
        grid_spec=pltpu.PrefetchScalarGridSpec(
            num_scalar_prefetch=0,
            # TODO(synk): for B == 1 on v7x, additionally split H across the two
            # TensorCores (needs a two-pass partial instance-norm reduction).
            grid=(B,),
            in_specs=[
                pl.BlockSpec((1, rows, c2), lambda b: (b, 0, 0)),
                pl.BlockSpec((1, rows, c1), lambda b: (b, 0, 0)),
                pl.BlockSpec((3, 3, c2, cmid), lambda b: (0, 0, 0, 0)),
                pl.BlockSpec((3, 3, c1, cmid), lambda b: (0, 0, 0, 0)),
                pl.BlockSpec((3, 3, cmid, cmid), lambda b: (0, 0, 0, 0)),
                pl.BlockSpec((c_out, cmid), lambda b: (0, 0)),
                pl.BlockSpec((c_out, 1), lambda b: (0, 0)),
                pl.BlockSpec((HW, 1), lambda b: (0, 0)),
            ],
            out_specs=pl.BlockSpec((1, c_out, HW), lambda b: (b, 0, 0)),
            scratch_shapes=[
                pltpu.VMEM((HW, cmid), jnp.float32),      # conv accumulator
                pltpu.VMEM((rows, cmid), jnp.bfloat16),   # h1 halo buffer
            ],
        ),
        compiler_params=pltpu.CompilerParams(
            dimension_semantics=("parallel",),
            vmem_limit_bytes=64 * 1024 * 1024,
        ),
    )(x2f, x1f, w1a, w1b, w2b, w3t, b3c, xcol)

    # (B, C, H*W) -> (B, C, H, W): pure reshape, output is already NCHW.
    return out_flat.reshape(B, c_out, H, W)


def reference(input_1_nchw, input_2_nchw, params):
    """Pure-JAX f32 reference of the same math (for correctness check)."""
    w1, w2, w3, b3 = params
    x1 = jnp.transpose(input_1_nchw, (0, 2, 3, 1)).astype(jnp.float32)
    x2 = jnp.transpose(input_2_nchw, (0, 2, 3, 1)).astype(jnp.float32)
    x = jnp.concatenate([x2, upsample2x_bilinear_nhwc(x1)], axis=-1)

    def conv3(a, w):
        return lax.conv_general_dilated(a, w, (1, 1), 'SAME',
                                        dimension_numbers=('NHWC', 'HWIO', 'NHWC'))

    def inorm_relu(a):
        m = jnp.mean(a, axis=(1, 2), keepdims=True)
        v = jnp.mean((a - m) ** 2, axis=(1, 2), keepdims=True)
        return jnp.maximum((a - m) * lax.rsqrt(v + EPS), 0.0)

    h = inorm_relu(conv3(x, w1))
    h = inorm_relu(conv3(h, w2))
    out = jnp.einsum('bhwc,co->bhwo', h, w3) + b3
    return jnp.transpose(out, (0, 3, 1, 2))


if __name__ == "__main__":
    key = jax.random.PRNGKey(0)
    k1, k2, k3, k4, k5, k6 = jax.random.split(key, 6)

    B, C_out = 2, 8           # Encoder_eff C = 8
    H2, W2 = 16, 16           # reduction_3 spatial
    H1, W1 = 8, 8             # reduction_4 spatial (half)

    input_1 = jax.random.normal(k1, (B, C_IN1, H1, W1), jnp.float32)   # reduction_4
    input_2 = jax.random.normal(k2, (B, C_IN2, H2, W2), jnp.float32)   # reduction_3

    # Deterministic synthetic parameters (HWIO conv weights, (Cin,Cout) 1x1, bias).
    w1 = jax.random.normal(k3, (3, 3, C_IN2 + C_IN1, C_MID), jnp.float32) * 0.05
    w2 = jax.random.normal(k4, (3, 3, C_MID, C_MID), jnp.float32) * 0.05
    w3 = jax.random.normal(k5, (C_MID, C_out), jnp.float32) * 0.1
    b3 = jax.random.normal(k6, (C_out,), jnp.float32) * 0.1
    params = (w1, w2, w3, b3)

    out = jax.block_until_ready(encoder_eff_tail(input_1, input_2, params))
    ref = jax.block_until_ready(reference(input_1, input_2, params))

    assert out.shape == (B, C_out, H2, W2), out.shape
    # The kernel runs the two 3x3 convs with bf16 MXU operands (f32 accumulation),
    # so compare against the pure-f32 reference with a bf16-appropriate tolerance.
    np.testing.assert_allclose(np.asarray(out), np.asarray(ref), rtol=2e-2, atol=2e-2)
    print("KERNEL_OK")
</pallas_src>

<mosaic_0001>
module attributes {stable_mosaic.version = 11 : i64} {
  func.func @_encoder_tail_kernel(%arg0: i32, %arg1: memref<1x320x56xbf16, #tpu.memory_space<vmem>>, %arg2: memref<1x320x160xbf16, #tpu.memory_space<vmem>>, %arg3: memref<3x3x56x128xbf16, #tpu.memory_space<vmem>>, %arg4: memref<3x3x160x128xbf16, #tpu.memory_space<vmem>>, %arg5: memref<3x3x128x128xbf16, #tpu.memory_space<vmem>>, %arg6: memref<8x128xf32, #tpu.memory_space<vmem>>, %arg7: memref<8x1xf32, #tpu.memory_space<vmem>>, %arg8: memref<256x1xf32, #tpu.memory_space<vmem>>, %arg9: memref<1x8x256xf32, #tpu.memory_space<vmem>>, %arg10: memref<256x128xf32, #tpu.memory_space<vmem>>, %arg11: memref<320x128xbf16, #tpu.memory_space<vmem>>) attributes {dimension_semantics = [#tpu.dimension_semantics<parallel>], iteration_bounds = array<i64: 2>, scalar_prefetch = 0 : i64, scratch_operands = 2 : i64, tpu.core_type = #tpu.core_type<tc>, window_params = [{transform_indices = @transform_0, window_bounds = array<i64: 1, 320, 56>}, {transform_indices = @transform_1, window_bounds = array<i64: 1, 320, 160>}, {pipeline_mode = #tpu.pipeline_mode<synchronous>, transform_indices = @transform_2, window_bounds = array<i64: 3, 3, 56, 128>}, {pipeline_mode = #tpu.pipeline_mode<synchronous>, transform_indices = @transform_3, window_bounds = array<i64: 3, 3, 160, 128>}, {pipeline_mode = #tpu.pipeline_mode<synchronous>, transform_indices = @transform_4, window_bounds = array<i64: 3, 3, 128, 128>}, {pipeline_mode = #tpu.pipeline_mode<synchronous>, transform_indices = @transform_5, window_bounds = array<i64: 8, 128>}, {pipeline_mode = #tpu.pipeline_mode<synchronous>, transform_indices = @transform_6, window_bounds = array<i64: 8, 1>}, {pipeline_mode = #tpu.pipeline_mode<synchronous>, transform_indices = @transform_7, window_bounds = array<i64: 256, 1>}, {transform_indices = @transform_8, window_bounds = array<i64: 1, 8, 256>}]} {
    %c0 = arith.constant 0 : index
    %c0_0 = arith.constant 0 : index
    %0 = vector.load %arg8[%c0, %c0_0] : memref<256x1xf32, #tpu.memory_space<vmem>>, vector<256x1xf32>
    %cst = arith.constant 0.000000e+00 : f32
    %1 = vector.broadcast %cst : f32 to vector<256x1xf32>
    %2 = arith.cmpf ogt, %0, %1 : vector<256x1xf32>
    %cst_1 = arith.constant 1.500000e+01 : f32
    %3 = vector.broadcast %cst_1 : f32 to vector<256x1xf32>
    %4 = arith.cmpf olt, %0, %3 : vector<256x1xf32>
    %c0_2 = arith.constant 0 : index
    %c15 = arith.constant 15 : index
    %c0_3 = arith.constant 0 : index
    %5 = vector.load %arg1[%c0_2, %c15, %c0_3] : memref<1x320x56xbf16, #tpu.memory_space<vmem>>, vector<1x256x56xbf16>
    %6 = vector.shape_cast %5 : vector<1x256x56xbf16> to vector<256x56xbf16>
    %c0_4 = arith.constant 0 : index
    %c15_5 = arith.constant 15 : index
    %c0_6 = arith.constant 0 : index
    %7 = vector.load %arg2[%c0_4, %c15_5, %c0_6] : memref<1x320x160xbf16, #tpu.memory_space<vmem>>, vector<1x256x160xbf16>
    %8 = vector.shape_cast %7 : vector<1x256x160xbf16> to vector<256x160xbf16>
    %c0_7 = arith.constant 0 : index
    %c0_8 = arith.constant 0 : index
    %c0_9 = arith.constant 0 : index
    %c0_10 = arith.constant 0 : index
    %9 = vector.load %arg3[%c0_7, %c0_8, %c0_9, %c0_10] : memref<3x3x56x128xbf16, #tpu.memory_space<vmem>>, vector<1x1x56x128xbf16>
    %10 = vector.shape_cast %9 : vector<1x1x56x128xbf16> to vector<56x128xbf16>
    %cst_11 = arith.constant dense<0.000000e+00> : vector<256x128xf32>
    %11 = tpu.matmul %6, %10, %cst_11 {dimension_numbers = #tpu.dot_dimension_numbers<[1], [0], [0], [1], [0, 0, 1, 1], [], []>} : vector<256x56xbf16>, vector<56x128xbf16>, vector<256x128xf32> -> vector<256x128xf32>
    %c0_12 = arith.constant 0 : index
    %c0_13 = arith.constant 0 : index
    %c0_14 = arith.constant 0 : index
    %c0_15 = arith.constant 0 : index
    %12 = vector.load %arg4[%c0_12, %c0_13, %c0_14, %c0_15] : memref<3x3x160x128xbf16, #tpu.memory_space<vmem>>, vector<1x1x160x128xbf16>
    %13 = vector.shape_cast %12 : vector<1x1x160x128xbf16> to vector<160x128xbf16>
    %cst_16 = arith.constant dense<0.000000e+00> : vector<256x128xf32>
    %14 = tpu.matmul %8, %13, %cst_16 {dimension_numbers = #tpu.dot_dimension_numbers<[1], [0], [0], [1], [0, 0, 1, 1], [], []>} : vector<256x160xbf16>, vector<160x128xbf16>, vector<256x128xf32> -> vector<256x128xf32>
    %15 = arith.addf %11, %14 : vector<256x128xf32>
    %c0_17 = arith.constant 0 : index
    %c31 = arith.constant 31 : index
    %c0_18 = arith.constant 0 : index
    %16 = vector.load %arg1[%c0_17, %c31, %c0_18] : memref<1x320x56xbf16, #tpu.memory_space<vmem>>, vector<1x256x56xbf16>
    %17 = vector.shape_cast %16 : vector<1x256x56xbf16> to vector<256x56xbf16>
    %c0_19 = arith.constant 0 : index
    %c31_20 = arith.constant 31 : index
    %c0_21 = arith.constant 0 : index
    %18 = vector.load %arg2[%c0_19, %c31_20, %c0_21] : memref<1x320x160xbf16, #tpu.memory_space<vmem>>, vector<1x256x160xbf16>
    %19 = vector.shape_cast %18 : vector<1x256x160xbf16> to vector<256x160xbf16>
    %c1 = arith.constant 1 : index
    %c0_22 = arith.constant 0 : index
    %c0_23 = arith.constant 0 : index
    %c0_24 = arith.constant 0 : index
    %20 = vector.load %arg3[%c1, %c0_22, %c0_23, %c0_24] : memref<3x3x56x128xbf16, #tpu.memory_space<vmem>>, vector<1x1x56x128xbf16>
    %21 = vector.shape_cast %20 : vector<1x1x56x128xbf16> to vector<56x128xbf16>
    %cst_25 = arith.constant dense<0.000000e+00> : vector<256x128xf32>
    %22 = tpu.matmul %17, %21, %cst_25 {dimension_numbers = #tpu.dot_dimension_numbers<[1], [0], [0], [1], [0, 0, 1, 1], [], []>} : vector<256x56xbf16>, vector<56x128xbf16>, vector<256x128xf32> -> vector<256x128xf32>
    %c1_26 = arith.constant 1 : index
    %c0_27 = arith.constant 0 : index
    %c0_28 = arith.constant 0 : index
    %c0_29 = arith.constant 0 : index
    %23 = vector.load %arg4[%c1_26, %c0_27, %c0_28, %c0_29] : memref<3x3x160x128xbf16, #tpu.memory_space<vmem>>, vector<1x1x160x128xbf16>
    %24 = vector.shape_cast %23 : vector<1x1x160x128xbf16> to vector<160x128xbf16>
    %cst_30 = arith.constant dense<0.000000e+00> : vector<256x128xf32>
    %25 = tpu.matmul %19, %24, %cst_30 {dimension_numbers = #tpu.dot_dimension_numbers<[1], [0], [0], [1], [0, 0, 1, 1], [], []>} : vector<256x160xbf16>, vector<160x128xbf16>, vector<256x128xf32> -> vector<256x128xf32>
    %26 = arith.addf %22, %25 : vector<256x128xf32>
    %27 = arith.addf %15, %26 : vector<256x128xf32>
    %c0_31 = arith.constant 0 : index
    %c47 = arith.constant 47 : index
    %c0_32 = arith.constant 0 : index
    %28 = vector.load %arg1[%c0_31, %c47, %c0_32] : memref<1x320x56xbf16, #tpu.memory_space<vmem>>, vector<1x256x56xbf16>
    %29 = vector.shape_cast %28 : vector<1x256x56xbf16> to vector<256x56xbf16>
    %c0_33 = arith.constant 0 : index
    %c47_34 = arith.constant 47 : index
    %c0_35 = arith.constant 0 : index
    %30 = vector.load %arg2[%c0_33, %c47_34, %c0_35] : memref<1x320x160xbf16, #tpu.memory_space<vmem>>, vector<1x256x160xbf16>
    %31 = vector.shape_cast %30 : vector<1x256x160xbf16> to vector<256x160xbf16>
    %c2 = arith.constant 2 : index
    %c0_36 = arith.constant 0 : index
    %c0_37 = arith.constant 0 : index
    %c0_38 = arith.constant 0 : index
    %32 = vector.load %arg3[%c2, %c0_36, %c0_37, %c0_38] : memref<3x3x56x128xbf16, #tpu.memory_space<vmem>>, vector<1x1x56x128xbf16>
    %33 = vector.shape_cast %32 : vector<1x1x56x128xbf16> to vector<56x128xbf16>
    %cst_39 = arith.constant dense<0.000000e+00> : vector<256x128xf32>
    %34 = tpu.matmul %29, %33, %cst_39 {dimension_numbers = #tpu.dot_dimension_numbers<[1], [0], [0], [1], [0, 0, 1, 1], [], []>} : vector<256x56xbf16>, vector<56x128xbf16>, vector<256x128xf32> -> vector<256x128xf32>
    %c2_40 = arith.constant 2 : index
    %c0_41 = arith.constant 0 : index
    %c0_42 = arith.constant 0 : index
    %c0_43 = arith.constant 0 : index
    %35 = vector.load %arg4[%c2_40, %c0_41, %c0_42, %c0_43] : memref<3x3x160x128xbf16, #tpu.memory_space<vmem>>, vector<1x1x160x128xbf16>
    %36 = vector.shape_cast %35 : vector<1x1x160x128xbf16> to vector<160x128xbf16>
    %cst_44 = arith.constant dense<0.000000e+00> : vector<256x128xf32>
    %37 = tpu.matmul %31, %36, %cst_44 {dimension_numbers = #tpu.dot_dimension_numbers<[1], [0], [0], [1], [0, 0, 1, 1], [], []>} : vector<256x160xbf16>, vector<160x128xbf16>, vector<256x128xf32> -> vector<256x128xf32>
    %38 = arith.addf %34, %37 : vector<256x128xf32>
    %39 = arith.addf %27, %38 : vector<256x128xf32>
    %cst_45 = arith.constant 0.000000e+00 : f32
    %40 = vector.shape_cast %2 : vector<256x1xi1> to vector<256x1xi1>
    %41 = vector.broadcast %40 : vector<256x1xi1> to vector<256x128xi1>
    %42 = vector.broadcast %cst_45 : f32 to vector<256x128xf32>
    %43 = arith.select %41, %39, %42 : vector<256x128xi1>, vector<256x128xf32>
    %c0_46 = arith.constant 0 : index
    %c0_47 = arith.constant 0 : index
    %44 = vector.load %arg10[%c0_46, %c0_47] : memref<256x128xf32, #tpu.memory_space<vmem>>, vector<256x128xf32>
    tpu.vector_store %arg10[%c0_46, %c0_47], %43 {strides = array<i32>} : memref<256x128xf32, #tpu.memory_space<vmem>>, vector<256x128xf32>,
    %c0_48 = arith.constant 0 : index
    %c16 = arith.constant 16 : index
    %c0_49 = arith.constant 0 : index
    %45 = vector.load %arg1[%c0_48, %c16, %c0_49] : memref<1x320x56xbf16, #tpu.memory_space<vmem>>, vector<1x256x56xbf16>
    %46 = vector.shape_cast %45 : vector<1x256x56xbf16> to vector<256x56xbf16>
    %c0_50 = arith.constant 0 : index
    %c16_51 = arith.constant 16 : index
    %c0_52 = arith.constant 0 : index
    %47 = vector.load %arg2[%c0_50, %c16_51, %c0_52] : memref<1x320x160xbf16, #tpu.memory_space<vmem>>, vector<1x256x160xbf16>
    %48 = vector.shape_cast %47 : vector<1x256x160xbf16> to vector<256x160xbf16>
    %c0_53 = arith.constant 0 : index
    %c1_54 = arith.constant 1 : index
    %c0_55 = arith.constant 0 : index
    %c0_56 = arith.constant 0 : index
    %49 = vector.load %arg3[%c0_53, %c1_54, %c0_55, %c0_56] : memref<3x3x56x128xbf16, #tpu.memory_space<vmem>>, vector<1x1x56x128xbf16>
    %50 = vector.shape_cast %49 : vector<1x1x56x128xbf16> to vector<56x128xbf16>
    %cst_57 = arith.constant dense<0.000000e+00> : vector<256x128xf32>
    %51 = tpu.matmul %46, %50, %cst_57 {dimension_numbers = #tpu.dot_dimension_numbers<[1], [0], [0], [1], [0, 0, 1, 1], [], []>} : vector<256x56xbf16>, vector<56x128xbf16>, vector<256x128xf32> -> vector<256x128xf32>
    %c0_58 = arith.constant 0 : index
    %c1_59 = arith.constant 1 : index
    %c0_60 = arith.constant 0 : index
    %c0_61 = arith.constant 0 : index
    %52 = vector.load %arg4[%c0_58, %c1_59, %c0_60, %c0_61] : memref<3x3x160x128xbf16, #tpu.memory_space<vmem>>, vector<1x1x160x128xbf16>
    %53 = vector.shape_cast %52 : vector<1x1x160x128xbf16> to vector<160x128xbf16>
    %cst_62 = arith.constant dense<0.000000e+00> : vector<256x128xf32>
    %54 = tpu.matmul %48, %53, %cst_62 {dimension_numbers = #tpu.dot_dimension_numbers<[1], [0], [0], [1], [0, 0, 1, 1], [], []>} : vector<256x160xbf16>, vector<160x128xbf16>, vector<256x128xf32> -> vector<256x128xf32>
    %55 = arith.addf %51, %54 : vector<256x128xf32>
    %c0_63 = arith.constant 0 : index
    %c32 = arith.constant 32 : index
    %c0_64 = arith.constant 0 : index
    %56 = vector.load %arg1[%c0_63, %c32, %c0_64] : memref<1x320x56xbf16, #tpu.memory_space<vmem>>, vector<1x256x56xbf16>
    %57 = vector.shape_cast %56 : vector<1x256x56xbf16> to vector<256x56xbf16>
    %c0_65 = arith.constant 0 : index
    %c32_66 = arith.constant 32 : index
    %c0_67 = arith.constant 0 : index
    %58 = vector.load %arg2[%c0_65, %c32_66, %c0_67] : memref<1x320x160xbf16, #tpu.memory_space<vmem>>, vector<1x256x160xbf16>
    %59 = vector.shape_cast %58 : vector<1x256x160xbf16> to vector<256x160xbf16>
    %c1_68 = arith.constant 1 : index
    %c1_69 = arith.constant 1 : index
    %c0_70 = arith.constant 0 : index
    %c0_71 = arith.constant 0 : index
    %60 = vector.load %arg3[%c1_68, %c1_69, %c0_70, %c0_71] : memref<3x3x56x128xbf16, #tpu.memory_space<vmem>>, vector<1x1x56x128xbf16>
    %61 = vector.shape_cast %60 : vector<1x1x56x128xbf16> to vector<56x128xbf16>
    %cst_72 = arith.constant dense<0.000000e+00> : vector<256x128xf32>
    %62 = tpu.matmul %57, %61, %cst_72 {dimension_numbers = #tpu.dot_dimension_numbers<[1], [0], [0], [1], [0, 0, 1, 1], [], []>} : vector<256x56xbf16>, vector<56x128xbf16>, vector<256x128xf32> -> vector<256x128xf32>
    %c1_73 = arith.constant 1 : index
    %c1_74 = arith.constant 1 : index
    %c0_75 = arith.constant 0 : index
    %c0_76 = arith.constant 0 : index
    %63 = vector.load %arg4[%c1_73, %c1_74, %c0_75, %c0_76] : memref<3x3x160x128xbf16, #tpu.memory_space<vmem>>, vector<1x1x160x128xbf16>
    %64 = vector.shape_cast %63 : vector<1x1x160x128xbf16> to vector<160x128xbf16>
    %cst_77 = arith.constant dense<0.000000e+00> : vector<256x128xf32>
    %65 = tpu.matmul %59, %64, %cst_77 {dimension_numbers = #tpu.dot_dimension_numbers<[1], [0], [0], [1], [0, 0, 1, 1], [], []>} : vector<256x160xbf16>, vector<160x128xbf16>, vector<256x128xf32> -> vector<256x128xf32>
    %66 = arith.addf %62, %65 : vector<256x128xf32>
    %67 = arith.addf %55, %66 : vector<256x128xf32>
    %c0_78 = arith.constant 0 : index
    %c48 = arith.constant 48 : index
    %c0_79 = arith.constant 0 : index
    %68 = vector.load %arg1[%c0_78, %c48, %c0_79] : memref<1x320x56xbf16, #tpu.memory_space<vmem>>, vector<1x256x56xbf16>
    %69 = vector.shape_cast %68 : vector<1x256x56xbf16> to vector<256x56xbf16>
    %c0_80 = arith.constant 0 : index
    %c48_81 = arith.constant 48 : index
    %c0_82 = arith.constant 0 : index
    %70 = vector.load %arg2[%c0_80, %c48_81, %c0_82] : memref<1x320x160xbf16, #tpu.memory_space<vmem>>, vector<1x256x160xbf16>
    %71 = vector.shape_cast %70 : vector<1x256x160xbf16> to vector<256x160xbf16>
    %c2_83 = arith.constant 2 : index
    %c1_84 = arith.constant 1 : index
    %c0_85 = arith.constant 0 : index
    %c0_86 = arith.constant 0 : index
    %72 = vector.load %arg3[%c2_83, %c1_84, %c0_85, %c0_86] : memref<3x3x56x128xbf16, #tpu.memory_space<vmem>>, vector<1x1x56x128xbf16>
    %73 = vector.shape_cast %72 : vector<1x1x56x128xbf16> to vector<56x128xbf16>
    %cst_87 = arith.constant dense<0.000000e+00> : vector<256x128xf32>
    %74 = tpu.matmul %69, %73, %cst_87 {dimension_numbers = #tpu.dot_dimension_numbers<[1], [0], [0], [1], [0, 0, 1, 1], [], []>} : vector<256x56xbf16>, vector<56x128xbf16>, vector<256x128xf32> -> vector<256x128xf32>
    %c2_88 = arith.constant 2 : index
    %c1_89 = arith.constant 1 : index
    %c0_90 = arith.constant 0 : index
    %c0_91 = arith.constant 0 : index
    %75 = vector.load %arg4[%c2_88, %c1_89, %c0_90, %c0_91] : memref<3x3x160x128xbf16, #tpu.memory_space<vmem>>, vector<1x1x160x128xbf16>
    %76 = vector.shape_cast %75 : vector<1x1x160x128xbf16> to vector<160x128xbf16>
    %cst_92 = arith.constant dense<0.000000e+00> : vector<256x128xf32>
    %77 = tpu.matmul %71, %76, %cst_92 {dimension_numbers = #tpu.dot_dimension_numbers<[1], [0], [0], [1], [0, 0, 1, 1], [], []>} : vector<256x160xbf16>, vector<160x128xbf16>, vector<256x128xf32> -> vector<256x128xf32>
    %78 = arith.addf %74, %77 : vector<256x128xf32>
    %79 = arith.addf %67, %78 : vector<256x128xf32>
    %c0_93 = arith.constant 0 : index
    %c0_94 = arith.constant 0 : index
    %80 = vector.load %arg10[%c0_93, %c0_94] : memref<256x128xf32, #tpu.memory_space<vmem>>, vector<256x128xf32>
    %81 = arith.addf %80, %79 : vector<256x128xf32>
    %c0_95 = arith.constant 0 : index
    %c0_96 = arith.constant 0 : index
    %82 = vector.load %arg10[%c0_95, %c0_96] : memref<256x128xf32, #tpu.memory_space<vmem>>, vector<256x128xf32>
    tpu.vector_store %arg10[%c0_95, %c0_96], %81 {strides = array<i32>} : memref<256x128xf32, #tpu.memory_space<vmem>>, vector<256x128xf32>,
    %c0_97 = arith.constant 0 : index
    %c17 = arith.constant 17 : index
    %c0_98 = arith.constant 0 : index
    %83 = vector.load %arg1[%c0_97, %c17, %c0_98] : memref<1x320x56xbf16, #tpu.memory_space<vmem>>, vector<1x256x56xbf16>
    %84 = vector.shape_cast %83 : vector<1x256x56xbf16> to vector<256x56xbf16>
    %c0_99 = arith.constant 0 : index
    %c17_100 = arith.constant 17 : index
    %c0_101 = arith.constant 0 : index
    %85 = vector.load %arg2[%c0_99, %c17_100, %c0_101] : memref<1x320x160xbf16, #tpu.memory_space<vmem>>, vector<1x256x160xbf16>
    %86 = vector.shape_cast %85 : vector<1x256x160xbf16> to vector<256x160xbf16>
    %c0_102 = arith.constant 0 : index
    %c2_103 = arith.constant 2 : index
    %c0_104 = arith.constant 0 : index
    %c0_105 = arith.constant 0 : index
    %87 = vector.load %arg3[%c0_102, %c2_103, %c0_104, %c0_105] : memref<3x3x56x128xbf16, #tpu.memory_space<vmem>>, vector<1x1x56x128xbf16>
    %88 = vector.shape_cast %87 : vector<1x1x56x128xbf16> to vector<56x128xbf16>
    %cst_106 = arith.constant dense<0.000000e+00> : vector<256x128xf32>
    %89 = tpu.matmul %84, %88, %cst_106 {dimension_numbers = #tpu.dot_dimension_numbers<[1], [0], [0], [1], [0, 0, 1, 1], [], []>} : vector<256x56xbf16>, vector<56x128xbf16>, vector<256x128xf32> -> vector<256x128xf32>
    %c0_107 = arith.constant 0 : index
    %c2_108 = arith.constant 2 : index
    %c0_109 = arith.constant 0 : index
    %c0_110 = arith.constant 0 : index
    %90 = vector.load %arg4[%c0_107, %c2_108, %c0_109, %c0_110] : memref<3x3x160x128xbf16, #tpu.memory_space<vmem>>, vector<1x1x160x128xbf16>
    %91 = vector.shape_cast %90 : vector<1x1x160x128xbf16> to vector<160x128xbf16>
    %cst_111 = arith.constant dense<0.000000e+00> : vector<256x128xf32>
    %92 = tpu.matmul %86, %91, %cst_111 {dimension_numbers = #tpu.dot_dimension_numbers<[1], [0], [0], [1], [0, 0, 1, 1], [], []>} : vector<256x160xbf16>, vector<160x128xbf16>, vector<256x128xf32> -> vector<256x128xf32>
    %93 = arith.addf %89, %92 : vector<256x128xf32>
    %c0_112 = arith.constant 0 : index
    %c33 = arith.constant 33 : index
    %c0_113 = arith.constant 0 : index
    %94 = vector.load %arg1[%c0_112, %c33, %c0_113] : memref<1x320x56xbf16, #tpu.memory_space<vmem>>, vector<1x256x56xbf16>
    %95 = vector.shape_cast %94 : vector<1x256x56xbf16> to vector<256x56xbf16>
    %c0_114 = arith.constant 0 : index
    %c33_115 = arith.constant 33 : index
    %c0_116 = arith.constant 0 : index
    %96 = vector.load %arg2[%c0_114, %c33_115, %c0_116] : memref<1x320x160xbf16, #tpu.memory_space<vmem>>, vector<1x256x160xbf16>
    %97 = vector.shape_cast %96 : vector<1x256x160xbf16> to vector<256x160xbf16>
    %c1_117 = arith.constant 1 : index
    %c2_118 = arith.constant 2 : index
    %c0_119 = arith.constant 0 : index
    %c0_120 = arith.constant 0 : index
    %98 = vector.load %arg3[%c1_117, %c2_118, %c0_119, %c0_120] : memref<3x3x56x128xbf16, #tpu.memory_space<vmem>>, vector<1x1x56x128xbf16>
    %99 = vector.shape_cast %98 : vector<1x1x56x128xbf16> to vector<56x128xbf16>
    %cst_121 = arith.constant dense<0.000000e+00> : vector<256x128xf32>
    %100 = tpu.matmul %95, %99, %cst_121 {dimension_numbers = #tpu.dot_dimension_numbers<[1], [0], [0], [1], [0, 0, 1, 1], [], []>} : vector<256x56xbf16>, vector<56x128xbf16>, vector<256x128xf32> -> vector<256x128xf32>
    %c1_122 = arith.constant 1 : index
    %c2_123 = arith.constant 2 : index
    %c0_124 = arith.constant 0 : index
    %c0_125 = arith.constant 0 : index
    %101 = vector.load %arg4[%c1_122, %c2_123, %c0_124, %c0_125] : memref<3x3x160x128xbf16, #tpu.memory_space<vmem>>, vector<1x1x160x128xbf16>
    %102 = vector.shape_cast %101 : vector<1x1x160x128xbf16> to vector<160x128xbf16>
    %cst_126 = arith.constant dense<0.000000e+00> : vector<256x128xf32>
    %103 = tpu.matmul %97, %102, %cst_126 {dimension_numbers = #tpu.dot_dimension_numbers<[1], [0], [0], [1], [0, 0, 1, 1], [], []>} : vector<256x160xbf16>, vector<160x128xbf16>, vector<256x128xf32> -> vector<256x128xf32>
    %104 = arith.addf %100, %103 : vector<256x128xf32>
    %105 = arith.addf %93, %104 : vector<256x128xf32>
    %c0_127 = arith.constant 0 : index
    %c49 = arith.constant 49 : index
    %c0_128 = arith.constant 0 : index
    %106 = vector.load %arg1[%c0_127, %c49, %c0_128] : memref<1x320x56xbf16, #tpu.memory_space<vmem>>, vector<1x256x56xbf16>
    %107 = vector.shape_cast %106 : vector<1x256x56xbf16> to vector<256x56xbf16>
    %c0_129 = arith.constant 0 : index
    %c49_130 = arith.constant 49 : index
    %c0_131 = arith.constant 0 : index
    %108 = vector.load %arg2[%c0_129, %c49_130, %c0_131] : memref<1x320x160xbf16, #tpu.memory_space<vmem>>, vector<1x256x160xbf16>
    %109 = vector.shape_cast %108 : vector<1x256x160xbf16> to vector<256x160xbf16>
    %c2_132 = arith.constant 2 : index
    %c2_133 = arith.constant 2 : index
    %c0_134 = arith.constant 0 : index
    %c0_135 = arith.constant 0 : index
    %110 = vector.load %arg3[%c2_132, %c2_133, %c0_134, %c0_135] : memref<3x3x56x128xbf16, #tpu.memory_space<vmem>>, vector<1x1x56x128xbf16>
    %111 = vector.shape_cast %110 : vector<1x1x56x128xbf16> to vector<56x128xbf16>
    %cst_136 = arith.constant dense<0.000000e+00> : vector<256x128xf32>
    %112 = tpu.matmul %107, %111, %cst_136 {dimension_numbers = #tpu.dot_dimension_numbers<[1], [0], [0], [1], [0, 0, 1, 1], [], []>} : vector<256x56xbf16>, vector<56x128xbf16>, vector<256x128xf32> -> vector<256x128xf32>
    %c2_137 = arith.constant 2 : index
    %c2_138 = arith.constant 2 : index
    %c0_139 = arith.constant 0 : index
    %c0_140 = arith.constant 0 : index
    %113 = vector.load %arg4[%c2_137, %c2_138, %c0_139, %c0_140] : memref<3x3x160x128xbf16, #tpu.memory_space<vmem>>, vector<1x1x160x128xbf16>
    %114 = vector.shape_cast %113 : vector<1x1x160x128xbf16> to vector<160x128xbf16>
    %cst_141 = arith.constant dense<0.000000e+00> : vector<256x128xf32>
    %115 = tpu.matmul %109, %114, %cst_141 {dimension_numbers = #tpu.dot_dimension_numbers<[1], [0], [0], [1], [0, 0, 1, 1], [], []>} : vector<256x160xbf16>, vector<160x128xbf16>, vector<256x128xf32> -> vector<256x128xf32>
    %116 = arith.addf %112, %115 : vector<256x128xf32>
    %117 = arith.addf %105, %116 : vector<256x128xf32>
    %cst_142 = arith.constant 0.000000e+00 : f32
    %118 = vector.shape_cast %4 : vector<256x1xi1> to vector<256x1xi1>
    %119 = vector.broadcast %118 : vector<256x1xi1> to vector<256x128xi1>
    %120 = vector.broadcast %cst_142 : f32 to vector<256x128xf32>
    %121 = arith.select %119, %117, %120 : vector<256x128xi1>, vector<256x128xf32>
    %c0_143 = arith.constant 0 : index
    %c0_144 = arith.constant 0 : index
    %122 = vector.load %arg10[%c0_143, %c0_144] : memref<256x128xf32, #tpu.memory_space<vmem>>, vector<256x128xf32>
    %123 = arith.addf %122, %121 : vector<256x128xf32>
    %c0_145 = arith.constant 0 : index
    %c0_146 = arith.constant 0 : index
    %124 = vector.load %arg10[%c0_145, %c0_146] : memref<256x128xf32, #tpu.memory_space<vmem>>, vector<256x128xf32>
    tpu.vector_store %arg10[%c0_145, %c0_146], %123 {strides = array<i32>} : memref<256x128xf32, #tpu.memory_space<vmem>>, vector<256x128xf32>,
    %c0_147 = arith.constant 0 : index
    %c0_148 = arith.constant 0 : index
    %125 = vector.load %arg10[%c0_147, %c0_148] : memref<256x128xf32, #tpu.memory_space<vmem>>, vector<256x128xf32>
    %cst_149 = arith.constant dense<0.000000e+00> : vector<128xf32>
    %126 = vector.multi_reduction <add>, %125, %cst_149 [0] : vector<256x128xf32> to vector<128xf32>
    %127 = vector.shape_cast %126 : vector<128xf32> to vector<1x128xf32>
    %cst_150 = arith.constant 2.560000e+02 : f32
    %128 = vector.broadcast %cst_150 : f32 to vector<1x128xf32>
    %129 = arith.divf %127, %128 : vector<1x128xf32>
    %130 = arith.mulf %125, %125 : vector<256x128xf32>
    %cst_151 = arith.constant dense<0.000000e+00> : vector<128xf32>
    %131 = vector.multi_reduction <add>, %130, %cst_151 [0] : vector<256x128xf32> to vector<128xf32>
    %132 = vector.shape_cast %131 : vector<128xf32> to vector<1x128xf32>
    %cst_152 = arith.constant 2.560000e+02 : f32
    %133 = vector.broadcast %cst_152 : f32 to vector<1x128xf32>
    %134 = arith.divf %132, %133 : vector<1x128xf32>
    %135 = arith.mulf %129, %129 : vector<1x128xf32>
    %136 = arith.subf %134, %135 : vector<1x128xf32>
    %137 = vector.broadcast %129 : vector<1x128xf32> to vector<256x128xf32>
    %138 = arith.subf %125, %137 : vector<256x128xf32>
    %cst_153 = arith.constant 9.99999974E-6 : f32
    %139 = vector.broadcast %cst_153 : f32 to vector<1x128xf32>
    %140 = arith.addf %136, %139 : vector<1x128xf32>
    %141 = math.rsqrt %140 : vector<1x128xf32>
    %142 = vector.broadcast %141 : vector<1x128xf32> to vector<256x128xf32>
    %143 = arith.mulf %138, %142 : vector<256x128xf32>
    %cst_154 = arith.constant 0.000000e+00 : f32
    %144 = vector.broadcast %cst_154 : f32 to vector<256x128xf32>
    %145 = arith.maximumf %143, %144 : vector<256x128xf32>
    %cst_155 = arith.constant 0.000000e+00 : bf16
    %146 = vector.broadcast %cst_155 : bf16 to vector<32x128xbf16>
    %c0_156 = arith.constant 0 : index
    %c0_157 = arith.constant 0 : index
    %147 = vector.load %arg11[%c0_156, %c0_157] : memref<320x128xbf16, #tpu.memory_space<vmem>>, vector<32x128xbf16>
    tpu.vector_store %arg11[%c0_156, %c0_157], %146 {strides = array<i32>} : memref<320x128xbf16, #tpu.memory_space<vmem>>, vector<32x128xbf16>,
    %c288 = arith.constant 288 : index
    %c0_158 = arith.constant 0 : index
    %148 = vector.load %arg11[%c288, %c0_158] : memref<320x128xbf16, #tpu.memory_space<vmem>>, vector<32x128xbf16>
    tpu.vector_store %arg11[%c288, %c0_158], %146 {strides = array<i32>} : memref<320x128xbf16, #tpu.memory_space<vmem>>, vector<32x128xbf16>,
    %149 = arith.truncf %145 : vector<256x128xf32> to vector<256x128xbf16>
    %c32_159 = arith.constant 32 : index
    %c0_160 = arith.constant 0 : index
    %150 = vector.load %arg11[%c32_159, %c0_160] : memref<320x128xbf16, #tpu.memory_space<vmem>>, vector<256x128xbf16>
    tpu.vector_store %arg11[%c32_159, %c0_160], %149 {strides = array<i32>} : memref<320x128xbf16, #tpu.memory_space<vmem>>, vector<256x128xbf16>,
    %c15_161 = arith.constant 15 : index
    %c0_162 = arith.constant 0 : index
    %151 = vector.load %arg11[%c15_161, %c0_162] : memref<320x128xbf16, #tpu.memory_space<vmem>>, vector<256x128xbf16>
    %c0_163 = arith.constant 0 : index
    %c0_164 = arith.constant 0 : index
    %c0_165 = arith.constant 0 : index
    %c0_166 = arith.constant 0 : index
    %152 = vector.load %arg5[%c0_163, %c0_164, %c0_165, %c0_166] : memref<3x3x128x128xbf16, #tpu.memory_space<vmem>>, vector<1x1x128x128xbf16>
    %153 = vector.shape_cast %152 : vector<1x1x128x128xbf16> to vector<128x128xbf16>
    %cst_167 = arith.constant dense<0.000000e+00> : vector<256x128xf32>
    %154 = tpu.matmul %151, %153, %cst_167 {dimension_numbers = #tpu.dot_dimension_numbers<[1], [0], [0], [1], [0, 0, 1, 1], [], []>} : vector<256x128xbf16>, vector<128x128xbf16>, vector<256x128xf32> -> vector<256x128xf32>
    %c31_168 = arith.constant 31 : index
    %c0_169 = arith.constant 0 : index
    %155 = vector.load %arg11[%c31_168, %c0_169] : memref<320x128xbf16, #tpu.memory_space<vmem>>, vector<256x128xbf16>
    %c1_170 = arith.constant 1 : index
    %c0_171 = arith.constant 0 : index
    %c0_172 = arith.constant 0 : index
    %c0_173 = arith.constant 0 : index
    %156 = vector.load %arg5[%c1_170, %c0_171, %c0_172, %c0_173] : memref<3x3x128x128xbf16, #tpu.memory_space<vmem>>, vector<1x1x128x128xbf16>
    %157 = vector.shape_cast %156 : vector<1x1x128x128xbf16> to vector<128x128xbf16>
    %cst_174 = arith.constant dense<0.000000e+00> : vector<256x128xf32>
    %158 = tpu.matmul %155, %157, %cst_174 {dimension_numbers = #tpu.dot_dimension_numbers<[1], [0], [0], [1], [0, 0, 1, 1], [], []>} : vector<256x128xbf16>, vector<128x128xbf16>, vector<256x128xf32> -> vector<256x128xf32>
    %159 = arith.addf %154, %158 : vector<256x128xf32>
    %c47_175 = arith.constant 47 : index
    %c0_176 = arith.constant 0 : index
    %160 = vector.load %arg11[%c47_175, %c0_176] : memref<320x128xbf16, #tpu.memory_space<vmem>>, vector<256x128xbf16>
    %c2_177 = arith.constant 2 : index
    %c0_178 = arith.constant 0 : index
    %c0_179 = arith.constant 0 : index
    %c0_180 = arith.constant 0 : index
    %161 = vector.load %arg5[%c2_177, %c0_178, %c0_179, %c0_180] : memref<3x3x128x128xbf16, #tpu.memory_space<vmem>>, vector<1x1x128x128xbf16>
    %162 = vector.shape_cast %161 : vector<1x1x128x128xbf16> to vector<128x128xbf16>
    %cst_181 = arith.constant dense<0.000000e+00> : vector<256x128xf32>
    %163 = tpu.matmul %160, %162, %cst_181 {dimension_numbers = #tpu.dot_dimension_numbers<[1], [0], [0], [1], [0, 0, 1, 1], [], []>} : vector<256x128xbf16>, vector<128x128xbf16>, vector<256x128xf32> -> vector<256x128xf32>
    %164 = arith.addf %159, %163 : vector<256x128xf32>
    %cst_182 = arith.constant 0.000000e+00 : f32
    %165 = vector.shape_cast %2 : vector<256x1xi1> to vector<256x1xi1>
    %166 = vector.broadcast %165 : vector<256x1xi1> to vector<256x128xi1>
    %167 = vector.broadcast %cst_182 : f32 to vector<256x128xf32>
    %168 = arith.select %166, %164, %167 : vector<256x128xi1>, vector<256x128xf32>
    %c0_183 = arith.constant 0 : index
    %c0_184 = arith.constant 0 : index
    %169 = vector.load %arg10[%c0_183, %c0_184] : memref<256x128xf32, #tpu.memory_space<vmem>>, vector<256x128xf32>
    tpu.vector_store %arg10[%c0_183, %c0_184], %168 {strides = array<i32>} : memref<256x128xf32, #tpu.memory_space<vmem>>, vector<256x128xf32>,
    %c16_185 = arith.constant 16 : index
    %c0_186 = arith.constant 0 : index
    %170 = vector.load %arg11[%c16_185, %c0_186] : memref<320x128xbf16, #tpu.memory_space<vmem>>, vector<256x128xbf16>
    %c0_187 = arith.constant 0 : index
    %c1_188 = arith.constant 1 : index
    %c0_189 = arith.constant 0 : index
    %c0_190 = arith.constant 0 : index
    %171 = vector.load %arg5[%c0_187, %c1_188, %c0_189, %c0_190] : memref<3x3x128x128xbf16, #tpu.memory_space<vmem>>, vector<1x1x128x128xbf16>
    %172 = vector.shape_cast %171 : vector<1x1x128x128xbf16> to vector<128x128xbf16>
    %cst_191 = arith.constant dense<0.000000e+00> : vector<256x128xf32>
    %173 = tpu.matmul %170, %172, %cst_191 {dimension_numbers = #tpu.dot_dimension_numbers<[1], [0], [0], [1], [0, 0, 1, 1], [], []>} : vector<256x128xbf16>, vector<128x128xbf16>, vector<256x128xf32> -> vector<256x128xf32>
    %c32_192 = arith.constant 32 : index
    %c0_193 = arith.constant 0 : index
    %174 = vector.load %arg11[%c32_192, %c0_193] : memref<320x128xbf16, #tpu.memory_space<vmem>>, vector<256x128xbf16>
    %c1_194 = arith.constant 1 : index
    %c1_195 = arith.constant 1 : index
    %c0_196 = arith.constant 0 : index
    %c0_197 = arith.constant 0 : index
    %175 = vector.load %arg5[%c1_194, %c1_195, %c0_196, %c0_197] : memref<3x3x128x128xbf16, #tpu.memory_space<vmem>>, vector<1x1x128x128xbf16>
    %176 = vector.shape_cast %175 : vector<1x1x128x128xbf16> to vector<128x128xbf16>
    %cst_198 = arith.constant dense<0.000000e+00> : vector<256x128xf32>
    %177 = tpu.matmul %174, %176, %cst_198 {dimension_numbers = #tpu.dot_dimension_numbers<[1], [0], [0], [1], [0, 0, 1, 1], [], []>} : vector<256x128xbf16>, vector<128x128xbf16>, vector<256x128xf32> -> vector<256x128xf32>
    %178 = arith.addf %173, %177 : vector<256x128xf32>
    %c48_199 = arith.constant 48 : index
    %c0_200 = arith.constant 0 : index
    %179 = vector.load %arg11[%c48_199, %c0_200] : memref<320x128xbf16, #tpu.memory_space<vmem>>, vector<256x128xbf16>
    %c2_201 = arith.constant 2 : index
    %c1_202 = arith.constant 1 : index
    %c0_203 = arith.constant 0 : index
    %c0_204 = arith.constant 0 : index
    %180 = vector.load %arg5[%c2_201, %c1_202, %c0_203, %c0_204] : memref<3x3x128x128xbf16, #tpu.memory_space<vmem>>, vector<1x1x128x128xbf16>
    %181 = vector.shape_cast %180 : vector<1x1x128x128xbf16> to vector<128x128xbf16>
    %cst_205 = arith.constant dense<0.000000e+00> : vector<256x128xf32>
    %182 = tpu.matmul %179, %181, %cst_205 {dimension_numbers = #tpu.dot_dimension_numbers<[1], [0], [0], [1], [0, 0, 1, 1], [], []>} : vector<256x128xbf16>, vector<128x128xbf16>, vector<256x128xf32> -> vector<256x128xf32>
    %183 = arith.addf %178, %182 : vector<256x128xf32>
    %c0_206 = arith.constant 0 : index
    %c0_207 = arith.constant 0 : index
    %184 = vector.load %arg10[%c0_206, %c0_207] : memref<256x128xf32, #tpu.memory_space<vmem>>, vector<256x128xf32>
    %185 = arith.addf %184, %183 : vector<256x128xf32>
    %c0_208 = arith.constant 0 : index
    %c0_209 = arith.constant 0 : index
    %186 = vector.load %arg10[%c0_208, %c0_209] : memref<256x128xf32, #tpu.memory_space<vmem>>, vector<256x128xf32>
    tpu.vector_store %arg10[%c0_208, %c0_209], %185 {strides = array<i32>} : memref<256x128xf32, #tpu.memory_space<vmem>>, vector<256x128xf32>,
    %c17_210 = arith.constant 17 : index
    %c0_211 = arith.constant 0 : index
    %187 = vector.load %arg11[%c17_210, %c0_211] : memref<320x128xbf16, #tpu.memory_space<vmem>>, vector<256x128xbf16>
    %c0_212 = arith.constant 0 : index
    %c2_213 = arith.constant 2 : index
    %c0_214 = arith.constant 0 : index
    %c0_215 = arith.constant 0 : index
    %188 = vector.load %arg5[%c0_212, %c2_213, %c0_214, %c0_215] : memref<3x3x128x128xbf16, #tpu.memory_space<vmem>>, vector<1x1x128x128xbf16>
    %189 = vector.shape_cast %188 : vector<1x1x128x128xbf16> to vector<128x128xbf16>
    %cst_216 = arith.constant dense<0.000000e+00> : vector<256x128xf32>
    %190 = tpu.matmul %187, %189, %cst_216 {dimension_numbers = #tpu.dot_dimension_numbers<[1], [0], [0], [1], [0, 0, 1, 1], [], []>} : vector<256x128xbf16>, vector<128x128xbf16>, vector<256x128xf32> -> vector<256x128xf32>
    %c33_217 = arith.constant 33 : index
    %c0_218 = arith.constant 0 : index
    %191 = vector.load %arg11[%c33_217, %c0_218] : memref<320x128xbf16, #tpu.memory_space<vmem>>, vector<256x128xbf16>
    %c1_219 = arith.constant 1 : index
    %c2_220 = arith.constant 2 : index
    %c0_221 = arith.constant 0 : index
    %c0_222 = arith.constant 0 : index
    %192 = vector.load %arg5[%c1_219, %c2_220, %c0_221, %c0_222] : memref<3x3x128x128xbf16, #tpu.memory_space<vmem>>, vector<1x1x128x128xbf16>
    %193 = vector.shape_cast %192 : vector<1x1x128x128xbf16> to vector<128x128xbf16>
    %cst_223 = arith.constant dense<0.000000e+00> : vector<256x128xf32>
    %194 = tpu.matmul %191, %193, %cst_223 {dimension_numbers = #tpu.dot_dimension_numbers<[1], [0], [0], [1], [0, 0, 1, 1], [], []>} : vector<256x128xbf16>, vector<128x128xbf16>, vector<256x128xf32> -> vector<256x128xf32>
    %195 = arith.addf %190, %194 : vector<256x128xf32>
    %c49_224 = arith.constant 49 : index
    %c0_225 = arith.constant 0 : index
    %196 = vector.load %arg11[%c49_224, %c0_225] : memref<320x128xbf16, #tpu.memory_space<vmem>>, vector<256x128xbf16>
    %c2_226 = arith.constant 2 : index
    %c2_227 = arith.constant 2 : index
    %c0_228 = arith.constant 0 : index
    %c0_229 = arith.constant 0 : index
    %197 = vector.load %arg5[%c2_226, %c2_227, %c0_228, %c0_229] : memref<3x3x128x128xbf16, #tpu.memory_space<vmem>>, vector<1x1x128x128xbf16>
    %198 = vector.shape_cast %197 : vector<1x1x128x128xbf16> to vector<128x128xbf16>
    %cst_230 = arith.constant dense<0.000000e+00> : vector<256x128xf32>
    %199 = tpu.matmul %196, %198, %cst_230 {dimension_numbers = #tpu.dot_dimension_numbers<[1], [0], [0], [1], [0, 0, 1, 1], [], []>} : vector<256x128xbf16>, vector<128x128xbf16>, vector<256x128xf32> -> vector<256x128xf32>
    %200 = arith.addf %195, %199 : vector<256x128xf32>
    %cst_231 = arith.constant 0.000000e+00 : f32
    %201 = vector.shape_cast %4 : vector<256x1xi1> to vector<256x1xi1>
    %202 = vector.broadcast %201 : vector<256x1xi1> to vector<256x128xi1>
    %203 = vector.broadcast %cst_231 : f32 to vector<256x128xf32>
    %204 = arith.select %202, %200, %203 : vector<256x128xi1>, vector<256x128xf32>
    %c0_232 = arith.constant 0 : index
    %c0_233 = arith.constant 0 : index
    %205 = vector.load %arg10[%c0_232, %c0_233] : memref<256x128xf32, #tpu.memory_space<vmem>>, vector<256x128xf32>
    %206 = arith.addf %205, %204 : vector<256x128xf32>
    %c0_234 = arith.constant 0 : index
    %c0_235 = arith.constant 0 : index
    %207 = vector.load %arg10[%c0_234, %c0_235] : memref<256x128xf32, #tpu.memory_space<vmem>>, vector<256x128xf32>
    tpu.vector_store %arg10[%c0_234, %c0_235], %206 {strides = array<i32>} : memref<256x128xf32, #tpu.memory_space<vmem>>, vector<256x128xf32>,
    %c0_236 = arith.constant 0 : index
    %c0_237 = arith.constant 0 : index
    %208 = vector.load %arg10[%c0_236, %c0_237] : memref<256x128xf32, #tpu.memory_space<vmem>>, vector<256x128xf32>
    %cst_238 = arith.constant dense<0.000000e+00> : vector<128xf32>
    %209 = vector.multi_reduction <add>, %208, %cst_238 [0] : vector<256x128xf32> to vector<128xf32>
    %210 = vector.shape_cast %209 : vector<128xf32> to vector<1x128xf32>
    %cst_239 = arith.constant 2.560000e+02 : f32
    %211 = vector.broadcast %cst_239 : f32 to vector<1x128xf32>
    %212 = arith.divf %210, %211 : vector<1x128xf32>
    %213 = arith.mulf %208, %208 : vector<256x128xf32>
    %cst_240 = arith.constant dense<0.000000e+00> : vector<128xf32>
    %214 = vector.multi_reduction <add>, %213, %cst_240 [0] : vector<256x128xf32> to vector<128xf32>
    %215 = vector.shape_cast %214 : vector<128xf32> to vector<1x128xf32>
    %cst_241 = arith.constant 2.560000e+02 : f32
    %216 = vector.broadcast %cst_241 : f32 to vector<1x128xf32>
    %217 = arith.divf %215, %216 : vector<1x128xf32>
    %218 = arith.mulf %212, %212 : vector<1x128xf32>
    %219 = arith.subf %217, %218 : vector<1x128xf32>
    %220 = vector.broadcast %212 : vector<1x128xf32> to vector<256x128xf32>
    %221 = arith.subf %208, %220 : vector<256x128xf32>
    %cst_242 = arith.constant 9.99999974E-6 : f32
    %222 = vector.broadcast %cst_242 : f32 to vector<1x128xf32>
    %223 = arith.addf %219, %222 : vector<1x128xf32>
    %224 = math.rsqrt %223 : vector<1x128xf32>
    %225 = vector.broadcast %224 : vector<1x128xf32> to vector<256x128xf32>
    %226 = arith.mulf %221, %225 : vector<256x128xf32>
    %cst_243 = arith.constant 0.000000e+00 : f32
    %227 = vector.broadcast %cst_243 : f32 to vector<256x128xf32>
    %228 = arith.maximumf %226, %227 : vector<256x128xf32>
    %c0_244 = arith.constant 0 : index
    %c0_245 = arith.constant 0 : index
    %229 = vector.load %arg6[%c0_244, %c0_245] : memref<8x128xf32, #tpu.memory_space<vmem>>, vector<8x128xf32>
    %cst_246 = arith.constant dense<0.000000e+00> : vector<8x256xf32>
    %230 = tpu.matmul %229, %228, %cst_246 {dimension_numbers = #tpu.dot_dimension_numbers<[1], [1], [0], [0], [0, 0, 1, 0], [], []>} : vector<8x128xf32>, vector<256x128xf32>, vector<8x256xf32> -> vector<8x256xf32>
    %c0_247 = arith.constant 0 : index
    %c0_248 = arith.constant 0 : index
    %231 = vector.load %arg7[%c0_247, %c0_248] : memref<8x1xf32, #tpu.memory_space<vmem>>, vector<8x1xf32>
    %232 = vector.broadcast %231 : vector<8x1xf32> to vector<8x256xf32>
    %233 = arith.addf %230, %232 : vector<8x256xf32>
    %c0_249 = arith.constant 0 : index
    %c0_250 = arith.constant 0 : index
    %c0_251 = arith.constant 0 : index
    %234 = vector.load %arg9[%c0_249, %c0_250, %c0_251] : memref<1x8x256xf32, #tpu.memory_space<vmem>>, vector<1x8x256xf32>
    %235 = vector.shape_cast %234 : vector<1x8x256xf32> to vector<8x256xf32>
    %236 = vector.shape_cast %233 : vector<8x256xf32> to vector<1x8x256xf32>
    tpu.vector_store %arg9[%c0_249, %c0_250, %c0_251], %236 {strides = array<i32>} : memref<1x8x256xf32, #tpu.memory_space<vmem>>, vector<1x8x256xf32>,
    return
  }
  func.func @transform_0(%arg0: i32) -> (i32, i32, i32) {
    %c0_i32 = arith.constant 0 : i32
    %c0_i32_0 = arith.constant 0 : i32
    %c0_i32_1 = arith.constant 0 : i32
    return %arg0, %c0_i32, %c0_i32_0 : i32, i32, i32
  }
  func.func @transform_1(%arg0: i32) -> (i32, i32, i32) {
    %c0_i32 = arith.constant 0 : i32
    %c0_i32_0 = arith.constant 0 : i32
    %c0_i32_1 = arith.constant 0 : i32
    return %arg0, %c0_i32, %c0_i32_0 : i32, i32, i32
  }
  func.func @transform_2(%arg0: i32) -> (i32, i32, i32, i32) {
    %c0_i32 = arith.constant 0 : i32
    %c0_i32_0 = arith.constant 0 : i32
    %c0_i32_1 = arith.constant 0 : i32
    %c0_i32_2 = arith.constant 0 : i32
    %c0_i32_3 = arith.constant 0 : i32
    return %c0_i32, %c0_i32_0, %c0_i32_1, %c0_i32_2 : i32, i32, i32, i32
  }
  func.func @transform_3(%arg0: i32) -> (i32, i32, i32, i32) {
    %c0_i32 = arith.constant 0 : i32
    %c0_i32_0 = arith.constant 0 : i32
    %c0_i32_1 = arith.constant 0 : i32
    %c0_i32_2 = arith.constant 0 : i32
    %c0_i32_3 = arith.constant 0 : i32
    return %c0_i32, %c0_i32_0, %c0_i32_1, %c0_i32_2 : i32, i32, i32, i32
  }
  func.func @transform_4(%arg0: i32) -> (i32, i32, i32, i32) {
    %c0_i32 = arith.constant 0 : i32
    %c0_i32_0 = arith.constant 0 : i32
    %c0_i32_1 = arith.constant 0 : i32
    %c0_i32_2 = arith.constant 0 : i32
    %c0_i32_3 = arith.constant 0 : i32
    return %c0_i32, %c0_i32_0, %c0_i32_1, %c0_i32_2 : i32, i32, i32, i32
  }
  func.func @transform_5(%arg0: i32) -> (i32, i32) {
    %c0_i32 = arith.constant 0 : i32
    %c0_i32_0 = arith.constant 0 : i32
    %c0_i32_1 = arith.constant 0 : i32
    return %c0_i32, %c0_i32_0 : i32, i32
  }
  func.func @transform_6(%arg0: i32) -> (i32, i32) {
    %c0_i32 = arith.constant 0 : i32
    %c0_i32_0 = arith.constant 0 : i32
    %c0_i32_1 = arith.constant 0 : i32
    return %c0_i32, %c0_i32_0 : i32, i32
  }
  func.func @transform_7(%arg0: i32) -> (i32, i32) {
    %c0_i32 = arith.constant 0 : i32
    %c0_i32_0 = arith.constant 0 : i32
    %c0_i32_1 = arith.constant 0 : i32
    return %c0_i32, %c0_i32_0 : i32, i32
  }
  func.func @transform_8(%arg0: i32) -> (i32, i32, i32) {
    %c0_i32 = arith.constant 0 : i32
    %c0_i32_0 = arith.constant 0 : i32
    %c0_i32_1 = arith.constant 0 : i32
    return %arg0, %c0_i32, %c0_i32_0 : i32, i32, i32
  }
}

</mosaic_0001>

<bundles_post_ra>
// kernel: tpu_custom_call.1
= control target key start
LH: loop header
LB: loop body
LE: loop exit
PB: predicated region body
PF: predicated region fallthrough
CT: control target
= control target key end

     0   :  { %s24849_s0 = inlined_call_operand.hbm [shape: bf16[2,320,56], index: 0, kind: input, shape index: {}]   ;;  %s24850_s1 = inlined_call_operand.hbm [shape: bf16[2,320,160], index: 1, kind: input, shape index: {}]   ;;  %s24851_s2 = inlined_call_operand.hbm [shape: bf16[3,3,56,128], index: 2, kind: input, shape index: {}]   ;;  %s24852_s3 = inlined_call_operand.hbm [shape: bf16[3,3,160,128], index: 3, kind: input, shape index: {}]   ;;  %s24853_s4 = inlined_call_operand.hbm [shape: bf16[3,3,128,128], index: 4, kind: input, shape index: {}]   ;;  %s24854_s5 = inlined_call_operand.hbm [shape: f32[8,128], index: 5, kind: input, shape index: {}]   ;;  %s24855_s6 = inlined_call_operand.hbm [shape: f32[8,1], index: 6, kind: input, shape index: {}]   ;;  %s24856_s7 = inlined_call_operand.hbm [shape: f32[256,1], index: 7, kind: input, shape index: {}]   ;;  %s24857_s8 = inlined_call_operand.hbm [shape: f32[2,8,256], index: 8, kind: output, shape index: {}]  }
   0x1   :  { %25004 = sst [smem:[#allocation149_spill]] %s24849_s0 }
   0x2   :  { %25005 = sst [smem:[#allocation150_spill]] %s24851_s2 }
   0x3   :  { %25006 = sst [smem:[#allocation151_spill]] %s24852_s3 }
   0x4   :  { %25007 = sst [smem:[#allocation152_spill]] %s24853_s4 }
   0x5   :  { %25008 = sst [smem:[#allocation153_spill]] %s24854_s5 }
   0x6   :  { %25009 = sst [smem:[#allocation154_spill]] %s24855_s6 }
   0x7   :  { %13 = vsyncpa [#allocation5], 0 }
   0x8   :  { %15 = vsyncpa [#allocation5 + $0x1], 0 }
   0x9   :  { %16 = vsyncpa [#allocation8], 0 }
   0xa   :  { %18 = vsyncpa [#allocation8 + $0x1], 0 }
   0xb   :  { %19 = vsyncpa [#allocation11], 0 }
   0xc   :  { %20 = vsyncpa [#allocation14], 0 }
   0xd   :  { %21 = vsyncpa [#allocation17], 0 }
   0xe   :  { %22 = vsyncpa [#allocation6], 0 }
   0xf   :  { %24 = vsyncpa [#allocation6 + $0x1], 0  ;;  %s18889_s27 = smov 0   ;;  %s18891_s28 = smov 0  }
  0x10   :  { %s18893_s29 = smov 0   ;;  %s18895_s30 = smov 0  }
  0x11 LB: > { %s18830_s9 = smov [#allocation9]   ;;  %s18910_s11 = sadd.s32 4294967295, %s18828_s30   ;;  %s18828_s30 = sphi %s18895_s30, %s25854_s30   ;;  %s18824_s29 = sphi %s18893_s29, %s25853_s29   ;;  %s18820_s28 = sphi %s18891_s28, %s25852_s28   ;;  %s18816_s27 = sphi %s18889_s27, %s25851_s27  }
  0x12   : > { %s251_s10 = sshll.u32 %s18830_s9, 4  ;;  %p15242_p0 = scmp.ge.s32.totalorder %s18828_s30, 1  ;;  %s18915_s10 = int_to_ptr.vmem [resolvable:$true] %s251_s10 }
  0x13   : > { %p24860_p1 = scmp.eq.s32.totalorder %s18910_s11, 0  ;;  %p239_p2 = scmp.lt.s32.totalorder %s18828_s30, 3 }
  0x14   : > { %s18831_s13 = smov [#allocation10]   ;;  %s18832_s16 = smov [#allocation13]  }
  0x15   : > { %p18917_p3 = pnand %p15242_p0, %p239_p2  ;;  %s264_s14 = sshll.u32 %s18831_s13, 4  ;;  %s18930_s14 = int_to_ptr.vmem [resolvable:$true] %s264_s14 }
  0x16   : > { %s291_s17 = sshll.u32 %s18832_s16, 4  ;;  %s25012_s2 = sld [smem:[#allocation150_spill]]  ;;  %s18932_s17 = int_to_ptr.vmem [resolvable:$true] %s291_s17 }
  0x17   : > { %s25010_s12 = scalar_select %p18917_p3, 1, 0 }
  0x18   : > { %p17713_p5 = pneg %p18917_p3 }
  0x1a   : > { %p18926_p6 = pnand %p17713_p5, %p24860_p1 }
  0x1c   : > { %s18514_s20 = scalar_lea.hbm %s25012_s2, 4032  ;;  %p18942_p8 = pneg %p18926_p6 }
  0x1d   : > { %p18515_p7 = scmp.ne.s32.totalorder %s25012_s2, %s18514_s20  ;;  %p18521_p11 = scmp.lt.u32.totalorder %s18514_s20, %s25012_s2 }
  0x1f   : > { %p18517_p9 = pnand %p18942_p8, %p18515_p7 }
  0x21   : > { %p18518_p10 = pneg %p18517_p9 }
  0x23   : > { %p18523_p12 = pnand %p18521_p11, %p18518_p10 }
  0x25   : > { %18526 = shalt.err (!%p18523_p12)
}
  0x26   : > { %s18527_s26 = scalar_lea.vmem %s18915_s10, 4032  ;;  %p18535_p5 = scmp.lt.s32.totalorder %s18915_s10, %s18915_s10 }
  0x27   : > { %p18528_p13 = scmp.ne.s32.totalorder %s18915_s10, %s18527_s26  ;;  %p18536_p4 = scmp.lt.s32.totalorder %s18527_s26, %s18527_s26 }
  0x29   : > { %p18530_p0 = pnand %p18528_p13, %p18942_p8  ;;  %p18537_p7 = por %p18536_p4, %p18535_p5 }
  0x2b   : > { %p18531_p2 = pneg %p18530_p0 }
  0x2d   : > { %p18538_p9 = pnand %p18537_p7, %p18531_p2 }
  0x2f   : > { %18541 = shalt.err (!%p18538_p9)
}
  0x30   : > { %s24858_s9 = smov 64   ;;  %s24864_s13 = smov 4  }
  0x31   : > { %17716 = dma.hbm_to_vmem [thread:$0]  (!%p18926_p6), %s25012_s2, 4032, %s18915_s10, [#allocation8], %s24858_s9, %s24858_s9, %s24864_s13  }
  0x32   : > { %s25014_s3 = sld [smem:[#allocation151_spill]] }
  0x38   : > { %s18542_s21 = scalar_lea.hbm %s25014_s3, 11520 }
  0x39   : > { %p18543_p4 = scmp.ne.s32.totalorder %s25014_s3, %s18542_s21  ;;  %p18549_p12 = scmp.lt.u32.totalorder %s18542_s21, %s25014_s3 }
  0x3b   : > { %p18545_p10 = pnand %p18543_p4, %p18942_p8 }
  0x3d   : > { %p18546_p11 = pneg %p18545_p10 }
  0x3f   : > { %p18551_p13 = pnand %p18549_p12, %p18546_p11 }
  0x41   : > { %18554 = shalt.err (!%p18551_p13)
}
  0x42   : > { %s18555_s10 = scalar_lea.vmem %s18930_s14, 11520  ;;  %p18563_p7 = scmp.lt.s32.totalorder %s18930_s14, %s18930_s14 }
  0x43   : > { %p18556_p0 = scmp.ne.s32.totalorder %s18930_s14, %s18555_s10  ;;  %p18564_p9 = scmp.lt.s32.totalorder %s18555_s10, %s18555_s10 }
  0x45   : > { %p18558_p2 = pnand %p18556_p0, %p18942_p8  ;;  %p18565_p4 = por %p18564_p9, %p18563_p7 }
  0x47   : > { %p18559_p5 = pneg %p18558_p2 }
  0x49   : > { %p18566_p10 = pnand %p18565_p4, %p18559_p5 }
  0x4b   : > { %18569 = shalt.err (!%p18566_p10)
}
  0x4c   : > { %17719 = dma.hbm_to_vmem [thread:$0]  (!%p18926_p6), %s25014_s3, 11520, %s18930_s14, [#allocation11], %s24858_s9, %s24858_s9, %s24864_s13  }
  0x4d   : > { %s25015_s5 = sld [smem:[#allocation153_spill]] }
  0x53   : > { %s18570_s21 = scalar_lea.hbm %s25015_s5, 128 }
  0x54   : > { %p18571_p11 = scmp.ne.s32.totalorder %s25015_s5, %s18570_s21  ;;  %p18577_p0 = scmp.lt.u32.totalorder %s18570_s21, %s25015_s5 }
  0x56   : > { %p18573_p12 = pnand %p18571_p11, %p18942_p8 }
  0x58   : > { %p18574_p13 = pneg %p18573_p12 }
  0x5a   : > { %p18579_p2 = pnand %p18577_p0, %p18574_p13 }
  0x5c   : > { %18582 = shalt.err (!%p18579_p2)
}
  0x5d   : > { %s18583_s14 = scalar_lea.vmem %s18932_s17, 128  ;;  %p18591_p4 = scmp.lt.s32.totalorder %s18932_s17, %s18932_s17 }
  0x5e   : > { %p18584_p5 = scmp.ne.s32.totalorder %s18932_s17, %s18583_s14  ;;  %p18592_p10 = scmp.lt.s32.totalorder %s18583_s14, %s18583_s14 }
  0x60   : > { %p18586_p7 = pnand %p18584_p5, %p18942_p8  ;;  %p18593_p11 = por %p18592_p10, %p18591_p4 }
  0x62   : > { %p18587_p9 = pneg %p18586_p7 }
  0x64   : > { %p18594_p12 = pnand %p18593_p11, %p18587_p9 }
  0x66   : > { %18597 = shalt.err (!%p18594_p12)
}
  0x67   : > { %17725 = dma.hbm_to_vmem [thread:$0]  (!%p18926_p6), %s25015_s5, 128, %s18932_s17, [#allocation14]  }
  0x68   : > { %s18835_s18 = smov [#allocation12]   ;;  %s18836_s20 = smov [#allocation15]  }
  0x69   : > { %s277_s19 = sshll.u32 %s18835_s18, 4  ;;  %s302_s21 = sshll.u32 %s18836_s20, 4  ;;  %s278_s19 = int_to_ptr.vmem [resolvable:$true] %s277_s19  ;;  %s303_s21 = int_to_ptr.vmem [resolvable:$true] %s302_s21 }
  0x6a   : > { %s25016_s4 = sld [smem:[#allocation152_spill]] }
  0x70   : > { %s18598_s25 = scalar_lea.hbm %s25016_s4, 9216 }
  0x71   : > { %p18599_p13 = scmp.ne.s32.totalorder %s25016_s4, %s18598_s25  ;;  %p18605_p5 = scmp.lt.u32.totalorder %s18598_s25, %s25016_s4 }
  0x73   : > { %p18601_p0 = pnand %p18599_p13, %p18942_p8 }
  0x75   : > { %p18602_p2 = pneg %p18601_p0 }
  0x77   : > { %p18607_p7 = pnand %p18605_p5, %p18602_p2 }
  0x79   : > { %18610 = shalt.err (!%p18607_p7)
}
  0x7a   : > { %s18611_s17 = scalar_lea.vmem %s278_s19, 9216  ;;  %p18619_p11 = scmp.lt.s32.totalorder %s278_s19, %s278_s19 }
  0x7b   : > { %p18612_p9 = scmp.ne.s32.totalorder %s278_s19, %s18611_s17  ;;  %p18620_p12 = scmp.lt.s32.totalorder %s18611_s17, %s18611_s17 }
  0x7d   : > { %p18614_p4 = pnand %p18612_p9, %p18942_p8  ;;  %p18621_p1 = por %p18620_p12, %p18619_p11 }
  0x7f   : > { %p18615_p10 = pneg %p18614_p4 }
  0x81   : > { %p18622_p3 = pnand %p18621_p1, %p18615_p10 }
  0x83   : > { %18625 = shalt.err (!%p18622_p3)
}
  0x84   : > { %s25017_s16 = smov 64   ;;  %s25018_s6 = sld [smem:[#allocation154_spill]] }
  0x85   : > { %17722 = dma.hbm_to_vmem [thread:$0]  (!%p18926_p6), %s25016_s4, 9216, %s278_s19, [#allocation11], %s25017_s16, %s25017_s16, %s24864_s13  }
  0x8a   : > { %s18626_s24 = scalar_lea.hbm %s25018_s6, 128 }
  0x8b   : > { %p18627_p1 = scmp.ne.s32.totalorder %s25018_s6, %s18626_s24  ;;  %p18633_p0 = scmp.lt.u32.totalorder %s18626_s24, %s25018_s6 }
  0x8d   : > { %p18629_p3 = pnand %p18627_p1, %p18942_p8 }
  0x8f   : > { %p18630_p13 = pneg %p18629_p3 }
  0x91   : > { %p18635_p2 = pnand %p18633_p0, %p18630_p13 }
  0x93   : > { %18638 = shalt.err (!%p18635_p2)
}
  0x94   : > { %s18639_s17 = scalar_lea.vmem %s303_s21, 128  ;;  %p18647_p4 = scmp.lt.s32.totalorder %s303_s21, %s303_s21 }
  0x95   : > { %p18640_p5 = scmp.ne.s32.totalorder %s303_s21, %s18639_s17  ;;  %p18648_p10 = scmp.lt.s32.totalorder %s18639_s17, %s18639_s17 }
  0x97   : > { %p18642_p7 = pnand %p18640_p5, %p18942_p8  ;;  %p18649_p11 = por %p18648_p10, %p18647_p4 }
  0x99   : > { %p18643_p9 = pneg %p18642_p7 }
  0x9b   : > { %p18650_p12 = pnand %p18649_p11, %p18643_p9 }
  0x9d   : > { %18653 = shalt.err (!%p18650_p12)
}
  0x9e   : > { %17728 = dma.hbm_to_vmem [thread:$0]  (!%p18926_p6), %s25018_s6, 128, %s303_s21, [#allocation14]  }
  0x9f   : > { %s18837_s18 = smov [#allocation16]   ;;  %s18654_s25 = scalar_lea.hbm %s24856_s7, 4096 }
  0xa0   : > { %s312_s20 = sshll.u32 %s18837_s18, 4  ;;  %p18655_p1 = scmp.ne.s32.totalorder %s24856_s7, %s18654_s25  ;;  %s313_s20 = int_to_ptr.vmem [resolvable:$true] %s312_s20 }
  0xa1   : > { %p18661_p0 = scmp.lt.u32.totalorder %s18654_s25, %s24856_s7 }
  0xa2   : > { %p18657_p3 = pnand %p18655_p1, %p18942_p8 }
  0xa4   : > { %p18658_p13 = pneg %p18657_p3 }
  0xa6   : > { %p18663_p2 = pnand %p18661_p0, %p18658_p13 }
  0xa8   : > { %18666 = shalt.err (!%p18663_p2)
}
  0xa9   : > { %s18667_s21 = scalar_lea.vmem %s313_s20, 4096  ;;  %p18675_p4 = scmp.lt.s32.totalorder %s313_s20, %s313_s20 }
  0xaa   : > { %p18668_p5 = scmp.ne.s32.totalorder %s313_s20, %s18667_s21  ;;  %p18676_p10 = scmp.lt.s32.totalorder %s18667_s21, %s18667_s21 }
  0xac   : > { %p18670_p7 = pnand %p18668_p5, %p18942_p8  ;;  %p18677_p11 = por %p18676_p10, %p18675_p4 }
  0xae   : > { %p18671_p9 = pneg %p18670_p7 }
  0xb0   : > { %p18678_p12 = pnand %p18677_p11, %p18671_p9 }
  0xb2   : > { %18681 = shalt.err (!%p18678_p12)
}
  0xb3   : > { %s24862_s19 = smov 128   ;;  %s24863_s23 = smov 8  }
  0xb4   : > { %17731 = dma.hbm_to_vmem [thread:$0]  (!%p18926_p6), %s24856_s7, 4096, %s313_s20, [#allocation17], %s24862_s19, %s24862_s19, %s24863_s23  }
  0xb5   : > { %s15241_s22 = sadd.s32 4294967294, %s18828_s30   ;;  %s19077_s24 = sadd.s32 1, %s18828_s30  }
  0xb6   : > { %s34_s25 = ssub.s32 %s18828_s30, %s19077_s24  ;;  %s37_s26 = sadd.s32 1, %s18824_s29 }
  0xb7   : > { %p35_p8 = scmp.eq.s32.totalorder %s34_s25, 0  ;;  %p44_p1 = scmp.ne.s32.totalorder %s18824_s29, %s18820_s28 }
  0xb8   : > { %p45_p3 = scmp.eq.s32.totalorder %s18828_s30, 0  ;;  %p50_p13 = scmp.ne.s32.totalorder %s18820_s28, %s18816_s27 }
  0xb9   : > { %s19088_s15 = scalar_select %p35_p8, %s18824_s29, %s37_s26  }
  0xba   : > { %p46_p0 = por %p45_p3, %p44_p1  ;;  %p25019_p2 = scmp.eq.s32.totalorder %s18910_s11, 0 }
  0xbb   : > { %p226_p6 = scmp.eq.s32.totalorder %s18910_s11, 1  ;;  %p232_p7 = scmp.eq.s32.totalorder %s15241_s22, 1 }
  0xbc   : > { %p19092_p5 = por %p25019_p2, %p50_p13  ;;  %p17749_p9 = scmp.lt.s32.totalorder %s18828_s30, 2 }
  0xbd   : > { %s19099_s20 = sand.u32 1, %s18824_s29   ;;  %p19101_p4 = por %p226_p6, %p44_p1 }
  0xbe   : > { %p19105_p10 = por %p232_p7, %p50_p13  ;;  %s17677_s21 = smul.u32 160, %s19099_s20 }
  0xbf   : > { %s25021_s10 = scalar_select %p19101_p4, 1, 0 }
  0xc0   : > { %s25022_s17 = scalar_select %p19105_p10, 1, 0 }
  0xc1   : > { %s17678_s9 = smul.u32 2560, %s18828_s30  ;;  %p19111_p11 = pnand %p17749_p9, %p46_p0 }
  0xc2   : > { %s25024_s0 = sld [smem:[#allocation149_spill]]  ;;  %s330_s23 = scalar_lea.vmem [#allocation4], %s17677_s21 }
  0xc3   : > { %s337_s13 = sshll.u32 %s330_s23, 4  ;;  %s327_s2 = scalar_lea.sflag [#allocation5], %s19099_s20  ;;  %s19121_s13 = int_to_ptr.vmem [resolvable:$true] %s337_s13 }
  0xc4   : > { %p18684_p8 = pneg %p19111_p11 }
  0xc8   : > { %s19119_s19 = scalar_lea.hbm %s25024_s0, %s17678_s9  ;;  %s18687_s26 = scalar_lea.hbm %s25024_s0, 5120 }
  0xc9   : > { %s18682_s3 = scalar_lea.hbm %s19119_s19, 2560  ;;  %p18688_p13 = scmp.lt.u32.totalorder %s19119_s19, %s25024_s0 }
  0xca   : > { %p18683_p12 = scmp.ne.s32.totalorder %s19119_s19, %s18682_s3  ;;  %p18689_p0 = scmp.lt.u32.totalorder %s18687_s26, %s18682_s3 }
  0xcb   : > { %p18691_p6 = scmp.lt.u32.totalorder %s18682_s3, %s19119_s19 }
  0xcc   : > { %p18685_p1 = pnand %p18684_p8, %p18683_p12  ;;  %p18690_p2 = por %p18689_p0, %p18688_p13 }
  0xce   : > { %p18686_p3 = pneg %p18685_p1  ;;  %p18692_p7 = por %p18691_p6, %p18690_p2 }
  0xd0   : > { %p18693_p9 = pnand %p18692_p7, %p18686_p3 }
  0xd2   : > { %18696 = shalt.err (!%p18693_p9)
}
  0xd3   : > { %s18697_s23 = scalar_lea.vmem %s19121_s13, 2560  ;;  %s18840_s21 = smov [#allocation4]  }
  0xd4   : > { %p18698_p12 = scmp.ne.s32.totalorder %s19121_s13, %s18697_s23  ;;  %s18702_s25 = sshll.u32 %s18840_s21, 4  ;;  %s18703_s25 = int_to_ptr.vmem [resolvable:$false] %s18702_s25 }
  0xd5   : > { %s18704_s4 = scalar_lea.vmem %s18703_s25, 5120  ;;  %p18705_p4 = scmp.lt.s32.totalorder %s19121_s13, %s18703_s25 }
  0xd6   : > { %p18700_p1 = pnand %p18698_p12, %p18684_p8  ;;  %p18706_p13 = scmp.lt.s32.totalorder %s18704_s4, %s18697_s23 }
  0xd8   : > { %p18701_p10 = pneg %p18700_p1  ;;  %p18707_p0 = por %p18706_p13, %p18705_p4 }
  0xda   : > { %p18708_p2 = pnand %p18707_p0, %p18701_p10 }
  0xdc   : > { %18711 = shalt.err (!%p18708_p2)
}
  0xdd   : > { %s25025_s3 = smov 4   ;;  %s17679_s22 = smul.u32 320, %s19099_s20 }
  0xde   : > { %17735 = dma.hbm_to_vmem [thread:$0]  (!%p19111_p11), %s19119_s19, 2560, %s19121_s13, %s327_s2, %s25017_s16, %s25017_s16, %s25025_s3  }
  0xdf   : > { %s17680_s9 = smul.u32 5120, %s18828_s30  ;;  %s351_s25 = scalar_lea.vmem [#allocation7], %s17679_s22 }
  0xe0   : > { %s358_s4 = sshll.u32 %s351_s25, 4  ;;  %s25026_s0 = sand.u32 1, %s18828_s30   ;;  %s19161_s4 = int_to_ptr.vmem [resolvable:$true] %s358_s4 }
  0xe1   : > { %s19159_s21 = scalar_lea.hbm %s24850_s1, %s17680_s9  ;;  %s19165_s5 = scalar_lea.sflag [#allocation8], %s25026_s0 }
  0xe2   : > { %s18712_s6 = scalar_lea.hbm %s19159_s21, 5120  ;;  %s18717_s16 = scalar_lea.hbm %s24850_s1, 10240 }
  0xe3   : > { %p18713_p4 = scmp.ne.s32.totalorder %s19159_s21, %s18712_s6  ;;  %p18718_p6 = scmp.lt.u32.totalorder %s19159_s21, %s24850_s1 }
  0xe4   : > { %p18719_p7 = scmp.lt.u32.totalorder %s18717_s16, %s18712_s6  ;;  %p18721_p12 = scmp.lt.u32.totalorder %s18712_s6, %s19159_s21 }
  0xe5   : > { %p18715_p10 = pnand %p18713_p4, %p18684_p8 }
  0xe6   : > { %p18720_p9 = por %p18719_p7, %p18718_p6 }
  0xe7   : > { %p18716_p3 = pneg %p18715_p10 }
  0xe8   : > { %p18722_p1 = por %p18721_p12, %p18720_p9 }
  0xea   : > { %p18723_p13 = pnand %p18722_p1, %p18716_p3 }
  0xec   : > { %18726 = shalt.err (!%p18723_p13)
}
  0xed   : > { %s18727_s0 = scalar_lea.vmem %s19161_s4, 5120  ;;  %s18841_s3 = smov [#allocation7]  }
  0xee   : > { %p18728_p0 = scmp.ne.s32.totalorder %s19161_s4, %s18727_s0  ;;  %s18732_s22 = sshll.u32 %s18841_s3, 4  ;;  %s18733_s22 = int_to_ptr.vmem [resolvable:$false] %s18732_s22 }
  0xef   : > { %s18734_s9 = scalar_lea.vmem %s18733_s22, 10240  ;;  %p18735_p10 = scmp.lt.s32.totalorder %s19161_s4, %s18733_s22 }
  0xf0   : > { %p18730_p2 = pnand %p18728_p0, %p18684_p8  ;;  %p18736_p6 = scmp.lt.s32.totalorder %s18734_s9, %s18727_s0 }
  0xf2   : > { %p18731_p4 = pneg %p18730_p2  ;;  %p18737_p7 = por %p18736_p6, %p18735_p10 }
  0xf4   : > { %p18738_p9 = pnand %p18737_p7, %p18731_p4 }
  0xf6   : > { %18741 = shalt.err (!%p18738_p9)
}
  0xf7   : > { %s25027_s6 = smov 8   ;;  %s25028_s26 = smov 128  }
  0xf8   : > { %17738 = dma.hbm_to_vmem [thread:$0]  (!%p19111_p11), %s19159_s21, 5120, %s19161_s4, %s19165_s5, %s25028_s26, %s25028_s26, %s25027_s6  }
  0xf9   : > { %p25029_p8 = scmp.ne.s32.totalorder %s25010_s12, 0 }
  0xfb   : > { %370 = sbr.rel (%p25029_p8) target bundleno = 2479 (0x9af), region = 52 }
 0x102   : > { %s19197_s23 = sand.u32 1, %s18820_s28  }
 0x103   : > { %s17681_s25 = smul.u32 160, %s19197_s23  ;;  %s373_s2 = scalar_lea.sflag [#allocation5], %s19197_s23 }
 0x105   : > { %s19201_s13 = scalar_lea.vmem [#allocation4], %s17681_s25 }
 0x106   : > { %18787 = dma.done.wait (%p19092_p5), %s373_s2, 2560  }
 0x107   : > { %18789 = vsyncadd (%p19092_p5), %s373_s2, 4294964736  ;;  %s381_s5 = sand.u32 1, %s18910_s11   ;;  %s17682_s12 = smul.u32 320, %s19197_s23 }
 0x108   : > { %s382_s18 = scalar_lea.sflag [#allocation8], %s381_s5 }
 0x109   : > { %s19209_s21 = scalar_lea.vmem [#allocation7], %s17682_s12 }
 0x10a   : > { %18791 = dma.done.wait (%p19092_p5), %s382_s18, 5120  }
 0x10b   : > { %18793 = vsyncadd (%p19092_p5), %s382_s18, 4294962176  ;;  %p25030_p11 = scmp.eq.s32.totalorder %s18910_s11, 0 }
 0x10d   : > { %18795 = dma.done.wait (%p25030_p11), [#allocation8], 4032   ;;  %p25031_p3 = pmov %p25030_p11 }
 0x10f   : > { %18797 = vsyncadd (%p25031_p3), [#allocation8], 4294963264  ;;  %p25032_p12 = pmov %p25031_p3 }
 0x110   : > { %p25033_p1 = pmov %p25031_p3 }
 0x111   : > { %18799 = dma.done.wait (%p25032_p12), [#allocation11], 20736  }
 0x112   : > { %18801 = vsyncadd (%p25033_p1), [#allocation11], 4294946560  ;;  %p25034_p13 = pmov %p25033_p1 }
 0x113   : > { %p25035_p0 = pmov %p25033_p1 }
 0x114   : > { %18803 = dma.done.wait (%p25034_p13), [#allocation14], 256  }
 0x115   : > { %18805 = vsyncadd (%p25035_p0), [#allocation14], 4294967040  ;;  %p25036_p5 = pmov %p25035_p0 }
 0x116   : > { %p25037_p2 = pmov %p25035_p0 }
 0x117   : > { %18807 = dma.done.wait (%p25036_p5), [#allocation17], 4096  }
 0x118   : > { %18809 = vsyncadd (%p25037_p2), [#allocation17], 4294963200  ;;  %v18842_v0 = vmov 0   ;;  %v17802_v1 = vld [vmem:[#allocation10] sm:$0xff]   ;;  %v17804_v3 = vld [vmem:[#allocation10 + $0x8] sm:$0xff]   ;;  %vm1666_vm1 = vcmask 1043456  }
 0x119   : > { %1200 = vmatprep.subr.bf16.mxu0 %v18842_v0  ;;  %11575 = vst [vmem:[#allocation3] sm:$0xff] %v18842_v0  ;;  %11576 = vst [vmem:[#allocation3 + $0x8] sm:$0xff] %v18842_v0  ;;  %17801 = vset.pattern.permute.xlu1 %v18842_v0  ;;  %v17803_v2 = vld [vmem:[#allocation9] sm:$0xff]   ;;  %v17805_v4 = vld [vmem:[#allocation9 + $0x8] sm:$0xff]   ;;  %vm770_vm0 = vsmask.f32 4352 }
 0x11a   : > { %11577 = vst [vmem:[#allocation3 + $0x90] sm:$0xff] %v18842_v0  ;;  %11578 = vst [vmem:[#allocation3 + $0x98] sm:$0xff] %v18842_v0  ;;  %17800 = vset.pattern.permute.xlu0 %v18842_v0  ;;  %1201 = vmatpush1.bf16.msra.mxu0 %v17802_v1  ;;  %v17807_v5 = vld [vmem:[#allocation9 + $0x10] sm:$0xff]   ;;  %v17809_v7 = vld [vmem:[#allocation9 + $0x18] ss:$0 sps:$4 sm:$0xff]   ;;  %vm1617_vm2 = vcmask 457728  }
 0x11b   : > { %16632 = vmatprep.subr.bf16.mxu1 %v17803_v2  ;;  %1202 = vmatprep.subr.bf16.mxu0 %v18842_v0  ;;  %v17806_v6 = vld [vmem:[#allocation10 + $0x10] sm:$0xff]   ;;  %v17810_v8 = vld [vmem:[%s19201_s13 + $0x4] sm:$0xf8]   ;;  %v17808_v10 = vld [vmem:[#allocation10 + $0x18] sm:$0xff]   ;;  %v1668_v15 = vsel %vm1666_vm1, %v17809_v7, 0  ;;  %vm1151_vm3 = vcmask 261120  }
 0x11c   : > { %16633 = vmatpush3.bf16.msra.mxu1 %v17803_v2  ;;  %v17811_v9 = vld [vmem:[%s19201_s13 + $0xc] sm:$0xff]   ;;  %v1445_v11 = vshrl.u32 %v17810_v8, 16  ;;  %v1448_v12 = vshll.u32 %v17810_v8, 16  ;;  %v17813_v16 = vld [vmem:[%s19201_s13 + $0x14] sm:$0xff]   ;;  %v17812_v21 = vld [vmem:[#allocation10 + $0x20] sm:$0xff]   ;;  %s15259_s14 = sshll.u32 %s19197_s23, 4 }
 0x11d   : > { %16634 = vmatprep.subr.bf16.mxu1 %v17805_v4  ;;  %v1453_v13 = vshrl.u32 %v17811_v9, 16  ;;  %v1456_v14 = vshll.u32 %v17811_v9, 16  ;;  %v1462_v22 = vshrl.u32 %v17813_v16, 16  ;;  %v1465_v23 = vshll.u32 %v17813_v16, 16  ;;  %v17816_v26 = vld [vmem:[%s19201_s13 + $0x1c] sm:$0xff]   ;;  %v17814_v29 = vld [vmem:[#allocation10 + $0xf0] sm:$0xff]  }
 0x11e   : > { %1203 = vmatpush1.bf16.msra.mxu0 %v17804_v3  ;;  %v1447_v17 = vrot.slane %v1445_v11, 3  ;;  %v1450_v18 = vrot.slane %v1448_v12, 4  ;;  %v17815_v31 = vld [vmem:[#allocation10 + $0x28] sm:$0xff]   ;;  %v1471_v32 = vshrl.u32 %v17816_v26, 16  ;;  %v1474_v33 = vshll.u32 %v17816_v26, 16  ;;  %v17817_v41 = vld [vmem:[#allocation10 + $0x30] sm:$0xff]  }
 0x11f   : > { %1204 = vmatprep.subr.bf16.mxu0 %v18842_v0  ;;  %v1455_v19 = vrot.slane %v1453_v13, 3  ;;  %v1458_v20 = vrot.slane %v1456_v14, 4  ;;  %v1464_v27 = vrot.slane %v1462_v22, 3  ;;  %v1467_v28 = vrot.slane %v1465_v23, 4  ;;  %v17818_v34 = vld [vmem:[%s19201_s13 + $0x24] sm:$0xff]   ;;  %v17819_v45 = vld [vmem:[#allocation10 + $0xf8] sm:$0xff]  }
 0x120   : > { %16635 = vmatpush3.bf16.msra.mxu1 %v17805_v4  ;;  %v1451_v24 = vor.u32 %v1450_v18, %v1447_v17  ;;  %v1473_v36 = vrot.slane %v1471_v32, 3  ;;  %v1476_v37 = vrot.slane %v1474_v33, 4  ;;  %v1480_v38 = vshrl.u32 %v17818_v34, 16  ;;  %v17822_v46 = vld [vmem:[%s19201_s13 + $0x2c] sm:$0xff]   ;;  %v17824_v51 = vld [vmem:[%s19201_s13 + $0x34] sm:$0xff]   ;;  %v17821_v57 = vld [vmem:[#allocation10 + $0x100] sm:$0xff]  }
 0x121   : > { %16636 = vmatprep.subr.bf16.mxu1 %v17807_v5  ;;  %v1459_v25 = vor.u32 %v1458_v20, %v1455_v19  ;;  %v1468_v35 = vor.u32 %v1467_v28, %v1464_v27  ;;  %v1483_v39 = vshll.u32 %v17818_v34, 16  ;;  %v1489_v49 = vshrl.u32 %v17822_v46, 16  ;;  %v17820_v52 = vld [vmem:[#allocation10 + $0x38] sm:$0xff]   ;;  %v17823_v62 = vld [vmem:[#allocation10 + $0x40] sm:$0xff]   ;;  %v17833_v13 = vld [vmem:[%s19201_s13 + $0x44] sm:$0xff]   ;;  %s16201_s4 = sshll.u32 %s18910_s11, 8 }
 0x122   : > { %1205 = vmatpush1.bf16.msra.mxu0 %v17806_v6  ;;  %v1477_v42 = vor.u32 %v1476_v37, %v1473_v36  ;;  %v1482_v43 = vrot.slane %v1480_v38, 3  ;;  %v1492_v50 = vshll.u32 %v17822_v46, 16  ;;  %v1498_v55 = vshrl.u32 %v17824_v51, 16  ;;  %v579_v61 = vld [vmem:[%s19209_s21 + $0x18] sm:$0xff]  ;;  %v19266_v1 = vld [vmem:[%s19209_s21 + $0x20] sm:$0xff]  ;;  %v17834_v27 = vld [vmem:[#allocation10 + $0x110] sm:$0xff]   ;;  %s24805_s3 = scalar_lea.hbm %s24857_s8, %s16201_s4 }
 0x123   : > { %1206 = vmatprep.subr.bf16.mxu0 %v18842_v0  ;;  %v1460_v30 = vsel %vm770_vm0, %v1451_v24, %v1459_v25  ;;  %v1469_v40 = vsel %vm770_vm0, %v1459_v25, %v1468_v35  ;;  %v1485_v44 = vrot.slane %v1483_v39, 4  ;;  %v1491_v53 = vrot.slane %v1489_v49, 3  ;;  %v17827_v2 = vld [vmem:[%s19209_s21 + $0xc] ss:$8 sps:$4 sm:$0xf8]   ;;  %v17832_v3 = vld [vmem:[%s19201_s13 + $0x3c] sm:$0xff]  }
 0x124   : > { %16637 = vmatpush3.bf16.msra.mxu1 %v17807_v5  ;;  %16640 = vmatprep.mubr.msk.bf16.mxu1 %vm1617_vm2, %v1460_v30  ;;  %v1478_v47 = vsel %vm770_vm0, %v1468_v35, %v1477_v42  ;;  %v1494_v54 = vrot.slane %v1492_v50, 4  ;;  %v1501_v58 = vshll.u32 %v17824_v51, 16  ;;  %v1500_v60 = vrot.slane %v1498_v55, 3  ;;  %v17826_v5 = vld [vmem:[#allocation10 + $0x108] sm:$0xff]   ;;  %v17835_v35 = vld [vmem:[%s19209_s21 + $0x2c] ss:$8 sps:$4 sm:$0xff]  }
 0x125   : > { %17668 = vmatprep.subr.msk.bf16.mxu1 %vm1666_vm1, %v17809_v7  ;;  %v1486_v48 = vor.u32 %v1485_v44, %v1482_v43  ;;  %v15263_v6 = vcombine.high %v579_v61, %v19266_v1  ;;  %v17830_v7 = vld [vmem:[%s19209_s21 + $0x8] ss:$8 sps:$4 sm:$0xf8]   ;;  %v15262_v8 = vcombine.low %v579_v61, %v19266_v1  ;;  %v792_v11 = vshll.u32 %v17827_v2, 16  ;;  %v17839_v49 = vld [vmem:[%s19201_s13 + $0x54] sm:$0xff]   ;;  %s446_s16 = scalar_lea.vmem [#allocation18], %s15259_s14 }
 0x126   : > { %1207 = vmatpush1.bf16.msra.mxu0 %v17808_v10  ;;  %v1495_v59 = vor.u32 %v1494_v54, %v1491_v53  ;;  %v1503_v63 = vrot.slane %v1501_v58, 4  ;;  %v789_v10 = vshrl.u32 %v17827_v2, 16  ;;  %v1507_v12 = vshrl.u32 %v17832_v3, 16  ;;  %v17825_v19 = vld [vmem:[#allocation10 + $0x48] sm:$0xff]   ;;  %v17838_v44 = vld [vmem:[%s19201_s13 + $0x4c] sm:$0xff]   ;;  %v17840_v54 = vld [vmem:[#allocation10 + $0x118] sm:$0xff]  }
 0x127   : > { %1208 = vmatprep.subr.bf16.mxu0 %v18842_v0  ;;  %v1487_v56 = vsel %vm770_vm0, %v1477_v42, %v1486_v48  ;;  %v797_v14 = vshrl.u32 %v15263_v6, 16  ;;  %v772_v16 = vshrl.u32 %v17830_v7, 16  ;;  %v775_v17 = vshll.u32 %v17830_v7, 16  ;;  %v17837_v36 = vld [vmem:[%s19209_s21 + $0x28] ss:$8 sps:$4 sm:$0xff]   ;;  %v17844_v2 = vld [vmem:[%s19201_s13 + $0x5c] sm:$0xff]  }
 0x128   : > { %16639 = vmatpush3.bf16.msra.mxu1 %v1668_v15  ;;  %v1496_v4 = vsel %vm770_vm0, %v1486_v48, %v1495_v59  ;;  %v19275_v9 = vor.u32 %v1503_v63, %v1500_v60  ;;  %v800_v15 = vshll.u32 %v15263_v6, 16  ;;  %v791_v20 = vrot.slane %v789_v10, 3  ;;  %v17841_v63 = vld [vmem:[%s19209_s21 + $0x3c] ss:$8 sps:$4 sm:$0xff]   ;;  %v17843_v7 = vld [vmem:[%s19209_s21 + $0x38] ss:$8 sps:$4 sm:$0xff]  }
 0x129   : > { %2487 = vmatprep.subr.bf16.mxu1 %v18842_v0  ;;  %v780_v22 = vshrl.u32 %v15262_v8, 16  ;;  %v799_v23 = vrot.slane %v797_v14, 3  ;;  %v774_v25 = vrot.slane %v772_v16, 3  ;;  %v777_v26 = vrot.slane %v775_v17, 4  ;;  %v17846_v17 = vld [vmem:[#allocation10 + $0x120] sm:$0xff]   ;;  %s15091_s19 = sshll.u32 %s446_s16, 4  ;;  %s24807_s19 = int_to_ptr.vmem [resolvable:$true] %s15091_s19 }
 0x12a   : > { %1209 = vmatpush1.bf16.msra.mxu0 %v17812_v21  ;;  %v1505_v18 = vsel %vm770_vm0, %v1495_v59, %v19275_v9  ;;  %v794_v21 = vrot.slane %v792_v11, 4  ;;  %v802_v24 = vrot.slane %v800_v15, 4  ;;  %v783_v30 = vshll.u32 %v15262_v8, 16  ;;  %s15077_s11 = scalar_lea.sflag [#allocation6], %s19197_s23  ;;  %s18742_s22 = scalar_lea.vmem %s24807_s19, 256 }
 0x12b   : > { %1210 = vmatprep.subr.bf16.mxu0 %v18842_v0  ;;  %16641 = vmatmul.mubr.msk.bf16.vlgmr.msra.gmra.mrb[0].mxu1 %vm1617_vm2, %v1469_v40  ;;  %v1510_v33 = vshll.u32 %v17832_v3, 16  ;;  %v1516_v34 = vshrl.u32 %v17833_v13, 16  ;;  %v778_v37 = vor.u32 %v777_v26, %v774_v25  ;;  %v1519_v39 = vshll.u32 %v17833_v13, 16  ;;  %p18743_p4 = scmp.ne.s32.totalorder %s24807_s19, %s18742_s22  ;;  %p25848_p10 = scmp.ne.s32.totalorder %s25021_s10, 0 }
 0x12c   : > { %2488 = vmatpush1.bf16.msra.mxu1 %v17814_v29  ;;  %16644 = vmatprep.mubr.msk.bf16.mxu1 %vm1617_vm2, %v1478_v47  ;;  %v795_v28 = vor.u32 %v794_v21, %v791_v20  ;;  %v782_v29 = vrot.slane %v780_v22, 3  ;;  %v803_v32 = vor.u32 %v802_v24, %v799_v23  ;;  %v785_v38 = vrot.slane %v783_v30, 4  ;;  %v17847_v30 = vld [vmem:[%s19209_s21 + $0x4c] ss:$8 sps:$4 sm:$0xff]   ;;  %s18843_s9 = smov [#allocation18]  }
 0x12d   : > { %2489 = vmatprep.subr.bf16.mxu1 %v18842_v0  ;;  %v1518_v42 = vrot.slane %v1516_v34, 3  ;;  %v815_v43 = vshrl.u32 %v17835_v35, 16  ;;  %v1521_v46 = vrot.slane %v1519_v39, 4  ;;  %v818_v47 = vshll.u32 %v17835_v35, 16  ;;  %v17851_v35 = vld [vmem:[%s19201_s13 + $0x6c] sm:$0xff]   ;;  %p18744_p6 = pnand %p18743_p4, %p25848_p10  ;;  %s18746_s6 = sshll.u32 %s18843_s9, 4  ;;  %s18747_s6 = int_to_ptr.vmem [resolvable:$false] %s18746_s6 }
 0x12e   : > { %1211 = vmatpush1.bf16.msra.mxu0 %v17815_v31  ;;  %v1509_v31 = vrot.slane %v1507_v12, 3  ;;  %v804_v40 = vsel %vm770_vm0, %v795_v28, %v803_v32  ;;  %v806_v48 = vshrl.u32 %v17837_v36, 16  ;;  %v1525_v53 = vshrl.u32 %v17838_v44, 16  ;;  %v17845_v12 = vld [vmem:[%s19201_s13 + $0x64] sm:$0xff]   ;;  %s18748_s26 = scalar_lea.vmem %s18747_s6, 512  ;;  %p18749_p9 = scmp.lt.s32.totalorder %s24807_s19, %s18747_s6 }
 0x12f   : > { %1212 = vmatprep.subr.bf16.mxu0 %v18842_v0  ;;  %15304 = vmatprep.mubr.msk.bf16.mxu0 %vm1151_vm3, %v804_v40  ;;  %v817_v51 = vrot.slane %v815_v43, 3  ;;  %v1537_v6 = vshll.u32 %v17839_v49, 16  ;;  %v836_v11 = vshll.u32 %v17841_v63, 16  ;;  %v824_v16 = vshrl.u32 %v17843_v7, 16  ;;  %v17852_v40 = vld [vmem:[%s19201_s13 + $0x74] sm:$0xff]   ;;  %p18745_p7 = pneg %p18744_p6  ;;  %p18750_p8 = scmp.lt.s32.totalorder %s18748_s26, %s18742_s22 }
 0x130   : > { %2490 = vmatpush1.bf16.msra.mxu1 %v17819_v45  ;;  %v786_v45 = vor.u32 %v785_v38, %v782_v29  ;;  %v808_v58 = vrot.slane %v806_v48, 3  ;;  %v1527_v61 = vrot.slane %v1525_v53, 3  ;;  %v827_v24 = vshll.u32 %v17843_v7, 16 }
 0x131   : > { %2491 = vmatprep.subr.bf16.mxu1 %v18842_v0  ;;  %v1539_v15 = vrot.slane %v1537_v6, 4  ;;  %v838_v21 = vrot.slane %v836_v11, 4  ;;  %v826_v23 = vrot.slane %v824_v16, 3  ;;  %v1543_v25 = vshrl.u32 %v17844_v2, 16  ;;  %v17856_v6 = vld [vmem:[%s19209_s21 + $0x58] ss:$8 sps:$4 sm:$0xff]   ;;  %p18751_p11 = por %p18750_p8, %p18749_p9 }
 0x132   : > { %1213 = vmatpush1.bf16.msra.mxu0 %v17817_v41  ;;  %v1512_v41 = vrot.slane %v1510_v33, 4  ;;  %v787_v55 = vsel %vm770_vm0, %v778_v37, %v786_v45  ;;  %v1546_v28 = vshll.u32 %v17844_v2, 16  ;;  %v1552_v29 = vshrl.u32 %v17845_v12, 16 }
 0x133   : > { %1214 = vmatprep.subr.bf16.mxu0 %v18842_v0  ;;  %16645 = vmatmul.mubr.msk.bf16.gmra.mrb[4].mxu1 %vm1617_vm2, %v1487_v56  ;;  %v1522_v56 = vor.u32 %v1521_v46, %v1518_v42  ;;  %v1545_v33 = vrot.slane %v1543_v25, 3  ;;  %v1555_v34 = vshll.u32 %v17845_v12, 16  ;;  %v851_v39 = vshrl.u32 %v17847_v30, 16  ;;  %p18752_p3 = pnand %p18751_p11, %p18745_p7 }
 0x134   : > { %2492 = vmatpush1.bf16.msra.mxu1 %v17821_v57  ;;  %16648 = vmatprep.mubr.msk.bf16.mxu1 %vm1617_vm2, %v1496_v4  ;;  %v1513_v50 = vor.u32 %v1512_v41, %v1509_v31  ;;  %v820_v57 = vrot.slane %v818_v47, 4  ;;  %v17849_v31 = vld [vmem:[#allocation10 + $0x128] sm:$0xff]   ;;  %v1548_v37 = vrot.slane %v1546_v28, 4  ;;  %v1554_v38 = vrot.slane %v1552_v29, 3  ;;  %v17860_v29 = vld [vmem:[%s19209_s21 + $0x6c] ss:$8 sps:$4 sm:$0xff]  }
 0x135   : > { %2493 = vmatprep.subr.bf16.mxu1 %v18842_v0  ;;  %v1557_v43 = vrot.slane %v1555_v34, 4  ;;  %v853_v47 = vrot.slane %v851_v39, 3  ;;  %v1561_v48 = vshrl.u32 %v17851_v35, 16  ;;  %v890_v39 = vshll.u32 %v17860_v29, 16 }
 0x136   : > { %1215 = vmatpush1.bf16.msra.mxu0 %v17820_v52  ;;  %v809_v52 = vshll.u32 %v17837_v36, 16  ;;  %v1514_v59 = vsel %vm770_vm0, %v19275_v9, %v1513_v50  ;;  %v1523_v3 = vsel %vm770_vm0, %v1513_v50, %v1522_v56  ;;  %v19300_v4 = vor.u32 %v820_v57, %v817_v51  ;;  %v17853_v50 = vld [vmem:[#allocation10 + $0x130] sm:$0xff]  }
 0x137   : > { %1216 = vmatprep.subr.bf16.mxu0 %v18842_v0  ;;  %v833_v9 = vshrl.u32 %v17841_v63, 16  ;;  %v1549_v46 = vor.u32 %v1548_v37, %v1545_v33  ;;  %v1558_v51 = vor.u32 %v1557_v43, %v1554_v38  ;;  %v887_v38 = vshrl.u32 %v17860_v29, 16 }
 0x138   : > { %2494 = vmatpush1.bf16.msra.mxu1 %v17826_v5  ;;  %v811_v60 = vrot.slane %v809_v52, 4  ;;  %v1534_v5 = vshrl.u32 %v17839_v49, 16  ;;  %v822_v13 = vsel %vm770_vm0, %v803_v32, %v19300_v4  ;;  %v829_v32 = vrot.slane %v827_v24, 4 }
 0x139   : > { %2495 = vmatprep.subr.bf16.mxu1 %v18842_v0  ;;  %v835_v20 = vrot.slane %v833_v9, 3  ;;  %v1564_v49 = vshll.u32 %v17851_v35, 16  ;;  %v1559_v11 = vsel %vm770_vm0, %v1549_v46, %v1558_v51  ;;  %v1864_v35 = vld [vmem:[%s19209_s21 + $0x18] sm:$0x88] }
 0x13a   : > { %1217 = vmatpush1.bf16.msra.mxu0 %v17823_v62  ;;  %v1528_v62 = vshll.u32 %v17838_v44, 16  ;;  %v19303_v8 = vor.u32 %v811_v60, %v808_v58  ;;  %v1536_v14 = vrot.slane %v1534_v5, 3  ;;  %v830_v42 = vor.u32 %v829_v32, %v826_v23  ;;  %v17854_v5 = vld [vmem:[%s19209_s21 + $0x5c] ss:$8 sps:$4 sm:$0xff]   ;;  %v17859_v23 = vld [vmem:[#allocation10 + $0x138] sm:$0xff]  }
 0x13b   : > { %1218 = vmatprep.subr.bf16.mxu0 %v18842_v0  ;;  %16649 = vmatmul.mubr.msk.bf16.gmra.mrb[8].mxu1 %vm1617_vm2, %v1505_v18  ;;  %v854_v44 = vshll.u32 %v17847_v30, 16  ;;  %v1566_v57 = vrot.slane %v1564_v49, 4  ;;  %v872_v16 = vshll.u32 %v17854_v5, 16  ;;  %v17862_v30 = vld [vmem:[%s19209_s21 + $0x68] ss:$8 sps:$4 sm:$0xff]  }
 0x13c   : > { %2496 = vmatpush1.bf16.msra.mxu1 %v17834_v27  ;;  %16652 = vmatprep.mubr.msk.bf16.mxu1 %vm1617_vm2, %v1514_v59  ;;  %v1530_v10 = vrot.slane %v1528_v62, 4  ;;  %v813_v18 = vsel %vm770_vm0, %v786_v45, %v19303_v8  ;;  %v1540_v22 = vor.u32 %v1539_v15, %v1536_v14  ;;  %v839_v27 = vor.u32 %v838_v21, %v835_v20  ;;  %v17850_v45 = vld [vmem:[%s19209_s21 + $0x48] ss:$8 sps:$4 sm:$0xff]   ;;  %v17857_v62 = vld [vmem:[%s19201_s13 + $0x7c] sm:$0xff]   ;;  %v17858_v15 = vld [vmem:[%s19201_s13 + $0x84] ss:$0 sps:$4 sm:$0xff]  }
 0x13d   : > { %2497 = vmatprep.subr.bf16.mxu1 %v18842_v0  ;;  %v856_v52 = vrot.slane %v854_v44, 4  ;;  %v842_v53 = vshrl.u32 %v17850_v45, 16  ;;  %v19332_v58 = vsel %vm770_vm0, %v19303_v8, %v830_v42  ;;  %v1579_v9 = vshrl.u32 %v17857_v62, 16  ;;  %v17866_v44 = vld [vmem:[%s19209_s21 + $0x7c] ss:$8 sps:$4 sm:$0xff]  }
 0x13e   : > { %1219 = vmatpush1.bf16.msra.mxu0 %v17825_v19  ;;  %v1531_v19 = vor.u32 %v1530_v10, %v1527_v61  ;;  %v19320_v36 = vsel %vm770_vm0, %v19300_v4, %v839_v27  ;;  %v1570_v61 = vshrl.u32 %v17852_v40, 16  ;;  %v869_v14 = vshrl.u32 %v17854_v5, 16 }
 0x13f   : > { %v857_v59 = vor.u32 %v856_v52, %v853_v47  ;;  %v844_v60 = vrot.slane %v842_v53, 3  ;;  %v874_v24 = vrot.slane %v872_v16, 4  ;;  %v1591_v28 = vshll.u32 %v17858_v15, 16 }
 0x140   : > { %2498 = vmatpush1.bf16.msra.mxu1 %v17840_v54  ;;  %v1532_v26 = vsel %vm770_vm0, %v1522_v56, %v1531_v19  ;;  %v1541_v41 = vsel %vm770_vm0, %v1531_v19, %v1540_v22  ;;  %v1550_v54 = vsel %vm770_vm0, %v1540_v22, %v1549_v46  ;;  %v1563_v56 = vrot.slane %v1561_v48, 3 }
 0x141   : > { %1233 = vmatmul.mubr.bf16.vlgmr.msra.gmra.mrb[0].mxu0 %v787_v55  ;;  %2499 = vmatprep.subr.bf16.mxu1 %v18842_v0  ;;  %v845_v55 = vshll.u32 %v17850_v45, 16  ;;  %v19339_v7 = vsel %vm770_vm0, %v839_v27, %v857_v59  ;;  %v1572_v10 = vrot.slane %v1570_v61, 3  ;;  %v1581_v19 = vrot.slane %v1579_v9, 3 }
 0x142   : > { %15305 = vmatprep.mubr.msk.bf16.mxu0 %vm1151_vm3, %v822_v13  ;;  %v1567_v2 = vor.u32 %v1566_v57, %v1563_v56  ;;  %v871_v21 = vrot.slane %v869_v14, 3  ;;  %v1582_v22 = vshll.u32 %v17857_v62, 16  ;;  %v1593_v43 = vrot.slane %v1591_v28, 4  ;;  %v17873_v28 = vld [vmem:[%s19209_s21 + $0x9c] ss:$8 sps:$4 sm:$0xff]  }
 0x143   : > { %16653 = vmatmul.mubr.msk.bf16.gmra.mrb[12].mxu1 %vm1617_vm2, %v1523_v3  ;;  %v847_v63 = vrot.slane %v845_v55, 4  ;;  %v1573_v3 = vshll.u32 %v17852_v40, 16  ;;  %v892_v45 = vrot.slane %v890_v39, 4  ;;  %v878_v46 = vshrl.u32 %v17862_v30, 16 }
 0x144   : > { %2500 = vmatpush1.bf16.msra.mxu1 %v17846_v17  ;;  %16656 = vmatprep.mubr.msk.bf16.mxu1 %vm1617_vm2, %v1532_v26  ;;  %v860_v17 = vshrl.u32 %v17856_v6, 16  ;;  %v1568_v20 = vsel %vm770_vm0, %v1558_v51, %v1567_v2  ;;  %v1588_v26 = vshrl.u32 %v17858_v15, 16  ;;  %v1584_v27 = vrot.slane %v1582_v22, 4 }
 0x145   : > { %2501 = vmatprep.subr.bf16.mxu1 %v18842_v0  ;;  %v848_v12 = vor.u32 %v847_v63, %v844_v60  ;;  %v1575_v13 = vrot.slane %v1573_v3, 4  ;;  %v875_v33 = vor.u32 %v874_v24, %v871_v21  ;;  %v881_v47 = vshll.u32 %v17862_v30, 16 }
 0x146   : > { %v862_v25 = vrot.slane %v860_v17, 3  ;;  %v1585_v37 = vor.u32 %v1584_v27, %v1581_v19  ;;  %v15358_v51 = vcombine.high %v1864_v35, %v19266_v1  ;;  %v908_v55 = vshll.u32 %v17866_v44, 16 }
 0x147   : > { %v1576_v32 = vor.u32 %v1575_v13, %v1572_v10  ;;  %v19358_v40 = vsel %vm770_vm0, %v857_v59, %v875_v33  ;;  %v17868_v59 = vld [vmem:[%s19209_s21 + $0x78] ss:$8 sps:$4 sm:$0xff]   ;;  %v880_v61 = vrot.slane %v878_v46, 3  ;;  %v883_v62 = vrot.slane %v881_v47, 4  ;;  %v17877_v46 = vld [vmem:[%s19209_s21 + $0xac] ss:$8 sps:$4 sm:$0xff]  }
 0x148   : > { %2502 = vmatpush1.bf16.msra.mxu1 %v17849_v31  ;;  %v19352_v31 = vsel %vm770_vm0, %v830_v42, %v848_v12  ;;  %v889_v42 = vrot.slane %v887_v38, 3  ;;  %v2077_v56 = vshrl.u32 %v15358_v51, 16  ;;  %v2080_v57 = vshll.u32 %v15358_v51, 16  ;;  %v17898_v47 = vld [vmem:[#allocation9 + $0x54] sm:$0xff]   ;;  %v17899_v51 = vld [vmem:[#allocation9 + $0x5c] sm:$0xff]  }
 0x149   : > { %1241 = vmatmul.mubr.bf16.gmra.mrb[4].mxu0 %v813_v18  ;;  %2503 = vmatprep.subr.bf16.mxu1 %v18842_v0  ;;  %v863_v18 = vshll.u32 %v17856_v6, 16  ;;  %v1577_v48 = vsel %vm770_vm0, %v1567_v2, %v1576_v32  ;;  %v1586_v52 = vsel %vm770_vm0, %v1576_v32, %v1585_v37  ;;  %v17869_v2 = vld [vmem:[%s19209_s21 + $0x8c] ss:$8 sps:$4 sm:$0xff]   ;;  %v884_v15 = vor.u32 %v883_v62, %v880_v61 }
 0x14a   : > { %15306 = vmatprep.mubr.msk.bf16.mxu0 %vm1151_vm3, %v19320_v36  ;;  %v893_v53 = vor.u32 %v892_v45, %v889_v42  ;;  %v2082_v5 = vrot.slane %v2080_v57, 4  ;;  %v896_v17 = vshrl.u32 %v17868_v59, 16  ;;  %v923_v21 = vshrl.u32 %v17869_v2, 16  ;;  %16672 = vmatprep.subr.bf16.mxu0 %v17898_v47  ;;  %v17883_v61 = vld [vmem:[#allocation10 + $0x1f8] sm:$0xff]  }
 0x14b   : > { %16657 = vmatmul.mubr.msk.bf16.gmra.mrb[16].mxu1 %vm1617_vm2, %v1541_v41  ;;  %v865_v34 = vrot.slane %v863_v18, 4  ;;  %v1590_v41 = vrot.slane %v1588_v26, 3  ;;  %v899_v18 = vshll.u32 %v17868_v59, 16  ;;  %v926_v22 = vshll.u32 %v17869_v2, 16  ;;  %16673 = vmatpush3.bf16.msra.mxu0 %v17898_v47  ;;  %v17903_v59 = vld [vmem:[#allocation9 + $0x64] sm:$0xff]  }
 0x14c   : > { %16660 = vmatprep.mubr.msk.bf16.mxu1 %vm1617_vm2, %v1550_v54  ;;  %2504 = vmatpush1.bf16.msra.mxu1 %v17853_v50  ;;  %v15357_v50 = vcombine.low %v1864_v35, %v19266_v1  ;;  %v905_v54 = vshrl.u32 %v17866_v44, 16  ;;  %v2079_v1 = vrot.slane %v2077_v56, 3  ;;  %v19376_v10 = vsel %vm770_vm0, %v875_v33, %v893_v53  ;;  %v17865_v33 = vld [vmem:[#allocation10 + $0x1e0] sm:$0xff]   ;;  %v17893_v47 = vld [vmem:[%s19209_s21 + $0xe8] ss:$8 sps:$4 sm:$0xff]  }
 0x14d   : > { %2505 = vmatprep.subr.bf16.mxu1 %v18842_v0  ;;  %v866_v49 = vor.u32 %v865_v34, %v862_v25  ;;  %v1594_v60 = vor.u32 %v1593_v43, %v1590_v41  ;;  %v898_v26 = vrot.slane %v896_v17, 3  ;;  %v901_v27 = vrot.slane %v899_v18, 4  ;;  %v17875_v43 = vld [vmem:[%s19209_s21 + $0x98] ss:$8 sps:$4 sm:$0xff]   ;;  %16674 = vmatprep.subr.bf16.mxu0 %v17899_v51  ;;  %v17884_v18 = vld [vmem:[%s19209_s21 + $0xcc] ss:$8 sps:$4 sm:$0xff]  }
 0x14e   : > { %v2060_v63 = vshrl.u32 %v15357_v50, 16  ;;  %v2063_v6 = vshll.u32 %v15357_v50, 16  ;;  %v907_v9 = vrot.slane %v905_v54, 3  ;;  %v2083_v13 = vor.u32 %v2082_v5, %v2079_v1  ;;  %v17876_v54 = vld [vmem:[#allocation10 + $0x1f0] sm:$0xff]   ;;  %v17880_v1 = vld [vmem:[%s19209_s21 + $0xbc] ss:$8 sps:$4 sm:$0xff]  }
 0x14f   : > { %v19372_v3 = vsel %vm770_vm0, %v848_v12, %v866_v49  ;;  %v1595_v14 = vsel %vm770_vm0, %v1585_v37, %v1594_v60  ;;  %v19387_v24 = vsel %vm770_vm0, %v866_v49, %v884_v15  ;;  %v928_v30 = vrot.slane %v926_v22, 4  ;;  %v17879_v60 = vld [vmem:[%s19209_s21 + $0xa8] ss:$8 sps:$4 sm:$0xff]   ;;  %16675 = vmatpush3.bf16.msra.mxu0 %v17899_v51  ;;  %v17895_v51 = vld [vmem:[%s19209_s21 + $0xfc] ss:$8 sps:$4 sm:$0xff]  }
 0x150   : > { %2506 = vmatpush1.bf16.msra.mxu1 %v17859_v23  ;;  %v2062_v12 = vrot.slane %v2060_v63, 3  ;;  %v2065_v16 = vrot.slane %v2063_v6, 4  ;;  %v2092_v19 = vsel %vm770_vm0, %v2083_v13, %v19300_v4  ;;  %v17872_v23 = vld [vmem:[%s19209_s21 + $0x88] ss:$8 sps:$4 sm:$0xff]   ;;  %v925_v4 = vrot.slane %v923_v21, 3  ;;  %16676 = vmatprep.subr.bf16.mxu0 %v17903_v59 }
 0x151   : > { %1249 = vmatmul.mubr.bf16.gmra.mrb[8].mxu0 %v19332_v58  ;;  %3804 = vmatprep.subr.bf16.mxu1 %v18842_v0  ;;  %v902_v34 = vor.u32 %v901_v27, %v898_v26  ;;  %v914_v35 = vshrl.u32 %v17872_v23, 16  ;;  %v917_v37 = vshll.u32 %v17872_v23, 16  ;;  %v941_v39 = vshrl.u32 %v17873_v28, 16  ;;  %v17888_v26 = vld [vmem:[%s19209_s21 + $0xdc] ss:$8 sps:$4 sm:$0xff]  }
 0x152   : > { %15307 = vmatprep.mubr.msk.bf16.mxu0 %vm1151_vm3, %v19339_v7  ;;  %v2066_v25 = vor.u32 %v2065_v16, %v2062_v12  ;;  %v929_v38 = vor.u32 %v928_v30, %v925_v4  ;;  %v944_v41 = vshll.u32 %v17873_v28, 16  ;;  %v959_v56 = vshrl.u32 %v17877_v46, 16  ;;  %v17887_v12 = vld [vmem:[#allocation10 + $0x200] sm:$0xff]   ;;  %v17894_v27 = vld [vmem:[#allocation10 + $0x208] sm:$0xff]  }
 0x153   : > { %16661 = vmatmul.mubr.msk.bf16.gmra.mrb[20].mxu1 %vm1617_vm2, %v1559_v11  ;;  %v910_v11 = vrot.slane %v908_v55, 4  ;;  %v19401_v44 = vsel %vm770_vm0, %v884_v15, %v902_v34  ;;  %v916_v42 = vrot.slane %v914_v35, 3  ;;  %v919_v45 = vrot.slane %v917_v37, 4  ;;  %16677 = vmatpush3.bf16.msra.mxu0 %v17903_v59  ;;  %v17901_v37 = vld [vmem:[#allocation10 + $0x210] sm:$0xff]  }
 0x154   : > { %16664 = vmatprep.mubr.msk.bf16.mxu1 %vm1617_vm2, %v1568_v20  ;;  %v2075_v32 = vsel %vm770_vm0, %v2066_v25, %v19303_v8  ;;  %v17871_v8 = vld [vmem:[#allocation10 + $0x1e8] sm:$0xff]   ;;  %v943_v49 = vrot.slane %v941_v39, 3  ;;  %v946_v50 = vrot.slane %v944_v41, 4  ;;  %v962_v57 = vshll.u32 %v17877_v46, 16 }
 0x155   : > { %v911_v20 = vor.u32 %v910_v11, %v907_v9  ;;  %v961_v6 = vrot.slane %v959_v56, 3  ;;  %v17882_v11 = vld [vmem:[%s19209_s21 + $0xb8] ss:$8 sps:$4 sm:$0xff]   ;;  %v950_v13 = vshrl.u32 %v17879_v60, 16  ;;  %v977_v15 = vshrl.u32 %v17880_v1, 16 }
 0x156   : > { %v947_v55 = vor.u32 %v946_v50, %v943_v49  ;;  %v964_v9 = vrot.slane %v962_v57, 4  ;;  %v980_v17 = vshll.u32 %v17880_v1, 16  ;;  %v968_v30 = vshrl.u32 %v17882_v11, 16  ;;  %v17897_v57 = vld [vmem:[%s19209_s21 + $0xf8] ss:$8 sps:$4 sm:$0xff]  }
 0x157   : > { %v19392_v29 = vsel %vm770_vm0, %v893_v53, %v911_v20  ;;  %v935_v53 = vshll.u32 %v17875_v43, 16  ;;  %v952_v22 = vrot.slane %v950_v13, 3  ;;  %v979_v25 = vrot.slane %v977_v15, 3  ;;  %v17906_v15 = vld [vmem:[%s19201_s13 + $0x14] sm:$0xff]  }
 0x158   : > { %v19425_v5 = vsel %vm770_vm0, %v929_v38, %v947_v55  ;;  %v965_v16 = vor.u32 %v964_v9, %v961_v6  ;;  %v982_v4 = vrot.slane %v980_v17, 4  ;;  %v970_v39 = vrot.slane %v968_v30, 3 }
 0x159   : > { %1257 = vmatmul.mubr.bf16.gmra.mrb[12].mxu0 %v19352_v31  ;;  %v937_v2 = vrot.slane %v935_v53, 4  ;;  %v1016_v46 = vshll.u32 %v17888_v26, 16  ;;  %v1049_v13 = vshrl.u32 %v17895_v51, 16 }
 0x15a   : > { %15308 = vmatprep.mubr.msk.bf16.mxu0 %vm1151_vm3, %v19358_v40  ;;  %v19445_v28 = vsel %vm770_vm0, %v947_v55, %v965_v16  ;;  %v17908_v55 = vld [vmem:[#allocation10 + $0x218] sm:$0xff]  }
 0x15b   : > { %16665 = vmatmul.mubr.msk.bf16.gmra.mrb[24].mxu1 %vm1617_vm2, %v1577_v48  ;;  %v19408_v48 = vsel %vm770_vm0, %v911_v20, %v929_v38  ;;  %v17886_v20 = vld [vmem:[%s19209_s21 + $0xc8] ss:$8 sps:$4 sm:$0xff]   ;;  %v983_v38 = vor.u32 %v982_v4, %v979_v25 }
 0x15c   : > { %16668 = vmatprep.mubr.msk.bf16.mxu1 %vm1617_vm2, %v1586_v52  ;;  %v932_v52 = vshrl.u32 %v17875_v43, 16  ;;  %v986_v35 = vshrl.u32 %v17886_v20, 16  ;;  %v17891_v43 = vld [vmem:[%s19209_s21 + $0xec] ss:$8 sps:$4 sm:$0xff]  }
 0x15d   : > { %v19466_v56 = vsel %vm770_vm0, %v965_v16, %v983_v38  ;;  %v1043_v16 = vshll.u32 %v17897_v57, 16 }
 0x15e   : > { %v934_v63 = vrot.slane %v932_v52, 3  ;;  %v988_v53 = vrot.slane %v986_v35, 3 }
 0x161   : > { %1265 = vmatmul.mubr.bf16.gmra.mrb[16].mxu0 %v19372_v3 }
 0x162   : > { %15309 = vmatprep.mubr.msk.bf16.mxu0 %vm1151_vm3, %v19376_v10 }
 0x163   : > { %16669 = vmatmul.mubr.msk.bf16.gmra.mrb[28].mxu1 %vm1617_vm2, %v1595_v14  ;;  %v953_v14 = vshll.u32 %v17879_v60, 16  ;;  %v1018_v60 = vrot.slane %v1016_v46, 4  ;;  %v2743_v46 = vshll.u32 %v17906_v15, 16 }
 0x164   : > { %15401 = vmatprep.mubr.msk.bf16.mxu1 %vm1151_vm3, %v2092_v19 }
 0x165   : > { %v955_v23 = vrot.slane %v953_v14, 4  ;;  %v1052_v14 = vshll.u32 %v17895_v51, 16 }
 0x169   : > { %1273 = vmatmul.mubr.bf16.gmra.mrb[20].mxu0 %v19387_v24 }
 0x16a   : > { %15310 = vmatprep.mubr.msk.bf16.mxu0 %vm1151_vm3, %v19392_v29 }
 0x16b   : > { %2520 = vmatmul.mubr.bf16.vlgmr.msra.gmra.mrb[32].mxu1 %v2075_v32  ;;  %v995_v32 = vshrl.u32 %v17884_v18, 16 }
 0x16c   : > { %3805 = vmatpush1.bf16.msra.mxu1 %v17865_v33  ;;  %15402 = vmatprep.mubr.msk.bf16.mxu1 %vm1151_vm3, %v19320_v36  ;;  %v920_v36 = vor.u32 %v919_v45, %v916_v42  ;;  %v956_v33 = vor.u32 %v955_v23, %v952_v22  ;;  %v989_v42 = vshll.u32 %v17886_v20, 16  ;;  %v1013_v45 = vshrl.u32 %v17888_v26, 16  ;;  %v17907_v20 = vld [vmem:[%s19201_s13 + $0x1c] sm:$0xff]   ;;  %v17918_v26 = vld [vmem:[#allocation10 + $0x228] sm:$0xff]  }
 0x16d   : > { %3806 = vmatprep.subr.bf16.mxu1 %v18842_v0  ;;  %v19413_v0 = vld [vmem:[#allocation3] sm:$0xff]  ;;  %v2752_v51 = vshll.u32 %v17907_v20, 16 }
 0x16e   : > { %v19419_v62 = vsel %vm770_vm0, %v902_v34, %v920_v36  ;;  %v998_v34 = vshll.u32 %v17884_v18, 16  ;;  %v1015_v59 = vrot.slane %v1013_v45, 3 }
 0x170   : > { %3807 = vmatpush1.bf16.msra.mxu1 %v17871_v8  ;;  %v997_v8 = vrot.slane %v995_v32, 3  ;;  %v1000_v52 = vrot.slane %v998_v34, 4  ;;  %v19501_v32 = vrot.slane %v1049_v13, 3  ;;  %v1019_v45 = vor.u32 %v1018_v60, %v1015_v59 }
 0x171   : > { %1281 = vmatmul.mubr.bf16.gmra.mrb[24].mxu0 %v19401_v44  ;;  %3808 = vmatprep.subr.bf16.mxu1 %v19413_v0 }
 0x172   : > { %15311 = vmatprep.mubr.msk.bf16.mxu0 %vm1151_vm3, %v19408_v48  ;;  %v1001_v9 = vor.u32 %v1000_v52, %v997_v8  ;;  %v17909_v8 = vld [vmem:[%s19201_s13 + $0x24] sm:$0xff]   ;;  %v17911_v52 = vld [vmem:[%s19201_s13 + $0x34] sm:$0xff]  }
 0x173   : > { %2528 = vmatmul.mubr.bf16.gmra.mrb[36].mxu1 %v19332_v58  ;;  %v17904_v58 = vld [vmem:[#allocation9 + $0x6c] ss:$0 sps:$4 sm:$0xff]   ;;  %v2761_v60 = vshll.u32 %v17909_v8, 16  ;;  %v2779_v13 = vshll.u32 %v17911_v52, 16 }
 0x174   : > { %15403 = vmatprep.mubr.msk.bf16.mxu1 %vm1151_vm3, %v19339_v7  ;;  %3809 = vmatpush1.bf16.msra.mxu1 %v17876_v54  ;;  %v938_v7 = vor.u32 %v937_v2, %v934_v63  ;;  %v2953_v19 = vsel %vm1666_vm1, %v17904_v58, 0  ;;  %v19463_v54 = vld [vmem:[%s19209_s21 + $0x108] sm:$0xff]  ;;  %v1034_v2 = vshll.u32 %v17891_v43, 16  ;;  %v19492_v23 = vsel %vm770_vm0, %v983_v38, %v1001_v9 }
 0x175   : > { %3810 = vmatprep.subr.bf16.mxu1 %v19413_v0  ;;  %17669 = vmatprep.subr.msk.bf16.mxu0 %vm1666_vm1, %v17904_v58  ;;  %v15293_v1 = vcombine.high %v19463_v54, %v19463_v54  ;;  %v1022_v58 = vshrl.u32 %v17893_v47, 16  ;;  %v15292_v17 = vcombine.low %v19463_v54, %v19463_v54 }
 0x176   : > { %v19439_v21 = vsel %vm770_vm0, %v920_v36, %v938_v7  ;;  %16679 = vmatpush3.bf16.msra.mxu0 %v2953_v19  ;;  %v19458_v36 = vsel %vm770_vm0, %v938_v7, %v956_v33  ;;  %v1025_v7 = vshll.u32 %v17893_v47, 16  ;;  %v17905_v19 = vld [vmem:[%s19201_s13 + $0xc] sm:$0xf8]   ;;  %v1036_v30 = vrot.slane %v1034_v2, 4 }
 0x177   : > { %v1067_v18 = vshrl.u32 %v15293_v1, 16  ;;  %v1070_v25 = vshll.u32 %v15293_v1, 16  ;;  %v2732_v34 = vshrl.u32 %v17905_v19, 16  ;;  %v2735_v35 = vshll.u32 %v17905_v19, 16  ;;  %v17916_v19 = vld [vmem:[%s19201_s13 + $0x4c] sm:$0xff]  }
 0x178   : > { %3811 = vmatpush1.bf16.msra.mxu1 %v17883_v61  ;;  %v1031_v61 = vshrl.u32 %v17891_v43, 16  ;;  %v2749_v47 = vshrl.u32 %v17907_v20, 16 }
 0x179   : > { %1289 = vmatmul.mubr.bf16.gmra.mrb[28].mxu0 %v19419_v62  ;;  %3812 = vmatprep.subr.bf16.mxu1 %v19413_v0  ;;  %v19514_v43 = vrot.slane %v1070_v25, 4 }
 0x17a   : > { %15312 = vmatprep.mubr.msk.bf16.mxu0 %vm1151_vm3, %v19425_v5  ;;  %v1033_v4 = vrot.slane %v1031_v61, 3  ;;  %v19539_v61 = vsel %vm770_vm0, %v1001_v9, %v1019_v45  ;;  %v19543_v2 = vrot.slane %v2749_v47, 3  ;;  %v1896_v47 = vld [vmem:[%s19209_s21 + $0x118] sm:$0xff] }
 0x17b   : > { %2536 = vmatmul.mubr.bf16.gmra.mrb[40].mxu1 %v19352_v31  ;;  %v971_v31 = vshll.u32 %v17882_v11, 16  ;;  %v17913_v11 = vld [vmem:[#allocation10 + $0x220] sm:$0xff]  }
 0x17c   : > { %15404 = vmatprep.mubr.msk.bf16.mxu1 %vm1151_vm3, %v19358_v40  ;;  %3813 = vmatpush1.bf16.msra.mxu1 %v17887_v12  ;;  %v17890_v40 = vld [vmem:[%s19209_s21 + $0xd8] ss:$8 sps:$4 sm:$0xff]   ;;  %v1040_v12 = vshrl.u32 %v17897_v57, 16  ;;  %v1037_v20 = vor.u32 %v1036_v30, %v1033_v4 }
 0x17d   : > { %3814 = vmatprep.subr.bf16.mxu1 %v19413_v0  ;;  %v973_v41 = vrot.slane %v971_v31, 4  ;;  %v1004_v49 = vshrl.u32 %v17890_v40, 16  ;;  %v1007_v50 = vshll.u32 %v17890_v40, 16  ;;  %v19499_v31 = vrot.slane %v1025_v7, 4 }
 0x17e   : > { %v1061_v40 = vshll.u32 %v15292_v17, 16  ;;  %v19508_v38 = vrot.slane %v1040_v12, 3  ;;  %v2776_v7 = vshrl.u32 %v17911_v52, 16 }
 0x17f   : > { %v19473_v63 = vrot.slane %v1007_v50, 4  ;;  %v974_v6 = vor.u32 %v973_v41, %v970_v39  ;;  %v19510_v39 = vrot.slane %v1043_v16, 4  ;;  %v19512_v41 = vrot.slane %v1067_v18, 3 }
 0x180   : > { %3815 = vmatpush1.bf16.msra.mxu1 %v17894_v27  ;;  %v19521_v50 = vrot.slane %v1061_v40, 4  ;;  %v19558_v16 = vrot.slane %v2761_v60, 4 }
 0x181   : > { %1297 = vmatmul.mubr.bf16.gmra.mrb[32].mxu0 %v19439_v21  ;;  %3816 = vmatprep.subr.bf16.mxu1 %v19413_v0  ;;  %v19487_v22 = vsel %vm770_vm0, %v956_v33, %v974_v6  ;;  %v19504_v33 = vrot.slane %v1052_v14, 4 }
 0x182   : > { %15313 = vmatprep.mubr.msk.bf16.mxu0 %vm1151_vm3, %v19445_v28 }
 0x183   : > { %2544 = vmatmul.mubr.bf16.gmra.mrb[44].mxu1 %v19372_v3  ;;  %v991_v3 = vrot.slane %v989_v42, 4  ;;  %v17910_v42 = vld [vmem:[%s19201_s13 + $0x2c] sm:$0xff]  }
 0x184   : > { %15405 = vmatprep.mubr.msk.bf16.mxu1 %vm1151_vm3, %v19376_v10  ;;  %3817 = vmatpush1.bf16.msra.mxu1 %v17901_v37  ;;  %v19471_v10 = vrot.slane %v1004_v49, 3  ;;  %v2740_v37 = vshrl.u32 %v17906_v15, 16  ;;  %v2767_v1 = vshrl.u32 %v17910_v42, 16  ;;  %v17914_v15 = vld [vmem:[%s19201_s13 + $0x44] sm:$0xff]  }
 0x185   : > { %3818 = vmatprep.subr.bf16.mxu1 %v19413_v0  ;;  %v19494_v27 = vor.u32 %v991_v3, %v988_v53  ;;  %v19525_v53 = vrot.slane %v2732_v34, 3  ;;  %v17912_v3 = vld [vmem:[%s19201_s13 + $0x3c] sm:$0xff]  }
 0x186   : > { %v19529_v57 = vrot.slane %v2740_v37, 3  ;;  %v1010_v9 = vor.u32 %v19473_v63, %v19471_v10  ;;  %v2785_v14 = vshrl.u32 %v17912_v3, 16  ;;  %v19563_v25 = vrot.slane %v2767_v1, 3  ;;  %v17919_v10 = vld [vmem:[%s19201_s13 + $0x54] sm:$0xff]  }
 0x187   : > { %v19534_v59 = vsel %vm770_vm0, %v974_v6, %v19494_v27  ;;  %v2770_v6 = vshll.u32 %v17910_v42, 16  ;;  %v2797_v37 = vshll.u32 %v17914_v15, 16  ;;  %v2812_v52 = vshrl.u32 %v17919_v10, 16 }
 0x188   : > { %3819 = vmatpush1.bf16.msra.mxu1 %v17908_v55  ;;  %v19527_v55 = vrot.slane %v2735_v35, 4  ;;  %v19574_v34 = vrot.slane %v2785_v14, 3  ;;  %v2794_v35 = vshrl.u32 %v17914_v15, 16  ;;  %v19579_v4 = vsel %vm770_vm0, %v19494_v27, %v1010_v9 }
 0x189   : > { %1305 = vmatmul.mubr.bf16.gmra.mrb[36].mxu0 %v19458_v36  ;;  %3820 = vmatprep.subr.bf16.mxu1 %v19413_v0  ;;  %v19566_v63 = vrot.slane %v2770_v6, 4  ;;  %v2815_v60 = vshll.u32 %v17919_v10, 16  ;;  %v15390_v1 = vcombine.high %v1896_v47, %v1896_v47  ;;  %v19600_v6 = vor.u32 %v19504_v33, %v19501_v32  ;;  %v17924_v10 = vld [vmem:[%s19201_s13 + $0x6c] sm:$0xff]  }
 0x18a   : > { %15314 = vmatprep.mubr.msk.bf16.mxu0 %vm1151_vm3, %v19466_v56 }
 0x18b   : > { %2552 = vmatmul.mubr.bf16.gmra.mrb[48].mxu1 %v19387_v24  ;;  %v19496_v24 = vrot.slane %v1022_v58, 3  ;;  %v1895_v58 = vld [vmem:[%s19209_s21 + $0x110] sm:$0xff]  ;;  %v19619_v33 = vrot.slane %v2815_v60, 4  ;;  %v17930_v60 = vld [vmem:[%s19209_s21 + $0x3c] ss:$8 sps:$4 sm:$0xff]  }
 0x18c   : > { %15406 = vmatprep.mubr.msk.bf16.mxu1 %vm1151_vm3, %v19392_v29  ;;  %3821 = vmatpush1.bf16.msra.mxu1 %v17913_v11  ;;  %v1058_v29 = vshrl.u32 %v15292_v17, 16  ;;  %v19546_v11 = vrot.slane %v2752_v51, 4  ;;  %v2788_v17 = vshll.u32 %v17912_v3, 16  ;;  %v15388_v18 = vcombine.high %v19463_v54, %v1895_v58 }
 0x18d   : > { %3822 = vmatprep.subr.bf16.mxu1 %v19413_v0  ;;  %v15387_v40 = vcombine.low %v19463_v54, %v1895_v58  ;;  %v19587_v54 = vsel %vm770_vm0, %v1019_v45, %v1037_v20  ;;  %v2806_v51 = vshll.u32 %v17916_v19, 16  ;;  %v19591_v3 = vor.u32 %v19499_v31, %v19496_v24 }
 0x18e   : > { %v19519_v49 = vrot.slane %v1058_v29, 3  ;;  %v19570_v29 = vrot.slane %v2779_v13, 4  ;;  %v19583_v30 = vrot.slane %v2788_v17, 4  ;;  %v2337_v42 = vshrl.u32 %v15388_v18, 16  ;;  %v17923_v13 = vld [vmem:[%s19201_s13 + $0x64] sm:$0xff]  }
 0x18f   : > { %v2328_v27 = vshrl.u32 %v15387_v40, 16  ;;  %v19602_v24 = vrot.slane %v2797_v37, 4  ;;  %v19611_v15 = vrot.slane %v2806_v51, 4  ;;  %v19613_v17 = vrot.slane %v2812_v52, 3 }
 0x190   : > { %3823 = vmatpush1.bf16.msra.mxu1 %v17918_v26  ;;  %v19568_v26 = vrot.slane %v2776_v7, 3  ;;  %v19604_v31 = vrot.slane %v2337_v42, 3  ;;  %v19629_v42 = vsel %vm770_vm0, %v1010_v9, %v19591_v3  ;;  %v17925_v51 = vld [vmem:[%s19209_s21 + $0x28] ss:$8 sps:$4 sm:$0xf8]   ;;  %v19643_v9 = vor.u32 %v19510_v39, %v19508_v38 }
 0x191   : > { %1313 = vmatmul.mubr.bf16.gmra.mrb[40].mxu0 %v19487_v22  ;;  %17456 = vmatprep.subr.bf16.mxu1 %v19413_v0  ;;  %v2758_v0 = vshrl.u32 %v17909_v8, 16  ;;  %v17921_v8 = vld [vmem:[%s19201_s13 + $0x5c] sm:$0xff]   ;;  %v17927_v52 = vld [vmem:[%s19209_s21 + $0x2c] ss:$8 sps:$4 sm:$0xf8]   ;;  %v2842_v38 = vshll.u32 %v17924_v10, 16 }
 0x192   : > { %15315 = vmatprep.mubr.msk.bf16.mxu0 %vm1151_vm3, %v19492_v23  ;;  %v2821_v58 = vshrl.u32 %v17921_v8, 16  ;;  %v2824_v45 = vshll.u32 %v17921_v8, 16  ;;  %v3394_v39 = vshrl.u32 %v17927_v52, 16 }
 0x193   : > { %2560 = vmatmul.mubr.bf16.gmra.mrb[52].mxu1 %v19401_v44  ;;  %v19541_v44 = vrot.slane %v2743_v46, 4  ;;  %v19556_v12 = vrot.slane %v2758_v0, 3  ;;  %v2803_v46 = vshrl.u32 %v17916_v19, 16  ;;  %v2331_v0 = vshll.u32 %v15387_v40, 16 }
 0x194   : > { %15407 = vmatprep.mubr.msk.bf16.mxu1 %vm1151_vm3, %v19408_v48  ;;  %v19548_v48 = vld [vmem:[#allocation9 + $0xa8] sm:$0xff]   ;;  %v19615_v19 = vrot.slane %v2328_v27, 3  ;;  %v2355_v40 = vshrl.u32 %v15390_v1, 16  ;;  %v19623_v37 = vrot.slane %v2821_v58, 3  ;;  %v19625_v8 = vrot.slane %v2824_v45, 4 }
 0x195   : > { %16712 = vmatprep.subr.bf16.mxu0 %v19548_v48  ;;  %v19606_v7 = vrot.slane %v2803_v46, 3  ;;  %v19617_v32 = vrot.slane %v2331_v0, 4  ;;  %v2830_v46 = vshrl.u32 %v17923_v13, 16  ;;  %v2839_v0 = vshrl.u32 %v17924_v10, 16 }
 0x196   : > { %25038 = vst [vmem:[#allocation26_spill] sm:$0xff] %v19615_v19  ;;  %25040 = vst [vmem:[#allocation28_spill] sm:$0xff] %v19623_v37  ;;  %v17933_v19 = vld [vmem:[%s19201_s13 + $0x7c] sm:$0xff]   ;;  %v19670_v10 = vsel %vm770_vm0, %v19591_v3, %v19643_v9  ;;  %v1064_v3 = vor.u32 %v19521_v50, %v19519_v49 }
 0x197   : > { %25039 = vst [vmem:[#allocation27_spill] sm:$0xff] %v19617_v32  ;;  %25041 = vst [vmem:[#allocation29_spill] sm:$0xff] %v19625_v8  ;;  %v19654_v45 = vrot.slane %v2830_v46, 3  ;;  %v3402_v32 = vshrl.u32 %v17930_v60, 16 }
 0x199   : > { %1321 = vmatmul.mubr.bf16.gmra.mrb[44].mxu0 %v19534_v59 }
 0x19a   : > { %15316 = vmatprep.mubr.msk.bf16.mxu0 %vm1151_vm3, %v19539_v61 }
 0x19b   : > { %2568 = vmatmul.mubr.bf16.gmra.mrb[56].mxu1 %v19419_v62  ;;  %v2340_v62 = vshll.u32 %v15388_v18, 16  ;;  %v15389_v18 = vcombine.low %v1896_v47, %v1896_v47  ;;  %v2833_v47 = vshll.u32 %v17923_v13, 16 }
 0x19c   : > { %15408 = vmatprep.mubr.msk.bf16.mxu1 %vm1151_vm3, %v19425_v5  ;;  %v19594_v5 = vrot.slane %v2794_v35, 3  ;;  %v2358_v35 = vshll.u32 %v15390_v1, 16  ;;  %v17928_v1 = vld [vmem:[%s19209_s21 + $0x38] ss:$8 sps:$4 sm:$0xff]  }
 0x19d   : > { %v19609_v14 = vrot.slane %v2340_v62, 4  ;;  %v19635_v62 = vsel %vm770_vm0, %v1037_v20, %v19600_v6  ;;  %v2349_v27 = vshll.u32 %v15389_v18, 16  ;;  %v1073_v20 = vor.u32 %v19514_v43, %v19512_v41 }
 0x19e   : > { %v19652_v58 = vrot.slane %v2358_v35, 4  ;;  %v19656_v13 = vrot.slane %v2833_v47, 4  ;;  %v3405_v41 = vshll.u32 %v17930_v60, 16  ;;  %v3377_v43 = vshrl.u32 %v17925_v51, 16  ;;  %v17934_v60 = vld [vmem:[%s19209_s21 + $0x4c] ss:$8 sps:$4 sm:$0xff]  }
 0x19f   : > { %v19661_v37 = vrot.slane %v2349_v27, 4  ;;  %v3380_v35 = vshll.u32 %v17925_v51, 16  ;;  %v3385_v46 = vshrl.u32 %v17928_v1, 16  ;;  %v3388_v47 = vshll.u32 %v17928_v1, 16 }
 0x1a0   : > { %v1074_v27 = vsel %vm770_vm0, %v19600_v6, %v1073_v20  ;;  %v19687_v1 = vrot.slane %v3402_v32, 3  ;;  %v19691_v20 = vrot.slane %v3377_v43, 3  ;;  %v2738_v32 = vor.u32 %v19527_v55, %v19525_v53  ;;  %v17939_v43 = vld [vmem:[%s19201_s13 + $0x84] sm:$0xff]   ;;  %v17945_v55 = vld [vmem:[%s19209_s21 + $0x58] ss:$8 sps:$4 sm:$0xff]  }
 0x1a1   : > { %1329 = vmatmul.mubr.bf16.gmra.mrb[48].mxu0 %v19579_v4  ;;  %25043 = vst [vmem:[#allocation31_spill] sm:$0xff] %v19661_v37  ;;  %v2860_v37 = vshll.u32 %v17933_v19, 16  ;;  %v19698_v49 = vrot.slane %v3388_v47, 4  ;;  %v17942_v53 = vld [vmem:[%s19209_s21 + $0x5c] ss:$8 sps:$4 sm:$0xff]  }
 0x1a2   : > { %15317 = vmatprep.mubr.msk.bf16.mxu0 %vm1151_vm3, %v19587_v54 }
 0x1a3   : > { %2576 = vmatmul.mubr.bf16.gmra.mrb[60].mxu1 %v19439_v21  ;;  %v2346_v21 = vshrl.u32 %v15389_v18, 16  ;;  %v17932_v18 = vld [vmem:[%s19201_s13 + $0x74] sm:$0xff]  }
 0x1a4   : > { %15409 = vmatprep.mubr.msk.bf16.mxu1 %vm1151_vm3, %v19445_v28  ;;  %v19645_v28 = vrot.slane %v2355_v40, 3  ;;  %v3397_v40 = vshll.u32 %v17927_v52, 16  ;;  %v2851_v52 = vshll.u32 %v17932_v18, 16 }
 0x1a5   : > { %v19659_v8 = vrot.slane %v2346_v21, 3  ;;  %v2848_v21 = vshrl.u32 %v17932_v18, 16  ;;  %v19689_v18 = vrot.slane %v3405_v41, 4  ;;  %v3420_v41 = vshrl.u32 %v17934_v60, 16 }
 0x1a6   : > { %25042 = vst [vmem:[#allocation30_spill] sm:$0xff] %v19645_v28  ;;  %v19663_v28 = vrot.slane %v2839_v0, 3  ;;  %v19678_v0 = vrot.slane %v3394_v39, 3  ;;  %v19680_v51 = vrot.slane %v3397_v40, 4  ;;  %v19696_v39 = vrot.slane %v3385_v46, 3 }
 0x1a7   : > { %v19700_v50 = vrot.slane %v2848_v21, 3  ;;  %v2746_v40 = vor.u32 %v19541_v44, %v19529_v57  ;;  %v19711_v46 = vrot.slane %v2860_v37, 4  ;;  %v17941_v21 = vld [vmem:[%s19201_s13 + $0x8c] ss:$0 sps:$4 sm:$0xff]   ;;  %v2755_v44 = vor.u32 %v19546_v11, %v19543_v2 }
 0x1a8   : > { %25044 = vst [vmem:[#allocation32_spill] sm:$0xff] %v19663_v28  ;;  %v2857_v28 = vshrl.u32 %v17933_v19, 16  ;;  %v19702_v19 = vrot.slane %v2851_v52, 4  ;;  %v1065_v52 = vsel %vm770_vm0, %v19643_v9, %v1064_v3  ;;  %v19724_v37 = vrot.slane %v3420_v41, 3 }
 0x1a9   : > { %1337 = vmatmul.mubr.bf16.gmra.mrb[52].mxu0 %v19629_v42  ;;  %25046 = vst [vmem:[#allocation34_spill] sm:$0xff] %v19711_v46  ;;  %v2747_v57 = vsel %vm770_vm0, %v2738_v32, %v2746_v40  ;;  %v2866_v3 = vshrl.u32 %v17939_v43, 16  ;;  %v2869_v46 = vshll.u32 %v17939_v43, 16  ;;  %v2764_v32 = vor.u32 %v19558_v16, %v19556_v12 }
 0x1aa   : > { %15318 = vmatprep.mubr.msk.bf16.mxu0 %vm1151_vm3, %v19635_v62  ;;  %25047 = vst [vmem:[#allocation35_spill] sm:$0xff] %v19724_v37  ;;  %v3438_v2 = vshrl.u32 %v17942_v53, 16  ;;  %v3441_v11 = vshll.u32 %v17942_v53, 16  ;;  %v3429_v41 = vshrl.u32 %v17945_v55, 16  ;;  %v17948_v37 = vld [vmem:[%s19201_s13 + $0x1c] sm:$0xff]   ;;  %v3432_v53 = vshll.u32 %v17945_v55, 16 }
 0x1ab   : > { %2584 = vmatmul.mubr.bf16.gmra.mrb[64].mxu1 %v19458_v36  ;;  %v19676_v36 = vrot.slane %v2842_v38, 4  ;;  %v19693_v38 = vrot.slane %v3380_v35, 4  ;;  %v19709_v35 = vrot.slane %v2857_v28, 3  ;;  %v19740_v43 = vrot.slane %v2866_v3, 3 }
 0x1ac   : > { %15410 = vmatprep.mubr.msk.bf16.mxu1 %vm1151_vm3, %v19466_v56  ;;  %v17937_v56 = vld [vmem:[%s19209_s21 + $0x48] ss:$8 sps:$4 sm:$0xff]   ;;  %v19755_v3 = vrot.slane %v3441_v11, 4  ;;  %v4060_v55 = vshll.u32 %v17948_v37, 16  ;;  %v17944_v11 = vld [vmem:[#allocation9 + $0xb8] sm:$0xff]  }
 0x1ad   : > { %25045 = vst [vmem:[#allocation33_spill] sm:$0xff] %v19709_v35  ;;  %v3411_v47 = vshrl.u32 %v17937_v56, 16  ;;  %v3414_v28 = vshll.u32 %v17937_v56, 16  ;;  %v2878_v35 = vshll.u32 %v17941_v21, 16  ;;  %v19734_v56 = vld [vmem:[#allocation9 + $0xc0] ss:$0 sps:$4 sm:$0xff]  }
 0x1ae   : > { %25050 = vst [vmem:[#allocation38_spill] sm:$0xff] %v19740_v43  ;;  %v19758_v43 = vrot.slane %v3429_v41, 3  ;;  %v19769_v41 = vrot.slane %v3432_v53, 4 }
 0x1af   : > { %v19748_v16 = vrot.slane %v2878_v35, 4 }
 0x1b0   : > { %25053 = vst [vmem:[#allocation41_spill] sm:$0xff] %v19758_v43 }
 0x1b1   : > { %1345 = vmatmul.mubr.bf16.gmra.mrb[56].mxu0 %v19670_v10  ;;  %25052 = vst [vmem:[#allocation40_spill] sm:$0xff] %v19748_v16  ;;  %v17952_v16 = vld [vmem:[%s19209_s21 + $0x68] ss:$8 sps:$4 sm:$0xff]  }
 0x1b2   : > { %15319 = vmatprep.mubr.msk.bf16.mxu0 %vm1151_vm3, %v1074_v27  ;;  %v3423_v27 = vshll.u32 %v17934_v60, 16  ;;  %v19728_v60 = vrot.slane %v3411_v47, 3  ;;  %v2756_v47 = vsel %vm770_vm0, %v2746_v40, %v2755_v44  ;;  %v2765_v40 = vsel %vm770_vm0, %v2755_v44, %v2764_v32 }
 0x1b3   : > { %2592 = vmatmul.mubr.bf16.gmra.mrb[68].mxu1 %v19487_v22  ;;  %v2773_v44 = vor.u32 %v19566_v63, %v19563_v25  ;;  %v2791_v25 = vor.u32 %v19583_v30, %v19574_v34  ;;  %v17955_v63 = vld [vmem:[%s19209_s21 + $0x7c] ss:$8 sps:$4 sm:$0xff]   ;;  %v3447_v30 = vshrl.u32 %v17952_v16, 16 }
 0x1b4   : > { %15411 = vmatprep.mubr.msk.bf16.mxu1 %vm1151_vm3, %v19492_v23  ;;  %v19726_v22 = vrot.slane %v3423_v27, 4  ;;  %25048 = vst [vmem:[#allocation36_spill] sm:$0xff] %v19728_v60  ;;  %v2875_v23 = vshrl.u32 %v17941_v21, 16  ;;  %v17947_v27 = vld [vmem:[%s19201_s13 + $0x14] sm:$0xf8]   ;;  %v19738_v60 = vrot.slane %v3414_v28, 4 }
 0x1b5   : > { %v17949_v21 = vld [vmem:[%s19209_s21 + $0x6c] ss:$8 sps:$4 sm:$0xff]   ;;  %v19753_v28 = vrot.slane %v3438_v2, 3  ;;  %v4049_v35 = vshrl.u32 %v17947_v27, 16  ;;  %v2782_v2 = vor.u32 %v19570_v29, %v19568_v26 }
 0x1b6   : > { %25049 = vst [vmem:[#allocation37_spill] sm:$0xff] %v19738_v60  ;;  %v19746_v12 = vrot.slane %v2875_v23, 3  ;;  %v4057_v60 = vshrl.u32 %v17948_v37, 16  ;;  %v4052_v23 = vshll.u32 %v17947_v27, 16  ;;  %v3459_v43 = vshll.u32 %v17949_v21, 16 }
 0x1b7   : > { %v19780_v26 = vrot.slane %v4049_v35, 3  ;;  %v2800_v35 = vor.u32 %v19602_v24, %v19594_v5  ;;  %v3477_v5 = vshll.u32 %v17955_v63, 16 }
 0x1b8   : > { %25051 = vst [vmem:[#allocation39_spill] sm:$0xff] %v19746_v12  ;;  %v19774_v37 = vrot.slane %v4057_v60, 3  ;;  %v17954_v12 = vld [vmem:[%s19201_s13 + $0x2c] sm:$0xff]   ;;  %v19782_v29 = vrot.slane %v4052_v23, 4  ;;  %v2774_v60 = vsel %vm770_vm0, %v2764_v32, %v2773_v44  ;;  %v19792_v34 = vrot.slane %v3459_v43, 4 }
 0x1b9   : > { %1353 = vmatmul.mubr.bf16.gmra.mrb[60].mxu0 %v1065_v52  ;;  %v17938_v52 = vld [vmem:[#allocation9 + $0xb0] sm:$0xff]   ;;  %v4075_v23 = vshrl.u32 %v17954_v12, 16  ;;  %v2792_v32 = vsel %vm770_vm0, %v2782_v2, %v2791_v25 }
 0x1ba   : > { %16680 = vmatprep.mubr.msk.bf16.mxu0 %vm1617_vm2, %v2747_v57  ;;  %v19744_v57 = vrot.slane %v2869_v46, 4  ;;  %v19762_v46 = vsel %vm1666_vm1, %v19734_v56, 0  ;;  %25055 = vst [vmem:[#allocation43_spill] sm:$0xff] %v19792_v34  ;;  %v3474_v34 = vshrl.u32 %v17955_v63, 16 }
 0x1bb   : > { %2600 = vmatmul.mubr.bf16.gmra.mrb[72].mxu1 %v19534_v59  ;;  %v17951_v59 = vld [vmem:[%s19201_s13 + $0x24] sm:$0xff]  }
 0x1bc   : > { %15412 = vmatprep.mubr.msk.bf16.mxu1 %vm1151_vm3, %v19539_v61  ;;  %v3456_v61 = vshrl.u32 %v17949_v21, 16  ;;  %v4066_v27 = vshrl.u32 %v17951_v59, 16  ;;  %v19784_v21 = vrot.slane %v4060_v55, 4  ;;  %v3450_v55 = vshll.u32 %v17952_v16, 16  ;;  %v3194_v16 = vld [vmem:[%s19209_s21 + $0x90] sm:$0xff] }
 0x1be   : > { %v19786_v53 = vrot.slane %v3456_v61, 3  ;;  %v17959_v61 = vld [vmem:[%s19201_s13 + $0x3c] sm:$0xff]   ;;  %v19801_v43 = vrot.slane %v4066_v27, 3 }
 0x1c0   : > { %25054 = vst [vmem:[#allocation42_spill] sm:$0xff] %v19786_v53  ;;  %v3193_v53 = vld [vmem:[%s19209_s21 + $0x88] sm:$0xff] }
 0x1c1   : > { %16681 = vmatmul.mubr.msk.bf16.vlgmr.msra.gmra.mrb[64].mxu0 %vm1617_vm2, %v2756_v47  ;;  %v4069_v47 = vshll.u32 %v17951_v59, 16  ;;  %v17958_v59 = vld [vmem:[%s19209_s21 + $0x78] ss:$8 sps:$4 sm:$0xff]  }
 0x1c2   : > { %16684 = vmatprep.mubr.msk.bf16.mxu0 %vm1617_vm2, %v2765_v40  ;;  %16713 = vmatpush3.bf16.msra.mxu0 %v19548_v48  ;;  %v17957_v48 = vld [vmem:[%s19201_s13 + $0x34] sm:$0xff]   ;;  %v2783_v40 = vsel %vm770_vm0, %v2773_v44, %v2782_v2  ;;  %v19814_v2 = vrot.slane %v3447_v30, 3  ;;  %v3465_v27 = vshrl.u32 %v17958_v59, 16 }
 0x1c3   : > { %16714 = vmatprep.subr.bf16.mxu0 %v17938_v52  ;;  %2608 = vmatmul.mubr.bf16.gmra.mrb[76].mxu1 %v19579_v4  ;;  %v4078_v4 = vshll.u32 %v17954_v12, 16  ;;  %v19803_v44 = vrot.slane %v4069_v47, 4  ;;  %v4084_v24 = vshrl.u32 %v17957_v48, 16  ;;  %v2809_v12 = vor.u32 %v19611_v15, %v19606_v7 }
 0x1c4   : > { %15413 = vmatprep.mubr.msk.bf16.mxu1 %vm1151_vm3, %v19587_v54  ;;  %v19808_v54 = vor.u32 %v19609_v14, %v19604_v31  ;;  %v3468_v47 = vshll.u32 %v17958_v59, 16  ;;  %v19818_v31 = vrot.slane %v3450_v55, 4  ;;  %v19820_v14 = vrot.slane %v4075_v23, 3  ;;  %v17964_v23 = vld [vmem:[%s19201_s13 + $0x4c] sm:$0xff]  }
 0x1c5   : > { %25056 = vst [vmem:[#allocation44_spill] sm:$0xff] %v19803_v44  ;;  %v17961_v44 = vld [vmem:[%s19201_s13 + $0x44] sm:$0xff]   ;;  %v19822_v63 = vrot.slane %v4078_v4, 4  ;;  %v19826_v7 = vor.u32 %v19619_v33, %v19613_v17  ;;  %v19830_v15 = vrot.slane %v3474_v34, 3  ;;  %v19834_v30 = vrot.slane %v4084_v24, 3  ;;  %v3195_v4 = vld [vmem:[%s19209_s21 + $0x98] sm:$0xff] }
 0x1c6   : > { %16715 = vmatpush3.bf16.msra.mxu0 %v17938_v52  ;;  %v4087_v52 = vshll.u32 %v17957_v48, 16  ;;  %25057 = vst [vmem:[#allocation45_spill] sm:$0xff] %v19818_v31  ;;  %v4093_v48 = vshrl.u32 %v17959_v61, 16  ;;  %v15466_v55 = vcombine.low %v3193_v53, %v3194_v16  ;;  %v19841_v31 = vld [vmem:[%s19209_s21 + $0xa0] sm:$0xff]  ;;  %v2801_v17 = vsel %vm770_vm0, %v2791_v25, %v2800_v35 }
 0x1c7   : > { %16716 = vmatprep.subr.bf16.mxu0 %v17944_v11  ;;  %25058 = vst [vmem:[#allocation46_spill] sm:$0xff] %v19834_v30  ;;  %25060 = vst [vmem:[#allocation48_spill] sm:$0xff] %v19841_v31  ;;  %v19845_v33 = vrot.slane %v3465_v27, 3  ;;  %v4102_v34 = vshrl.u32 %v17961_v44, 16  ;;  %v17966_v27 = vld [vmem:[%s19201_s13 + $0x54] sm:$0xff]  }
 0x1c8   : > { %v19836_v59 = vrot.slane %v4087_v52, 4 }
 0x1c9   : > { %16685 = vmatmul.mubr.msk.bf16.gmra.mrb[68].mxu0 %vm1617_vm2, %v2774_v60  ;;  %v4096_v60 = vshll.u32 %v17959_v61, 16  ;;  %25061 = vst [vmem:[#allocation49_spill] sm:$0xff] %v19845_v33  ;;  %v2810_v61 = vsel %vm770_vm0, %v2800_v35, %v2809_v12  ;;  %v25069_v33 = vld [vmem:[#allocation29_spill] sm:$0xff] }
 0x1ca   : > { %16688 = vmatprep.mubr.msk.bf16.mxu0 %vm1617_vm2, %v2783_v40  ;;  %16717 = vmatpush3.bf16.msra.mxu0 %v17944_v11  ;;  %v15467_v40 = vcombine.high %v3193_v53, %v3194_v16  ;;  %v19832_v11 = vrot.slane %v3477_v5, 4  ;;  %25059 = vst [vmem:[#allocation47_spill] sm:$0xff] %v19836_v59  ;;  %v2344_v53 = vsel %vm770_vm0, %v19600_v6, %v19808_v54  ;;  %v19856_v5 = vrot.slane %v4093_v48, 3  ;;  %v25065_v6 = vld [vmem:[#allocation26_spill] sm:$0xff] }
 0x1cb   : > { %17670 = vmatprep.subr.msk.bf16.mxu0 %vm1666_vm1, %v19734_v56  ;;  %2616 = vmatmul.mubr.bf16.gmra.mrb[80].mxu1 %v19629_v42  ;;  %v19847_v56 = vrot.slane %v3468_v47, 4  ;;  %v4105_v42 = vshll.u32 %v17961_v44, 16  ;;  %v19858_v25 = vrot.slane %v4096_v60, 4  ;;  %v15469_v16 = vcombine.high %v3195_v4, %v19841_v31  ;;  %v19862_v47 = vld [vmem:[#allocation3] sm:$0xff] }
 0x1cc   : > { %15414 = vmatprep.mubr.msk.bf16.mxu1 %vm1151_vm3, %v19635_v62  ;;  %25063 = vst [vmem:[#allocation51_spill] sm:$0xff] %v19856_v5  ;;  %v3492_v24 = vshrl.u32 %v15467_v40, 16  ;;  %v3495_v52 = vshll.u32 %v15467_v40, 16  ;;  %v25066_v62 = vld [vmem:[#allocation27_spill] sm:$0xff]  ;;  %v3483_v44 = vshrl.u32 %v15466_v55, 16  ;;  %v4111_v48 = vshrl.u32 %v17964_v23, 16 }
 0x1cd   : > { %25062 = vst [vmem:[#allocation50_spill] sm:$0xff] %v19847_v56  ;;  %25064 = vst [vmem:[#allocation52_spill] sm:$0xff] %v19858_v25  ;;  %v2334_v35 = vor.u32 %v25066_v62, %v25065_v6  ;;  %v25067_v60 = vld [vmem:[#allocation30_spill] sm:$0xff]  ;;  %v25068_v56 = vld [vmem:[#allocation28_spill] sm:$0xff]  ;;  %v3486_v5 = vshll.u32 %v15466_v55, 16  ;;  %v4114_v59 = vshll.u32 %v17964_v23, 16  ;;  %v19877_v6 = vor.u32 %v19656_v13, %v19654_v45 }
 0x1ce   : > { %16719 = vmatpush3.bf16.msra.mxu0 %v19762_v46  ;;  %v2819_v46 = vsel %vm770_vm0, %v2809_v12, %v19826_v7  ;;  %v2361_v40 = vor.u32 %v19652_v58, %v25067_v60  ;;  %v2827_v25 = vor.u32 %v25069_v33, %v25068_v56  ;;  %v19879_v12 = vrot.slane %v4102_v34, 3  ;;  %v19885_v62 = vld [vmem:[%s19209_s21 + $0xa8] sm:$0xff]  ;;  %v3198_v33 = vld [vmem:[%s19209_s21 + $0xb0] sm:$0xff] }
 0x1cf   : > { %5034 = vmatprep.subr.bf16.mxu0 %v19862_v47  ;;  %v15468_v58 = vcombine.low %v3195_v4, %v19841_v31  ;;  %25072 = vst [vmem:[#allocation30_spill] sm:$0xff] %v19885_v62  ;;  %v19888_v55 = vrot.slane %v3492_v24, 3  ;;  %v3510_v23 = vshrl.u32 %v15469_v16, 16  ;;  %v3513_v56 = vshll.u32 %v15469_v16, 16  ;;  %v25073_v60 = vld [vmem:[#allocation31_spill] sm:$0xff]  ;;  %v3199_v4 = vld [vmem:[%s19209_s21 + $0xb8] sm:$0xff] }
 0x1d0   : > { %25070 = vst [vmem:[#allocation26_spill] sm:$0xff] %v19879_v12  ;;  %v2352_v30 = vor.u32 %v25073_v60, %v19659_v8  ;;  %v19892_v45 = vrot.slane %v3495_v52, 4  ;;  %v19894_v13 = vrot.slane %v4111_v48, 3  ;;  %v4123_v34 = vshll.u32 %v17966_v27, 16 }
 0x1d1   : > { %16689 = vmatmul.mubr.msk.bf16.gmra.mrb[72].mxu0 %vm1617_vm2, %v2792_v32  ;;  %v19881_v32 = vrot.slane %v4105_v42, 4  ;;  %v19897_v42 = vld [vmem:[%s19201_s13 + $0x5c] sm:$0xff]   ;;  %v19902_v24 = vrot.slane %v3483_v44, 3  ;;  %v19904_v12 = vrot.slane %v3486_v5, 4  ;;  %v19906_v16 = vrot.slane %v4114_v59, 4 }
 0x1d2   : > { %16692 = vmatprep.mubr.msk.bf16.mxu0 %vm1617_vm2, %v2801_v17  ;;  %v4120_v17 = vshrl.u32 %v17966_v27, 16  ;;  %25074 = vst [vmem:[#allocation28_spill] sm:$0xff] %v19894_v13  ;;  %v15471_v8 = vcombine.high %v19885_v62, %v3198_v33  ;;  %v2335_v52 = vsel %vm770_vm0, %v19643_v9, %v2334_v35  ;;  %v3501_v27 = vshrl.u32 %v15468_v58, 16  ;;  %v19914_v13 = vld [vmem:[%s19201_s13 + $0x64] sm:$0xff]  }
 0x1d3   : > { %25071 = vst [vmem:[#allocation27_spill] sm:$0xff] %v19881_v32  ;;  %v3200_v32 = vld [vmem:[%s19209_s21 + $0xc0] sm:$0xff]  ;;  %2624 = vmatmul.mubr.bf16.gmra.mrb[84].mxu1 %v19670_v10  ;;  %25075 = vst [vmem:[#allocation29_spill] sm:$0xff] %v19902_v24  ;;  %v3504_v48 = vshll.u32 %v15468_v58, 16  ;;  %v15470_v60 = vcombine.low %v19885_v62, %v3198_v33  ;;  %v450_v10 = vld [vmem:[#allocation16 + $0x10] sm:$0xff]  ;;  %v2828_v5 = vsel %vm770_vm0, %v19826_v7, %v2827_v25  ;;  %v19918_v44 = vrot.slane %v3510_v23, 3 }
 0x1d4   : > { %25076 = vst [vmem:[#allocation31_spill] sm:$0xff] %v19904_v12  ;;  %15415 = vmatprep.mubr.msk.bf16.mxu1 %vm1151_vm3, %v2344_v53  ;;  %v19920_v59 = vrot.slane %v3513_v56, 4  ;;  %v19922_v12 = vrot.slane %v4120_v17, 3  ;;  %v2362_v9 = vsel %vm770_vm0, %v19808_v54, %v2361_v40  ;;  %v2837_v53 = vsel %vm770_vm0, %v2827_v25, %v19877_v6  ;;  %v19930_v24 = vld [vmem:[#allocation16] sm:$0xff] }
 0x1d5   : > { %v19928_v58 = vrot.slane %v4123_v34, 4  ;;  %v15473_v33 = vcombine.high %v3199_v4, %v3200_v32  ;;  %v19934_v7 = vsel %vm770_vm0, %v2334_v35, %v2352_v30  ;;  %v3528_v23 = vshrl.u32 %v15471_v8, 16  ;;  %v3201_v34 = vld [vmem:[%s19209_s21 + $0xc8] sm:$0xff] }
 0x1d6   : > { %25077 = vst [vmem:[#allocation53_spill] sm:$0xff] %v19922_v12  ;;  %v3531_v56 = vshll.u32 %v15471_v8, 16  ;;  %vm482_vm4 = vcmp.gt.f32.partialorder %v450_v10, 0.0  ;;  %v19937_v54 = vrot.slane %v3501_v27, 3  ;;  %v19939_v40 = vrot.slane %v3504_v48, 4  ;;  %v25081_v35 = vld [vmem:[#allocation32_spill] sm:$0xff] }
 0x1d7   : > { %25078 = vst [vmem:[#allocation54_spill] sm:$0xff] %v19928_v58  ;;  %v3519_v25 = vshrl.u32 %v15470_v60, 16  ;;  %v4129_v17 = vshrl.u32 %v19897_v42, 16  ;;  %v3522_v58 = vshll.u32 %v15470_v60, 16  ;;  %v4132_v12 = vshll.u32 %v19897_v42, 16  ;;  %v451_v10 = vld [vmem:[#allocation16 + $0x18] sm:$0xff] }
 0x1d8   : > { %25079 = vst [vmem:[#allocation55_spill] sm:$0xff] %v19937_v54  ;;  %25080 = vst [vmem:[#allocation56_spill] sm:$0xff] %v19939_v40  ;;  %v4467_v30 = vsel %vm482_vm4, 1, %v19862_v47  ;;  %vm512_vm5 = vcmp.lt.f32.partialorder %v19930_v24, 15.0  ;;  %v2845_v8 = vor.u32 %v19676_v36, %v25081_v35  ;;  %v3546_v27 = vshrl.u32 %v15473_v33, 16  ;;  %v453_v35 = vld [vmem:[#allocation16 + $0x28] sm:$0xff] }
 0x1d9   : > { %16693 = vmatmul.mubr.msk.bf16.gmra.mrb[76].mxu0 %vm1617_vm2, %v2810_v61  ;;  %v3202_v61 = vld [vmem:[%s19209_s21 + $0xd0] sm:$0xff]  ;;  %v4138_v48 = vshrl.u32 %v19914_v13, 16  ;;  %4504 = vperm.xlu1 %17801, %v4467_v30   ;;  %v3408_v42 = vor.u32 %v19689_v18, %v19687_v1  ;;  %v3383_v60 = vor.u32 %v19693_v38, %v19691_v20  ;;  %v3549_v40 = vshll.u32 %v15473_v33, 16  ;;  %v452_v38 = vld [vmem:[#allocation16 + $0x20] sm:$0xff] }
 0x1da   : > { %16696 = vmatprep.mubr.msk.bf16.mxu0 %vm1617_vm2, %v2819_v46  ;;  %v3400_v46 = vor.u32 %v19680_v51, %v19678_v0  ;;  %v11046_v54 = vsel %vm512_vm5, 1, %v19862_v47  ;;  %v19960_v36 = vor.u32 %v19698_v49, %v19696_v39  ;;  %v19962_v0 = vrot.slane %v3528_v23, 3  ;;  %v19971_v20 = vld [vmem:[%s19201_s13 + $0x6c] sm:$0xff]  }
 0x1db   : > { %2632 = vmatmul.mubr.bf16.gmra.mrb[88].mxu1 %v2335_v52  ;;  %v19964_v51 = vrot.slane %v3531_v56, 4  ;;  %v15472_v52 = vcombine.low %v3199_v4, %v3200_v32  ;;  %v19966_v30 = vrot.slane %v3519_v25, 3  ;;  %v19968_v1 = vrot.slane %v4129_v17, 3  ;;  %v25082_v4 = vld [vmem:[#allocation35_spill] sm:$0xff]  ;;  %v19997_v17 = vld [vmem:[%s19201_s13 + $0x74] sm:$0xff]   ;;  %v25111_v31 = vld [vmem:[#allocation28_spill] sm:$0xff] }
 0x1dc   : > { %15416 = vmatprep.mubr.msk.bf16.mxu1 %vm1151_vm3, %v2362_v9  ;;  %v15475_v18 = vcombine.high %v3201_v34, %v3202_v61  ;;  %vm483_vm6 = vcmp.gt.f32.partialorder %v451_v10, 0.0  ;;  %v19975_v39 = vor.u32 %v19702_v19, %v19700_v50  ;;  %v19977_v49 = vrot.slane %v3522_v58, 4  ;;  %v3203_v58 = vld [vmem:[%s19209_s21 + $0xd8] sm:$0xff]  ;;  %v3204_v25 = vld [vmem:[%s19209_s21 + $0xe0] sm:$0xff] }
 0x1dd   : > { %v19979_v9 = vrot.slane %v4132_v12, 4  ;;  %v19981_v32 = vrot.slane %v4138_v48, 3  ;;  %11079 = vperm.xlu1 %17801, %v11046_v54   ;;  %v19986_v33 = vor.u32 %v19726_v22, %v25082_v4  ;;  %v19988_v23 = vrot.slane %v3546_v27, 3  ;;  %v3206_v4 = vld [vmem:[%s19209_s21 + $0xf0] sm:$0xff] }
 0x1de   : > { %v19990_v56 = vrot.slane %v3549_v40, 4  ;;  %v4141_v50 = vshll.u32 %v19914_v13, 16  ;;  %v3537_v19 = vshrl.u32 %v15472_v52, 16  ;;  %v15474_v12 = vcombine.low %v3201_v34, %v3202_v61  ;;  %v25085_v34 = vld [vmem:[#allocation33_spill] sm:$0xff]  ;;  %v25086_v61 = vld [vmem:[#allocation34_spill] sm:$0xff] }
 0x1df   : > { %25083 = vst [vmem:[#allocation32_spill] sm:$0xff] %v19988_v23  ;;  %vm484_vm7 = vcmp.gt.f32.partialorder %v452_v38, 0.0  ;;  %v3409_v22 = vsel %vm770_vm0, %v3400_v46, %v3408_v42  ;;  %v3540_v54 = vshll.u32 %v15472_v52, 16  ;;  %v3564_v40 = vshrl.u32 %v15475_v18, 16 }
 0x1e0   : > { %25084 = vst [vmem:[#allocation35_spill] sm:$0xff] %v19990_v56  ;;  %v2846_v13 = vsel %vm770_vm0, %v19877_v6, %v2845_v8  ;;  %v20008_v27 = vor.u32 %v25086_v61, %v25085_v34  ;;  %v3567_v48 = vshll.u32 %v15475_v18, 16  ;;  %v2855_v46 = vsel %vm770_vm0, %v2845_v8, %v19975_v39  ;;  %v3205_v6 = vld [vmem:[%s19209_s21 + $0xe8] sm:$0xff] }
 0x1e1   : > { %16697 = vmatmul.mubr.msk.bf16.gmra.mrb[80].mxu0 %vm1617_vm2, %v2828_v5  ;;  %v4468_v5 = vsel %vm483_vm6, 1, %v19862_v47  ;;  %v3427_v10 = vsel %vm770_vm0, %v3408_v42, %v19986_v33  ;;  %v4147_v52 = vshrl.u32 %v19971_v20, 16  ;;  %v20021_v34 = vrot.slane %v4141_v50, 4  ;;  %v454_v42 = vld [vmem:[#allocation16 + $0x30] sm:$0xff] }
 0x1e2   : > { %16700 = vmatprep.mubr.msk.bf16.mxu0 %vm1617_vm2, %v2837_v53  ;;  %v3392_v53 = vsel %vm770_vm0, %v3383_v60, %v19960_v36  ;;  %4507 = vperm.xlu1 %17801, %v4468_v5   ;;  %v4469_v60 = vsel %vm484_vm7, 1, %v19862_v47  ;;  %v20023_v18 = vrot.slane %v3537_v19, 3  ;;  %vm485_vm8 = vcmp.gt.f32.partialorder %v453_v35, 0.0  ;;  %v20037_v19 = vld [vmem:[#allocation10 + $0x50] sm:$0xff]  }
 0x1e3   : > { %2640 = vmatmul.mubr.bf16.gmra.mrb[92].mxu1 %v19934_v7  ;;  %v3555_v7 = vshrl.u32 %v15474_v12, 16  ;;  %v3558_v5 = vshll.u32 %v15474_v12, 16  ;;  %v4150_v8 = vshll.u32 %v19971_v20, 16  ;;  %v20026_v61 = vcombine.high %v3203_v58, %v3204_v25 }
 0x1e4   : > { %15498 = vmatprep.mubr.msk.bf16.mxu1 %vm1151_vm3, %v3409_v22  ;;  %vm480_vm9 = vcmp.gt.f32.partialorder %v19930_v24, 0.0  ;;  %v20029_v56 = vrot.slane %v3540_v54, 4  ;;  %v20031_v38 = vrot.slane %v3564_v40, 3  ;;  %v20033_v23 = vrot.slane %v3567_v48, 4  ;;  %v25090_v54 = vld [vmem:[#allocation38_spill] sm:$0xff] }
 0x1e5   : > { %v4156_v50 = vshrl.u32 %v19997_v17, 16  ;;  %v20039_v20 = vrot.slane %v4147_v52, 3  ;;  %v15476_v12 = vcombine.low %v3203_v58, %v3204_v25  ;;  %v4470_v22 = vsel %vm485_vm8, 1, %v19862_v47 }
 0x1e6   : > { %25087 = vst [vmem:[#allocation33_spill] sm:$0xff] %v20029_v56  ;;  %25088 = vst [vmem:[#allocation34_spill] sm:$0xff] %v20031_v38  ;;  %4510 = vperm.xlu1 %17801, %v4469_v60   ;;  %v4465_v24 = vsel %vm480_vm9, 1, %v19862_v47  ;;  %v20046_v40 = vor.u32 %v19744_v57, %v25090_v54  ;;  %v20048_v35 = vrot.slane %v3555_v7, 3  ;;  %v15479_v48 = vcombine.high %v3205_v6, %v3206_v4  ;;  %v20056_v60 = vld [vmem:[%s19201_s13 + $0x7c] sm:$0xff]   ;;  %v25092_v38 = vld [vmem:[#allocation36_spill] sm:$0xff] }
 0x1e7   : > { %25089 = vst [vmem:[#allocation57_spill] sm:$0xff] %v20033_v23  ;;  %vm486_vm10 = vcmp.gt.f32.partialorder %v454_v42, 0.0  ;;  %4498 = vperm.xlu0 %17800, %v4465_v24   ;;  %v20052_v52 = vrot.slane %v4150_v8, 4  ;;  %v3582_v58 = vshrl.u32 %v20026_v61, 16  ;;  %v15478_v25 = vcombine.low %v3205_v6, %v3206_v4  ;;  %v455_v23 = vld [vmem:[#allocation16 + $0x38] sm:$0xff]  ;;  %v456_v42 = vld [vmem:[#allocation16 + $0x40] sm:$0xff] }
 0x1e8   : > { %v25093_v56 = vld [vmem:[#allocation37_spill] sm:$0xff]  ;;  %v20066_v24 = vor.u32 %v19755_v3, %v19753_v28  ;;  %v20069_v8 = vrot.slane %v4156_v50, 3  ;;  %v4159_v6 = vshll.u32 %v19997_v17, 16  ;;  %v3573_v4 = vshrl.u32 %v15476_v12, 16  ;;  %v25095_v50 = vld [vmem:[#allocation40_spill] sm:$0xff] }
 0x1e9   : > { %16701 = vmatmul.mubr.msk.bf16.gmra.mrb[84].mxu0 %vm1617_vm2, %v2846_v13  ;;  %v20050_v13 = vrot.slane %v3558_v5, 4  ;;  %v20060_v57 = vor.u32 %v25093_v56, %v25092_v38  ;;  %v20062_v7 = vld [vmem:[#allocation10 + $0x58] sm:$0xff]   ;;  %v3585_v5 = vshll.u32 %v20026_v61, 16  ;;  %v3576_v54 = vshll.u32 %v15476_v12, 16  ;;  %v20088_v12 = vld [vmem:[#allocation10 + $0x60] sm:$0xff]  }
 0x1ea   : > { %16704 = vmatprep.mubr.msk.bf16.mxu0 %vm1617_vm2, %v2855_v46  ;;  %v449_v46 = vld [vmem:[#allocation16 + $0x8] sm:$0xff]  ;;  %4513 = vperm.xlu1 %17801, %v4470_v22   ;;  %v4471_v56 = vsel %vm486_vm10, 1, %v19862_v47  ;;  %v2864_v28 = vsel %vm770_vm0, %v19975_v39, %v20008_v27  ;;  %v3600_v3 = vshrl.u32 %v15479_v48, 16  ;;  %vm487_vm11 = vcmp.gt.f32.partialorder %v455_v23, 0.0 }
 0x1eb   : > { %25091 = vst [vmem:[#allocation38_spill] sm:$0xff] %v20050_v13  ;;  %3837 = vmatmul.mubr.bf16.vlgmr.msra.gmra.mrb[96].mxu1 %v3392_v53  ;;  %vm481_vm12 = vcmp.gt.f32.partialorder %v449_v46, 0.0  ;;  %v2873_v17 = vsel %vm770_vm0, %v20008_v27, %v20046_v40  ;;  %v3603_v53 = vshll.u32 %v15479_v48, 16  ;;  %v3591_v61 = vshrl.u32 %v15478_v25, 16  ;;  %v25094_v39 = vld [vmem:[#allocation39_spill] sm:$0xff] }
 0x1ec   : > { %17466 = vmatpush1.bf16.msra.mxu1 %v20037_v19  ;;  %15499 = vmatprep.mubr.msk.bf16.mxu1 %vm1151_vm3, %v3427_v10  ;;  %v3418_v38 = vsel %vm770_vm0, %v19960_v36, %v20060_v57  ;;  %v2881_v10 = vor.u32 %v25095_v50, %v25094_v39  ;;  %v3594_v22 = vshll.u32 %v15478_v25, 16  ;;  %v4466_v46 = vsel %vm481_vm12, 1, %v19862_v47  ;;  %v20101_v39 = vld [vmem:[%s19201_s13 + $0x84] sm:$0xff]  }
 0x1ed   : > { %17457 = vmatprep.subr.bf16.mxu1 %v19862_v47  ;;  %v3445_v27 = vsel %vm770_vm0, %v19986_v33, %v20066_v24  ;;  %v20097_v48 = vor.u32 %v19784_v21, %v19774_v37  ;;  %v4165_v36 = vshrl.u32 %v20056_v60, 16  ;;  %v4472_v25 = vsel %vm487_vm11, 1, %v19862_v47  ;;  %4501 = vperm.xlu0 %17800, %v4466_v46   ;;  %v457_v21 = vld [vmem:[#allocation16 + $0x48] sm:$0xff]  ;;  %v20123_v46 = vld [vmem:[%s19209_s21 + $0xf8] sm:$0xff] }
 0x1ee   : > { %4516 = vperm.xlu1 %17801, %v4471_v56   ;;  %v4055_v33 = vor.u32 %v19782_v29, %v19780_v26  ;;  %v20109_v56 = vrot.slane %v3582_v58, 3  ;;  %v20111_v37 = vrot.slane %v3585_v5, 4  ;;  %vm488_vm13 = vcmp.gt.f32.partialorder %v456_v42, 0.0  ;;  %v20126_v13 = vld [vmem:[%s19209_s21 + $0x100] sm:$0xff] }
 0x1ef   : > { %v20116_v23 = vrot.slane %v3573_v4, 3  ;;  %v20118_v50 = vrot.slane %v3576_v54, 4  ;;  %v20128_v26 = vld [vmem:[#allocation10 + $0x68] sm:$0xff]   ;;  %v20130_v29 = vrot.slane %v3603_v53, 4  ;;  %v20132_v58 = vrot.slane %v3591_v61, 3 }
 0x1f0   : > { %17467 = vmatpush1.bf16.msra.mxu1 %v20062_v7  ;;  %v20134_v5 = vrot.slane %v3594_v22, 4  ;;  %v4473_v4 = vsel %vm488_vm13, 1, %v19862_v47  ;;  %vm489_vm14 = vcmp.gt.f32.partialorder %v457_v21, 0.0  ;;  %v2882_v54 = vsel %vm770_vm0, %v20046_v40, %v2881_v10  ;;  %v25099_v42 = vld [vmem:[#allocation43_spill] sm:$0xff]  ;;  %v459_v21 = vld [vmem:[#allocation16 + $0x58] sm:$0xff] }
 0x1f1   : > { %16705 = vmatmul.mubr.msk.bf16.gmra.mrb[88].mxu0 %vm1617_vm2, %v2864_v28  ;;  %17458 = vmatprep.subr.bf16.mxu1 %v19862_v47  ;;  %v20114_v28 = vrot.slane %v4159_v6, 4  ;;  %v20136_v6 = vrot.slane %v4165_v36, 3  ;;  %v4168_v61 = vshll.u32 %v20056_v60, 16  ;;  %v4064_v22 = vsel %vm770_vm0, %v4055_v33, %v20097_v48  ;;  %v25098_v36 = vld [vmem:[#allocation42_spill] sm:$0xff]  ;;  %v25104_v40 = vld [vmem:[#allocation51_spill] sm:$0xff] }
 0x1f2   : > { %16708 = vmatprep.mubr.msk.bf16.mxu0 %vm1617_vm2, %v2873_v17  ;;  %v20120_v17 = vrot.slane %v3600_v3, 3  ;;  %4519 = vperm.xlu1 %17801, %v4472_v25   ;;  %25096 = vst [vmem:[#allocation36_spill] sm:$0xff] %v20134_v5  ;;  %v25097_v3 = vld [vmem:[#allocation41_spill] sm:$0xff]  ;;  %v3462_v25 = vor.u32 %v25099_v42, %v25098_v36  ;;  %v4474_v60 = vsel %vm489_vm14, 1, %v19862_v47  ;;  %vm491_vm4 = vcmp.gt.f32.partialorder %v459_v21, 0.0  ;;  %v462_v21 = vld [vmem:[#allocation16 + $0x70] sm:$0xff] }
 0x1f3   : > { %3845 = vmatmul.mubr.bf16.gmra.mrb[100].mxu1 %v3418_v38  ;;  %v3435_v53 = vor.u32 %v19769_v41, %v25097_v3  ;;  %v458_v38 = vld [vmem:[#allocation16 + $0x50] sm:$0xff]  ;;  %v20158_v41 = vcombine.high %v20123_v46, %v20126_v13  ;;  %v20175_v10 = vrot.slane %v4168_v61, 4  ;;  %vm494_vm7 = vcmp.gt.f32.partialorder %v462_v21, 0.0 }
 0x1f4   : > { %15500 = vmatprep.mubr.msk.bf16.mxu1 %vm1151_vm3, %v3445_v27  ;;  %17468 = vmatpush1.bf16.msra.mxu1 %v20088_v12  ;;  %v20154_v27 = vld [vmem:[#allocation10 + $0x70] sm:$0xff]   ;;  %vm490_vm15 = vcmp.gt.f32.partialorder %v458_v38, 0.0  ;;  %v4117_v5 = vor.u32 %v19906_v16, %v25111_v31  ;;  %v25112_v31 = vld [vmem:[#allocation29_spill] sm:$0xff]  ;;  %v25113_v16 = vld [vmem:[#allocation31_spill] sm:$0xff]  ;;  %v25114_v21 = vshll.u32 %v20101_v39, 16 }
 0x1f5   : > { %17459 = vmatprep.subr.bf16.mxu1 %v19862_v47  ;;  %v3436_v33 = vsel %vm770_vm0, %v20060_v57, %v3435_v53  ;;  %v25100_v3 = vld [vmem:[#allocation44_spill] sm:$0xff]  ;;  %v460_v57 = vld [vmem:[#allocation16 + $0x60] sm:$0xff] }
 0x1f6   : > { %4522 = vperm.xlu1 %17801, %v4473_v4   ;;  %v4072_v36 = vor.u32 %v25100_v3, %v19801_v43  ;;  %v3463_v4 = vsel %vm770_vm0, %v20066_v24, %v3462_v25  ;;  %v20179_v43 = vld [vmem:[#allocation10 + $0x78] sm:$0xff]   ;;  %v4475_v24 = vsel %vm490_vm15, 1, %v19862_v47  ;;  %vm492_vm5 = vcmp.gt.f32.partialorder %v460_v57, 0.0 }
 0x1f8   : > { %17469 = vmatpush1.bf16.msra.mxu1 %v20128_v26 }
 0x1f9   : > { %16709 = vmatmul.mubr.msk.bf16.gmra.mrb[92].mxu0 %vm1617_vm2, %v2882_v54  ;;  %v4081_v54 = vor.u32 %v19822_v63, %v19820_v14  ;;  %17460 = vmatprep.subr.bf16.mxu1 %v19862_v47  ;;  %v4073_v14 = vsel %vm770_vm0, %v20097_v48, %v4072_v36  ;;  %v25101_v63 = vld [vmem:[#allocation45_spill] sm:$0xff] }
 0x1fa   : > { %16720 = vmatprep.mubr.msk.bf16.mxu0 %vm1617_vm2, %v4064_v22  ;;  %4525 = vperm.xlu1 %17801, %v4474_v60   ;;  %v3453_v61 = vor.u32 %v25101_v63, %v19814_v2  ;;  %v3480_v60 = vor.u32 %v19832_v11, %v19830_v15  ;;  %v4476_v2 = vsel %vm491_vm4, 1, %v19862_v47  ;;  %v25102_v11 = vld [vmem:[#allocation46_spill] sm:$0xff]  ;;  %v25103_v63 = vld [vmem:[#allocation47_spill] sm:$0xff] }
 0x1fb   : > { %3853 = vmatmul.mubr.bf16.gmra.mrb[104].mxu1 %v3436_v33  ;;  %v4082_v22 = vsel %vm770_vm0, %v4072_v36, %v4081_v54  ;;  %v461_v33 = vld [vmem:[#allocation16 + $0x68] sm:$0xff]  ;;  %v4090_v38 = vor.u32 %v25103_v63, %v25102_v11  ;;  %v25107_v11 = vld [vmem:[#allocation50_spill] sm:$0xff] }
 0x1fc   : > { %15501 = vmatprep.mubr.msk.bf16.mxu1 %vm1151_vm3, %v3463_v4  ;;  %17470 = vmatpush1.bf16.msra.mxu1 %v20154_v27  ;;  %v20197_v4 = vld [vmem:[#allocation10 + $0x80] sm:$0xff]   ;;  %v3454_v15 = vsel %vm770_vm0, %v3435_v53, %v3453_v61  ;;  %v3481_v3 = vsel %vm770_vm0, %v3462_v25, %v3480_v60  ;;  %v20218_v53 = vld [vmem:[#allocation10 + $0x88] sm:$0xff]   ;;  %vm493_vm6 = vcmp.gt.f32.partialorder %v461_v33, 0.0  ;;  %v3498_v33 = vor.u32 %v19892_v45, %v19888_v55  ;;  %v463_v55 = vld [vmem:[#allocation16 + $0x78] sm:$0xff] }
 0x1fd   : > { %17461 = vmatprep.subr.bf16.mxu1 %v19862_v47  ;;  %v4091_v25 = vsel %vm770_vm0, %v4081_v54, %v4090_v38  ;;  %vm495_vm8 = vcmp.gt.f32.partialorder %v463_v55, 0.0  ;;  %v4135_v55 = vor.u32 %v19979_v9, %v19968_v1  ;;  %v20311_v9 = vld [vmem:[%s19201_s13 + $0x8c] sm:$0xff]  }
 0x1fe   : > { %v20195_v42 = vpop.f32.mrb[0].mxu1  ;;  %4528 = vperm.xlu1 %17801, %v4475_v24  }
 0x1ff   : > { %v20199_v48 = vpop.f32.mrb[1].mxu1 }
 0x200   : > { %v20204_v36 = vpop.f32.mrb[2].mxu1  ;;  %17471 = vmatpush1.bf16.msra.mxu1 %v20179_v43 }
 0x201   : > { %16721 = vmatmul.mubr.msk.bf16.vlgmr.msra.gmra.mrb[96].mxu0 %vm1617_vm2, %v4073_v14  ;;  %v20211_v24 = vpop.f32.mrb[3].mxu1  ;;  %v25105_v14 = vld [vmem:[#allocation52_spill] sm:$0xff]  ;;  %17462 = vmatprep.subr.bf16.mxu1 %v19862_v47 }
 0x202   : > { %16724 = vmatprep.mubr.msk.bf16.mxu0 %vm1617_vm2, %v4082_v22  ;;  %v4099_v62 = vor.u32 %v25105_v14, %v25104_v40  ;;  %5035 = vmatpush1.bf16.msra.mxu0 %v20037_v19  ;;  %v4477_v22 = vsel %vm492_vm5, 1, %v19862_v47  ;;  %v25106_v40 = vld [vmem:[#allocation49_spill] sm:$0xff] }
 0x203   : > { %4531 = vperm.xlu1 %17801, %v4476_v2   ;;  %5036 = vmatprep.subr.bf16.mxu0 %v19862_v47  ;;  %v3471_v63 = vor.u32 %v25107_v11, %v25106_v40  ;;  %v25108_v2 = vshrl.u32 %v20101_v39, 16  ;;  %v25110_v40 = vld [vmem:[#allocation27_spill] sm:$0xff] }
 0x204   : > { %3861 = vmatmul.mubr.bf16.gmra.mrb[108].mxu1 %v3454_v15  ;;  %v4100_v19 = vsel %vm770_vm0, %v4090_v38, %v4099_v62  ;;  %v20240_v15 = vld [vmem:[#allocation10 + $0x90] sm:$0xff]  }
 0x205   : > { %15502 = vmatprep.mubr.msk.bf16.mxu1 %vm1151_vm3, %v3481_v3  ;;  %17472 = vmatpush1.bf16.msra.mxu1 %v20197_v4  ;;  %v20234_v57 = vrot.slane %v25108_v2, 3  ;;  %v4478_v3 = vsel %vm493_vm6, 1, %v19862_v47  ;;  %v3472_v14 = vsel %vm770_vm0, %v3453_v61, %v3471_v63  ;;  %v3499_v2 = vsel %vm770_vm0, %v3480_v60, %v3498_v33  ;;  %v20260_v61 = vld [vmem:[#allocation10 + $0x98] sm:$0xff]  }
 0x206   : > { %17463 = vmatprep.subr.bf16.mxu1 %v19862_v47  ;;  %5037 = vmatpush1.bf16.msra.mxu0 %v20062_v7  ;;  %v20238_v54 = vpop.f32.mrb[4].mxu1  ;;  %v25109_v7 = vld [vmem:[#allocation26_spill] sm:$0xff] }
 0x207   : > { %4534 = vperm.xlu1 %17801, %v4477_v22   ;;  %5038 = vmatprep.subr.bf16.mxu0 %v19862_v47  ;;  %v20243_v38 = vpop.f32.mrb[5].mxu1  ;;  %v4108_v11 = vor.u32 %v25110_v40, %v25109_v7  ;;  %v3489_v7 = vor.u32 %v25113_v16, %v25112_v31  ;;  %v20275_v40 = vrot.slane %v25114_v21, 4  ;;  %v25116_v31 = vld [vmem:[#allocation54_spill] sm:$0xff]  ;;  %v20301_v21 = vcombine.low %v20123_v46, %v20126_v13  ;;  %v466_v13 = vld [vmem:[#allocation16 + $0x90] sm:$0xff] }
 0x208   : > { %v20246_v45 = vpop.f32.mrb[6].mxu1  ;;  %vm498_vm11 = vcmp.gt.f32.partialorder %v466_v13, 0.0 }
 0x209   : > { %16725 = vmatmul.mubr.msk.bf16.gmra.mrb[100].mxu0 %vm1617_vm2, %v4091_v25  ;;  %17473 = vmatpush1.bf16.msra.mxu1 %v20218_v53  ;;  %v20253_v22 = vpop.f32.mrb[7].mxu1  ;;  %v464_v25 = vld [vmem:[#allocation16 + $0x80] sm:$0xff]  ;;  %v4109_v60 = vsel %vm770_vm0, %v4099_v62, %v4108_v11 }
 0x20a   : > { %16728 = vmatprep.mubr.msk.bf16.mxu0 %vm1617_vm2, %v4100_v19  ;;  %17464 = vmatprep.subr.bf16.mxu1 %v19862_v47  ;;  %v4479_v19 = vsel %vm494_vm7, 1, %v19862_v47  ;;  %vm496_vm9 = vcmp.gt.f32.partialorder %v464_v25, 0.0 }
 0x20b   : > { %5039 = vmatpush1.bf16.msra.mxu0 %v20088_v12  ;;  %4537 = vperm.xlu1 %17801, %v4478_v3   ;;  %v4118_v12 = vsel %vm770_vm0, %v4108_v11, %v4117_v5  ;;  %v3516_v3 = vor.u32 %v19920_v59, %v19918_v44  ;;  %v4480_v44 = vsel %vm495_vm8, 1, %v19862_v47  ;;  %v465_v59 = vld [vmem:[#allocation16 + $0x88] sm:$0xff]  ;;  %v3490_v11 = vsel %vm770_vm0, %v3471_v63, %v3489_v7 }
 0x20c   : > { %5040 = vmatprep.subr.bf16.mxu0 %v19862_v47  ;;  %3869 = vmatmul.mubr.bf16.gmra.mrb[112].mxu1 %v3472_v14  ;;  %v18003_v14 = vld [vmem:[#allocation9 + $0x1c] sm:$0xff]   ;;  %v4481_v63 = vsel %vm496_vm9, 1, %v19862_v47  ;;  %vm497_vm10 = vcmp.gt.f32.partialorder %v465_v59, 0.0  ;;  %v25119_v59 = vshrl.u32 %v20158_v41, 16 }
 0x20d   : > { %15503 = vmatprep.mubr.msk.bf16.mxu1 %vm1151_vm3, %v3499_v2  ;;  %17474 = vmatpush1.bf16.msra.mxu1 %v20240_v15 }
 0x20e   : > { %17465 = vmatprep.subr.bf16.mxu1 %v19862_v47  ;;  %v20279_v62 = vpop.f32.mrb[8].mxu1 }
 0x20f   : > { %5041 = vmatpush1.bf16.msra.mxu0 %v20128_v26  ;;  %4540 = vperm.xlu1 %17801, %v4479_v19   ;;  %v20282_v2 = vpop.f32.mrb[9].mxu1  ;;  %v25115_v26 = vld [vmem:[#allocation53_spill] sm:$0xff] }
 0x210   : > { %5042 = vmatprep.subr.bf16.mxu0 %v19862_v47  ;;  %v20287_v39 = vpop.f32.mrb[10].mxu1  ;;  %v4126_v19 = vor.u32 %v25116_v31, %v25115_v26 }
 0x211   : > { %16729 = vmatmul.mubr.msk.bf16.gmra.mrb[104].mxu0 %vm1617_vm2, %v4109_v60  ;;  %17475 = vmatpush1.bf16.msra.mxu1 %v20260_v61  ;;  %v20294_v16 = vpop.f32.mrb[11].mxu1  ;;  %v3517_v60 = vsel %vm770_vm0, %v3498_v33, %v3516_v3 }
 0x212   : > { %16732 = vmatprep.mubr.msk.bf16.mxu0 %vm1617_vm2, %v4118_v12  ;;  %16752 = vmatprep.subr.bf16.mxu1 %v18003_v14  ;;  %v4127_v25 = vsel %vm770_vm0, %v4117_v5, %v4126_v19  ;;  %v25117_v14 = vld [vmem:[#allocation55_spill] sm:$0xff]  ;;  %v4136_v31 = vsel %vm770_vm0, %v4126_v19, %v4135_v55  ;;  %v4482_v5 = vsel %vm497_vm10, 1, %v19862_v47 }
 0x213   : > { %5043 = vmatpush1.bf16.msra.mxu0 %v20154_v27  ;;  %4543 = vperm.xlu1 %17801, %v4480_v44   ;;  %v25118_v27 = vld [vmem:[#allocation56_spill] sm:$0xff]  ;;  %v3534_v44 = vor.u32 %v19964_v51, %v19962_v0 }
 0x214   : > { %v1234_v12 = vpop.f32.mrb[0].mxu0  ;;  %5044 = vmatprep.subr.bf16.mxu0 %v19862_v47  ;;  %3877 = vmatmul.mubr.bf16.gmra.mrb[116].mxu1 %v3490_v11  ;;  %v3507_v26 = vor.u32 %v25118_v27, %v25117_v14  ;;  %v20350_v14 = vor.u32 %v20052_v52, %v20039_v20  ;;  %v3612_v27 = vshll.u32 %v20301_v21, 16 }
 0x215   : > { %v20308_v33 = vadd.f32 %v20199_v48, %v1234_v12  ;;  %v1236_v1 = vpop.f32.mrb[1].mxu0  ;;  %15504 = vmatprep.mubr.msk.bf16.mxu1 %vm1151_vm3, %v3517_v60  ;;  %v3609_v12 = vshrl.u32 %v20301_v21, 16  ;;  %v3535_v19 = vsel %vm770_vm0, %v3516_v3, %v3534_v44  ;;  %v25121_v21 = vld [vmem:[#allocation32_spill] sm:$0xff] }
 0x216   : > { %v1237_v46 = vpop.f32.mrb[2].mxu0  ;;  %v20325_v60 = vpop.f32.mrb[12].mxu1  ;;  %v3210_v1 = vld [vmem:[%s19209_s21 + $0x110] sm:$0xff] }
 0x217   : > { %v20320_v11 = vadd.f32 %v20211_v24, %v1237_v46  ;;  %v1239_v48 = vpop.f32.mrb[3].mxu0  ;;  %5045 = vmatpush1.bf16.msra.mxu0 %v20179_v43  ;;  %4546 = vperm.xlu1 %17801, %v4481_v63   ;;  %v20330_v0 = vpop.f32.mrb[13].mxu1  ;;  %v3508_v24 = vsel %vm770_vm0, %v3489_v7, %v3507_v26  ;;  %v4144_v43 = vor.u32 %v20021_v34, %v19981_v32  ;;  %v20342_v63 = vrot.slane %v25119_v59, 3  ;;  %v467_v46 = vld [vmem:[#allocation16 + $0x98] sm:$0xff] }
 0x218   : > { %5046 = vmatprep.subr.bf16.mxu0 %v19862_v47  ;;  %v20333_v51 = vpop.f32.mrb[14].mxu1  ;;  %v3209_v47 = vld [vmem:[%s19209_s21 + $0x108] sm:$0xff]  ;;  %v25120_v7 = vshll.u32 %v20158_v41, 16  ;;  %v4183_v32 = vshrl.u32 %v20311_v9, 16  ;;  %v20359_v48 = vld [vmem:[#allocation3] sm:$0xff]  ;;  %v20369_v41 = vor.u32 %v19977_v49, %v19966_v30  ;;  %vm499_vm12 = vcmp.gt.f32.partialorder %v467_v46, 0.0 }
 0x219   : > { %16733 = vmatmul.mubr.msk.bf16.gmra.mrb[108].mxu0 %vm1617_vm2, %v4127_v25  ;;  %v20346_v25 = vpop.f32.mrb[15].mxu1  ;;  %v4145_v13 = vsel %vm770_vm0, %v4135_v55, %v4144_v43  ;;  %v4154_v30 = vsel %vm770_vm0, %v4144_v43, %v20350_v14  ;;  %v20385_v49 = vcombine.high %v3209_v47, %v3210_v1  ;;  %v4186_v55 = vshll.u32 %v20311_v9, 16 }
 0x21a   : > { %16736 = vmatprep.mubr.msk.bf16.mxu0 %vm1617_vm2, %v4136_v31  ;;  %v20354_v3 = vrot.slane %v25120_v7, 4  ;;  %v4483_v31 = vsel %vm498_vm11, 1, %v20359_v48  ;;  %v20378_v7 = vld [vmem:[%s19201_s13 + $0x94] ss:$0 sps:$4 sm:$0xff]   ;;  %v3526_v43 = vsel %vm770_vm0, %v3507_v26, %v20369_v41  ;;  %v4171_v26 = vor.u32 %v20175_v10, %v20136_v6 }
 0x21b   : > { %5047 = vmatpush1.bf16.msra.mxu0 %v20197_v4  ;;  %4549 = vperm.xlu1 %17801, %v4482_v5   ;;  %v25122_v5 = vld [vmem:[#allocation35_spill] sm:$0xff]  ;;  %v3636_v46 = vshrl.u32 %v20385_v49, 16 }
 0x21c   : > { %v1242_v34 = vpop.f32.mrb[4].mxu0  ;;  %5048 = vmatprep.subr.bf16.mxu0 %v20359_v48  ;;  %3885 = vmatmul.mubr.bf16.gmra.mrb[120].mxu1 %v3508_v24  ;;  %v20374_v59 = vor.u32 %v25122_v5, %v25121_v21  ;;  %v20392_v21 = vrot.slane %v3609_v12, 3  ;;  %v4162_v12 = vor.u32 %v20114_v28, %v20069_v8  ;;  %v4192_v8 = vshrl.u32 %v20378_v7, 16  ;;  %v470_v28 = vld [vmem:[#allocation16 + $0xb0] sm:$0xff]  ;;  %v25124_v5 = vld [vmem:[#allocation34_spill] sm:$0xff] }
 0x21d   : > { %v20365_v20 = vadd.f32 %v20195_v42, %v1242_v34  ;;  %v1244_v52 = vpop.f32.mrb[5].mxu0  ;;  %15505 = vmatprep.mubr.msk.bf16.mxu1 %vm1151_vm3, %v3535_v19  ;;  %v20387_v34 = vcombine.low %v3209_v47, %v3210_v1  ;;  %v468_v19 = vld [vmem:[#allocation16 + $0xa0] sm:$0xff]  ;;  %v20401_v47 = vrot.slane %v3612_v27, 4  ;;  %vm502_vm15 = vcmp.gt.f32.partialorder %v470_v28, 0.0 }
 0x21e   : > { %v1245_v4 = vpop.f32.mrb[6].mxu0  ;;  %v20390_v52 = vpop.f32.mrb[16].mxu1  ;;  %v3553_v9 = vsel %vm770_vm0, %v3534_v44, %v20374_v59  ;;  %vm500_vm13 = vcmp.gt.f32.partialorder %v468_v19, 0.0  ;;  %v4172_v19 = vsel %vm770_vm0, %v4162_v12, %v4171_v26  ;;  %v20458_v28 = vrot.slane %v3636_v46, 3  ;;  %v20469_v46 = vld [vmem:[%s19209_s21 + $0x11c] ss:$8 sps:$4 sm:$0xff]  }
 0x21f   : > { %v20381_v42 = vadd.f32 %v20204_v36, %v1245_v4  ;;  %v1247_v24 = vpop.f32.mrb[7].mxu0  ;;  %5049 = vmatpush1.bf16.msra.mxu0 %v20218_v53  ;;  %4552 = vperm.xlu1 %17801, %v4483_v31   ;;  %v20396_v36 = vpop.f32.mrb[17].mxu1  ;;  %v4484_v53 = vsel %vm499_vm12, 1, %v20359_v48  ;;  %v469_v31 = vld [vmem:[#allocation16 + $0xa8] sm:$0xff] }
 0x220   : > { %5050 = vmatprep.subr.bf16.mxu0 %v20359_v48  ;;  %v20405_v1 = vpop.f32.mrb[18].mxu1  ;;  %v4188_v24 = vrot.slane %v4186_v55, 4  ;;  %vm501_vm14 = vcmp.gt.f32.partialorder %v469_v31, 0.0  ;;  %v4195_v31 = vshll.u32 %v20378_v7, 16 }
 0x221   : > { %16737 = vmatmul.mubr.msk.bf16.gmra.mrb[112].mxu0 %vm1617_vm2, %v4145_v13  ;;  %v20414_v27 = vpop.f32.mrb[19].mxu1  ;;  %v4185_v13 = vrot.slane %v4183_v32, 3 }
 0x222   : > { %16740 = vmatprep.mubr.msk.bf16.mxu0 %vm1617_vm2, %v4154_v30  ;;  %v4485_v30 = vsel %vm500_vm13, 1, %v20359_v48 }
 0x223   : > { %5051 = vmatpush1.bf16.msra.mxu0 %v20240_v15  ;;  %4555 = vperm.xlu1 %17801, %v4484_v53   ;;  %v25123_v15 = vld [vmem:[#allocation33_spill] sm:$0xff] }
 0x224   : > { %v1250_v44 = vpop.f32.mrb[8].mxu0  ;;  %5052 = vmatprep.subr.bf16.mxu0 %v20359_v48  ;;  %3893 = vmatmul.mubr.bf16.gmra.mrb[124].mxu1 %v3526_v43  ;;  %v3543_v55 = vor.u32 %v25123_v15, %v20023_v18  ;;  %v25125_v53 = vld [vmem:[#allocation57_spill] sm:$0xff]  ;;  %v4163_v43 = vsel %vm770_vm0, %v20350_v14, %v4162_v12  ;;  %v4486_v18 = vsel %vm501_vm14, 1, %v20359_v48  ;;  %v3630_v12 = vshll.u32 %v20387_v34, 16 }
 0x225   : > { %v20423_v6 = vadd.f32 %v20243_v38, %v1250_v44  ;;  %v1252_v10 = vpop.f32.mrb[9].mxu0  ;;  %15506 = vmatprep.mubr.msk.bf16.mxu1 %vm1151_vm3, %v3553_v9  ;;  %v3570_v4 = vor.u32 %v25125_v53, %v25124_v5  ;;  %v471_v5 = vld [vmem:[#allocation16 + $0xb8] sm:$0xff]  ;;  %v4194_v15 = vrot.slane %v4192_v8, 3  ;;  %v4197_v53 = vrot.slane %v4195_v31, 4 }
 0x226   : > { %v1253_v32 = vpop.f32.mrb[10].mxu0  ;;  %v20440_v9 = vpop.f32.mrb[20].mxu1  ;;  %vm503_vm4 = vcmp.gt.f32.partialorder %v471_v5, 0.0 }
 0x227   : > { %v20435_v38 = vadd.f32 %v20253_v22, %v1253_v32  ;;  %v1255_v44 = vpop.f32.mrb[11].mxu0  ;;  %5053 = vmatpush1.bf16.msra.mxu0 %v20260_v61  ;;  %4558 = vperm.xlu1 %17801, %v4485_v30   ;;  %v20443_v10 = vpop.f32.mrb[21].mxu1  ;;  %v3544_v22 = vsel %vm770_vm0, %v20369_v41, %v3543_v55  ;;  %v3571_v7 = vsel %vm770_vm0, %v20374_v59, %v3570_v4  ;;  %v4487_v59 = vsel %vm502_vm15, 1, %v20359_v48 }
 0x228   : > { %v20446_v14 = vpop.f32.mrb[22].mxu1  ;;  %v4180_v61 = vor.u32 %v20275_v40, %v20234_v57  ;;  %v4189_v32 = vor.u32 %v4188_v24, %v4185_v13  ;;  %v25126_v40 = vld [vmem:[#allocation38_spill] sm:$0xff] }
 0x229   : > { %16741 = vmatmul.mubr.msk.bf16.gmra.mrb[116].mxu0 %vm1617_vm2, %v4163_v43  ;;  %v20456_v30 = vpop.f32.mrb[23].mxu1  ;;  %v3561_v44 = vor.u32 %v25126_v40, %v20048_v35  ;;  %v473_v35 = vld [vmem:[#allocation16 + $0xc8] sm:$0xff]  ;;  %v3654_v40 = vshrl.u32 %v20469_v46, 16 }
 0x22a   : > { %16744 = vmatprep.mubr.msk.bf16.mxu0 %vm1617_vm2, %v4172_v19  ;;  %v3588_v19 = vor.u32 %v20111_v37, %v20109_v56  ;;  %v4181_v24 = vsel %vm770_vm0, %v4171_v26, %v4180_v61  ;;  %v4190_v31 = vsel %vm770_vm0, %v4180_v61, %v4189_v32  ;;  %v25127_v61 = vshll.u32 %v20385_v49, 16 }
 0x22b   : > { %4561 = vperm.xlu1 %17801, %v4486_v18   ;;  %v472_v18 = vld [vmem:[#allocation16 + $0xc0] sm:$0xff]  ;;  %v3562_v37 = vsel %vm770_vm0, %v3543_v55, %v3561_v44  ;;  %v4198_v55 = vor.u32 %v4197_v53, %v4194_v15  ;;  %vm505_vm6 = vcmp.gt.f32.partialorder %v473_v35, 0.0 }
 0x22c   : > { %v1258_v41 = vpop.f32.mrb[12].mxu0  ;;  %3901 = vmatmul.mubr.bf16.gmra.mrb[128].mxu1 %v3544_v22  ;;  %v20489_v5 = vrot.slane %v25127_v61, 4  ;;  %vm504_vm5 = vcmp.gt.f32.partialorder %v472_v18, 0.0  ;;  %v17997_v15 = vld [vmem:[%s19209_s21 + $0x118] ss:$8 sps:$4 sm:$0xff]  }
 0x22d   : > { %v20462_v43 = vadd.f32 %v20238_v54, %v1258_v41  ;;  %v1260_v57 = vpop.f32.mrb[13].mxu0  ;;  %15507 = vmatprep.mubr.msk.bf16.mxu1 %vm1151_vm3, %v3571_v7  ;;  %v3589_v7 = vsel %vm770_vm0, %v3570_v4, %v3588_v19  ;;  %v25128_v41 = vshrl.u32 %v20387_v34, 16  ;;  %v474_v34 = vld [vmem:[#allocation16 + $0xd0] sm:$0xff]  ;;  %v4489_v53 = vsel %vm504_vm5, 1, %v20359_v48  ;;  %v475_v18 = vld [vmem:[#allocation16 + $0xd8] sm:$0xff] }
 0x22e   : > { %v1261_v13 = vpop.f32.mrb[14].mxu0  ;;  %v20477_v22 = vpop.f32.mrb[24].mxu1  ;;  %v20498_v57 = vrot.slane %v3630_v12, 4  ;;  %v4199_v61 = vsel %vm770_vm0, %v4189_v32, %v4198_v55  ;;  %vm506_vm7 = vcmp.gt.f32.partialorder %v474_v34, 0.0  ;;  %vm507_vm8 = vcmp.gt.f32.partialorder %v475_v18, 0.0 }
 0x22f   : > { %v20474_v8 = vadd.f32 %v20246_v45, %v1261_v13  ;;  %v1263_v54 = vpop.f32.mrb[15].mxu0  ;;  %4564 = vperm.xlu1 %17801, %v4487_v59   ;;  %v20479_v56 = vpop.f32.mrb[25].mxu1  ;;  %v4488_v45 = vsel %vm503_vm4, 1, %v20359_v48  ;;  %v20493_v59 = vrot.slane %v25128_v41, 3  ;;  %v3657_v13 = vshll.u32 %v20469_v46, 16 }
 0x230   : > { %v20485_v26 = vpop.f32.mrb[26].mxu1  ;;  %v3579_v46 = vor.u32 %v20118_v50, %v20116_v23  ;;  %v4490_v41 = vsel %vm505_vm6, 1, %v20359_v48  ;;  %v3645_v55 = vshrl.u32 %v17997_v15, 16  ;;  %v3648_v34 = vshll.u32 %v17997_v15, 16  ;;  %v25131_v15 = vld [vmem:[#allocation36_spill] sm:$0xff] }
 0x231   : > { %16745 = vmatmul.mubr.msk.bf16.gmra.mrb[120].mxu0 %vm1617_vm2, %v4181_v24  ;;  %v20496_v4 = vpop.f32.mrb[27].mxu1  ;;  %v18018_v24 = vld [vmem:[%s19209_s21 + $0x14] ss:$8 sps:$4 sm:$0xff]  }
 0x232   : > { %16748 = vmatprep.mubr.msk.bf16.mxu0 %vm1617_vm2, %v4190_v31  ;;  %v3580_v50 = vsel %vm770_vm0, %v3561_v44, %v3579_v46  ;;  %v4492_v44 = vsel %vm507_vm8, 1, %v20359_v48 }
 0x233   : > { %4567 = vperm.xlu1 %17801, %v4488_v45  }
 0x234   : > { %v1266_v49 = vpop.f32.mrb[16].mxu0  ;;  %3909 = vmatmul.mubr.bf16.gmra.mrb[132].mxu1 %v3562_v37 }
 0x235   : > { %v20504_v54 = vadd.f32 %v20282_v2, %v1266_v49  ;;  %v1268_v31 = vpop.f32.mrb[17].mxu0  ;;  %15508 = vmatprep.mubr.msk.bf16.mxu1 %vm1151_vm3, %v3589_v7  ;;  %v3606_v2 = vor.u32 %v20130_v29, %v20120_v17  ;;  %v476_v17 = vld [vmem:[#allocation16 + $0xe0] sm:$0xff]  ;;  %v477_v29 = vld [vmem:[#allocation16 + $0xe8] sm:$0xff] }
 0x236   : > { %v1269_v12 = vpop.f32.mrb[18].mxu0  ;;  %v20519_v49 = vpop.f32.mrb[28].mxu1  ;;  %v18016_v31 = vld [vmem:[%s19209_s21 + $0x10] ss:$8 sps:$4 sm:$0xff]   ;;  %vm508_vm9 = vcmp.gt.f32.partialorder %v476_v17, 0.0  ;;  %vm509_vm10 = vcmp.gt.f32.partialorder %v477_v29, 0.0 }
 0x237   : > { %25129 = vst [vmem:[#allocation37_spill] sm:$0xff] %v20504_v54  ;;  %v20513_v45 = vadd.f32 %v20294_v16, %v1269_v12  ;;  %v1271_v37 = vpop.f32.mrb[19].mxu0  ;;  %4570 = vperm.xlu1 %17801, %v4489_v53   ;;  %v20521_v7 = vpop.f32.mrb[29].mxu1  ;;  %v20527_v16 = vrot.slane %v3654_v40, 3  ;;  %v3607_v35 = vsel %vm770_vm0, %v3588_v19, %v3606_v2  ;;  %v4491_v53 = vsel %vm506_vm7, 1, %v20359_v48 }
 0x238   : > { %v20524_v23 = vpop.f32.mrb[30].mxu1  ;;  %v3597_v37 = vor.u32 %v25131_v15, %v20132_v58  ;;  %v3659_v15 = vrot.slane %v3657_v13, 4  ;;  %v20555_v54 = vrot.slane %v3645_v55, 3 }
 0x239   : > { %25130 = vst [vmem:[#allocation39_spill] sm:$0xff] %v20513_v45  ;;  %16749 = vmatmul.mubr.msk.bf16.gmra.mrb[124].mxu0 %vm1617_vm2, %v4199_v61  ;;  %v20530_v32 = vpop.f32.mrb[31].mxu1  ;;  %v18022_v61 = vld [vmem:[%s19209_s21 + $0x24] ss:$8 sps:$4 sm:$0xff]  }
 0x23a   : > { %15593 = vmatprep.mubr.msk.bf16.mxu0 %vm1151_vm3, %v18018_v24  ;;  %v478_v45 = vld [vmem:[#allocation16 + $0xf0] sm:$0xff]  ;;  %v3598_v58 = vsel %vm770_vm0, %v3579_v46, %v3597_v37  ;;  %v18027_v46 = vld [vmem:[%s19209_s21 + $0x34] ss:$8 sps:$4 sm:$0xff]  }
 0x23b   : > { %4573 = vperm.xlu1 %17801, %v4490_v41   ;;  %vm510_vm11 = vcmp.gt.f32.partialorder %v478_v45, 0.0  ;;  %v3660_v45 = vor.u32 %v3659_v15, %v20527_v16  ;;  %v18038_v15 = vld [vmem:[%s19209_s21 + $0x54] ss:$8 sps:$4 sm:$0xff]  }
 0x23c   : > { %v1274_v12 = vpop.f32.mrb[20].mxu0  ;;  %3917 = vmatmul.mubr.bf16.gmra.mrb[136].mxu1 %v3580_v50  ;;  %v3624_v50 = vor.u32 %v20354_v3, %v20342_v63  ;;  %v18025_v3 = vld [vmem:[%s19209_s21 + $0x20] ss:$8 sps:$4 sm:$0xff]  }
 0x23d   : > { %v20539_v40 = vadd.f32 %v20279_v62, %v1274_v12  ;;  %v1276_v24 = vpop.f32.mrb[21].mxu0  ;;  %15509 = vmatprep.mubr.msk.bf16.mxu1 %vm1151_vm3, %v3607_v35 }
 0x23e   : > { %v1277_v19 = vpop.f32.mrb[22].mxu0  ;;  %v20549_v62 = vpop.f32.mrb[32].mxu1  ;;  %v3213_v24 = vld [vmem:[%s19209_s21 + $0x128] sm:$0xff]  ;;  %v3625_v63 = vsel %vm770_vm0, %v3606_v2, %v3624_v50  ;;  %v3615_v2 = vor.u32 %v20401_v47, %v20392_v21 }
 0x23f   : > { %v20545_v41 = vadd.f32 %v20287_v39, %v1277_v19  ;;  %v1279_v18 = vpop.f32.mrb[23].mxu0  ;;  %4576 = vperm.xlu1 %17801, %v4491_v53   ;;  %v2523_v12 = vpop.f32.mrb[33].mxu1  ;;  %v20557_v39 = vrot.slane %v3648_v34, 4  ;;  %v4493_v53 = vsel %vm508_vm9, 1, %v20359_v48  ;;  %v15487_v17 = vcombine.high %v3213_v24, %v3213_v24 }
 0x240   : > { %v20552_v35 = vpop.f32.mrb[34].mxu1  ;;  %v3616_v21 = vsel %vm770_vm0, %v3597_v37, %v3615_v2 }
 0x241   : > { %5067 = vmatmul.mubr.bf16.vlgmr.msra.gmra.mrb[128].mxu0 %v18016_v31  ;;  %v2526_v19 = vpop.f32.mrb[35].mxu1  ;;  %v4494_v31 = vsel %vm509_vm10, 1, %v20359_v48  ;;  %v3672_v47 = vshrl.u32 %v15487_v17, 16 }
 0x242   : > { %15594 = vmatprep.mubr.msk.bf16.mxu0 %vm1151_vm3, %v18022_v61  ;;  %v20573_v61 = vcombine.low %v3213_v24, %v3213_v24  ;;  %v3675_v24 = vshll.u32 %v15487_v17, 16 }
 0x243   : > { %4579 = vperm.xlu1 %17801, %v4492_v44   ;;  %v3642_v44 = vor.u32 %v20489_v5, %v20458_v28 }
 0x244   : > { %v1282_v18 = vpop.f32.mrb[24].mxu0  ;;  %3925 = vmatmul.mubr.bf16.gmra.mrb[140].mxu1 %v3598_v58  ;;  %v3666_v5 = vshll.u32 %v20573_v61, 16 }
 0x245   : > { %v20568_v13 = vadd.f32 %v20330_v0, %v1282_v18  ;;  %v1284_v55 = vpop.f32.mrb[25].mxu0  ;;  %15510 = vmatprep.mubr.msk.bf16.mxu1 %vm1151_vm3, %v3625_v63  ;;  %v479_v0 = vld [vmem:[#allocation16 + $0xf8] sm:$0xff]  ;;  %v3643_v28 = vsel %vm770_vm0, %v3624_v50, %v3642_v44  ;;  %v3633_v50 = vor.u32 %v20498_v57, %v20493_v59  ;;  %v3674_v59 = vrot.slane %v3672_v47, 3 }
 0x246   : > { %v1285_v34 = vpop.f32.mrb[26].mxu0  ;;  %v20580_v58 = vpop.f32.mrb[36].mxu1  ;;  %v18030_v55 = vld [vmem:[%s19209_s21 + $0x30] ss:$8 sps:$4 sm:$0xff]   ;;  %vm511_vm12 = vcmp.gt.f32.partialorder %v479_v0, 0.0  ;;  %v3661_v57 = vsel %vm770_vm0, %v3642_v44, %v3660_v45 }
 0x247   : > { %v20576_v29 = vadd.f32 %v20346_v25, %v1285_v34  ;;  %v1287_v12 = vpop.f32.mrb[27].mxu0  ;;  %4582 = vperm.xlu1 %17801, %v4493_v53   ;;  %v2531_v19 = vpop.f32.mrb[37].mxu1  ;;  %v3663_v25 = vshrl.u32 %v20573_v61, 16  ;;  %v18032_v53 = vld [vmem:[%s19209_s21 + $0x44] ss:$8 sps:$4 sm:$0xff]  }
 0x248   : > { %v20582_v63 = vpop.f32.mrb[38].mxu1 }
 0x249   : > { %5075 = vmatmul.mubr.bf16.gmra.mrb[132].mxu0 %v18025_v3  ;;  %v2534_v18 = vpop.f32.mrb[39].mxu1  ;;  %v4495_v3 = vsel %vm510_vm11, 1, %v20359_v48 }
 0x24a   : > { %15595 = vmatprep.mubr.msk.bf16.mxu0 %vm1151_vm3, %v18027_v46  ;;  %v3677_v18 = vrot.slane %v3675_v24, 4 }
 0x24b   : > { %4585 = vperm.xlu1 %17801, %v4494_v31  }
 0x24c   : > { %v1290_v34 = vpop.f32.mrb[28].mxu0  ;;  %3933 = vmatmul.mubr.bf16.gmra.mrb[144].mxu1 %v3616_v21  ;;  %v3634_v21 = vsel %vm770_vm0, %v3615_v2, %v3633_v50  ;;  %v3651_v2 = vor.u32 %v20557_v39, %v20555_v54  ;;  %v3678_v24 = vor.u32 %v3677_v18, %v3674_v59  ;;  %v18041_v39 = vld [vmem:[%s19209_s21 + $0x50] ss:$8 sps:$4 sm:$0xff]   ;;  %v4735_v59 = vld [vmem:[%s19209_s21 + $0x80] sm:$0xff] }
 0x24d   : > { %v20594_v37 = vadd.f32 %v20325_v60, %v1290_v34  ;;  %v1292_v17 = vpop.f32.mrb[29].mxu0  ;;  %15511 = vmatprep.mubr.msk.bf16.mxu1 %vm1151_vm3, %v3643_v28  ;;  %v4496_v60 = vsel %vm511_vm12, 1, %v20359_v48  ;;  %v18035_v28 = vld [vmem:[%s19209_s21 + $0x40] ss:$8 sps:$4 sm:$0xff]   ;;  %v3665_v34 = vrot.slane %v3663_v25, 3 }
 0x24e   : > { %v1293_v12 = vpop.f32.mrb[30].mxu0  ;;  %v20603_v61 = vpop.f32.mrb[40].mxu1  ;;  %v3652_v25 = vsel %vm770_vm0, %v3633_v50, %v3651_v2  ;;  %v3679_v54 = vsel %vm770_vm0, %v3660_v45, %v3678_v24 }
 0x24f   : > { %v20600_v46 = vadd.f32 %v20333_v51, %v1293_v12  ;;  %v1295_v31 = vpop.f32.mrb[31].mxu0  ;;  %4588 = vperm.xlu1 %17801, %v4495_v3   ;;  %v2539_v0 = vpop.f32.mrb[41].mxu1  ;;  %v3668_v12 = vrot.slane %v3666_v5, 4 }
 0x250   : > { %v20606_v19 = vpop.f32.mrb[42].mxu1 }
 0x251   : > { %5083 = vmatmul.mubr.bf16.gmra.mrb[136].mxu0 %v18030_v55  ;;  %v2542_v51 = vpop.f32.mrb[43].mxu1  ;;  %v3669_v5 = vor.u32 %v3668_v12, %v3665_v34  ;;  %v18048_v34 = vld [vmem:[%s19209_s21 + $0x60] ss:$8 sps:$4 sm:$0xff]  }
 0x252   : > { %15596 = vmatprep.mubr.msk.bf16.mxu0 %vm1151_vm3, %v18032_v53 }
 0x253   : > { %4591 = vperm.xlu1 %17801, %v4496_v60   ;;  %v18045_v60 = vld [vmem:[%s19209_s21 + $0x64] ss:$8 sps:$4 sm:$0xff]  }
 0x254   : > { %v1298_v16 = vpop.f32.mrb[32].mxu0  ;;  %3941 = vmatmul.mubr.bf16.gmra.mrb[148].mxu1 %v3634_v21 }
 0x255   : > { %v20614_v48 = vadd.f32 %v20396_v36, %v1298_v16  ;;  %v1300_v55 = vpop.f32.mrb[33].mxu0  ;;  %15512 = vmatprep.mubr.msk.bf16.mxu1 %vm1151_vm3, %v3661_v57  ;;  %v18445_v16 = vld [vmem:[%s19209_s21 + $0x88] sm:$0xff] }
 0x256   : > { %v1301_v3 = vpop.f32.mrb[34].mxu0  ;;  %v20622_v53 = vpop.f32.mrb[44].mxu1  ;;  %v18065_v55 = vld [vmem:[#allocation9 + $0x70] sm:$0xff]  }
 0x257   : > { %v20620_v44 = vadd.f32 %v20414_v27, %v1301_v3  ;;  %v1303_v47 = vpop.f32.mrb[35].mxu0  ;;  %v2547_v36 = vpop.f32.mrb[45].mxu1  ;;  %16792 = vmatprep.subr.bf16.mxu0 %v18065_v55 }
 0x258   : > { %v20624_v17 = vpop.f32.mrb[46].mxu1  ;;  %16793 = vmatpush3.bf16.msra.mxu0 %v18065_v55 }
 0x259   : > { %5091 = vmatmul.mubr.bf16.gmra.mrb[140].mxu0 %v18035_v28  ;;  %v2550_v31 = vpop.f32.mrb[47].mxu1 }
 0x25a   : > { %15597 = vmatprep.mubr.msk.bf16.mxu0 %vm1151_vm3, %v18038_v15  ;;  %v15566_v15 = vcombine.high %v4735_v59, %v18445_v16 }
 0x25c   : > { %v1306_v27 = vpop.f32.mrb[36].mxu0  ;;  %3949 = vmatmul.mubr.bf16.gmra.mrb[152].mxu1 %v3652_v25  ;;  %v4737_v25 = vld [vmem:[%s19209_s21 + $0x90] sm:$0xff] }
 0x25d   : > { %v20632_v0 = vadd.f32 %v20390_v52, %v1306_v27  ;;  %v1308_v21 = vpop.f32.mrb[37].mxu0  ;;  %15513 = vmatprep.mubr.msk.bf16.mxu1 %vm1151_vm3, %v3679_v54  ;;  %v3670_v52 = vsel %vm770_vm0, %v3651_v2, %v3669_v5  ;;  %v18067_v2 = vld [vmem:[#allocation9 + $0x78] sm:$0xff]   ;;  %v18070_v5 = vld [vmem:[#allocation9 + $0x80] sm:$0xff]   ;;  %vm7534_vm0 = vsmask.f32 7424 }
 0x25e   : > { %v1309_v51 = vpop.f32.mrb[38].mxu0  ;;  %v20639_v57 = vpop.f32.mrb[48].mxu1  ;;  %16794 = vmatprep.subr.bf16.mxu0 %v18067_v2  ;;  %v18446_v21 = vld [vmem:[%s19209_s21 + $0x98] sm:$0xff] }
 0x25f   : > { %v20637_v50 = vadd.f32 %v20405_v1, %v1309_v51  ;;  %v1311_v45 = vpop.f32.mrb[39].mxu0  ;;  %v2555_v18 = vpop.f32.mrb[49].mxu1  ;;  %v18052_v1 = vld [vmem:[%s19209_s21 + $0x74] ss:$8 sps:$4 sm:$0xff]   ;;  %v15568_v51 = vcombine.high %v4737_v25, %v18446_v21  ;;  %16795 = vmatpush3.bf16.msra.mxu0 %v18067_v2 }
 0x260   : > { %v20641_v28 = vpop.f32.mrb[50].mxu1  ;;  %v18008_v18 = vld [vmem:[#allocation9 + $0x24] sm:$0xff]   ;;  %16796 = vmatprep.subr.bf16.mxu0 %v18070_v5 }
 0x261   : > { %5099 = vmatmul.mubr.bf16.gmra.mrb[144].mxu0 %v18041_v39  ;;  %v2558_v3 = vpop.f32.mrb[51].mxu1 }
 0x262   : > { %15598 = vmatprep.mubr.msk.bf16.mxu0 %vm1151_vm3, %v18045_v60  ;;  %v15565_v60 = vcombine.low %v4735_v59, %v18445_v16  ;;  %v18013_v59 = vld [vmem:[#allocation9 + $0x2c] sm:$0xff]   ;;  %v18447_v16 = vld [vmem:[#allocation9 + $0x1c] sm:$0xff]  }
 0x263   : > { %16797 = vmatpush3.bf16.msra.mxu0 %v18070_v5 }
 0x264   : > { %v1314_v47 = vpop.f32.mrb[40].mxu0  ;;  %3957 = vmatmul.mubr.bf16.gmra.mrb[156].mxu1 %v3670_v52  ;;  %v18055_v52 = vld [vmem:[%s19209_s21 + $0x70] ss:$8 sps:$4 sm:$0xff]  }
 0x265   : > { %v20649_v24 = vadd.f32 %v20443_v10, %v1314_v47  ;;  %v1316_v36 = vpop.f32.mrb[41].mxu0  ;;  %15600 = vmatprep.mubr.msk.bf16.mxu1 %vm1151_vm3, %v15566_v15 }
 0x266   : > { %v1317_v12 = vpop.f32.mrb[42].mxu0  ;;  %v20656_v39 = vpop.f32.mrb[52].mxu1 }
 0x267   : > { %v20654_v31 = vadd.f32 %v20456_v30, %v1317_v12  ;;  %v1319_v54 = vpop.f32.mrb[43].mxu0  ;;  %v2563_v27 = vpop.f32.mrb[53].mxu1  ;;  %v18021_v12 = vld [vmem:[#allocation9 + $0x34] ss:$0 sps:$4 sm:$0xff]  }
 0x268   : > { %v20658_v10 = vpop.f32.mrb[54].mxu1  ;;  %v15567_v54 = vcombine.low %v4737_v25, %v18446_v21  ;;  %v18074_v27 = vld [vmem:[%s19201_s13 + $0x10] sm:$0xff]   ;;  %v5345_v5 = vsel %vm1666_vm1, %v18021_v12, 0 }
 0x269   : > { %5107 = vmatmul.mubr.bf16.gmra.mrb[148].mxu0 %v18048_v34  ;;  %v2566_v45 = vpop.f32.mrb[55].mxu1  ;;  %v18073_v34 = vld [vmem:[#allocation9 + $0x88] ss:$0 sps:$4 sm:$0xff]  }
 0x26a   : > { %15599 = vmatprep.mubr.msk.bf16.mxu0 %vm1151_vm3, %v18052_v1  ;;  %17672 = vmatprep.subr.msk.bf16.mxu0 %vm1666_vm1, %v18073_v34  ;;  %v20679_v45 = vld [vmem:[#allocation3] sm:$0xff] }
 0x26c   : > { %v1322_v30 = vpop.f32.mrb[44].mxu0  ;;  %5123 = vmatmul.mubr.bf16.vlgmr.msra.gmra.mrb[160].mxu1 %v15565_v60 }
 0x26d   : > { %v20664_v15 = vadd.f32 %v20440_v9, %v1322_v30  ;;  %v1324_v55 = vpop.f32.mrb[45].mxu0  ;;  %16753 = vmatpush3.bf16.msra.mxu1 %v18447_v16  ;;  %15601 = vmatprep.mubr.msk.bf16.mxu1 %vm1151_vm3, %v15568_v51  ;;  %v6164_v9 = vsel %vm1666_vm1, %v18073_v34, 0 }
 0x26e   : > { %v1325_v3 = vpop.f32.mrb[46].mxu0  ;;  %16754 = vmatprep.subr.bf16.mxu1 %v18008_v18  ;;  %v20670_v36 = vpop.f32.mrb[56].mxu1  ;;  %16799 = vmatpush3.bf16.msra.mxu0 %v6164_v9  ;;  %v25133_v55 = vld [vmem:[#allocation30_spill] sm:$0xff] }
 0x26f   : > { %v20668_v47 = vadd.f32 %v20446_v14, %v1325_v3  ;;  %v1327_v1 = vpop.f32.mrb[47].mxu0  ;;  %v2571_v2 = vpop.f32.mrb[57].mxu1  ;;  %6704 = vmatprep.subr.bf16.mxu0 %v20679_v45  ;;  %v18077_v9 = vld [vmem:[%s19201_s13 + $0x20] sm:$0xff]  }
 0x270   : > { %v20675_v60 = vpop.f32.mrb[58].mxu1 }
 0x271   : > { %5115 = vmatmul.mubr.bf16.gmra.mrb[152].mxu0 %v18055_v52  ;;  %16755 = vmatpush3.bf16.msra.mxu1 %v18008_v18  ;;  %v2574_v14 = vpop.f32.mrb[59].mxu1  ;;  %v18075_v18 = vld [vmem:[%s19201_s13 + $0x18] sm:$0xff]   ;;  %v25132_v52 = vld [vmem:[#allocation48_spill] sm:$0xff] }
 0x272   : > { %16756 = vmatprep.subr.bf16.mxu1 %v18013_v59  ;;  %16800 = vmatprep.mubr.msk.bf16.mxu0 %vm1617_vm2, %v18074_v27  ;;  %v25134_v16 = vcombine.high %v25132_v52, %v25133_v55  ;;  %v18450_v27 = vld [vmem:[%s19209_s21 + $0xb8] sm:$0xff] }
 0x274   : > { %v1330_v51 = vpop.f32.mrb[48].mxu0  ;;  %5131 = vmatmul.mubr.bf16.gmra.mrb[164].mxu1 %v15567_v54  ;;  %v18449_v54 = vld [vmem:[%s19209_s21 + $0xb0] sm:$0xff] }
 0x275   : > { %v20683_v25 = vadd.f32 %v20479_v56, %v1330_v51  ;;  %v1332_v21 = vpop.f32.mrb[49].mxu0  ;;  %15602 = vmatprep.mubr.msk.bf16.mxu1 %vm1151_vm3, %v25134_v16  ;;  %16757 = vmatpush3.bf16.msra.mxu1 %v18013_v59  ;;  %v15572_v14 = vcombine.high %v18449_v54, %v18450_v27  ;;  %v25136_v51 = vcombine.low %v25132_v52, %v25133_v55  ;;  %v18079_v52 = vld [vmem:[%s19201_s13 + $0x30] sm:$0xff]  }
 0x276   : > { %v1333_v30 = vpop.f32.mrb[50].mxu0  ;;  %17671 = vmatprep.subr.msk.bf16.mxu1 %vm1666_vm1, %v18021_v12  ;;  %v20694_v1 = vpop.f32.mrb[60].mxu1  ;;  %v18078_v12 = vld [vmem:[%s19201_s13 + $0x28] sm:$0xff]  }
 0x277   : > { %v20691_v3 = vadd.f32 %v20496_v4, %v1333_v30  ;;  %v1335_v34 = vpop.f32.mrb[51].mxu0  ;;  %v2579_v56 = vpop.f32.mrb[61].mxu1 }
 0x278   : > { %v20698_v2 = vpop.f32.mrb[62].mxu1 }
 0x279   : > { %25135 = vst [vmem:[#allocation40_spill] sm:$0xff] %v20691_v3  ;;  %16801 = vmatmul.mubr.msk.bf16.vlgmr.msra.gmra.mrb[156].mxu0 %vm1617_vm2, %v18075_v18  ;;  %16759 = vmatpush3.bf16.msra.mxu1 %v5345_v5  ;;  %v2582_v59 = vpop.f32.mrb[63].mxu1 }
 0x27a   : > { %5853 = vmatprep.subr.bf16.mxu1 %v20679_v45  ;;  %16804 = vmatprep.mubr.msk.bf16.mxu0 %vm1617_vm2, %v18077_v9  ;;  %v15571_v9 = vcombine.low %v18449_v54, %v18450_v27  ;;  %v18452_v59 = vld [vmem:[%s19209_s21 + $0xc8] sm:$0xff] }
 0x27c   : > { %v1338_v4 = vpop.f32.mrb[52].mxu0  ;;  %5139 = vmatmul.mubr.bf16.gmra.mrb[168].mxu1 %v25136_v51 }
 0x27d   : > { %v20709_v21 = vadd.f32 %v20477_v22, %v1338_v4  ;;  %v1340_v18 = vpop.f32.mrb[53].mxu0  ;;  %15603 = vmatprep.mubr.msk.bf16.mxu1 %vm1151_vm3, %v15572_v14  ;;  %v18451_v22 = vld [vmem:[%s19209_s21 + $0xc0] sm:$0xff]  ;;  %v18080_v14 = vld [vmem:[%s19201_s13 + $0x38] sm:$0xff]  }
 0x27e   : > { %v1341_v30 = vpop.f32.mrb[54].mxu0  ;;  %v20715_v34 = vpop.f32.mrb[64].mxu1  ;;  %v15574_v4 = vcombine.high %v18451_v22, %v18452_v59 }
 0x27f   : > { %v20713_v5 = vadd.f32 %v20485_v26, %v1341_v30  ;;  %v1343_v16 = vpop.f32.mrb[55].mxu0  ;;  %v2587_v56 = vpop.f32.mrb[65].mxu1 }
 0x280   : > { %v20719_v55 = vpop.f32.mrb[66].mxu1 }
 0x281   : > { %16805 = vmatmul.mubr.msk.bf16.gmra.mrb[160].mxu0 %vm1617_vm2, %v18078_v12  ;;  %v2590_v51 = vpop.f32.mrb[67].mxu1 }
 0x282   : > { %16808 = vmatprep.mubr.msk.bf16.mxu0 %vm1617_vm2, %v18079_v52  ;;  %v15573_v52 = vcombine.low %v18451_v22, %v18452_v59  ;;  %v18081_v51 = vld [vmem:[%s19201_s13 + $0x40] sm:$0xff]  }
 0x284   : > { %v1346_v26 = vpop.f32.mrb[56].mxu0  ;;  %5147 = vmatmul.mubr.bf16.gmra.mrb[172].mxu1 %v15571_v9 }
 0x285   : > { %v20726_v18 = vadd.f32 %v20521_v7, %v1346_v26  ;;  %v1348_v54 = vpop.f32.mrb[57].mxu0  ;;  %15604 = vmatprep.mubr.msk.bf16.mxu1 %vm1151_vm3, %v15574_v4  ;;  %v18453_v7 = vld [vmem:[%s19209_s21 + $0xd0] sm:$0xff]  ;;  %v18454_v26 = vld [vmem:[%s19209_s21 + $0xd8] sm:$0xff] }
 0x286   : > { %v1349_v27 = vpop.f32.mrb[58].mxu0  ;;  %v20732_v16 = vpop.f32.mrb[68].mxu1  ;;  %v15576_v54 = vcombine.high %v18453_v7, %v18454_v26  ;;  %v18083_v4 = vld [vmem:[#allocation10 + $0x230] sm:$0xff]  }
 0x287   : > { %25137 = vst [vmem:[#allocation41_spill] sm:$0xff] %v20726_v18  ;;  %v20730_v12 = vadd.f32 %v20530_v32, %v1349_v27  ;;  %v1351_v30 = vpop.f32.mrb[59].mxu0  ;;  %v2595_v56 = vpop.f32.mrb[69].mxu1  ;;  %v18082_v32 = vld [vmem:[%s19201_s13 + $0x48] sm:$0xff]   ;;  %6705 = vmatpush1.bf16.msra.mxu0 %v18083_v4  ;;  %v18455_v4 = vld [vmem:[%s19209_s21 + $0xe0] sm:$0xff] }
 0x288   : > { %v20736_v9 = vpop.f32.mrb[70].mxu1  ;;  %6706 = vmatprep.subr.bf16.mxu0 %v20679_v45  ;;  %v18084_v30 = vld [vmem:[#allocation10 + $0x238] sm:$0xff]  }
 0x289   : > { %25138 = vst [vmem:[#allocation42_spill] sm:$0xff] %v20730_v12  ;;  %16809 = vmatmul.mubr.msk.bf16.gmra.mrb[164].mxu0 %vm1617_vm2, %v18080_v14  ;;  %v2598_v18 = vpop.f32.mrb[71].mxu1 }
 0x28a   : > { %16812 = vmatprep.mubr.msk.bf16.mxu0 %vm1617_vm2, %v18081_v51  ;;  %v15575_v51 = vcombine.low %v18453_v7, %v18454_v26 }
 0x28b   : > { %6707 = vmatpush1.bf16.msra.mxu0 %v18084_v30 }
 0x28c   : > { %v1354_v3 = vpop.f32.mrb[60].mxu0  ;;  %5155 = vmatmul.mubr.bf16.gmra.mrb[176].mxu1 %v15573_v52  ;;  %6708 = vmatprep.subr.bf16.mxu0 %v20679_v45 }
 0x28d   : > { %v20743_v27 = vadd.f32 %v20519_v49, %v1354_v3  ;;  %v1356_v22 = vpop.f32.mrb[61].mxu0  ;;  %15605 = vmatprep.mubr.msk.bf16.mxu1 %vm1151_vm3, %v15576_v54  ;;  %v18085_v49 = vld [vmem:[%s19201_s13 + $0x50] sm:$0xff]  }
 0x28e   : > { %v1357_v59 = vpop.f32.mrb[62].mxu0  ;;  %v20750_v56 = vpop.f32.mrb[72].mxu1  ;;  %v18456_v22 = vld [vmem:[%s19209_s21 + $0xe8] sm:$0xff] }
 0x28f   : > { %v20748_v14 = vadd.f32 %v20524_v23, %v1357_v59  ;;  %v1359_v18 = vpop.f32.mrb[63].mxu0  ;;  %v2603_v52 = vpop.f32.mrb[73].mxu1  ;;  %v15578_v54 = vcombine.high %v18455_v4, %v18456_v22  ;;  %v18087_v23 = vld [vmem:[#allocation10 + $0x240] sm:$0xff]  }
 0x290   : > { %v20754_v3 = vpop.f32.mrb[74].mxu1  ;;  %v18086_v18 = vld [vmem:[%s19201_s13 + $0x58] sm:$0xff]   ;;  %6709 = vmatpush1.bf16.msra.mxu0 %v18087_v23 }
 0x291   : > { %25139 = vst [vmem:[#allocation43_spill] sm:$0xff] %v20748_v14  ;;  %16813 = vmatmul.mubr.msk.bf16.gmra.mrb[168].mxu0 %vm1617_vm2, %v18082_v32  ;;  %v2606_v12 = vpop.f32.mrb[75].mxu1  ;;  %6710 = vmatprep.subr.bf16.mxu0 %v20679_v45 }
 0x292   : > { %16816 = vmatprep.mubr.msk.bf16.mxu0 %vm1617_vm2, %v18085_v49 }
 0x294   : > { %v16682_v59 = vpop.f32.mrb[64].mxu0  ;;  %5163 = vmatmul.mubr.bf16.gmra.mrb[180].mxu1 %v15575_v51 }
 0x295   : > { %v2998_v7 = vadd.f32 %v16682_v59, %v20580_v58  ;;  %v2989_v26 = vpop.f32.mrb[65].mxu0  ;;  %15606 = vmatprep.mubr.msk.bf16.mxu1 %vm1151_vm3, %v15578_v54  ;;  %v18089_v58 = vld [vmem:[#allocation10 + $0x248] sm:$0xff]  }
 0x296   : > { %v2990_v32 = vadd.f32 %v2989_v26, %v20549_v62  ;;  %v16683_v52 = vpop.f32.mrb[66].mxu0  ;;  %v20769_v51 = vpop.f32.mrb[76].mxu1  ;;  %v18457_v26 = vld [vmem:[%s19209_s21 + $0xf0] sm:$0xff]  ;;  %6711 = vmatpush1.bf16.msra.mxu0 %v18089_v58 }
 0x297   : > { %v20765_v12 = vadd.f32 %v2998_v7, %v20365_v20  ;;  %v3001_v30 = vadd.f32 %v16683_v52, %v20582_v63  ;;  %v2992_v49 = vpop.f32.mrb[67].mxu0  ;;  %v2611_v54 = vpop.f32.mrb[77].mxu1  ;;  %v15577_v20 = vcombine.low %v18455_v4, %v18456_v22  ;;  %v18090_v63 = vld [vmem:[%s19201_s13 + $0x60] sm:$0xff]   ;;  %v18458_v52 = vld [vmem:[%s19209_s21 + $0xf8] sm:$0xff]  ;;  %6712 = vmatprep.subr.bf16.mxu0 %v20679_v45 }
 0x298   : > { %v2993_v62 = vadd.f32 %v2992_v49, %v20552_v35  ;;  %v20773_v59 = vadd.f32 %v2990_v32, %v20308_v33  ;;  %v20780_v7 = vpop.f32.mrb[78].mxu1  ;;  %v18091_v33 = vld [vmem:[%s19201_s13 + $0x68] sm:$0xff]  }
 0x299   : > { %25140 = vst [vmem:[#allocation44_spill] sm:$0xff] %v20765_v12  ;;  %v20776_v23 = vadd.f32 %v3001_v30, %v20381_v42  ;;  %16817 = vmatmul.mubr.msk.bf16.gmra.mrb[172].mxu0 %vm1617_vm2, %v18086_v18  ;;  %v15580_v12 = vcombine.high %v18457_v26, %v18458_v52  ;;  %v2614_v35 = vpop.f32.mrb[79].mxu1  ;;  %v18092_v42 = vld [vmem:[#allocation10 + $0x250] sm:$0xff]  }
 0x29a   : > { %v20785_v14 = vadd.f32 %v2993_v62, %v20320_v11  ;;  %16820 = vmatprep.mubr.msk.bf16.mxu0 %vm1617_vm2, %v18090_v63  ;;  %6713 = vmatpush1.bf16.msra.mxu0 %v18092_v42  ;;  %v18093_v62 = vld [vmem:[#allocation10 + $0x258] sm:$0xff]   ;;  %v18459_v42 = vld [vmem:[%s19209_s21 + $0x100] sm:$0xff] }
 0x29b   : > { %6714 = vmatprep.subr.bf16.mxu0 %v20679_v45 }
 0x29c   : > { %v16686_v4 = vpop.f32.mrb[68].mxu0  ;;  %5171 = vmatmul.mubr.bf16.gmra.mrb[184].mxu1 %v15577_v20 }
 0x29d   : > { %v3014_v22 = vadd.f32 %v16686_v4, %v20622_v53  ;;  %v3005_v18 = vpop.f32.mrb[69].mxu0  ;;  %15607 = vmatprep.mubr.msk.bf16.mxu1 %vm1151_vm3, %v15580_v12  ;;  %v18460_v4 = vld [vmem:[%s19209_s21 + $0x108] sm:$0xff] }
 0x29e   : > { %v3006_v32 = vadd.f32 %v3005_v18, %v20603_v61  ;;  %v16687_v30 = vpop.f32.mrb[70].mxu0  ;;  %v20798_v53 = vpop.f32.mrb[80].mxu1  ;;  %6715 = vmatpush1.bf16.msra.mxu0 %v18093_v62  ;;  %v25141_v62 = vld [vmem:[#allocation37_spill] sm:$0xff] }
 0x29f   : > { %v20794_v11 = vadd.f32 %v3014_v22, %v20462_v43  ;;  %v3017_v49 = vadd.f32 %v16687_v30, %v20624_v17  ;;  %v3008_v58 = vpop.f32.mrb[71].mxu0  ;;  %v2619_v12 = vpop.f32.mrb[81].mxu1  ;;  %v15579_v43 = vcombine.low %v18457_v26, %v18458_v52  ;;  %v18094_v17 = vld [vmem:[%s19201_s13 + $0x70] sm:$0xff]   ;;  %6716 = vmatprep.subr.bf16.mxu0 %v20679_v45 }
 0x2a0   : > { %v20801_v61 = vadd.f32 %v3006_v32, %v20423_v6  ;;  %v3009_v54 = vadd.f32 %v3008_v58, %v20606_v19  ;;  %v20809_v63 = vpop.f32.mrb[82].mxu1  ;;  %v15582_v6 = vcombine.high %v18459_v42, %v18460_v4  ;;  %v18100_v58 = vld [vmem:[#allocation10 + $0x268] sm:$0xff]  }
 0x2a1   : > { %v20805_v20 = vadd.f32 %v3017_v49, %v20474_v8  ;;  %16821 = vmatmul.mubr.msk.bf16.gmra.mrb[176].mxu0 %vm1617_vm2, %v18091_v33  ;;  %v2622_v22 = vpop.f32.mrb[83].mxu1  ;;  %v18099_v8 = vld [vmem:[#allocation10 + $0x260] sm:$0xff]  }
 0x2a2   : > { %v20812_v35 = vadd.f32 %v3009_v54, %v20435_v38  ;;  %16824 = vmatprep.mubr.msk.bf16.mxu0 %vm1617_vm2, %v18094_v17  ;;  %v18097_v33 = vld [vmem:[%s19201_s13 + $0x78] sm:$0xff]   ;;  %6717 = vmatpush1.bf16.msra.mxu0 %v18099_v8  ;;  %v18034_v8 = vld [vmem:[%s19201_s13 + $0x8] sm:$0xff]  }
 0x2a3   : > { %6718 = vmatprep.subr.bf16.mxu0 %v20679_v45 }
 0x2a4   : > { %v16690_v19 = vpop.f32.mrb[72].mxu0  ;;  %5179 = vmatmul.mubr.bf16.gmra.mrb[188].mxu1 %v15579_v43  ;;  %v15581_v43 = vcombine.low %v18459_v42, %v18460_v4 }
 0x2a5   : > { %v3030_v26 = vadd.f32 %v16690_v19, %v20656_v39  ;;  %v3021_v52 = vpop.f32.mrb[73].mxu0  ;;  %15608 = vmatprep.mubr.msk.bf16.mxu1 %vm1151_vm3, %v15582_v6  ;;  %v25142_v6 = vld [vmem:[#allocation39_spill] sm:$0xff] }
 0x2a6   : > { %v3022_v18 = vadd.f32 %v3021_v52, %v20639_v57  ;;  %v16691_v38 = vpop.f32.mrb[74].mxu0  ;;  %v20827_v39 = vpop.f32.mrb[84].mxu1  ;;  %6719 = vmatpush1.bf16.msra.mxu0 %v18100_v58 }
 0x2a7   : > { %v3033_v32 = vadd.f32 %v16691_v38, %v20658_v10  ;;  %v3024_v30 = vpop.f32.mrb[75].mxu0  ;;  %v20824_v49 = vadd.f32 %v3030_v26, %v20539_v40  ;;  %v2627_v12 = vpop.f32.mrb[85].mxu1  ;;  %v18101_v40 = vld [vmem:[%s19201_s13 + $0x80] sm:$0xff]   ;;  %6720 = vmatprep.subr.bf16.mxu0 %v20679_v45  ;;  %v18105_v26 = vld [vmem:[%s19201_s13 + $0x88] sm:$0xff]  }
 0x2a8   : > { %v20830_v54 = vadd.f32 %v3022_v18, %v25141_v62  ;;  %v3025_v57 = vadd.f32 %v3024_v30, %v20641_v28  ;;  %v20838_v10 = vpop.f32.mrb[86].mxu1  ;;  %v18106_v28 = vld [vmem:[#allocation10 + $0x270] sm:$0xff]  }
 0x2a9   : > { %v20834_v17 = vadd.f32 %v3033_v32, %v20545_v41  ;;  %16825 = vmatmul.mubr.msk.bf16.gmra.mrb[180].mxu0 %vm1617_vm2, %v18097_v33  ;;  %v2630_v19 = vpop.f32.mrb[87].mxu1 }
 0x2aa   : > { %v20841_v22 = vadd.f32 %v3025_v57, %v25142_v6  ;;  %16828 = vmatprep.mubr.msk.bf16.mxu0 %vm1617_vm2, %v18101_v40  ;;  %6721 = vmatpush1.bf16.msra.mxu0 %v18106_v28  ;;  %v18036_v57 = vld [vmem:[%s19201_s13 + $0x10] sm:$0xff]   ;;  %v18040_v40 = vld [vmem:[%s19201_s13 + $0x18] sm:$0xff]  }
 0x2ab   : > { %6722 = vmatprep.subr.bf16.mxu0 %v20679_v45 }
 0x2ac   : > { %v16694_v42 = vpop.f32.mrb[76].mxu0  ;;  %5187 = vmatmul.mubr.bf16.gmra.mrb[192].mxu1 %v15581_v43  ;;  %v18037_v43 = vld [vmem:[#allocation10 + $0x140] sm:$0xff]  }
 0x2ad   : > { %v3046_v41 = vadd.f32 %v16694_v42, %v20694_v1  ;;  %v3037_v4 = vpop.f32.mrb[77].mxu0  ;;  %16760 = vmatprep.mubr.msk.bf16.mxu1 %vm1617_vm2, %v18034_v8  ;;  %v18107_v1 = vld [vmem:[#allocation10 + $0x278] sm:$0xff]  }
 0x2ae   : > { %v3038_v52 = vadd.f32 %v3037_v4, %v20670_v36  ;;  %v16695_v33 = vpop.f32.mrb[78].mxu0  ;;  %v20855_v30 = vpop.f32.mrb[88].mxu1  ;;  %6723 = vmatpush1.bf16.msra.mxu0 %v18107_v1  ;;  %v18108_v8 = vld [vmem:[%s19209_s21 + $0x30] ss:$8 sps:$4 sm:$0xff]  }
 0x2af   : > { %v3049_v18 = vadd.f32 %v16695_v33, %v20698_v2  ;;  %v3040_v38 = vpop.f32.mrb[79].mxu0  ;;  %v20852_v32 = vadd.f32 %v3046_v41, %v20594_v37  ;;  %v2635_v62 = vpop.f32.mrb[89].mxu1  ;;  %v18110_v37 = vld [vmem:[%s19209_s21 + $0x34] ss:$8 sps:$4 sm:$0xff]  }
 0x2b0   : > { %v3041_v36 = vadd.f32 %v3040_v38, %v20675_v60  ;;  %v20859_v58 = vadd.f32 %v3038_v52, %v20568_v13  ;;  %v20867_v2 = vpop.f32.mrb[90].mxu1 }
 0x2b1   : > { %v20863_v12 = vadd.f32 %v3049_v18, %v20600_v46  ;;  %16829 = vmatmul.mubr.msk.bf16.gmra.mrb[184].mxu0 %vm1617_vm2, %v18105_v26  ;;  %v2638_v60 = vpop.f32.mrb[91].mxu1  ;;  %v18042_v18 = vld [vmem:[%s19201_s13 + $0x20] sm:$0xff]  }
 0x2b2   : > { %v20871_v6 = vadd.f32 %v3041_v36, %v20576_v29  ;;  %15781 = vmatprep.mubr.msk.bf16.mxu0 %vm1151_vm3, %v18110_v37  ;;  %v18043_v29 = vld [vmem:[#allocation10 + $0x148] sm:$0xff]  }
 0x2b3   : > { %v18047_v36 = vld [vmem:[%s19201_s13 + $0x28] sm:$0xff]  }
 0x2b4   : > { %v16698_v13 = vpop.f32.mrb[80].mxu0  ;;  %16761 = vmatmul.mubr.msk.bf16.vlgmr.msra.gmra.mrb[196].mxu1 %vm1617_vm2, %v18036_v57 }
 0x2b5   : > { %v3062_v46 = vadd.f32 %v16698_v13, %v20732_v16  ;;  %v3053_v19 = vpop.f32.mrb[81].mxu0  ;;  %5854 = vmatpush1.bf16.msra.mxu1 %v18037_v43  ;;  %16764 = vmatprep.mubr.msk.bf16.mxu1 %vm1617_vm2, %v18040_v40 }
 0x2b6   : > { %v3054_v28 = vadd.f32 %v3053_v19, %v20715_v34  ;;  %v16699_v42 = vpop.f32.mrb[82].mxu0  ;;  %5855 = vmatprep.subr.bf16.mxu1 %v20679_v45  ;;  %v20884_v52 = vpop.f32.mrb[92].mxu1 }
 0x2b7   : > { %v3065_v41 = vadd.f32 %v16699_v42, %v20736_v9  ;;  %v3056_v4 = vpop.f32.mrb[83].mxu0  ;;  %v20882_v26 = vadd.f32 %v3062_v46, %v20632_v0  ;;  %v2643_v33 = vpop.f32.mrb[93].mxu1  ;;  %v18115_v9 = vld [vmem:[%s19209_s21 + $0x44] ss:$8 sps:$4 sm:$0xff]  }
 0x2b8   : > { %v3057_v16 = vadd.f32 %v3056_v4, %v20719_v55  ;;  %v20888_v34 = vadd.f32 %v3054_v28, %v20614_v48  ;;  %v20895_v1 = vpop.f32.mrb[94].mxu1  ;;  %v18044_v0 = vld [vmem:[#allocation10 + $0x150] sm:$0xff]   ;;  %v18120_v48 = vld [vmem:[%s19209_s21 + $0x40] ss:$8 sps:$4 sm:$0xff]  }
 0x2b9   : > { %v20892_v38 = vadd.f32 %v3065_v41, %v20637_v50  ;;  %6737 = vmatmul.mubr.bf16.vlgmr.msra.gmra.mrb[188].mxu0 %v18108_v8  ;;  %5856 = vmatpush1.bf16.msra.mxu1 %v18043_v29  ;;  %v2646_v57 = vpop.f32.mrb[95].mxu1  ;;  %v18049_v28 = vld [vmem:[%s19201_s13 + $0x30] sm:$0xff]   ;;  %v18056_v41 = vld [vmem:[#allocation10 + $0x160] sm:$0xff]  }
 0x2ba   : > { %v20899_v62 = vadd.f32 %v3057_v16, %v20620_v44  ;;  %5857 = vmatprep.subr.bf16.mxu1 %v20679_v45  ;;  %15782 = vmatprep.mubr.msk.bf16.mxu0 %vm1151_vm3, %v18115_v9  ;;  %v18050_v44 = vld [vmem:[#allocation10 + $0x158] sm:$0xff]  }
 0x2bc   : > { %v16702_v55 = vpop.f32.mrb[84].mxu0  ;;  %16765 = vmatmul.mubr.msk.bf16.gmra.mrb[200].mxu1 %vm1617_vm2, %v18042_v18 }
 0x2bd   : > { %v3078_v50 = vadd.f32 %v16702_v55, %v20769_v51  ;;  %v3069_v37 = vpop.f32.mrb[85].mxu0  ;;  %5858 = vmatpush1.bf16.msra.mxu1 %v18044_v0  ;;  %16768 = vmatprep.mubr.msk.bf16.mxu1 %vm1617_vm2, %v18047_v36 }
 0x2be   : > { %v3070_v43 = vadd.f32 %v3069_v37, %v20750_v56  ;;  %v16703_v40 = vpop.f32.mrb[86].mxu0  ;;  %5859 = vmatprep.subr.bf16.mxu1 %v20679_v45  ;;  %v20913_v46 = vpop.f32.mrb[96].mxu1 }
 0x2bf   : > { %v3081_v60 = vadd.f32 %v16703_v40, %v20780_v7  ;;  %v3072_v8 = vpop.f32.mrb[87].mxu0  ;;  %v20911_v13 = vadd.f32 %v3078_v50, %v20664_v15  ;;  %v3840_v19 = vpop.f32.mrb[97].mxu1  ;;  %v18121_v7 = vld [vmem:[%s19209_s21 + $0x54] ss:$8 sps:$4 sm:$0xff]   ;;  %v18054_v50 = vld [vmem:[%s19201_s13 + $0x40] sm:$0xff]   ;;  %v18057_v40 = vld [vmem:[%s19201_s13 + $0x48] sm:$0xff]  }
 0x2c0   : > { %v3073_v56 = vadd.f32 %v3072_v8, %v20754_v3  ;;  %v20917_v51 = vadd.f32 %v3070_v43, %v20649_v24  ;;  %v20924_v29 = vpop.f32.mrb[98].mxu1  ;;  %v18051_v15 = vld [vmem:[%s19201_s13 + $0x38] sm:$0xff]  }
 0x2c1   : > { %v20921_v42 = vadd.f32 %v3081_v60, %v20668_v47  ;;  %6745 = vmatmul.mubr.bf16.gmra.mrb[192].mxu0 %v18120_v48  ;;  %5860 = vmatpush1.bf16.msra.mxu1 %v18050_v44  ;;  %v3843_v16 = vpop.f32.mrb[99].mxu1  ;;  %v18126_v24 = vld [vmem:[%s19209_s21 + $0x50] ss:$8 sps:$4 sm:$0xff]  }
 0x2c2   : > { %v20928_v4 = vadd.f32 %v3073_v56, %v20654_v31  ;;  %5861 = vmatprep.subr.bf16.mxu1 %v20679_v45  ;;  %15783 = vmatprep.mubr.msk.bf16.mxu0 %vm1151_vm3, %v18121_v7  ;;  %v18059_v31 = vld [vmem:[#allocation10 + $0x168] sm:$0xff]   ;;  %v18062_v44 = vld [vmem:[#allocation10 + $0x170] sm:$0xff]   ;;  %v18063_v7 = vld [vmem:[#allocation10 + $0x178] sm:$0xff]  }
 0x2c4   : > { %v16706_v3 = vpop.f32.mrb[88].mxu0  ;;  %16769 = vmatmul.mubr.msk.bf16.gmra.mrb[204].mxu1 %vm1617_vm2, %v18049_v28 }
 0x2c5   : > { %v3094_v47 = vadd.f32 %v16706_v3, %v20827_v39  ;;  %v3085_v33 = vpop.f32.mrb[89].mxu0  ;;  %16772 = vmatprep.mubr.msk.bf16.mxu1 %vm1617_vm2, %v18051_v15  ;;  %5862 = vmatpush1.bf16.msra.mxu1 %v18056_v41  ;;  %v25144_v3 = vld [vmem:[#allocation41_spill] sm:$0xff] }
 0x2c6   : > { %v3086_v18 = vadd.f32 %v3085_v33, %v20798_v53  ;;  %v16707_v9 = vpop.f32.mrb[90].mxu0  ;;  %5863 = vmatprep.subr.bf16.mxu1 %v20679_v45  ;;  %v3846_v48 = vpop.f32.mrb[100].mxu1  ;;  %v18058_v33 = vld [vmem:[%s19201_s13 + $0x50] sm:$0xff]  }
 0x2c7   : > { %v3097_v0 = vadd.f32 %v16707_v9, %v20838_v10  ;;  %v3088_v36 = vpop.f32.mrb[91].mxu0  ;;  %v20940_v57 = vadd.f32 %v3094_v47, %v20709_v21  ;;  %v3848_v55 = vpop.f32.mrb[101].mxu1  ;;  %v18127_v10 = vld [vmem:[%s19209_s21 + $0x64] ss:$8 sps:$4 sm:$0xff]  }
 0x2c8   : > { %v3089_v39 = vadd.f32 %v3088_v36, %v20809_v63  ;;  %v20944_v53 = vadd.f32 %v3086_v18, %v20683_v25  ;;  %v3849_v43 = vpop.f32.mrb[102].mxu1  ;;  %v25143_v21 = vld [vmem:[#allocation40_spill] sm:$0xff]  ;;  %v18132_v25 = vld [vmem:[%s19209_s21 + $0x60] ss:$8 sps:$4 sm:$0xff]  }
 0x2c9   : > { %v20948_v37 = vadd.f32 %v3097_v0, %v20713_v5  ;;  %6753 = vmatmul.mubr.bf16.gmra.mrb[196].mxu0 %v18126_v24  ;;  %5864 = vmatpush1.bf16.msra.mxu1 %v18059_v31  ;;  %v3851_v8 = vpop.f32.mrb[103].mxu1  ;;  %v25145_v18 = vld [vmem:[#allocation43_spill] sm:$0xff]  ;;  %v18060_v0 = vld [vmem:[%s19201_s13 + $0x58] sm:$0xff]  }
 0x2ca   : > { %v20953_v60 = vadd.f32 %v3089_v39, %v25143_v21  ;;  %5865 = vmatprep.subr.bf16.mxu1 %v20679_v45  ;;  %15784 = vmatprep.mubr.msk.bf16.mxu0 %vm1151_vm3, %v18127_v10  ;;  %v25146_v36 = vld [vmem:[#allocation42_spill] sm:$0xff]  ;;  %v18072_v8 = vld [vmem:[#allocation10 + $0x188] sm:$0xff]  }
 0x2cc   : > { %v16710_v63 = vpop.f32.mrb[92].mxu0  ;;  %16773 = vmatmul.mubr.msk.bf16.gmra.mrb[208].mxu1 %vm1617_vm2, %v18054_v50 }
 0x2cd   : > { %v3110_v5 = vadd.f32 %v16710_v63, %v20884_v52  ;;  %v3101_v56 = vpop.f32.mrb[93].mxu0  ;;  %16776 = vmatprep.mubr.msk.bf16.mxu1 %vm1617_vm2, %v18057_v40  ;;  %5866 = vmatpush1.bf16.msra.mxu1 %v18062_v44  ;;  %v18138_v40 = vld [vmem:[%s19209_s21 + $0x70] ss:$8 sps:$4 sm:$0xff]  }
 0x2ce   : > { %v3102_v19 = vadd.f32 %v3101_v56, %v20855_v30  ;;  %v16711_v28 = vpop.f32.mrb[94].mxu0  ;;  %5867 = vmatprep.subr.bf16.mxu1 %v20679_v45  ;;  %v3854_v24 = vpop.f32.mrb[104].mxu1  ;;  %v25147_v63 = vld [vmem:[#allocation44_spill] sm:$0xff] }
 0x2cf   : > { %v3113_v15 = vadd.f32 %v16711_v28, %v20895_v1  ;;  %v3104_v41 = vpop.f32.mrb[95].mxu0  ;;  %v20965_v16 = vadd.f32 %v3110_v5, %v20743_v27  ;;  %v3856_v47 = vpop.f32.mrb[105].mxu1  ;;  %v18133_v1 = vld [vmem:[%s19209_s21 + $0x74] ss:$8 sps:$4 sm:$0xff]  }
 0x2d0   : > { %v3105_v52 = vadd.f32 %v3104_v41, %v20867_v2  ;;  %v20969_v30 = vadd.f32 %v3102_v19, %v25144_v3  ;;  %v3857_v31 = vpop.f32.mrb[106].mxu1  ;;  %v18068_v27 = vld [vmem:[#allocation10 + $0x180] sm:$0xff]   ;;  %v18064_v47 = vld [vmem:[%s19201_s13 + $0x68] sm:$0xff]  }
 0x2d1   : > { %v20973_v9 = vadd.f32 %v3113_v15, %v25145_v18  ;;  %6761 = vmatmul.mubr.bf16.gmra.mrb[200].mxu0 %v18132_v25  ;;  %5868 = vmatpush1.bf16.msra.mxu1 %v18063_v7  ;;  %v3859_v2 = vpop.f32.mrb[107].mxu1  ;;  %v20987_v25 = vld [vmem:[%s19209_s21 + $0x84] ss:$8 sps:$4 sm:$0xff]   ;;  %v21014_v18 = vld [vmem:[%s19209_s21 + $0x80] ss:$8 sps:$4 sm:$0xff]  }
 0x2d2   : > { %v20978_v39 = vadd.f32 %v3105_v52, %v25146_v36  ;;  %5869 = vmatprep.subr.bf16.mxu1 %v20679_v45  ;;  %15785 = vmatprep.mubr.msk.bf16.mxu0 %vm1151_vm3, %v18133_v1  ;;  %v20992_v19 = vld [vmem:[#allocation3] sm:$0xff] }
 0x2d3   : > { %v18061_v52 = vld [vmem:[%s19201_s13 + $0x60] sm:$0xff]  }
 0x2d4   : > { %v16722_v55 = vpop.f32.mrb[96].mxu0  ;;  %16777 = vmatmul.mubr.msk.bf16.gmra.mrb[212].mxu1 %vm1617_vm2, %v18058_v33 }
 0x2d5   : > { %v4315_v50 = vadd.f32 %v16722_v55, %v3846_v48  ;;  %v4306_v10 = vpop.f32.mrb[97].mxu0  ;;  %16780 = vmatprep.mubr.msk.bf16.mxu1 %vm1617_vm2, %v18060_v0  ;;  %5870 = vmatpush1.bf16.msra.mxu1 %v18068_v27  ;;  %v20995_v48 = vld [vmem:[#allocation9 + $0xc4] sm:$0xff]   ;;  %v21018_v0 = vld [vmem:[%s19209_s21 + $0x94] ss:$8 sps:$4 sm:$0xff]  }
 0x2d6   : > { %v4307_v44 = vadd.f32 %v4306_v10, %v20913_v46  ;;  %v16723_v21 = vpop.f32.mrb[98].mxu0  ;;  %5871 = vmatprep.subr.bf16.mxu1 %v20992_v19 }
 0x2d7   : > { %v20990_v45 = vadd.f32 %v4315_v50, %v25147_v63  ;;  %v4318_v5 = vadd.f32 %v16723_v21, %v3849_v43  ;;  %v4309_v56 = vpop.f32.mrb[99].mxu0  ;;  %v3862_v46 = vpop.f32.mrb[108].mxu1 }
 0x2d8   : > { %v20998_v28 = vadd.f32 %v4307_v44, %v20773_v59  ;;  %v4310_v7 = vadd.f32 %v4309_v56, %v20924_v29  ;;  %v3864_v15 = vpop.f32.mrb[109].mxu1  ;;  %v18066_v44 = vld [vmem:[%s19201_s13 + $0x70] sm:$0xff]  }
 0x2d9   : > { %25148 = vst [vmem:[#allocation45_spill] sm:$0xff] %v20990_v45  ;;  %v21002_v41 = vadd.f32 %v4318_v5, %v20776_v23  ;;  %6769 = vmatmul.mubr.bf16.gmra.mrb[204].mxu0 %v18138_v40  ;;  %v3865_v43 = vpop.f32.mrb[110].mxu1  ;;  %5872 = vmatpush1.bf16.msra.mxu1 %v18072_v8  ;;  %v18069_v8 = vld [vmem:[%s19201_s13 + $0x78] sm:$0xff]  }
 0x2da   : > { %25149 = vst [vmem:[#allocation46_spill] sm:$0xff] %v20998_v28  ;;  %v21006_v3 = vadd.f32 %v4310_v7, %v20785_v14  ;;  %15786 = vmatprep.mubr.msk.bf16.mxu0 %vm1151_vm3, %v20987_v25  ;;  %v3867_v59 = vpop.f32.mrb[111].mxu1  ;;  %16832 = vmatprep.subr.bf16.mxu1 %v20995_v48  ;;  %v21039_v5 = vld [vmem:[%s19209_s21 + $0x90] ss:$8 sps:$4 sm:$0xff]  }
 0x2db   : > { %25150 = vst [vmem:[#allocation47_spill] sm:$0xff] %v21002_v41  ;;  %v18071_v59 = vld [vmem:[%s19201_s13 + $0x80] sm:$0xff]  }
 0x2dc   : > { %25151 = vst [vmem:[#allocation51_spill] sm:$0xff] %v21006_v3  ;;  %v16726_v29 = vpop.f32.mrb[100].mxu0  ;;  %16781 = vmatmul.mubr.msk.bf16.gmra.mrb[216].mxu1 %vm1617_vm2, %v18061_v52 }
 0x2dd   : > { %v4331_v23 = vadd.f32 %v16726_v29, %v3862_v46  ;;  %v4322_v33 = vpop.f32.mrb[101].mxu0  ;;  %16784 = vmatprep.mubr.msk.bf16.mxu1 %vm1617_vm2, %v18064_v47  ;;  %v21043_v46 = vld [vmem:[%s19209_s21 + $0xa4] ss:$8 sps:$4 sm:$0xff]  }
 0x2de   : > { %v4323_v1 = vadd.f32 %v4322_v33, %v3854_v24  ;;  %v16727_v14 = vpop.f32.mrb[102].mxu0 }
 0x2df   : > { %v21021_v27 = vadd.f32 %v4331_v23, %v20794_v11  ;;  %v4334_v36 = vadd.f32 %v16727_v14, %v3865_v43  ;;  %v4325_v2 = vpop.f32.mrb[103].mxu0  ;;  %v3870_v55 = vpop.f32.mrb[112].mxu1 }
 0x2e0   : > { %v21024_v50 = vadd.f32 %v4323_v1, %v20801_v61  ;;  %v4326_v10 = vadd.f32 %v4325_v2, %v3857_v31  ;;  %v3872_v40 = vpop.f32.mrb[113].mxu1 }
 0x2e1   : > { %25152 = vst [vmem:[#allocation52_spill] sm:$0xff] %v21021_v27  ;;  %v21027_v24 = vadd.f32 %v4334_v36, %v20805_v20  ;;  %6777 = vmatmul.mubr.bf16.gmra.mrb[208].mxu0 %v21014_v18  ;;  %v3873_v21 = vpop.f32.mrb[114].mxu1  ;;  %v21068_v40 = vld [vmem:[%s19209_s21 + $0xb4] ss:$8 sps:$4 sm:$0xff]   ;;  %v18241_v27 = vld [vmem:[%s19209_s21 + $0x44] ss:$8 sps:$4 sm:$0xff]  }
 0x2e2   : > { %25153 = vst [vmem:[#allocation49_spill] sm:$0xff] %v21024_v50  ;;  %v21032_v11 = vadd.f32 %v4326_v10, %v20812_v35  ;;  %15787 = vmatprep.mubr.msk.bf16.mxu0 %vm1151_vm3, %v21018_v0  ;;  %v3875_v61 = vpop.f32.mrb[115].mxu1  ;;  %v18153_v50 = vld [vmem:[%s19201_s13 + $0x28] sm:$0xff]  }
 0x2e3   : > { %25154 = vst [vmem:[#allocation50_spill] sm:$0xff] %v21027_v24  ;;  %v18151_v24 = vld [vmem:[%s19201_s13 + $0x20] sm:$0xff]  }
 0x2e4   : > { %25155 = vst [vmem:[#allocation26_spill] sm:$0xff] %v21032_v11  ;;  %v16730_v63 = vpop.f32.mrb[104].mxu0  ;;  %16785 = vmatmul.mubr.msk.bf16.gmra.mrb[220].mxu1 %vm1617_vm2, %v18066_v44 }
 0x2e5   : > { %v4338_v31 = vpop.f32.mrb[105].mxu0  ;;  %16788 = vmatprep.mubr.msk.bf16.mxu1 %vm1617_vm2, %v18069_v8 }
 0x2e6   : > { %v4339_v20 = vadd.f32 %v4338_v31, %v3870_v55  ;;  %v16731_v56 = vpop.f32.mrb[106].mxu0  ;;  %v21063_v55 = vld [vmem:[%s19209_s21 + $0xa0] ss:$8 sps:$4 sm:$0xff]  }
 0x2e7   : > { %v4341_v35 = vpop.f32.mrb[107].mxu0  ;;  %v3878_v7 = vpop.f32.mrb[116].mxu1 }
 0x2e8   : > { %v21046_v15 = vadd.f32 %v4339_v20, %v20830_v54  ;;  %v4342_v52 = vadd.f32 %v4341_v35, %v3873_v21  ;;  %v4347_v43 = vadd.f32 %v16730_v63, %v3878_v7  ;;  %v3880_v47 = vpop.f32.mrb[117].mxu1  ;;  %v18149_v21 = vld [vmem:[#allocation9 + $0x38] sm:$0xff]   ;;  %v18463_v7 = vld [vmem:[%s19209_s21 + $0x20] ss:$8 sps:$4 sm:$0xff]  }
 0x2e9   : > { %6785 = vmatmul.mubr.bf16.gmra.mrb[212].mxu0 %v21039_v5  ;;  %v3881_v29 = vpop.f32.mrb[118].mxu1  ;;  %16872 = vmatprep.subr.bf16.mxu0 %v18149_v21  ;;  %v21083_v47 = vld [vmem:[%s19209_s21 + $0xb0] ss:$8 sps:$4 sm:$0xff]  }
 0x2ea   : > { %25156 = vst [vmem:[#allocation27_spill] sm:$0xff] %v21046_v15  ;;  %v21051_v23 = vadd.f32 %v4342_v52, %v20841_v22  ;;  %15788 = vmatprep.mubr.msk.bf16.mxu0 %vm1151_vm3, %v21043_v46  ;;  %v21056_v33 = vadd.f32 %v4347_v43, %v20824_v49  ;;  %v4350_v54 = vadd.f32 %v16731_v56, %v3881_v29  ;;  %v3883_v1 = vpop.f32.mrb[119].mxu1  ;;  %v18462_v22 = vld [vmem:[%s19209_s21 + $0x24] ss:$8 sps:$4 sm:$0xff]  }
 0x2eb   : > { %v18088_v56 = vld [vmem:[#allocation9 + $0xcc] sm:$0xff]   ;;  %16873 = vmatpush3.bf16.msra.mxu0 %v18149_v21  ;;  %v18114_v1 = vld [vmem:[#allocation9 + $0xd4] sm:$0xff]  }
 0x2ec   : > { %25157 = vst [vmem:[#allocation28_spill] sm:$0xff] %v21051_v23  ;;  %25158 = vst [vmem:[#allocation29_spill] sm:$0xff] %v21056_v33  ;;  %v16734_v14 = vpop.f32.mrb[108].mxu0  ;;  %16789 = vmatmul.mubr.msk.bf16.gmra.mrb[224].mxu1 %vm1617_vm2, %v18071_v59  ;;  %v21060_v36 = vadd.f32 %v4350_v54, %v20834_v17  ;;  %v18464_v59 = vld [vmem:[%s19209_s21 + $0x34] ss:$8 sps:$4 sm:$0xff]  }
 0x2ed   : > { %v4354_v2 = vpop.f32.mrb[109].mxu0  ;;  %15687 = vmatprep.mubr.msk.bf16.mxu1 %vm1151_vm3, %v18462_v22  ;;  %v21089_v29 = vld [vmem:[%s19209_s21 + $0xc4] ss:$8 sps:$4 sm:$0xff]  }
 0x2ee   : > { %25159 = vst [vmem:[#allocation31_spill] sm:$0xff] %v21060_v36  ;;  %v16735_v10 = vpop.f32.mrb[110].mxu0 }
 0x2ef   : > { %v4357_v49 = vpop.f32.mrb[111].mxu0  ;;  %v3886_v44 = vpop.f32.mrb[120].mxu1 }
 0x2f0   : > { %v4355_v8 = vadd.f32 %v4354_v2, %v3886_v44  ;;  %v3888_v61 = vpop.f32.mrb[121].mxu1 }
 0x2f1   : > { %6793 = vmatmul.mubr.bf16.gmra.mrb[216].mxu0 %v21063_v55  ;;  %v3889_v17 = vpop.f32.mrb[122].mxu1 }
 0x2f2   : > { %15789 = vmatprep.mubr.msk.bf16.mxu0 %vm1151_vm3, %v21068_v40  ;;  %v21074_v63 = vadd.f32 %v4355_v8, %v20859_v58  ;;  %v4358_v31 = vadd.f32 %v4357_v49, %v3889_v17  ;;  %v3891_v20 = vpop.f32.mrb[123].mxu1  ;;  %v18139_v8 = vld [vmem:[#allocation9 + $0xdc] ss:$0 sps:$4 sm:$0xff]  }
 0x2f3   : > { %v18466_v20 = vld [vmem:[%s19209_s21 + $0x44] ss:$8 sps:$4 sm:$0xff]  }
 0x2f4   : > { %25160 = vst [vmem:[#allocation53_spill] sm:$0xff] %v21074_v63  ;;  %v21076_v35 = vpop.f32.mrb[112].mxu0  ;;  %5886 = vmatmul.mubr.bf16.vlgmr.msra.gmra.mrb[228].mxu1 %v18463_v7  ;;  %v21080_v52 = vadd.f32 %v4358_v31, %v20871_v6  ;;  %v7015_v7 = vsel %vm1666_vm1, %v18139_v8, 0 }
 0x2f5   : > { %v4370_v43 = vpop.f32.mrb[113].mxu0  ;;  %16833 = vmatpush3.bf16.msra.mxu1 %v20995_v48  ;;  %15688 = vmatprep.mubr.msk.bf16.mxu1 %vm1151_vm3, %v18464_v59 }
 0x2f6   : > { %25161 = vst [vmem:[#allocation54_spill] sm:$0xff] %v21080_v52  ;;  %v16739_v58 = vpop.f32.mrb[114].mxu0  ;;  %16834 = vmatprep.subr.bf16.mxu1 %v18088_v56 }
 0x2f7   : > { %v4373_v54 = vpop.f32.mrb[115].mxu0  ;;  %v3894_v2 = vpop.f32.mrb[124].mxu1 }
 0x2f8   : > { %v4363_v22 = vadd.f32 %v16734_v14, %v3894_v2  ;;  %v3896_v6 = vpop.f32.mrb[125].mxu1  ;;  %v18465_v14 = vld [vmem:[%s19209_s21 + $0x30] ss:$8 sps:$4 sm:$0xff]   ;;  %v21113_v2 = vld [vmem:[%s19209_s21 + $0xd4] ss:$8 sps:$4 sm:$0xff]  }
 0x2f9   : > { %6801 = vmatmul.mubr.bf16.gmra.mrb[220].mxu0 %v21083_v47  ;;  %v3897_v49 = vpop.f32.mrb[126].mxu1  ;;  %16835 = vmatpush3.bf16.msra.mxu1 %v18088_v56 }
 0x2fa   : > { %15790 = vmatprep.mubr.msk.bf16.mxu0 %vm1151_vm3, %v21089_v29  ;;  %v21095_v48 = vadd.f32 %v4363_v22, %v20852_v32  ;;  %v4366_v44 = vadd.f32 %v16735_v10, %v3897_v49  ;;  %v3899_v21 = vpop.f32.mrb[127].mxu1  ;;  %16836 = vmatprep.subr.bf16.mxu1 %v18114_v1  ;;  %v21108_v10 = vld [vmem:[%s19209_s21 + $0xc0] ss:$8 sps:$4 sm:$0xff]  }
 0x2fc   : > { %25162 = vst [vmem:[#allocation55_spill] sm:$0xff] %v21095_v48  ;;  %v21097_v61 = vpop.f32.mrb[116].mxu0  ;;  %5894 = vmatmul.mubr.bf16.gmra.mrb[232].mxu1 %v18465_v14  ;;  %v21101_v17 = vadd.f32 %v4366_v44, %v20863_v12 }
 0x2fd   : > { %v4386_v31 = vpop.f32.mrb[117].mxu0  ;;  %15689 = vmatprep.mubr.msk.bf16.mxu1 %vm1151_vm3, %v18466_v20  ;;  %16837 = vmatpush3.bf16.msra.mxu1 %v18114_v1  ;;  %v18468_v20 = vld [vmem:[%s19209_s21 + $0x54] ss:$8 sps:$4 sm:$0xff]  }
 0x2fe   : > { %25163 = vst [vmem:[#allocation56_spill] sm:$0xff] %v21101_v17  ;;  %v21105_v56 = vpop.f32.mrb[118].mxu0  ;;  %17673 = vmatprep.subr.msk.bf16.mxu1 %vm1666_vm1, %v18139_v8  ;;  %v18472_v17 = vld [vmem:[%s19209_s21 + $0x74] ss:$8 sps:$4 sm:$0xff]  }
 0x2ff   : > { %v4389_v32 = vpop.f32.mrb[119].mxu0  ;;  %v3902_v59 = vpop.f32.mrb[128].mxu1 }
 0x300   : > { %v4371_v12 = vadd.f32 %v4370_v43, %v3902_v59  ;;  %v3904_v22 = vpop.f32.mrb[129].mxu1  ;;  %v18467_v43 = vld [vmem:[%s19209_s21 + $0x40] ss:$8 sps:$4 sm:$0xff]  }
 0x301   : > { %6809 = vmatmul.mubr.bf16.gmra.mrb[224].mxu0 %v21108_v10  ;;  %v3905_v6 = vpop.f32.mrb[130].mxu1  ;;  %16839 = vmatpush3.bf16.msra.mxu1 %v7015_v7 }
 0x302   : > { %15791 = vmatprep.mubr.msk.bf16.mxu0 %vm1151_vm3, %v21113_v2  ;;  %v21119_v1 = vadd.f32 %v4371_v12, %v20888_v34  ;;  %v4374_v49 = vadd.f32 %v4373_v54, %v3905_v6  ;;  %v3907_v44 = vpop.f32.mrb[131].mxu1  ;;  %7923 = vmatprep.subr.bf16.mxu1 %v20992_v19  ;;  %v21137_v54 = vld [vmem:[%s19209_s21 + $0xd0] ss:$8 sps:$4 sm:$0xff]   ;;  %v21140_v12 = vld [vmem:[%s19209_s21 + $0xe4] ss:$8 sps:$4 sm:$0xff]  }
 0x304   : > { %25164 = vst [vmem:[#allocation32_spill] sm:$0xff] %v21119_v1  ;;  %v21122_v21 = vpop.f32.mrb[120].mxu0  ;;  %5902 = vmatmul.mubr.bf16.gmra.mrb[236].mxu1 %v18467_v43  ;;  %v21126_v8 = vadd.f32 %v4374_v49, %v20899_v62 }
 0x305   : > { %v21128_v14 = vpop.f32.mrb[121].mxu0  ;;  %15690 = vmatprep.mubr.msk.bf16.mxu1 %vm1151_vm3, %v18468_v20 }
 0x306   : > { %25165 = vst [vmem:[#allocation35_spill] sm:$0xff] %v21126_v8  ;;  %v21132_v7 = vpop.f32.mrb[122].mxu0  ;;  %v18469_v8 = vld [vmem:[%s19209_s21 + $0x50] ss:$8 sps:$4 sm:$0xff]  }
 0x307   : > { %v21134_v34 = vpop.f32.mrb[123].mxu0  ;;  %v3910_v59 = vpop.f32.mrb[132].mxu1 }
 0x308   : > { %v4379_v22 = vadd.f32 %v21076_v35, %v3910_v59  ;;  %v3912_v62 = vpop.f32.mrb[133].mxu1 }
 0x309   : > { %6817 = vmatmul.mubr.bf16.gmra.mrb[228].mxu0 %v21137_v54  ;;  %v3913_v6 = vpop.f32.mrb[134].mxu1  ;;  %v18470_v62 = vld [vmem:[%s19209_s21 + $0x64] ss:$8 sps:$4 sm:$0xff]  }
 0x30a   : > { %15792 = vmatprep.mubr.msk.bf16.mxu0 %vm1151_vm3, %v21140_v12  ;;  %v21147_v49 = vadd.f32 %v4379_v22, %v20882_v26  ;;  %v4382_v44 = vadd.f32 %v16739_v58, %v3913_v6  ;;  %v3915_v43 = vpop.f32.mrb[135].mxu1  ;;  %v21164_v26 = vld [vmem:[%s19209_s21 + $0xe0] ss:$8 sps:$4 sm:$0xff]   ;;  %v21167_v22 = vld [vmem:[%s19209_s21 + $0xf4] ss:$8 sps:$4 sm:$0xff]  }
 0x30c   : > { %25166 = vst [vmem:[#allocation33_spill] sm:$0xff] %v21147_v49  ;;  %v21149_v20 = vpop.f32.mrb[124].mxu0  ;;  %5910 = vmatmul.mubr.bf16.gmra.mrb[240].mxu1 %v18469_v8  ;;  %v21153_v35 = vadd.f32 %v4382_v44, %v20892_v38  ;;  %v18163_v38 = vld [vmem:[#allocation9 + $0x40] sm:$0xff]  }
 0x30d   : > { %v21155_v59 = vpop.f32.mrb[125].mxu0  ;;  %15691 = vmatprep.mubr.msk.bf16.mxu1 %vm1151_vm3, %v18470_v62  ;;  %16874 = vmatprep.subr.bf16.mxu0 %v18163_v38 }
 0x30e   : > { %25167 = vst [vmem:[#allocation34_spill] sm:$0xff] %v21153_v35  ;;  %v21159_v1 = vpop.f32.mrb[126].mxu0  ;;  %16875 = vmatpush3.bf16.msra.mxu0 %v18163_v38 }
 0x30f   : > { %v21161_v52 = vpop.f32.mrb[127].mxu0  ;;  %v3918_v58 = vpop.f32.mrb[136].mxu1 }
 0x310   : > { %v4387_v6 = vadd.f32 %v4386_v31, %v3918_v58  ;;  %v3920_v8 = vpop.f32.mrb[137].mxu1  ;;  %v18471_v31 = vld [vmem:[%s19209_s21 + $0x60] ss:$8 sps:$4 sm:$0xff]  }
 0x311   : > { %6825 = vmatmul.mubr.bf16.gmra.mrb[232].mxu0 %v21164_v26  ;;  %v3921_v44 = vpop.f32.mrb[138].mxu1 }
 0x312   : > { %15793 = vmatprep.mubr.msk.bf16.mxu0 %vm1151_vm3, %v21167_v22  ;;  %v21173_v43 = vadd.f32 %v4387_v6, %v20917_v51  ;;  %v4390_v62 = vadd.f32 %v4389_v32, %v3921_v44  ;;  %v3923_v35 = vpop.f32.mrb[139].mxu1  ;;  %v21186_v51 = vld [vmem:[%s19209_s21 + $0xf0] ss:$8 sps:$4 sm:$0xff]   ;;  %v21189_v6 = vld [vmem:[%s19209_s21 + $0x104] ss:$8 sps:$4 sm:$0xff]  }
 0x314   : > { %25168 = vst [vmem:[#allocation57_spill] sm:$0xff] %v21173_v43  ;;  %v21175_v49 = vpop.f32.mrb[128].mxu0  ;;  %5918 = vmatmul.mubr.bf16.gmra.mrb[244].mxu1 %v18471_v31  ;;  %v21179_v58 = vadd.f32 %v4390_v62, %v20928_v4  ;;  %v18189_v43 = vld [vmem:[%s19209_s21 + $0x24] ss:$8 sps:$4 sm:$0xff]  }
 0x315   : > { %v5070_v8 = vpop.f32.mrb[129].mxu0  ;;  %15692 = vmatprep.mubr.msk.bf16.mxu1 %vm1151_vm3, %v18472_v17 }
 0x316   : > { %25169 = vst [vmem:[#allocation38_spill] sm:$0xff] %v21179_v58  ;;  %v21183_v48 = vpop.f32.mrb[130].mxu0  ;;  %v21210_v58 = vld [vmem:[%s19209_s21 + $0x100] ss:$8 sps:$4 sm:$0xff]  }
 0x317   : > { %v5073_v32 = vpop.f32.mrb[131].mxu0  ;;  %v3926_v35 = vpop.f32.mrb[140].mxu1 }
 0x318   : > { %v4395_v38 = vadd.f32 %v21097_v61, %v3926_v35  ;;  %v3928_v44 = vpop.f32.mrb[141].mxu1  ;;  %v18473_v32 = vld [vmem:[%s19209_s21 + $0x70] ss:$8 sps:$4 sm:$0xff]  }
 0x319   : > { %6833 = vmatmul.mubr.bf16.gmra.mrb[236].mxu0 %v21186_v51  ;;  %v3929_v4 = vpop.f32.mrb[142].mxu1 }
 0x31a   : > { %15794 = vmatprep.mubr.msk.bf16.mxu0 %vm1151_vm3, %v21189_v6  ;;  %v21196_v17 = vadd.f32 %v4395_v38, %v20911_v13  ;;  %v4398_v62 = vadd.f32 %v21105_v56, %v3929_v4  ;;  %v3931_v31 = vpop.f32.mrb[143].mxu1  ;;  %v21213_v56 = vld [vmem:[%s19209_s21 + $0x114] ss:$8 sps:$4 sm:$0xff]  }
 0x31c   : > { %25170 = vst [vmem:[#allocation36_spill] sm:$0xff] %v21196_v17  ;;  %v21199_v8 = vpop.f32.mrb[132].mxu0  ;;  %5926 = vmatmul.mubr.bf16.gmra.mrb[248].mxu1 %v18473_v32  ;;  %v21203_v61 = vadd.f32 %v4398_v62, %v20921_v42 }
 0x31d   : > { %v5078_v35 = vpop.f32.mrb[133].mxu0  ;;  %15693 = vmatprep.mubr.msk.bf16.mxu1 %vm1151_vm3, %v20987_v25 }
 0x31e   : > { %25171 = vst [vmem:[#allocation48_spill] sm:$0xff] %v21203_v61  ;;  %v21207_v44 = vpop.f32.mrb[134].mxu0 }
 0x31f   : > { %v5081_v13 = vpop.f32.mrb[135].mxu0  ;;  %v3934_v38 = vpop.f32.mrb[144].mxu1 }
 0x320   : > { %v4403_v4 = vadd.f32 %v21128_v14, %v3934_v38  ;;  %v3936_v31 = vpop.f32.mrb[145].mxu1 }
 0x321   : > { %6841 = vmatmul.mubr.bf16.gmra.mrb[240].mxu0 %v21210_v58  ;;  %v3937_v42 = vpop.f32.mrb[146].mxu1  ;;  %v21234_v31 = vld [vmem:[%s19209_s21 + $0x110] ss:$8 sps:$4 sm:$0xff]  }
 0x322   : > { %15795 = vmatprep.mubr.msk.bf16.mxu0 %vm1151_vm3, %v21213_v56  ;;  %v21220_v25 = vadd.f32 %v4403_v4, %v20944_v53  ;;  %v4406_v62 = vadd.f32 %v21134_v34, %v3937_v42  ;;  %v3939_v32 = vpop.f32.mrb[147].mxu1 }
 0x324   : > { %25172 = vst [vmem:[#allocation30_spill] sm:$0xff] %v21220_v25  ;;  %v21223_v35 = vpop.f32.mrb[136].mxu0  ;;  %5934 = vmatmul.mubr.bf16.gmra.mrb[252].mxu1 %v21014_v18  ;;  %v21227_v14 = vadd.f32 %v4406_v62, %v20953_v60  ;;  %v18174_v60 = vld [vmem:[%s19209_s21 + $0x124] ss:$8 sps:$4 sm:$0xff]   ;;  %v18176_v25 = vld [vmem:[%s19209_s21 + $0x120] ss:$8 sps:$4 sm:$0xff]  }
 0x325   : > { %v5086_v13 = vpop.f32.mrb[137].mxu0  ;;  %15694 = vmatprep.mubr.msk.bf16.mxu1 %vm1151_vm3, %v21018_v0  ;;  %v18178_v62 = vld [vmem:[#allocation9 + $0x48] sm:$0xff]  }
 0x326   : > { %25173 = vst [vmem:[#allocation37_spill] sm:$0xff] %v21227_v14  ;;  %v21231_v38 = vpop.f32.mrb[138].mxu0  ;;  %v18182_v14 = vld [vmem:[%s19201_s13 + $0x8] sm:$0xff]   ;;  %16876 = vmatprep.subr.bf16.mxu0 %v18178_v62 }
 0x327   : > { %v5089_v53 = vpop.f32.mrb[139].mxu0  ;;  %v3942_v34 = vpop.f32.mrb[148].mxu1  ;;  %16877 = vmatpush3.bf16.msra.mxu0 %v18178_v62 }
 0x328   : > { %v4411_v4 = vadd.f32 %v21122_v21, %v3942_v34  ;;  %v3944_v42 = vpop.f32.mrb[149].mxu1  ;;  %v18183_v21 = vld [vmem:[%s19201_s13 + $0x10] sm:$0xff]  }
 0x329   : > { %6849 = vmatmul.mubr.bf16.gmra.mrb[244].mxu0 %v21234_v31  ;;  %v3945_v18 = vpop.f32.mrb[150].mxu1 }
 0x32a   : > { %v21240_v32 = vadd.f32 %v4411_v4, %v20940_v57  ;;  %v4414_v0 = vadd.f32 %v21132_v7, %v3945_v18  ;;  %v3947_v13 = vpop.f32.mrb[151].mxu1  ;;  %15796 = vmatprep.mubr.msk.bf16.mxu0 %vm1151_vm3, %v18174_v60  ;;  %v8170_v57 = vshll.u32 %v18182_v14, 16  ;;  %v18181_v4 = vld [vmem:[#allocation9 + $0x50] ss:$0 sps:$4 sm:$0xff]   ;;  %v8168_v60 = vshrl.u32 %v18182_v14, 16 }
 0x32b   : > { %v8175_v18 = vshll.u32 %v18183_v21, 16  ;;  %17674 = vmatprep.subr.msk.bf16.mxu0 %vm1666_vm1, %v18181_v4 }
 0x32c   : > { %25174 = vst [vmem:[#allocation39_spill] sm:$0xff] %v21240_v32  ;;  %v21245_v53 = vpop.f32.mrb[140].mxu0  ;;  %5942 = vmatmul.mubr.bf16.gmra.mrb[0].mxu1 %v21039_v5  ;;  %v21250_v34 = vadd.f32 %v4414_v0, %v20948_v37  ;;  %v8172_v32 = vrot.slane %v8170_v57, 1  ;;  %v18190_v5 = vld [vmem:[%s19201_s13 + $0x18] sm:$0xff]   ;;  %v8369_v37 = vsel %vm1666_vm1, %v18181_v4, 0  ;;  %v8179_v0 = vshrl.u32 %v18183_v21, 16 }
 0x32d   : > { %v5094_v42 = vpop.f32.mrb[141].mxu0  ;;  %15695 = vmatprep.mubr.msk.bf16.mxu1 %vm1151_vm3, %v21043_v46  ;;  %v8177_v62 = vrot.slane %v8175_v18, 1  ;;  %16879 = vmatpush3.bf16.msra.mxu0 %v8369_v37  ;;  %v18192_v21 = vld [vmem:[%s19201_s13 + $0x20] sm:$0xff]  }
 0x32e   : > { %25175 = vst [vmem:[#allocation40_spill] sm:$0xff] %v21250_v34  ;;  %v21255_v7 = vpop.f32.mrb[142].mxu0  ;;  %v18187_v42 = vld [vmem:[%s19209_s21 + $0x20] ss:$8 sps:$4 sm:$0xff]   ;;  %v8173_v14 = vor.u32 %v8172_v32, %v8168_v60  ;;  %9148 = vmatprep.subr.bf16.mxu0 %v20992_v19  ;;  %v7555_v60 = vshll.u32 %v18189_v43, 16 }
 0x32f   : > { %v5097_v13 = vpop.f32.mrb[143].mxu0  ;;  %v3950_v61 = vpop.f32.mrb[152].mxu1 }
 0x330   : > { %v3952_v34 = vpop.f32.mrb[153].mxu1  ;;  %v4419_v46 = vadd.f32 %v21155_v59, %v3950_v61  ;;  %v8178_v18 = vsel %vm7534_vm0, %v8173_v14, %v8177_v62  ;;  %v8181_v59 = vor.u32 %v8179_v0, %v8177_v62  ;;  %v7543_v61 = vshll.u32 %v18187_v42, 16 }
 0x331   : > { %6857 = vmatmul.mubr.bf16.gmra.mrb[248].mxu0 %v18176_v25  ;;  %v3953_v17 = vpop.f32.mrb[154].mxu1  ;;  %v8183_v25 = vshll.u32 %v18190_v5, 16  ;;  %v8187_v0 = vshrl.u32 %v18190_v5, 16 }
 0x332   : > { %v21264_v57 = vadd.f32 %v4419_v46, %v20969_v30  ;;  %v3955_v13 = vpop.f32.mrb[155].mxu1  ;;  %v4422_v4 = vadd.f32 %v21161_v52, %v3953_v17  ;;  %16880 = vmatprep.mubr.msk.bf16.mxu0 %vm1617_vm2, %v8178_v18  ;;  %v18193_v52 = vld [vmem:[%s19201_s13 + $0x28] sm:$0xff]   ;;  %v8191_v17 = vshll.u32 %v18192_v21, 16  ;;  %v7559_v46 = vshrl.u32 %v18187_v42, 16 }
 0x333   : > { %v8185_v62 = vrot.slane %v8183_v25, 1  ;;  %v8195_v18 = vshrl.u32 %v18192_v21, 16  ;;  %v21282_v63 = vrot.slane %v7543_v61, 1  ;;  %v7567_v42 = vshrl.u32 %v18189_v43, 16  ;;  %v18194_v43 = vld [vmem:[%s19201_s13 + $0x30] sm:$0xff]  }
 0x334   : > { %25176 = vst [vmem:[#allocation41_spill] sm:$0xff] %v21264_v57  ;;  %v21270_v34 = vpop.f32.mrb[144].mxu0  ;;  %5950 = vmatmul.mubr.bf16.gmra.mrb[4].mxu1 %v21063_v55  ;;  %v21275_v30 = vadd.f32 %v4422_v4, %v20978_v39  ;;  %v8193_v13 = vrot.slane %v8191_v17, 1  ;;  %v8199_v57 = vshll.u32 %v18193_v52, 16 }
 0x335   : > { %v5102_v32 = vpop.f32.mrb[145].mxu0  ;;  %15696 = vmatprep.mubr.msk.bf16.mxu1 %vm1151_vm3, %v21068_v40  ;;  %v8186_v39 = vsel %vm7534_vm0, %v8181_v59, %v8185_v62  ;;  %v8189_v4 = vor.u32 %v8187_v0, %v8185_v62  ;;  %v21286_v40 = vrot.slane %v7555_v60, 1  ;;  %v21291_v61 = vor.u32 %v7559_v46, %v21282_v63  ;;  %v18195_v0 = vld [vmem:[%s19201_s13 + $0x38] sm:$0xff]  }
 0x336   : > { %25177 = vst [vmem:[#allocation43_spill] sm:$0xff] %v21275_v30  ;;  %v21280_v37 = vpop.f32.mrb[146].mxu0  ;;  %v8197_v25 = vor.u32 %v8195_v18, %v8193_v13  ;;  %v8201_v17 = vrot.slane %v8199_v57, 1 }
 0x337   : > { %v5105_v14 = vpop.f32.mrb[147].mxu0  ;;  %v3958_v55 = vpop.f32.mrb[156].mxu1  ;;  %v8194_v21 = vsel %vm7534_vm0, %v8189_v4, %v8193_v13  ;;  %v21299_v60 = vor.u32 %v7567_v42, %v21286_v40  ;;  %v8203_v13 = vshrl.u32 %v18193_v52, 16  ;;  %v18196_v52 = vld [vmem:[%s19201_s13 + $0x40] sm:$0xff]  }
 0x338   : > { %v4427_v32 = vadd.f32 %v21149_v20, %v3958_v55  ;;  %v3960_v30 = vpop.f32.mrb[157].mxu1  ;;  %v8202_v14 = vsel %vm7534_vm0, %v8197_v25, %v8201_v17 }
 0x339   : > { %16881 = vmatmul.mubr.msk.bf16.vlgmr.msra.gmra.mrb[252].mxu0 %vm1617_vm2, %v8186_v39  ;;  %v3961_v5 = vpop.f32.mrb[158].mxu1  ;;  %v8211_v39 = vshrl.u32 %v18194_v43, 16 }
 0x33a   : > { %v21294_v59 = vadd.f32 %v4427_v32, %v20965_v16  ;;  %v4430_v20 = vadd.f32 %v21159_v1, %v3961_v5  ;;  %v3963_v30 = vpop.f32.mrb[159].mxu1  ;;  %16884 = vmatprep.mubr.msk.bf16.mxu0 %vm1617_vm2, %v8194_v21  ;;  %v8207_v16 = vshll.u32 %v18194_v43, 16  ;;  %v18197_v43 = vld [vmem:[%s19201_s13 + $0x48] sm:$0xff]  }
 0x33c   : > { %25178 = vst [vmem:[#allocation42_spill] sm:$0xff] %v21294_v59  ;;  %v21302_v62 = vpop.f32.mrb[148].mxu0  ;;  %5958 = vmatmul.mubr.bf16.gmra.mrb[8].mxu1 %v21083_v47  ;;  %v21306_v57 = vadd.f32 %v4430_v20, %v20973_v9  ;;  %v8209_v55 = vrot.slane %v8207_v16, 1  ;;  %v8215_v47 = vshll.u32 %v18195_v0, 16  ;;  %v8205_v9 = vor.u32 %v8203_v13, %v8201_v17 }
 0x33d   : > { %v5110_v46 = vpop.f32.mrb[149].mxu0  ;;  %15697 = vmatprep.mubr.msk.bf16.mxu1 %vm1151_vm3, %v21089_v29  ;;  %v8223_v17 = vshll.u32 %v18196_v52, 16 }
 0x33e   : > { %25179 = vst [vmem:[#allocation44_spill] sm:$0xff] %v21306_v57  ;;  %v21311_v1 = vpop.f32.mrb[150].mxu0  ;;  %v8210_v29 = vsel %vm7534_vm0, %v8205_v9, %v8209_v55  ;;  %v8213_v5 = vor.u32 %v8211_v39, %v8209_v55  ;;  %v8217_v21 = vrot.slane %v8215_v47, 1  ;;  %v8227_v55 = vshrl.u32 %v18196_v52, 16 }
 0x33f   : > { %v5113_v18 = vpop.f32.mrb[151].mxu0  ;;  %v21314_v4 = vpop.f32.mrb[160].mxu1  ;;  %v8231_v39 = vshll.u32 %v18197_v43, 16 }
 0x340   : > { %v5126_v32 = vpop.f32.mrb[161].mxu1  ;;  %v8218_v16 = vsel %vm7534_vm0, %v8213_v5, %v8217_v21  ;;  %v8225_v18 = vrot.slane %v8223_v17, 1 }
 0x341   : > { %16885 = vmatmul.mubr.msk.bf16.gmra.mrb[0].mxu0 %vm1617_vm2, %v8202_v14  ;;  %v21317_v42 = vpop.f32.mrb[162].mxu1  ;;  %v8219_v14 = vshrl.u32 %v18195_v0, 16  ;;  %v18201_v0 = vld [vmem:[#allocation10 + $0x190] sm:$0xff]  }
 0x342   : > { %v5129_v25 = vpop.f32.mrb[163].mxu1  ;;  %16888 = vmatprep.mubr.msk.bf16.mxu0 %vm1617_vm2, %v8210_v29  ;;  %v8229_v29 = vor.u32 %v8227_v55, %v8225_v18  ;;  %9149 = vmatpush1.bf16.msra.mxu0 %v18201_v0 }
 0x343   : > { %v8233_v25 = vrot.slane %v8231_v39, 1  ;;  %9150 = vmatprep.subr.bf16.mxu0 %v20992_v19  ;;  %v18202_v39 = vld [vmem:[#allocation10 + $0x198] sm:$0xff]  }
 0x344   : > { %v21322_v20 = vpop.f32.mrb[152].mxu0  ;;  %5966 = vmatmul.mubr.bf16.gmra.mrb[12].mxu1 %v21108_v10  ;;  %v8221_v10 = vor.u32 %v8219_v14, %v8217_v21  ;;  %v18204_v21 = vld [vmem:[%s19201_s13 + $0x58] sm:$0xff]  }
 0x345   : > { %v5118_v30 = vpop.f32.mrb[153].mxu0  ;;  %15698 = vmatprep.mubr.msk.bf16.mxu1 %vm1151_vm3, %v21113_v2 }
 0x346   : > { %v21328_v46 = vpop.f32.mrb[154].mxu0  ;;  %v8226_v2 = vsel %vm7534_vm0, %v8221_v10, %v8225_v18  ;;  %v18203_v30 = vld [vmem:[%s19201_s13 + $0x50] sm:$0xff]   ;;  %v8235_v18 = vshrl.u32 %v18197_v43, 16  ;;  %9151 = vmatpush1.bf16.msra.mxu0 %v18202_v39 }
 0x347   : > { %v5121_v13 = vpop.f32.mrb[155].mxu0  ;;  %v21331_v47 = vpop.f32.mrb[164].mxu1  ;;  %9152 = vmatprep.subr.bf16.mxu0 %v20992_v19 }
 0x348   : > { %v5134_v9 = vpop.f32.mrb[165].mxu1  ;;  %v8234_v13 = vsel %vm7534_vm0, %v8229_v29, %v8233_v25 }
 0x349   : > { %16889 = vmatmul.mubr.msk.bf16.gmra.mrb[4].mxu0 %vm1617_vm2, %v8218_v16  ;;  %v21334_v32 = vpop.f32.mrb[166].mxu1  ;;  %v8239_v16 = vshll.u32 %v18203_v30, 16  ;;  %v8247_v9 = vshll.u32 %v18204_v21, 16 }
 0x34a   : > { %v5137_v5 = vpop.f32.mrb[167].mxu1  ;;  %16892 = vmatprep.mubr.msk.bf16.mxu0 %vm1617_vm2, %v8226_v2 }
 0x34b   : > { %v8241_v10 = vrot.slane %v8239_v16, 1  ;;  %v8237_v5 = vor.u32 %v8235_v18, %v8233_v25  ;;  %v8249_v57 = vrot.slane %v8247_v9, 1  ;;  %v18211_v16 = vld [vmem:[%s19201_s13 + $0x60] sm:$0xff]   ;;  %v18212_v18 = vld [vmem:[%s19201_s13 + $0x68] sm:$0xff]  }
 0x34c   : > { %v21339_v52 = vpop.f32.mrb[156].mxu0  ;;  %5974 = vmatmul.mubr.bf16.gmra.mrb[16].mxu1 %v21137_v54  ;;  %v8243_v54 = vshrl.u32 %v18203_v30, 16  ;;  %v18208_v30 = vld [vmem:[#allocation10 + $0x1a0] sm:$0xff]   ;;  %v8259_v9 = vshrl.u32 %v18211_v16, 16 }
 0x34d   : > { %v21342_v17 = vpop.f32.mrb[157].mxu0  ;;  %15699 = vmatprep.mubr.msk.bf16.mxu1 %vm1151_vm3, %v21140_v12  ;;  %v8242_v29 = vsel %vm7534_vm0, %v8237_v5, %v8241_v10  ;;  %9153 = vmatpush1.bf16.msra.mxu0 %v18208_v30  ;;  %v8263_v5 = vshll.u32 %v18212_v18, 16 }
 0x34e   : > { %v21347_v14 = vpop.f32.mrb[158].mxu0  ;;  %v8245_v43 = vor.u32 %v8243_v54, %v8241_v10  ;;  %v8251_v10 = vshrl.u32 %v18204_v21, 16  ;;  %9154 = vmatprep.subr.bf16.mxu0 %v20992_v19 }
 0x34f   : > { %v21351_v55 = vpop.f32.mrb[159].mxu0  ;;  %v21353_v2 = vpop.f32.mrb[168].mxu1 }
 0x350   : > { %v5142_v0 = vpop.f32.mrb[169].mxu1  ;;  %v8250_v39 = vsel %vm7534_vm0, %v8245_v43, %v8249_v57 }
 0x351   : > { %16893 = vmatmul.mubr.msk.bf16.gmra.mrb[8].mxu0 %vm1617_vm2, %v8234_v13  ;;  %v21356_v12 = vpop.f32.mrb[170].mxu1  ;;  %v8255_v13 = vshll.u32 %v18211_v16, 16 }
 0x352   : > { %v5145_v59 = vpop.f32.mrb[171].mxu1  ;;  %16896 = vmatprep.mubr.msk.bf16.mxu0 %vm1617_vm2, %v8242_v29  ;;  %v8253_v29 = vor.u32 %v8251_v10, %v8249_v57  ;;  %v18216_v57 = vld [vmem:[#allocation10 + $0x1b0] sm:$0xff]  }
 0x353   : > { %v18210_v59 = vld [vmem:[#allocation10 + $0x1a8] sm:$0xff]   ;;  %v8257_v54 = vrot.slane %v8255_v13, 1  ;;  %v8265_v13 = vrot.slane %v8263_v5, 1 }
 0x354   : > { %5982 = vmatmul.mubr.bf16.gmra.mrb[20].mxu1 %v21164_v26  ;;  %v21363_v25 = vpop.f32.mrb[160].mxu0  ;;  %9155 = vmatpush1.bf16.msra.mxu0 %v18210_v59 }
 0x355   : > { %25180 = vst [vmem:[#allocation58_spill] sm:$0xff] %v21363_v25  ;;  %15700 = vmatprep.mubr.msk.bf16.mxu1 %vm1151_vm3, %v21167_v22  ;;  %v21372_v26 = vpop.f32.mrb[161].mxu0  ;;  %v8258_v30 = vsel %vm7534_vm0, %v8253_v29, %v8257_v54  ;;  %v8261_v16 = vor.u32 %v8259_v9, %v8257_v54  ;;  %9156 = vmatprep.subr.bf16.mxu0 %v20992_v19  ;;  %v8267_v29 = vshrl.u32 %v18212_v18, 16 }
 0x356   : > { %25181 = vst [vmem:[#allocation59_spill] sm:$0xff] %v21372_v26  ;;  %v21375_v22 = vpop.f32.mrb[162].mxu0  ;;  %v21542_v26 = vld [vmem:[%s19209_s21 + $0x84] ss:$8 sps:$4 sm:$0xff]  }
 0x357   : > { %v21370_v0 = vpop.f32.mrb[172].mxu1  ;;  %25182 = vst [vmem:[#allocation60_spill] sm:$0xff] %v21375_v22  ;;  %v21379_v21 = vpop.f32.mrb[163].mxu0  ;;  %v8266_v59 = vsel %vm7534_vm0, %v8261_v16, %v8265_v13 }
 0x358   : > { %v5150_v36 = vpop.f32.mrb[173].mxu1  ;;  %25183 = vst [vmem:[#allocation61_spill] sm:$0xff] %v21379_v21  ;;  %9157 = vmatpush1.bf16.msra.mxu0 %v18216_v57 }
 0x359   : > { %16897 = vmatmul.mubr.msk.bf16.gmra.mrb[12].mxu0 %vm1617_vm2, %v8250_v39  ;;  %v21377_v43 = vpop.f32.mrb[174].mxu1  ;;  %v18218_v36 = vld [vmem:[%s19201_s13 + $0x70] sm:$0xff]   ;;  %v18219_v39 = vld [vmem:[%s19201_s13 + $0x78] sm:$0xff]   ;;  %9158 = vmatprep.subr.bf16.mxu0 %v20992_v19 }
 0x35a   : > { %v5153_v23 = vpop.f32.mrb[175].mxu1  ;;  %16900 = vmatprep.mubr.msk.bf16.mxu0 %vm1617_vm2, %v8258_v30  ;;  %v8271_v10 = vshll.u32 %v18218_v36, 16  ;;  %v8275_v9 = vshrl.u32 %v18218_v36, 16  ;;  %v8279_v5 = vshll.u32 %v18219_v39, 16  ;;  %v18223_v36 = vld [vmem:[#allocation10 + $0x1c0] sm:$0xff]  }
 0x35b   : > { %v18217_v23 = vld [vmem:[#allocation10 + $0x1b8] sm:$0xff]  }
 0x35c   : > { %5990 = vmatmul.mubr.bf16.gmra.mrb[24].mxu1 %v21186_v51  ;;  %v8273_v54 = vrot.slane %v8271_v10, 1  ;;  %v8269_v51 = vor.u32 %v8267_v29, %v8265_v13  ;;  %9159 = vmatpush1.bf16.msra.mxu0 %v18217_v23  ;;  %v8281_v16 = vrot.slane %v8279_v5, 1  ;;  %v18225_v10 = vld [vmem:[%s19201_s13 + $0x80] sm:$0xff]   ;;  %v21401_v13 = vpop.f32.mrb[164].mxu0  ;;  %v8283_v23 = vshrl.u32 %v18219_v39, 16  ;;  %v18150_v39 = vld [vmem:[%s19201_s13 + $0x18] sm:$0xff]  }
 0x35d   : > { %15701 = vmatprep.mubr.msk.bf16.mxu1 %vm1151_vm3, %v21189_v6  ;;  %9160 = vmatprep.subr.bf16.mxu0 %v20992_v19  ;;  %25184 = vst [vmem:[#allocation62_spill] sm:$0xff] %v21401_v13  ;;  %v8291_v5 = vshrl.u32 %v18225_v10, 16  ;;  %v18157_v13 = vld [vmem:[%s19201_s13 + $0x38] sm:$0xff]  }
 0x35e   : > { %v8274_v6 = vsel %vm7534_vm0, %v8269_v51, %v8273_v54  ;;  %v8277_v18 = vor.u32 %v8275_v9, %v8273_v54  ;;  %v18224_v54 = vld [vmem:[#allocation10 + $0x1c8] sm:$0xff]  }
 0x35f   : > { %v21391_v30 = vpop.f32.mrb[176].mxu1 }
 0x360   : > { %v5158_v33 = vpop.f32.mrb[177].mxu1  ;;  %v8282_v29 = vsel %vm7534_vm0, %v8277_v18, %v8281_v16  ;;  %9161 = vmatpush1.bf16.msra.mxu0 %v18223_v36 }
 0x361   : > { %16901 = vmatmul.mubr.msk.bf16.gmra.mrb[16].mxu0 %vm1617_vm2, %v8266_v59  ;;  %v21394_v15 = vpop.f32.mrb[178].mxu1  ;;  %v18226_v33 = vld [vmem:[%s19201_s13 + $0x88] ss:$0 sps:$4 sm:$0x11]   ;;  %v8287_v59 = vshll.u32 %v18225_v10, 16  ;;  %9162 = vmatprep.subr.bf16.mxu0 %v20992_v19 }
 0x362   : > { %v5161_v57 = vpop.f32.mrb[179].mxu1  ;;  %16904 = vmatprep.mubr.msk.bf16.mxu0 %vm1617_vm2, %v8274_v6  ;;  %v8295_v51 = vshll.u32 %v18226_v33, 16 }
 0x363   : > { %v8289_v9 = vrot.slane %v8287_v59, 1  ;;  %v8285_v57 = vor.u32 %v8283_v23, %v8281_v16  ;;  %v21422_v16 = vld [vmem:[#allocation3] sm:$0xff]  ;;  %v18232_v23 = vld [vmem:[%s19209_s21 + $0x30] ss:$8 sps:$4 sm:$0xff]  }
 0x364   : > { %5998 = vmatmul.mubr.bf16.gmra.mrb[28].mxu1 %v21210_v58  ;;  %v21410_v58 = vpop.f32.mrb[165].mxu0  ;;  %9163 = vmatpush1.bf16.msra.mxu0 %v18224_v54  ;;  %v8297_v33 = vrot.slane %v8295_v51, 1  ;;  %v8768_v51 = vshll.u32 %v18232_v23, 16 }
 0x365   : > { %15702 = vmatprep.mubr.msk.bf16.mxu1 %vm1151_vm3, %v21213_v56  ;;  %25185 = vst [vmem:[#allocation63_spill] sm:$0xff] %v21410_v58  ;;  %v21413_v56 = vpop.f32.mrb[166].mxu0  ;;  %v8290_v36 = vsel %vm7534_vm0, %v8285_v57, %v8289_v9  ;;  %v8293_v10 = vor.u32 %v8291_v5, %v8289_v9  ;;  %9164 = vmatprep.subr.bf16.mxu0 %v21422_v16  ;;  %v18231_v5 = vld [vmem:[#allocation10 + $0x1d8] sm:$0xff]  }
 0x366   : > { %25186 = vst [vmem:[#allocation64_spill] sm:$0xff] %v21413_v56  ;;  %v21418_v19 = vpop.f32.mrb[167].mxu0 }
 0x367   : > { %v21408_v6 = vpop.f32.mrb[180].mxu1  ;;  %25187 = vst [vmem:[#allocation65_spill] sm:$0xff] %v21418_v19  ;;  %v8298_v54 = vsel %vm7534_vm0, %v8293_v10, %v8297_v33  ;;  %v8770_v10 = vrot.slane %v8768_v51, 1  ;;  %v8784_v51 = vshrl.u32 %v18232_v23, 16  ;;  %v18156_v23 = vld [vmem:[#allocation10 + $0xb0] sm:$0xff]  }
 0x368   : > { %v5166_v11 = vpop.f32.mrb[181].mxu1 }
 0x369   : > { %16905 = vmatmul.mubr.msk.bf16.gmra.mrb[20].mxu0 %vm1617_vm2, %v8282_v29  ;;  %v21415_v18 = vpop.f32.mrb[182].mxu1  ;;  %v18230_v11 = vld [vmem:[#allocation10 + $0x1d0] sm:$0xff]   ;;  %v18234_v29 = vld [vmem:[%s19209_s21 + $0x34] ss:$8 sps:$4 sm:$0xff]  }
 0x36a   : > { %v5169_v59 = vpop.f32.mrb[183].mxu1  ;;  %16908 = vmatprep.mubr.msk.bf16.mxu0 %vm1617_vm2, %v8290_v36  ;;  %9165 = vmatpush1.bf16.msra.mxu0 %v18230_v11  ;;  %v8780_v9 = vshll.u32 %v18234_v29, 16  ;;  %v8792_v3 = vshrl.u32 %v18234_v29, 16 }
 0x36b   : > { %9166 = vmatprep.subr.bf16.mxu0 %v21422_v16 }
 0x36c   : > { %6006 = vmatmul.mubr.bf16.gmra.mrb[32].mxu1 %v21234_v31  ;;  %v8782_v36 = vrot.slane %v8780_v9, 1  ;;  %v21443_v9 = vpop.f32.mrb[168].mxu0 }
 0x36d   : > { %16840 = vmatprep.mubr.msk.bf16.mxu1 %vm1617_vm2, %v18150_v39  ;;  %v18152_v39 = vld [vmem:[#allocation10 + $0xa0] sm:$0xff]   ;;  %25188 = vst [vmem:[#allocation66_spill] sm:$0xff] %v21443_v9  ;;  %v21453_v28 = vpop.f32.mrb[169].mxu0  ;;  %v18154_v9 = vld [vmem:[%s19201_s13 + $0x30] sm:$0xff]  }
 0x36e   : > { %9167 = vmatpush1.bf16.msra.mxu0 %v18231_v5  ;;  %v8783_v33 = vsel %vm7534_vm0, %v21299_v60, %v8782_v36  ;;  %v8771_v5 = vsel %vm7534_vm0, %v21291_v61, %v8770_v10  ;;  %25189 = vst [vmem:[#allocation67_spill] sm:$0xff] %v21453_v28  ;;  %v8794_v45 = vor.u32 %v8792_v3, %v8782_v36  ;;  %v21456_v56 = vpop.f32.mrb[170].mxu0  ;;  %v21467_v36 = vld [vmem:[%s19209_s21 + $0x50] ss:$8 sps:$4 sm:$0xff]  }
 0x36f   : > { %v21431_v57 = vpop.f32.mrb[184].mxu1  ;;  %25190 = vst [vmem:[#allocation68_spill] sm:$0xff] %v21456_v56  ;;  %v21461_v19 = vpop.f32.mrb[171].mxu0  ;;  %v8786_v28 = vor.u32 %v8784_v51, %v8770_v10  ;;  %v8808_v51 = vshrl.u32 %v18241_v27, 16 }
 0x370   : > { %v5174_v59 = vpop.f32.mrb[185].mxu1  ;;  %25191 = vst [vmem:[#allocation69_spill] sm:$0xff] %v21461_v19 }
 0x371   : > { %16909 = vmatmul.mubr.msk.bf16.gmra.mrb[24].mxu0 %vm1617_vm2, %v8298_v54  ;;  %v21435_v31 = vpop.f32.mrb[186].mxu1  ;;  %v18239_v59 = vld [vmem:[%s19209_s21 + $0x40] ss:$8 sps:$4 sm:$0xff]  }
 0x372   : > { %v5177_v11 = vpop.f32.mrb[187].mxu1  ;;  %15974 = vmatprep.mubr.msk.bf16.mxu0 %vm1151_vm3, %v8783_v33  ;;  %v18155_v54 = vld [vmem:[#allocation10 + $0xa8] sm:$0xff]   ;;  %v8788_v33 = vshll.u32 %v18239_v59, 16 }
 0x373   : > { %v8796_v11 = vshll.u32 %v18241_v27, 16  ;;  %v18162_v27 = vld [vmem:[#allocation10 + $0xc0] sm:$0xff]  }
 0x374   : > { %16841 = vmatmul.mubr.msk.bf16.vlgmr.msra.gmra.mrb[36].mxu1 %vm1617_vm2, %v18151_v24  ;;  %v18200_v24 = vld [vmem:[%s19209_s21 + $0x54] ss:$8 sps:$4 sm:$0xff]   ;;  %v8790_v58 = vrot.slane %v8788_v33, 1  ;;  %v7595_v33 = vshll.u32 %v21467_v36, 16 }
 0x375   : > { %7924 = vmatpush1.bf16.msra.mxu1 %v18152_v39  ;;  %16844 = vmatprep.mubr.msk.bf16.mxu1 %vm1617_vm2, %v18153_v50  ;;  %v8798_v39 = vrot.slane %v8796_v11, 1  ;;  %v18159_v11 = vld [vmem:[#allocation10 + $0xb8] sm:$0xff]   ;;  %v7615_v56 = vshrl.u32 %v18200_v24, 16 }
 0x376   : > { %7925 = vmatprep.subr.bf16.mxu1 %v21422_v16  ;;  %v8791_v10 = vsel %vm7534_vm0, %v8786_v28, %v8790_v58  ;;  %v18160_v28 = vld [vmem:[%s19201_s13 + $0x48] sm:$0xff]  }
 0x377   : > { %v21450_v41 = vpop.f32.mrb[188].mxu1  ;;  %v8799_v22 = vsel %vm7534_vm0, %v8794_v45, %v8798_v39  ;;  %v8800_v45 = vshrl.u32 %v18239_v59, 16 }
 0x378   : > { %v5182_v50 = vpop.f32.mrb[189].mxu1 }
 0x379   : > { %9181 = vmatmul.mubr.bf16.vlgmr.msra.gmra.mrb[28].mxu0 %v8771_v5  ;;  %v21458_v29 = vpop.f32.mrb[190].mxu1  ;;  %7926 = vmatpush1.bf16.msra.mxu1 %v18155_v54  ;;  %v7603_v5 = vshll.u32 %v18200_v24, 16  ;;  %v21471_v54 = vld [vmem:[%s19209_s21 + $0x64] ss:$8 sps:$4 sm:$0xff]   ;;  %v8802_v25 = vor.u32 %v8800_v45, %v8790_v58  ;;  %v21493_v24 = vld [vmem:[%s19209_s21 + $0x60] ss:$8 sps:$4 sm:$0xff]  }
 0x37a   : > { %v5185_v3 = vpop.f32.mrb[191].mxu1  ;;  %7927 = vmatprep.subr.bf16.mxu1 %v21422_v16  ;;  %15975 = vmatprep.mubr.msk.bf16.mxu0 %vm1151_vm3, %v8799_v22  ;;  %v18166_v58 = vld [vmem:[#allocation10 + $0xc8] sm:$0xff]  }
 0x37b   : > { %v21479_v50 = vrot.slane %v7603_v5, 1 }
 0x37c   : > { %16845 = vmatmul.mubr.msk.bf16.gmra.mrb[40].mxu1 %vm1617_vm2, %v18154_v9  ;;  %v8810_v9 = vor.u32 %v8808_v51, %v8798_v39  ;;  %v21490_v39 = vrot.slane %v7595_v33, 1  ;;  %v21498_v51 = vld [vmem:[%s19209_s21 + $0x74] ss:$8 sps:$4 sm:$0xff]   ;;  %v7607_v33 = vshrl.u32 %v21467_v36, 16 }
 0x37d   : > { %7928 = vmatpush1.bf16.msra.mxu1 %v18156_v23  ;;  %16848 = vmatprep.mubr.msk.bf16.mxu1 %vm1617_vm2, %v18157_v13  ;;  %v18158_v23 = vld [vmem:[%s19201_s13 + $0x40] sm:$0xff]   ;;  %v7619_v13 = vshll.u32 %v21471_v54, 16 }
 0x37e   : > { %7929 = vmatprep.subr.bf16.mxu1 %v21422_v16  ;;  %v8815_v19 = vsel %vm7534_vm0, %v8810_v9, %v21479_v50 }
 0x37f   : > { %v21476_v22 = vpop.f32.mrb[192].mxu1 }
 0x380   : > { %v5190_v3 = vpop.f32.mrb[193].mxu1 }
 0x381   : > { %9189 = vmatmul.mubr.bf16.gmra.mrb[32].mxu0 %v8791_v10  ;;  %v21483_v59 = vpop.f32.mrb[194].mxu1  ;;  %7930 = vmatpush1.bf16.msra.mxu1 %v18159_v11  ;;  %v7617_v11 = vor.u32 %v7615_v56, %v21479_v50  ;;  %v7621_v10 = vrot.slane %v7619_v13, 1  ;;  %v21500_v3 = vpop.f32.mrb[172].mxu0  ;;  %v7611_v56 = vshll.u32 %v21493_v24, 16 }
 0x382   : > { %v5193_v5 = vpop.f32.mrb[195].mxu1  ;;  %7931 = vmatprep.subr.bf16.mxu1 %v21422_v16  ;;  %15976 = vmatprep.mubr.msk.bf16.mxu0 %vm1151_vm3, %v8815_v19  ;;  %25192 = vst [vmem:[#allocation70_spill] sm:$0xff] %v21500_v3  ;;  %v8807_v19 = vsel %vm7534_vm0, %v8802_v25, %v21490_v39  ;;  %v21508_v9 = vpop.f32.mrb[173].mxu0  ;;  %v7631_v25 = vshrl.u32 %v21471_v54, 16 }
 0x383   : > { %25193 = vst [vmem:[#allocation71_spill] sm:$0xff] %v21508_v9  ;;  %v7635_v5 = vshll.u32 %v21498_v51, 16  ;;  %v21519_v3 = vpop.f32.mrb[174].mxu0 }
 0x384   : > { %16849 = vmatmul.mubr.msk.bf16.gmra.mrb[44].mxu1 %vm1617_vm2, %v18158_v23  ;;  %25194 = vst [vmem:[#allocation72_spill] sm:$0xff] %v21519_v3  ;;  %v21525_v21 = vpop.f32.mrb[175].mxu0  ;;  %v7633_v3 = vor.u32 %v7631_v25, %v7621_v10  ;;  %v18165_v25 = vld [vmem:[%s19201_s13 + $0x60] sm:$0xff]  }
 0x385   : > { %16852 = vmatprep.mubr.msk.bf16.mxu1 %vm1617_vm2, %v18160_v28  ;;  %7932 = vmatpush1.bf16.msra.mxu1 %v18162_v27  ;;  %v18161_v28 = vld [vmem:[%s19201_s13 + $0x50] sm:$0xff]   ;;  %v21515_v27 = vsel %vm7534_vm0, %v7617_v11, %v7621_v10  ;;  %25195 = vst [vmem:[#allocation73_spill] sm:$0xff] %v21525_v21  ;;  %v7637_v21 = vrot.slane %v7635_v5, 1 }
 0x386   : > { %7933 = vmatprep.subr.bf16.mxu1 %v21422_v16 }
 0x387   : > { %v16762_v45 = vpop.f32.mrb[196].mxu1  ;;  %v21556_v5 = vsel %vm7534_vm0, %v7633_v3, %v7637_v21 }
 0x388   : > { %v21511_v23 = vadd.f32 %v16762_v45, %v21199_v8  ;;  %v5381_v13 = vpop.f32.mrb[197].mxu1  ;;  %v18164_v8 = vld [vmem:[%s19201_s13 + $0x58] sm:$0xff]   ;;  %v18169_v45 = vld [vmem:[#allocation10 + $0xd0] sm:$0xff]   ;;  %25198 = vst [vmem:[#allocation76_spill] sm:$0xff] %v21556_v5 }
 0x389   : > { %9197 = vmatmul.mubr.bf16.gmra.mrb[36].mxu0 %v8807_v19  ;;  %v21522_v36 = vadd.f32 %v5381_v13, %v21175_v49  ;;  %v16763_v9 = vpop.f32.mrb[198].mxu1  ;;  %7934 = vmatpush1.bf16.msra.mxu1 %v18166_v58  ;;  %v7613_v49 = vrot.slane %v7611_v56, 1  ;;  %v7609_v13 = vor.u32 %v7607_v33, %v21490_v39  ;;  %v21538_v58 = vld [vmem:[%s19209_s21 + $0x70] ss:$8 sps:$4 sm:$0xff]   ;;  %v7623_v56 = vshrl.u32 %v21493_v24, 16 }
 0x38a   : > { %15977 = vmatprep.mubr.msk.bf16.mxu0 %vm1151_vm3, %v21515_v27  ;;  %v21530_v54 = vadd.f32 %v16763_v9, %v21207_v44  ;;  %v5384_v11 = vpop.f32.mrb[199].mxu1  ;;  %7935 = vmatprep.subr.bf16.mxu1 %v21422_v16  ;;  %v18170_v44 = vld [vmem:[#allocation10 + $0xd8] sm:$0xff]   ;;  %v7627_v9 = vshll.u32 %v21538_v58, 16 }
 0x38b   : > { %v21534_v19 = vadd.f32 %v5384_v11, %v21183_v48  ;;  %v21548_v33 = vsel %vm7534_vm0, %v7609_v13, %v7613_v49  ;;  %v18167_v13 = vld [vmem:[%s19201_s13 + $0x68] sm:$0xff]  }
 0x38c   : > { %25196 = vst [vmem:[#allocation74_spill] sm:$0xff] %v21530_v54  ;;  %16853 = vmatmul.mubr.msk.bf16.gmra.mrb[48].mxu1 %vm1617_vm2, %v18161_v28  ;;  %v21579_v54 = vld [vmem:[%s19209_s21 + $0x94] ss:$8 sps:$4 sm:$0xff]  }
 0x38d   : > { %16856 = vmatprep.mubr.msk.bf16.mxu1 %vm1617_vm2, %v18164_v8  ;;  %7936 = vmatpush1.bf16.msra.mxu1 %v18169_v45  ;;  %v7647_v8 = vshrl.u32 %v21498_v51, 16  ;;  %v7651_v45 = vshll.u32 %v21542_v26, 16 }
 0x38e   : > { %7937 = vmatprep.subr.bf16.mxu1 %v21422_v16 }
 0x38f   : > { %v16766_v48 = vpop.f32.mrb[200].mxu1 }
 0x390   : > { %v21552_v10 = vadd.f32 %v16766_v48, %v21245_v53  ;;  %v5397_v28 = vpop.f32.mrb[201].mxu1  ;;  %v18173_v53 = vld [vmem:[#allocation10 + $0xe0] sm:$0xff]  }
 0x391   : > { %9205 = vmatmul.mubr.bf16.gmra.mrb[40].mxu0 %v21548_v33  ;;  %v21562_v24 = vadd.f32 %v5397_v28, %v21223_v35  ;;  %v16767_v11 = vpop.f32.mrb[202].mxu1  ;;  %7938 = vmatpush1.bf16.msra.mxu1 %v18170_v44  ;;  %v7625_v35 = vor.u32 %v7623_v56, %v7613_v49  ;;  %v21575_v28 = vld [vmem:[%s19209_s21 + $0x80] ss:$8 sps:$4 sm:$0xff]   ;;  %v7649_v44 = vor.u32 %v7647_v8, %v7637_v21  ;;  %v7639_v56 = vshrl.u32 %v21538_v58, 16 }
 0x392   : > { %25197 = vst [vmem:[#allocation75_spill] sm:$0xff] %v21552_v10  ;;  %15978 = vmatprep.mubr.msk.bf16.mxu0 %vm1151_vm3, %v21556_v5  ;;  %v21568_v3 = vadd.f32 %v16767_v11, %v21255_v7  ;;  %v5400_v48 = vpop.f32.mrb[203].mxu1  ;;  %7939 = vmatprep.subr.bf16.mxu1 %v21422_v16  ;;  %v7629_v10 = vrot.slane %v7627_v9, 1  ;;  %v21581_v5 = vpop.f32.mrb[176].mxu0  ;;  %v18180_v7 = vld [vmem:[#allocation10 + $0xe8] sm:$0xff]   ;;  %v7643_v9 = vshll.u32 %v21575_v28, 16 }
 0x393   : > { %25199 = vst [vmem:[#allocation77_spill] sm:$0xff] %v21562_v24  ;;  %v21572_v51 = vadd.f32 %v5400_v48, %v21231_v38  ;;  %v7653_v24 = vrot.slane %v7651_v45, 1  ;;  %25201 = vst [vmem:[#allocation79_spill] sm:$0xff] %v21581_v5  ;;  %v21585_v38 = vld [vmem:[#allocation9 + $0x8c] sm:$0xff]   ;;  %v7667_v58 = vshll.u32 %v21579_v54, 16 }
 0x394   : > { %25200 = vst [vmem:[#allocation78_spill] sm:$0xff] %v21568_v3  ;;  %16857 = vmatmul.mubr.msk.bf16.gmra.mrb[52].mxu1 %vm1617_vm2, %v18165_v25  ;;  %v21589_v21 = vsel %vm7534_vm0, %v7625_v35, %v7629_v10  ;;  %v21592_v25 = vpop.f32.mrb[177].mxu0  ;;  %v18168_v11 = vld [vmem:[%s19201_s13 + $0x70] sm:$0xff]  }
 0x395   : > { %16860 = vmatprep.mubr.msk.bf16.mxu1 %vm1617_vm2, %v18167_v13  ;;  %7940 = vmatpush1.bf16.msra.mxu1 %v18173_v53  ;;  %25202 = vst [vmem:[#allocation80_spill] sm:$0xff] %v21592_v25  ;;  %v21599_v13 = vsel %vm7534_vm0, %v7649_v44, %v7653_v24  ;;  %v7663_v53 = vshrl.u32 %v21542_v26, 16  ;;  %v21604_v48 = vpop.f32.mrb[178].mxu0  ;;  %v18186_v25 = vld [vmem:[%s19209_s21 + $0x14] ss:$8 sps:$4 sm:$0xff]  }
 0x396   : > { %7941 = vmatprep.subr.bf16.mxu1 %v21422_v16  ;;  %25204 = vst [vmem:[#allocation82_spill] sm:$0xff] %v21604_v48  ;;  %v21610_v5 = vpop.f32.mrb[179].mxu0 }
 0x397   : > { %v16770_v49 = vpop.f32.mrb[204].mxu1  ;;  %25206 = vst [vmem:[#allocation84_spill] sm:$0xff] %v21610_v5  ;;  %v7669_v5 = vrot.slane %v7667_v58, 1 }
 0x398   : > { %v21595_v8 = vadd.f32 %v16770_v49, %v21302_v62  ;;  %v5413_v45 = vpop.f32.mrb[205].mxu1  ;;  %v18171_v49 = vld [vmem:[%s19201_s13 + $0x78] sm:$0xff]  }
 0x399   : > { %9213 = vmatmul.mubr.bf16.gmra.mrb[44].mxu0 %v21589_v21  ;;  %v21607_v35 = vadd.f32 %v5413_v45, %v21270_v34  ;;  %v16771_v62 = vpop.f32.mrb[206].mxu1  ;;  %7942 = vmatpush1.bf16.msra.mxu1 %v18180_v7  ;;  %v7645_v34 = vrot.slane %v7643_v9, 1  ;;  %v7641_v45 = vor.u32 %v7639_v56, %v7629_v10  ;;  %v7665_v7 = vor.u32 %v7663_v53, %v7653_v24  ;;  %v18172_v9 = vld [vmem:[%s19201_s13 + $0x80] sm:$0xff]  }
 0x39a   : > { %25203 = vst [vmem:[#allocation81_spill] sm:$0xff] %v21595_v8  ;;  %15979 = vmatprep.mubr.msk.bf16.mxu0 %vm1151_vm3, %v21599_v13  ;;  %v21615_v26 = vadd.f32 %v16771_v62, %v21311_v1  ;;  %v5416_v44 = vpop.f32.mrb[207].mxu1  ;;  %16912 = vmatprep.subr.bf16.mxu1 %v21585_v38  ;;  %v21623_v8 = vld [vmem:[%s19209_s21 + $0x90] ss:$8 sps:$4 sm:$0xff]   ;;  %v7550_v1 = vshll.u32 %v18186_v25, 16  ;;  %v7679_v53 = vshrl.u32 %v21579_v54, 16 }
 0x39b   : > { %25205 = vst [vmem:[#allocation83_spill] sm:$0xff] %v21607_v35  ;;  %v21620_v48 = vadd.f32 %v5416_v44, %v21280_v37  ;;  %v21627_v35 = vld [vmem:[%s19209_s21 + $0xa4] ss:$8 sps:$4 sm:$0xff]   ;;  %v7655_v37 = vshrl.u32 %v21575_v28, 16  ;;  %v21632_v44 = vsel %vm7534_vm0, %v7641_v45, %v7645_v34  ;;  %v7659_v10 = vshll.u32 %v21623_v8, 16 }
 0x39c   : > { %25207 = vst [vmem:[#allocation85_spill] sm:$0xff] %v21615_v26  ;;  %16861 = vmatmul.mubr.msk.bf16.gmra.mrb[56].mxu1 %vm1617_vm2, %v18168_v11  ;;  %25209 = vst [vmem:[#allocation87_spill] sm:$0xff] %v21632_v44  ;;  %v21640_v11 = vsel %vm7534_vm0, %v7665_v7, %v7669_v5  ;;  %v7683_v58 = vshll.u32 %v21627_v35, 16  ;;  %v18177_v45 = vld [vmem:[%s19201_s13 + $0x88] sm:$0xff]   ;;  %v7552_v54 = vrot.slane %v7550_v1, 1 }
 0x39d   : > { %25208 = vst [vmem:[#allocation86_spill] sm:$0xff] %v21620_v48  ;;  %16864 = vmatprep.mubr.msk.bf16.mxu1 %vm1617_vm2, %v18171_v49  ;;  %25211 = vst [vmem:[#allocation89_spill] sm:$0xff] %v21640_v11  ;;  %v7661_v48 = vrot.slane %v7659_v10, 1  ;;  %v7657_v3 = vor.u32 %v7655_v37, %v7645_v34 }
 0x39f   : > { %v16774_v62 = vpop.f32.mrb[208].mxu1  ;;  %v21670_v34 = vsel %vm7534_vm0, %v7657_v3, %v7661_v48 }
 0x3a0   : > { %v21636_v56 = vadd.f32 %v16774_v62, %v21314_v4  ;;  %v5429_v24 = vpop.f32.mrb[209].mxu1  ;;  %v18184_v4 = vld [vmem:[%s19209_s21 + $0x10] ss:$8 sps:$4 sm:$0xff]  }
 0x3a1   : > { %9221 = vmatmul.mubr.bf16.gmra.mrb[48].mxu0 %v21632_v44  ;;  %v21646_v28 = vadd.f32 %v5429_v24, %v21322_v20  ;;  %v16775_v49 = vpop.f32.mrb[210].mxu1  ;;  %v21659_v20 = vld [vmem:[%s19209_s21 + $0xa0] ss:$8 sps:$4 sm:$0xff]   ;;  %v7681_v24 = vor.u32 %v7679_v53, %v7669_v5  ;;  %v21663_v44 = vld [vmem:[%s19209_s21 + $0xb4] ss:$8 sps:$4 sm:$0xff]  }
 0x3a2   : > { %25210 = vst [vmem:[#allocation88_spill] sm:$0xff] %v21636_v56  ;;  %15980 = vmatprep.mubr.msk.bf16.mxu0 %vm1151_vm3, %v21640_v11  ;;  %v21653_v7 = vadd.f32 %v16775_v49, %v21317_v42  ;;  %v5432_v62 = vpop.f32.mrb[211].mxu1  ;;  %v7548_v56 = vshrl.u32 %v18186_v25, 16  ;;  %v21665_v11 = vpop.f32.mrb[180].mxu0  ;;  %v7538_v42 = vshll.u32 %v18184_v4, 16  ;;  %v7675_v37 = vshll.u32 %v21659_v20, 16 }
 0x3a3   : > { %25212 = vst [vmem:[#allocation90_spill] sm:$0xff] %v21646_v28  ;;  %v21656_v26 = vadd.f32 %v5432_v62, %v21328_v46  ;;  %v7685_v28 = vrot.slane %v7683_v58, 1  ;;  %25213 = vst [vmem:[#allocation91_spill] sm:$0xff] %v21665_v11  ;;  %v7671_v46 = vshrl.u32 %v21623_v8, 16  ;;  %v21673_v10 = vpop.f32.mrb[181].mxu0  ;;  %v18179_v53 = vld [vmem:[%s19201_s13 + $0x90] sm:$0xff]  }
 0x3a4   : > { %16865 = vmatmul.mubr.msk.bf16.gmra.mrb[60].mxu1 %vm1617_vm2, %v18172_v9  ;;  %v7553_v25 = vor.u32 %v7552_v54, %v7548_v56  ;;  %25214 = vst [vmem:[#allocation92_spill] sm:$0xff] %v21673_v10  ;;  %v7695_v56 = vshrl.u32 %v21627_v35, 16  ;;  %v7699_v8 = vshll.u32 %v21663_v44, 16  ;;  %v21685_v3 = vpop.f32.mrb[182].mxu0  ;;  %v7540_v62 = vrot.slane %v7538_v42, 1 }
 0x3a5   : > { %16868 = vmatprep.mubr.msk.bf16.mxu1 %vm1617_vm2, %v18177_v45  ;;  %v21680_v58 = vsel %vm7534_vm0, %v7681_v24, %v7685_v28  ;;  %25216 = vst [vmem:[#allocation94_spill] sm:$0xff] %v21685_v3  ;;  %v7536_v45 = vshrl.u32 %v18184_v4, 16  ;;  %v21690_v54 = vpop.f32.mrb[183].mxu0  ;;  %v18475_v3 = vld [vmem:[%s19209_s21 + $0x34] ss:$8 sps:$4 sm:$0xff]   ;;  %v7677_v4 = vrot.slane %v7675_v37, 1 }
 0x3a6   : > { %25217 = vst [vmem:[#allocation95_spill] sm:$0xff] %v21690_v54  ;;  %v7571_v11 = vshll.u32 %v18475_v3, 16  ;;  %v21704_v42 = vld [vmem:[%s19209_s21 + $0xb0] ss:$8 sps:$4 sm:$0xff]   ;;  %v7697_v54 = vor.u32 %v7695_v56, %v7685_v28  ;;  %v7701_v10 = vrot.slane %v7699_v8, 1 }
 0x3a7   : > { %v16778_v1 = vpop.f32.mrb[212].mxu1 }
 0x3a8   : > { %v21676_v5 = vadd.f32 %v16778_v1, %v21353_v2  ;;  %v5445_v9 = vpop.f32.mrb[213].mxu1  ;;  %v7558_v1 = vsel %vm7534_vm0, %v7553_v25, %v21286_v40  ;;  %v7573_v40 = vrot.slane %v7571_v11, 1  ;;  %v7711_v11 = vshrl.u32 %v21663_v44, 16 }
 0x3a9   : > { %9229 = vmatmul.mubr.bf16.gmra.mrb[52].mxu0 %v21670_v34  ;;  %v21688_v49 = vadd.f32 %v5445_v9, %v21331_v47  ;;  %v16779_v2 = vpop.f32.mrb[214].mxu1  ;;  %v7673_v9 = vor.u32 %v7671_v46, %v7661_v48  ;;  %v7691_v48 = vshll.u32 %v21704_v42, 16  ;;  %v21716_v46 = vpop.permute.xlu1 %4504 }
 0x3aa   : > { %25215 = vst [vmem:[#allocation93_spill] sm:$0xff] %v21676_v5  ;;  %15981 = vmatprep.mubr.msk.bf16.mxu0 %vm1151_vm3, %v21680_v58  ;;  %v21695_v35 = vadd.f32 %v16779_v2, %v21356_v12  ;;  %v5448_v24 = vpop.f32.mrb[215].mxu1  ;;  %v21708_v5 = vld [vmem:[%s19209_s21 + $0xc4] ss:$8 sps:$4 sm:$0xff]   ;;  %v7541_v12 = vor.u32 %v7540_v62, %v7536_v45  ;;  %v7687_v2 = vshrl.u32 %v21659_v20, 16  ;;  %25218 = vst [vmem:[#allocation96_spill] sm:$0xff] %v21716_v46 }
 0x3ab   : > { %v21701_v47 = vadd.f32 %v5448_v24, %v21334_v32  ;;  %v21713_v32 = vsel %vm7534_vm0, %v7673_v9, %v7677_v4  ;;  %v7715_v56 = vshll.u32 %v21708_v5, 16  ;;  %v21733_v45 = vld [vmem:[%s19209_s21 + $0x30] ss:$8 sps:$4 sm:$0xff]   ;;  %v7583_v24 = vshrl.u32 %v18475_v3, 16  ;;  %v21758_v3 = vpop.f32.mrb[184].mxu0 }
 0x3ac   : > { %16869 = vmatmul.mubr.msk.bf16.gmra.mrb[64].mxu1 %vm1617_vm2, %v18179_v53  ;;  %v21722_v53 = vsel %vm7534_vm0, %v7697_v54, %v7701_v10  ;;  %v7563_v62 = vshll.u32 %v21733_v45, 16  ;;  %v18209_v9 = vld [vmem:[#allocation9 + $0x94] sm:$0xff]   ;;  %v7689_v46 = vor.u32 %v7687_v2, %v7677_v4  ;;  %25222 = vst [vmem:[#allocation100_spill] sm:$0xff] %v21758_v3  ;;  %v18238_v4 = vld [vmem:[#allocation9 + $0x9c] sm:$0xff]  }
 0x3ad   : > { %15877 = vmatprep.mubr.msk.bf16.mxu1 %vm1151_vm3, %v7558_v1  ;;  %v21744_v1 = vld [vmem:[%s19209_s21 + $0x44] ss:$8 sps:$4 sm:$0xff]   ;;  %v21800_v3 = vld [vmem:[%s19209_s21 + $0xd0] ss:$8 sps:$4 sm:$0xff]  }
 0x3af   : > { %v16782_v25 = vpop.f32.mrb[216].mxu1 }
 0x3b0   : > { %v21719_v28 = vadd.f32 %v16782_v25, %v21391_v30  ;;  %v5461_v37 = vpop.f32.mrb[217].mxu1  ;;  %v7546_v30 = vsel %vm7534_vm0, %v7541_v12, %v21282_v63  ;;  %v7587_v63 = vshll.u32 %v21744_v1, 16  ;;  %v18263_v12 = vld [vmem:[#allocation9 + $0xe0] sm:$0xff]  }
 0x3b1   : > { %9237 = vmatmul.mubr.bf16.gmra.mrb[56].mxu0 %v21713_v32  ;;  %v21728_v20 = vadd.f32 %v5461_v37, %v21370_v0  ;;  %v16783_v8 = vpop.f32.mrb[218].mxu1  ;;  %v7574_v0 = vsel %vm7534_vm0, %v21299_v60, %v7573_v40  ;;  %v7693_v37 = vrot.slane %v7691_v48, 1  ;;  %16952 = vmatprep.subr.bf16.mxu0 %v18263_v12  ;;  %v7565_v60 = vrot.slane %v7563_v62, 1 }
 0x3b2   : > { %25219 = vst [vmem:[#allocation97_spill] sm:$0xff] %v21719_v28  ;;  %15982 = vmatprep.mubr.msk.bf16.mxu0 %vm1151_vm3, %v21722_v53  ;;  %v21739_v44 = vadd.f32 %v16783_v8, %v21394_v15  ;;  %v5464_v54 = vpop.f32.mrb[219].mxu1  ;;  %v21751_v28 = vld [vmem:[%s19209_s21 + $0xc0] ss:$8 sps:$4 sm:$0xff]   ;;  %v7713_v15 = vor.u32 %v7711_v11, %v7701_v10  ;;  %v7717_v8 = vrot.slane %v7715_v56, 1  ;;  %v7589_v48 = vrot.slane %v7587_v63, 1  ;;  %16953 = vmatpush3.bf16.msra.mxu0 %v18263_v12 }
 0x3b3   : > { %25220 = vst [vmem:[#allocation98_spill] sm:$0xff] %v21728_v20  ;;  %v21748_v25 = vadd.f32 %v5464_v54, %v21377_v43  ;;  %v21760_v20 = vpop.permute.xlu1 %11079  ;;  %v7585_v43 = vor.u32 %v7583_v24, %v7573_v40  ;;  %v7703_v10 = vshrl.u32 %v21704_v42, 16  ;;  %v21764_v11 = vsel %vm7534_vm0, %v7689_v46, %v7693_v37  ;;  %v21767_v56 = vpop.f32.mrb[185].mxu0  ;;  %v18478_v12 = vld [vmem:[%s19209_s21 + $0x40] ss:$8 sps:$4 sm:$0xff]  }
 0x3b4   : > { %25221 = vst [vmem:[#allocation99_spill] sm:$0xff] %v21739_v44  ;;  %7956 = vmatmul.mubr.bf16.vlgmr.msra.gmra.mrb[68].mxu1 %v7546_v30  ;;  %v21754_v44 = vld [vmem:[%s19209_s21 + $0xd4] ss:$8 sps:$4 sm:$0xff]   ;;  %25223 = vst [vmem:[#allocation101_spill] sm:$0xff] %v21760_v20  ;;  %v21773_v40 = vsel %vm7534_vm0, %v7713_v15, %v7717_v8  ;;  %v7727_v54 = vshrl.u32 %v21708_v5, 16  ;;  %v21778_v42 = vpop.f32.mrb[186].mxu0 }
 0x3b5   : > { %16913 = vmatpush3.bf16.msra.mxu1 %v21585_v38  ;;  %15878 = vmatprep.mubr.msk.bf16.mxu1 %vm1151_vm3, %v7574_v0  ;;  %v7707_v38 = vshll.u32 %v21751_v28, 16  ;;  %25224 = vst [vmem:[#allocation102_spill] sm:$0xff] %v21767_v56  ;;  %v7731_v0 = vshll.u32 %v21754_v44, 16  ;;  %25226 = vst [vmem:[#allocation104_spill] sm:$0xff] %v21778_v42  ;;  %v7575_v63 = vshrl.u32 %v21733_v45, 16  ;;  %v7579_v15 = vshll.u32 %v18478_v12, 16 }
 0x3b6   : > { %16914 = vmatprep.subr.bf16.mxu1 %v18209_v9  ;;  %v21787_v5 = vpop.f32.mrb[187].mxu0  ;;  %v7599_v45 = vshrl.u32 %v21744_v1, 16  ;;  %v18254_v20 = vld [vmem:[#allocation9 + $0xa4] ss:$0 sps:$4 sm:$0xff]   ;;  %v7705_v42 = vor.u32 %v7703_v10, %v7693_v37  ;;  %v7719_v10 = vshrl.u32 %v21751_v28, 16 }
 0x3b7   : > { %v16786_v2 = vpop.f32.mrb[220].mxu1  ;;  %25227 = vst [vmem:[#allocation105_spill] sm:$0xff] %v21787_v5  ;;  %v7729_v5 = vor.u32 %v7727_v54, %v7717_v8  ;;  %v7733_v56 = vrot.slane %v7731_v0, 1  ;;  %v21806_v1 = vpop.permute.xlu1 %4507  ;;  %v7743_v0 = vshrl.u32 %v21754_v44, 16 }
 0x3b8   : > { %v21770_v30 = vadd.f32 %v16786_v2, %v21431_v57  ;;  %v5477_v62 = vpop.f32.mrb[221].mxu1  ;;  %v7566_v57 = vsel %vm7534_vm0, %v21291_v61, %v7565_v60  ;;  %25228 = vst [vmem:[#allocation106_spill] sm:$0xff] %v21806_v1  ;;  %v21815_v54 = vpop.f32.mrb[188].mxu0 }
 0x3b9   : > { %9245 = vmatmul.mubr.bf16.gmra.mrb[60].mxu0 %v21764_v11  ;;  %v21781_v46 = vadd.f32 %v5477_v62, %v21408_v6  ;;  %v16787_v24 = vpop.f32.mrb[222].mxu1  ;;  %16915 = vmatpush3.bf16.msra.mxu1 %v18209_v9  ;;  %v7590_v62 = vsel %vm7534_vm0, %v7585_v43, %v7589_v48  ;;  %v7709_v9 = vrot.slane %v7707_v38, 1  ;;  %v7577_v43 = vor.u32 %v7575_v63, %v7565_v60  ;;  %v6740_v28 = vpop.f32.mrb[189].mxu0 }
 0x3ba   : > { %25225 = vst [vmem:[#allocation103_spill] sm:$0xff] %v21770_v30  ;;  %15983 = vmatprep.mubr.msk.bf16.mxu0 %vm1151_vm3, %v21773_v40  ;;  %v21792_v2 = vadd.f32 %v16787_v24, %v21435_v31  ;;  %v5480_v6 = vpop.f32.mrb[223].mxu1  ;;  %16916 = vmatprep.subr.bf16.mxu1 %v18238_v4  ;;  %v21803_v30 = vld [vmem:[%s19209_s21 + $0xe4] ss:$8 sps:$4 sm:$0xff]   ;;  %v7581_v31 = vrot.slane %v7579_v15, 1  ;;  %v7601_v24 = vor.u32 %v7599_v45, %v7589_v48  ;;  %v7723_v38 = vshll.u32 %v21800_v3, 16 }
 0x3bb   : > { %v21797_v61 = vadd.f32 %v5480_v6, %v21415_v18  ;;  %v9594_v18 = vsel %vm1666_vm1, %v18254_v20, 0  ;;  %v21812_v8 = vsel %vm7534_vm0, %v7705_v42, %v7709_v9  ;;  %v21821_v48 = vsel %vm7534_vm0, %v7729_v5, %v7733_v56  ;;  %v21830_v15 = vpop.f32.mrb[190].mxu0 }
 0x3bc   : > { %7964 = vmatmul.mubr.bf16.gmra.mrb[72].mxu1 %v7566_v57  ;;  %v7591_v57 = vshrl.u32 %v18478_v12, 16  ;;  %25229 = vst [vmem:[#allocation107_spill] sm:$0xff] %v21830_v15  ;;  %v7606_v6 = vsel %vm7534_vm0, %v7601_v24, %v21479_v50  ;;  %v7721_v45 = vor.u32 %v7719_v10, %v7709_v9  ;;  %v21857_v10 = vpop.permute.xlu1 %4510  ;;  %v18487_v15 = vld [vmem:[#allocation16 + $0x40] sm:$0xff] }
 0x3bd   : > { %15879 = vmatprep.mubr.msk.bf16.mxu1 %vm1151_vm3, %v7590_v62  ;;  %16917 = vmatpush3.bf16.msra.mxu1 %v18238_v4  ;;  %v7725_v62 = vrot.slane %v7723_v38, 1  ;;  %25230 = vst [vmem:[#allocation108_spill] sm:$0xff] %v21857_v10  ;;  %vm520_vm8 = vcmp.lt.f32.partialorder %v18487_v15, 15.0  ;;  %v25272_v15 = vld [vmem:[#allocation86_spill] sm:$0xff] }
 0x3be   : > { %17675 = vmatprep.subr.msk.bf16.mxu1 %vm1666_vm1, %v18254_v20  ;;  %v7747_v20 = vshll.u32 %v21803_v30, 16  ;;  %v7593_v50 = vor.u32 %v7591_v57, %v7581_v31 }
 0x3bf   : > { %v16790_v37 = vpop.f32.mrb[224].mxu1 }
 0x3c0   : > { %v21818_v60 = vadd.f32 %v16790_v37, %v21476_v22  ;;  %v5493_v4 = vpop.f32.mrb[225].mxu1  ;;  %v7582_v22 = vsel %vm7534_vm0, %v7577_v43, %v7581_v31  ;;  %v21844_v43 = vld [vmem:[%s19209_s21 + $0xe0] ss:$8 sps:$4 sm:$0xff]   ;;  %v7749_v37 = vrot.slane %v7747_v20, 1  ;;  %v7598_v57 = vsel %vm7534_vm0, %v7593_v50, %v21490_v39 }
 0x3c1   : > { %9253 = vmatmul.mubr.bf16.gmra.mrb[64].mxu0 %v21812_v8  ;;  %v21827_v42 = vadd.f32 %v5493_v4, %v21450_v41  ;;  %v16791_v63 = vpop.f32.mrb[226].mxu1  ;;  %16919 = vmatpush3.bf16.msra.mxu1 %v9594_v18  ;;  %v6743_v41 = vpop.f32.mrb[191].mxu0  ;;  %v7745_v18 = vor.u32 %v7743_v0, %v7733_v56  ;;  %v21847_v4 = vld [vmem:[%s19209_s21 + $0xf4] ss:$8 sps:$4 sm:$0xff]   ;;  %v7739_v9 = vshll.u32 %v21844_v43, 16  ;;  %v7759_v0 = vshrl.u32 %v21803_v30, 16 }
 0x3c2   : > { %15984 = vmatprep.mubr.msk.bf16.mxu0 %vm1151_vm3, %v21821_v48  ;;  %v21835_v44 = vadd.f32 %v16791_v63, %v21483_v59  ;;  %v5496_v5 = vpop.f32.mrb[227].mxu1  ;;  %10405 = vmatprep.subr.bf16.mxu1 %v21422_v16  ;;  %v21849_v59 = vpop.f32.mrb[192].mxu0  ;;  %v7735_v63 = vshrl.u32 %v21800_v3, 16  ;;  %v7763_v31 = vshll.u32 %v21847_v4, 16 }
 0x3c3   : > { %v21841_v12 = vadd.f32 %v5496_v5, %v21458_v29  ;;  %v6748_v24 = vpop.f32.mrb[193].mxu0  ;;  %v21854_v29 = vsel %vm7534_vm0, %v7721_v45, %v7725_v62  ;;  %v21860_v38 = vsel %vm7534_vm0, %v7745_v18, %v7749_v37  ;;  %v7741_v45 = vrot.slane %v7739_v9, 1 }
 0x3c4   : > { %7972 = vmatmul.mubr.bf16.gmra.mrb[76].mxu1 %v7582_v22  ;;  %v21868_v22 = vpop.f32.mrb[194].mxu0  ;;  %v7737_v18 = vor.u32 %v7735_v63, %v7725_v62  ;;  %v7761_v39 = vor.u32 %v7759_v0, %v7749_v37  ;;  %v7765_v50 = vrot.slane %v7763_v31, 1  ;;  %v21891_v62 = vpop.permute.xlu1 %4513  ;;  %v7751_v0 = vshrl.u32 %v21844_v43, 16 }
 0x3c5   : > { %15880 = vmatprep.mubr.msk.bf16.mxu1 %vm1151_vm3, %v7606_v6  ;;  %v6751_v30 = vpop.f32.mrb[195].mxu0  ;;  %25234 = vst [vmem:[#allocation112_spill] sm:$0xff] %v21891_v62 }
 0x3c6   : > { %v21879_v24 = vpop.f32.mrb[196].mxu0  ;;  %v21896_v31 = vsel %vm7534_vm0, %v7737_v18, %v7741_v45 }
 0x3c7   : > { %v5887_v28 = vpop.f32.mrb[228].mxu1  ;;  %25231 = vst [vmem:[#allocation109_spill] sm:$0xff] %v21879_v24 }
 0x3c8   : > { %v5889_v56 = vpop.f32.mrb[229].mxu1  ;;  %v6201_v3 = vadd.f32 %v21342_v17, %v5887_v28  ;;  %v21877_v17 = vld [vmem:[%s19209_s21 + $0xf0] ss:$8 sps:$4 sm:$0xff]   ;;  %v21882_v28 = vld [vmem:[%s19209_s21 + $0x104] ss:$8 sps:$4 sm:$0xff]  }
 0x3c9   : > { %9261 = vmatmul.mubr.bf16.gmra.mrb[68].mxu0 %v21854_v29  ;;  %v5890_v20 = vpop.f32.mrb[230].mxu1  ;;  %v7779_v30 = vshll.u32 %v21882_v28, 16 }
 0x3ca   : > { %15985 = vmatprep.mubr.msk.bf16.mxu0 %vm1151_vm3, %v21860_v38  ;;  %v5892_v5 = vpop.f32.mrb[231].mxu1  ;;  %v21873_v6 = vadd.f32 %v6201_v3, %v21522_v36  ;;  %v6204_v41 = vadd.f32 %v21351_v55, %v5890_v20  ;;  %v18479_v55 = vld [vmem:[#allocation16 + $0x8] sm:$0xff]  ;;  %v21902_v20 = vsel %vm7534_vm0, %v7761_v39, %v7765_v50 }
 0x3cb   : > { %v6756_v5 = vpop.f32.mrb[197].mxu0  ;;  %vm513_vm13 = vcmp.lt.f32.partialorder %v18479_v55, 15.0  ;;  %v18480_v55 = vld [vmem:[#allocation16 + $0x10] sm:$0xff] }
 0x3cc   : > { %7980 = vmatmul.mubr.bf16.gmra.mrb[80].mxu1 %v7598_v57  ;;  %v21885_v56 = vadd.f32 %v6204_v41, %v21534_v19  ;;  %v21889_v36 = vpop.f32.mrb[198].mxu0  ;;  %v11047_v9 = vsel %vm513_vm13, 1, %v21422_v16  ;;  %v7755_v19 = vshll.u32 %v21877_v17, 16  ;;  %v7775_v57 = vshrl.u32 %v21847_v4, 16 }
 0x3cd   : > { %15881 = vmatprep.mubr.msk.bf16.mxu1 %vm1151_vm3, %v21515_v27  ;;  %25233 = vst [vmem:[#allocation111_spill] sm:$0xff] %v21889_v36  ;;  %v6759_v63 = vpop.f32.mrb[199].mxu0  ;;  %11082 = vperm.xlu0 %17800, %v11047_v9   ;;  %vm514_vm14 = vcmp.lt.f32.partialorder %v18480_v55, 15.0  ;;  %v7781_v55 = vrot.slane %v7779_v30, 1 }
 0x3ce   : > { %25232 = vst [vmem:[#allocation110_spill] sm:$0xff] %v21885_v56  ;;  %v21899_v3 = vpop.f32.mrb[200].mxu0 }
 0x3cf   : > { %v5895_v37 = vpop.f32.mrb[232].mxu1  ;;  %25235 = vst [vmem:[#allocation113_spill] sm:$0xff] %v21899_v3  ;;  %v6764_v43 = vpop.f32.mrb[201].mxu0  ;;  %v18287_v3 = vld [vmem:[%s19209_s21 + $0x114] ss:$8 sps:$4 sm:$0xff]  }
 0x3d0   : > { %v5897_v27 = vpop.f32.mrb[233].mxu1  ;;  %v6209_v41 = vadd.f32 %v21339_v52, %v5895_v37  ;;  %v21908_v5 = vpop.f32.mrb[202].mxu0  ;;  %v11048_v52 = vsel %vm514_vm14, 1, %v21422_v16  ;;  %v7757_v37 = vrot.slane %v7755_v19, 1  ;;  %v21918_v43 = vld [vmem:[%s19209_s21 + $0x100] ss:$8 sps:$4 sm:$0xff]  }
 0x3d1   : > { %9269 = vmatmul.mubr.bf16.gmra.mrb[72].mxu0 %v21896_v31  ;;  %v5898_v18 = vpop.f32.mrb[234].mxu1  ;;  %25236 = vst [vmem:[#allocation114_spill] sm:$0xff] %v21908_v5  ;;  %v6767_v9 = vpop.f32.mrb[203].mxu0  ;;  %v7753_v27 = vor.u32 %v7751_v0, %v7741_v45  ;;  %11085 = vperm.xlu0 %17800, %v11048_v52   ;;  %v7777_v5 = vor.u32 %v7775_v57, %v7765_v50  ;;  %v18481_v45 = vld [vmem:[#allocation16 + $0x18] sm:$0xff]  ;;  %v7767_v57 = vshrl.u32 %v21877_v17, 16 }
 0x3d2   : > { %15986 = vmatprep.mubr.msk.bf16.mxu0 %vm1151_vm3, %v21902_v20  ;;  %v5900_v39 = vpop.f32.mrb[235].mxu1  ;;  %v21913_v63 = vadd.f32 %v6209_v41, %v21511_v23  ;;  %v6212_v4 = vadd.f32 %v21347_v14, %v5898_v18  ;;  %v21920_v36 = vpop.f32.mrb[204].mxu0  ;;  %v18278_v23 = vld [vmem:[#allocation9 + $0xe8] sm:$0xff]   ;;  %vm515_vm15 = vcmp.lt.f32.partialorder %v18481_v45, 15.0 }
 0x3d3   : > { %25237 = vst [vmem:[#allocation115_spill] sm:$0xff] %v21920_v36  ;;  %v25238_v39 = vld [vmem:[#allocation74_spill] sm:$0xff]  ;;  %v6772_v41 = vpop.f32.mrb[205].mxu0  ;;  %v25240_v14 = vld [vmem:[#allocation76_spill] sm:$0xff]  ;;  %v21930_v0 = vpop.permute.xlu1 %4516  ;;  %16954 = vmatprep.subr.bf16.mxu0 %v18278_v23  ;;  %v21935_v30 = vsel %vm7534_vm0, %v7753_v27, %v7757_v37  ;;  %v7769_v36 = vor.u32 %v7767_v57, %v7757_v37  ;;  %v18483_v37 = vld [vmem:[#allocation16 + $0x28] sm:$0xff] }
 0x3d4   : > { %7988 = vmatmul.mubr.bf16.gmra.mrb[84].mxu1 %v21548_v33  ;;  %v21924_v24 = vadd.f32 %v6212_v4, %v25238_v39  ;;  %v21928_v18 = vpop.f32.mrb[206].mxu0  ;;  %25242 = vst [vmem:[#allocation116_spill] sm:$0xff] %v21930_v0  ;;  %v11049_v33 = vsel %vm515_vm15, 1, %v21422_v16  ;;  %v7771_v4 = vshll.u32 %v21918_v43, 16  ;;  %16955 = vmatpush3.bf16.msra.mxu0 %v18278_v23  ;;  %v21941_v39 = vsel %vm7534_vm0, %v7777_v5, %v7781_v55  ;;  %v25244_v41 = vld [vmem:[#allocation59_spill] sm:$0xff]  ;;  %v18482_v27 = vld [vmem:[#allocation16 + $0x20] sm:$0xff] }
 0x3d5   : > { %15882 = vmatprep.mubr.msk.bf16.mxu1 %vm1151_vm3, %v25240_v14  ;;  %25241 = vst [vmem:[#allocation76_spill] sm:$0xff] %v21928_v18  ;;  %v6775_v19 = vpop.f32.mrb[207].mxu0  ;;  %11088 = vperm.xlu0 %17800, %v11049_v33   ;;  %vm516_vm4 = vcmp.lt.f32.partialorder %v18482_v27, 15.0  ;;  %v25246_v33 = vld [vmem:[#allocation77_spill] sm:$0xff]  ;;  %vm517_vm5 = vcmp.lt.f32.partialorder %v18483_v37, 15.0  ;;  %v25254_v37 = vld [vmem:[#allocation58_spill] sm:$0xff] }
 0x3d6   : > { %25239 = vst [vmem:[#allocation74_spill] sm:$0xff] %v21924_v24  ;;  %v21938_v9 = vpop.f32.mrb[208].mxu0  ;;  %v25248_v5 = vld [vmem:[#allocation61_spill] sm:$0xff] }
 0x3d7   : > { %v5903_v50 = vpop.f32.mrb[236].mxu1  ;;  %25243 = vst [vmem:[#allocation117_spill] sm:$0xff] %v21938_v9  ;;  %v6780_v45 = vpop.f32.mrb[209].mxu0  ;;  %v7791_v9 = vshrl.u32 %v21882_v28, 16  ;;  %v9004_v28 = vshll.u32 %v18287_v3, 16 }
 0x3d8   : > { %v5905_v52 = vpop.f32.mrb[237].mxu1  ;;  %v6217_v14 = vadd.f32 %v25244_v41, %v5903_v50  ;;  %v21945_v19 = vpop.f32.mrb[210].mxu0  ;;  %v11050_v41 = vsel %vm516_vm4, 1, %v21422_v16  ;;  %v7773_v45 = vrot.slane %v7771_v4, 1 }
 0x3d9   : > { %9277 = vmatmul.mubr.bf16.gmra.mrb[76].mxu0 %v21935_v30  ;;  %v5906_v17 = vpop.f32.mrb[238].mxu1  ;;  %25245 = vst [vmem:[#allocation59_spill] sm:$0xff] %v21945_v19  ;;  %v6783_v50 = vpop.f32.mrb[211].mxu0  ;;  %11091 = vperm.xlu0 %17800, %v11050_v41   ;;  %v9006_v41 = vrot.slane %v9004_v28, 1  ;;  %v25258_v28 = vld [vmem:[#allocation60_spill] sm:$0xff] }
 0x3da   : > { %15987 = vmatprep.mubr.msk.bf16.mxu0 %vm1151_vm3, %v21941_v39  ;;  %v5908_v23 = vpop.f32.mrb[239].mxu1  ;;  %v21950_v52 = vadd.f32 %v6217_v14, %v25246_v33  ;;  %v6220_v18 = vadd.f32 %v25248_v5, %v5906_v17  ;;  %v21955_v19 = vpop.f32.mrb[212].mxu0  ;;  %v11051_v33 = vsel %vm517_vm5, 1, %v21422_v16  ;;  %v21975_v5 = vsel %vm7534_vm0, %v7769_v36, %v7773_v45 }
 0x3db   : > { %25249 = vst [vmem:[#allocation61_spill] sm:$0xff] %v21955_v19  ;;  %v6788_v14 = vpop.f32.mrb[213].mxu0  ;;  %v21963_v23 = vld [vmem:[%s19209_s21 + $0x110] ss:$8 sps:$4 sm:$0xff]   ;;  %v21969_v57 = vpop.permute.xlu1 %4519  ;;  %v21977_v50 = vor.u32 %v7791_v9, %v7781_v55 }
 0x3dc   : > { %25247 = vst [vmem:[#allocation77_spill] sm:$0xff] %v21950_v52  ;;  %7996 = vmatmul.mubr.bf16.gmra.mrb[88].mxu1 %v21589_v21  ;;  %v21960_v27 = vadd.f32 %v6220_v18, %v21572_v51  ;;  %v21967_v17 = vpop.f32.mrb[214].mxu0  ;;  %25252 = vst [vmem:[#allocation120_spill] sm:$0xff] %v21969_v57  ;;  %v8996_v21 = vshll.u32 %v21963_v23, 16  ;;  %v7783_v18 = vshrl.u32 %v21918_v43, 16  ;;  %v18484_v55 = vld [vmem:[#allocation16 + $0x30] sm:$0xff] }
 0x3dd   : > { %15883 = vmatprep.mubr.msk.bf16.mxu1 %vm1151_vm3, %v21599_v13  ;;  %25251 = vst [vmem:[#allocation119_spill] sm:$0xff] %v21967_v17  ;;  %v6791_v4 = vpop.f32.mrb[215].mxu0  ;;  %11094 = vperm.xlu0 %17800, %v11051_v33   ;;  %v9007_v36 = vsel %vm7534_vm0, %v21977_v50, %v9006_v41  ;;  %vm518_vm6 = vcmp.lt.f32.partialorder %v18484_v55, 15.0  ;;  %v25260_v55 = vld [vmem:[#allocation87_spill] sm:$0xff] }
 0x3de   : > { %25250 = vst [vmem:[#allocation118_spill] sm:$0xff] %v21960_v27  ;;  %v21979_v13 = vpop.f32.mrb[216].mxu0  ;;  %v8998_v43 = vrot.slane %v8996_v21, 1  ;;  %v21997_v21 = vld [vmem:[#allocation3] sm:$0xff] }
 0x3df   : > { %v5911_v51 = vpop.f32.mrb[240].mxu1  ;;  %25253 = vst [vmem:[#allocation121_spill] sm:$0xff] %v21979_v13  ;;  %v6796_v16 = vpop.f32.mrb[217].mxu0  ;;  %v25256_v13 = vld [vmem:[#allocation75_spill] sm:$0xff] }
 0x3e0   : > { %v5913_v14 = vpop.f32.mrb[241].mxu1  ;;  %v6225_v4 = vadd.f32 %v25254_v37, %v5911_v51  ;;  %v21983_v19 = vpop.f32.mrb[218].mxu0  ;;  %v8597_v51 = vld [vmem:[%s19209_s21 + $0x120] sm:$0x11]  ;;  %v21993_v37 = vor.u32 %v7783_v18, %v7773_v45 }
 0x3e1   : > { %9285 = vmatmul.mubr.bf16.gmra.mrb[80].mxu0 %v21975_v5  ;;  %v5914_v17 = vpop.f32.mrb[242].mxu1  ;;  %25255 = vst [vmem:[#allocation58_spill] sm:$0xff] %v21983_v19  ;;  %v6799_v27 = vpop.f32.mrb[219].mxu0  ;;  %v11052_v19 = vsel %vm518_vm6, 1, %v21997_v21  ;;  %v15963_v52 = vcombine.high %v8597_v51, %v8597_v51 }
 0x3e2   : > { %v5916_v9 = vpop.f32.mrb[243].mxu1  ;;  %v21988_v33 = vadd.f32 %v6225_v4, %v25256_v13  ;;  %v6228_v14 = vadd.f32 %v25258_v28, %v5914_v17  ;;  %15988 = vmatprep.mubr.msk.bf16.mxu0 %vm1151_vm3, %v9007_v36  ;;  %v21995_v16 = vpop.f32.mrb[220].mxu0  ;;  %11097 = vperm.xlu0 %17800, %v11052_v19   ;;  %v15962_v27 = vcombine.low %v8597_v51, %v8597_v51  ;;  %v25263_v4 = vld [vmem:[#allocation89_spill] sm:$0xff]  ;;  %v9016_v28 = vshrl.u32 %v18287_v3, 16 }
 0x3e3   : > { %25259 = vst [vmem:[#allocation60_spill] sm:$0xff] %v21995_v16  ;;  %v25261_v9 = vld [vmem:[#allocation78_spill] sm:$0xff]  ;;  %v6804_v17 = vpop.f32.mrb[221].mxu0  ;;  %v8999_v45 = vsel %vm7534_vm0, %v21993_v37, %v8998_v43  ;;  %v18486_v36 = vld [vmem:[#allocation16 + $0x38] sm:$0xff]  ;;  %v9020_v16 = vshll.u32 %v15963_v52, 16 }
 0x3e4   : > { %25257 = vst [vmem:[#allocation75_spill] sm:$0xff] %v21988_v33  ;;  %8004 = vmatmul.mubr.bf16.gmra.mrb[92].mxu1 %v25260_v55  ;;  %v22002_v13 = vadd.f32 %v6228_v14, %v25261_v9  ;;  %v22008_v18 = vpop.f32.mrb[222].mxu0  ;;  %vm519_vm7 = vcmp.lt.f32.partialorder %v18486_v36, 15.0  ;;  %v22010_v33 = vpop.permute.xlu1 %4522  ;;  %v9008_v14 = vshrl.u32 %v21963_v23, 16  ;;  %v9012_v51 = vshll.u32 %v15962_v27, 16 }
 0x3e5   : > { %15884 = vmatprep.mubr.msk.bf16.mxu1 %vm1151_vm3, %v25263_v4  ;;  %25264 = vst [vmem:[#allocation78_spill] sm:$0xff] %v22008_v18  ;;  %25265 = vst [vmem:[#allocation89_spill] sm:$0xff] %v22010_v33  ;;  %v6807_v55 = vpop.f32.mrb[223].mxu0  ;;  %v11053_v19 = vsel %vm519_vm7, 1, %v21997_v21  ;;  %v9018_v4 = vor.u32 %v9016_v28, %v9006_v41  ;;  %v25267_v18 = vld [vmem:[#allocation63_spill] sm:$0xff]  ;;  %v18296_v33 = vld [vmem:[#allocation9 + $0xf0] sm:$0xff]  }
 0x3e6   : > { %25262 = vst [vmem:[#allocation87_spill] sm:$0xff] %v22002_v13  ;;  %v22014_v17 = vpop.f32.mrb[224].mxu0  ;;  %v9022_v13 = vrot.slane %v9020_v16, 1  ;;  %11100 = vperm.xlu0 %17800, %v11053_v19   ;;  %v9014_v23 = vrot.slane %v9012_v51, 1  ;;  %v9010_v27 = vor.u32 %v9008_v14, %v8998_v43  ;;  %v18299_v41 = vld [vmem:[%s19201_s13 + $0x18] sm:$0xff]   ;;  %16956 = vmatprep.subr.bf16.mxu0 %v18296_v33  ;;  %v11054_v43 = vsel %vm520_vm8, 1, %v21997_v21 }
 0x3e7   : > { %v5919_v9 = vpop.f32.mrb[244].mxu1  ;;  %25266 = vst [vmem:[#allocation122_spill] sm:$0xff] %v22014_v17  ;;  %v6812_v3 = vpop.f32.mrb[225].mxu0  ;;  %v22035_v51 = vld [vmem:[%s19201_s13 + $0x28] sm:$0xff]   ;;  %16957 = vmatpush3.bf16.msra.mxu0 %v18296_v33 }
 0x3e8   : > { %v5921_v56 = vpop.f32.mrb[245].mxu1  ;;  %v6233_v24 = vadd.f32 %v25267_v18, %v5919_v9  ;;  %v22017_v36 = vpop.f32.mrb[226].mxu0  ;;  %v9023_v55 = vsel %vm7534_vm0, %v9018_v4, %v9022_v13  ;;  %v18300_v9 = vld [vmem:[%s19201_s13 + $0x20] sm:$0xff]   ;;  %v10652_v13 = vshll.u32 %v18299_v41, 16 }
 0x3e9   : > { %9293 = vmatmul.mubr.bf16.gmra.mrb[84].mxu0 %v8999_v45  ;;  %v5922_v52 = vpop.f32.mrb[246].mxu1  ;;  %25268 = vst [vmem:[#allocation63_spill] sm:$0xff] %v22017_v36  ;;  %v25269_v56 = vld [vmem:[#allocation83_spill] sm:$0xff]  ;;  %v25270_v45 = vld [vmem:[#allocation65_spill] sm:$0xff]  ;;  %v6815_v19 = vpop.f32.mrb[227].mxu0  ;;  %v10657_v4 = vshll.u32 %v18300_v9, 16 }
 0x3ea   : > { %v5924_v16 = vpop.f32.mrb[247].mxu1  ;;  %v22022_v28 = vadd.f32 %v6233_v24, %v25269_v56  ;;  %v6236_v18 = vadd.f32 %v25270_v45, %v5922_v52  ;;  %15989 = vmatprep.mubr.msk.bf16.mxu0 %vm1151_vm3, %v9023_v55  ;;  %v22027_v3 = vpop.f32.mrb[228].mxu0  ;;  %11103 = vperm.xlu0 %17800, %v11054_v43   ;;  %v9015_v52 = vsel %vm7534_vm0, %v9010_v27, %v9014_v23  ;;  %v18488_v56 = vld [vmem:[#allocation16 + $0x48] sm:$0xff]  ;;  %v10654_v45 = vrot.slane %v10652_v13, 1 }
 0x3eb   : > { %25271 = vst [vmem:[#allocation83_spill] sm:$0xff] %v22027_v3  ;;  %v6820_v24 = vpop.f32.mrb[229].mxu0  ;;  %v18298_v16 = vld [vmem:[#allocation9 + $0xf8] ss:$0 sps:$4 sm:$0xff]   ;;  %vm521_vm9 = vcmp.lt.f32.partialorder %v18488_v56, 15.0  ;;  %v10665_v23 = vshll.u32 %v22035_v51, 16 }
 0x3ec   : > { %8012 = vmatmul.mubr.bf16.gmra.mrb[96].mxu1 %v21670_v34  ;;  %v22032_v14 = vadd.f32 %v6236_v18, %v25272_v15  ;;  %v22040_v55 = vpop.f32.mrb[230].mxu0  ;;  %v10650_v34 = vshrl.u32 %v18299_v41, 16  ;;  %v22042_v18 = vpop.permute.xlu1 %4525  ;;  %v11055_v43 = vsel %vm521_vm9, 1, %v21997_v21  ;;  %v10659_v15 = vrot.slane %v10657_v4, 1  ;;  %17676 = vmatprep.subr.msk.bf16.mxu0 %vm1666_vm1, %v18298_v16  ;;  %v25277_v41 = vld [vmem:[#allocation62_spill] sm:$0xff] }
 0x3ed   : > { %15885 = vmatprep.mubr.msk.bf16.mxu1 %vm1151_vm3, %v21680_v58  ;;  %25274 = vst [vmem:[#allocation86_spill] sm:$0xff] %v22040_v55  ;;  %25275 = vst [vmem:[#allocation123_spill] sm:$0xff] %v22042_v18  ;;  %v6823_v19 = vpop.f32.mrb[231].mxu0  ;;  %v10661_v24 = vshrl.u32 %v18300_v9, 16  ;;  %v10851_v58 = vsel %vm1666_vm1, %v18298_v16, 0 }
 0x3ee   : > { %25273 = vst [vmem:[#allocation65_spill] sm:$0xff] %v22032_v14  ;;  %v22045_v36 = vpop.f32.mrb[232].mxu0  ;;  %v10655_v33 = vor.u32 %v10654_v45, %v10650_v34  ;;  %11106 = vperm.xlu0 %17800, %v11055_v43   ;;  %16959 = vmatpush3.bf16.msra.mxu0 %v10851_v58  ;;  %v25279_v14 = vld [vmem:[#allocation81_spill] sm:$0xff]  ;;  %v25280_v34 = vld [vmem:[#allocation64_spill] sm:$0xff] }
 0x3ef   : > { %v5927_v3 = vpop.f32.mrb[248].mxu1  ;;  %25276 = vst [vmem:[#allocation124_spill] sm:$0xff] %v22045_v36  ;;  %v6828_v56 = vpop.f32.mrb[233].mxu0  ;;  %v10663_v55 = vor.u32 %v10661_v24, %v10659_v15  ;;  %v10667_v36 = vrot.slane %v10665_v23, 1  ;;  %v25282_v43 = vld [vmem:[#allocation85_spill] sm:$0xff] }
 0x3f0   : > { %v5929_v27 = vpop.f32.mrb[249].mxu1  ;;  %v6241_v13 = vadd.f32 %v25277_v41, %v5927_v3  ;;  %v22051_v4 = vpop.f32.mrb[234].mxu0  ;;  %v10660_v9 = vsel %vm7534_vm0, %v10655_v33, %v10659_v15  ;;  %v18490_v33 = vld [vmem:[#allocation16 + $0x58] sm:$0xff] }
 0x3f1   : > { %9301 = vmatmul.mubr.bf16.gmra.mrb[88].mxu0 %v9015_v52  ;;  %v5930_v19 = vpop.f32.mrb[250].mxu1  ;;  %25278 = vst [vmem:[#allocation62_spill] sm:$0xff] %v22051_v4  ;;  %v6831_v27 = vpop.f32.mrb[235].mxu0  ;;  %v18489_v52 = vld [vmem:[#allocation16 + $0x50] sm:$0xff]  ;;  %vm523_vm10 = vcmp.lt.f32.partialorder %v18490_v33, 15.0 }
 0x3f2   : > { %v5932_v17 = vpop.f32.mrb[251].mxu1  ;;  %v22055_v16 = vadd.f32 %v6241_v13, %v25279_v14  ;;  %v6244_v45 = vadd.f32 %v25280_v34, %v5930_v19  ;;  %16960 = vmatprep.mubr.msk.bf16.mxu0 %vm1617_vm2, %v10660_v9  ;;  %v22059_v3 = vpop.f32.mrb[236].mxu0  ;;  %vm522_vm1 = vcmp.lt.f32.partialorder %v18489_v52, 15.0  ;;  %v10668_v14 = vsel %vm7534_vm0, %v10663_v55, %v10667_v36  ;;  %v25286_v9 = vld [vmem:[#allocation67_spill] sm:$0xff]  ;;  %v18491_v27 = vld [vmem:[#allocation16 + $0x60] sm:$0xff]  ;;  %v25297_v4 = vld [vmem:[#allocation68_spill] sm:$0xff] }
 0x3f3   : > { %25281 = vst [vmem:[#allocation81_spill] sm:$0xff] %v22059_v3  ;;  %v11056_v15 = vsel %vm522_vm1, 1, %v21997_v21  ;;  %v6836_v17 = vpop.f32.mrb[237].mxu0  ;;  %v22071_v23 = vpop.permute.xlu1 %4528  ;;  %vm524_vm11 = vcmp.lt.f32.partialorder %v18491_v27, 15.0  ;;  %v22095_v27 = vld [vmem:[%s19201_s13 + $0x38] sm:$0xff]  }
 0x3f4   : > { %8020 = vmatmul.mubr.bf16.gmra.mrb[100].mxu1 %v21713_v32  ;;  %v22063_v58 = vadd.f32 %v6244_v45, %v25282_v43  ;;  %11109 = vperm.xlu0 %17800, %v11056_v15   ;;  %v22069_v24 = vpop.f32.mrb[238].mxu0  ;;  %25284 = vst [vmem:[#allocation85_spill] sm:$0xff] %v22071_v23  ;;  %v11057_v32 = vsel %vm523_vm10, 1, %v21997_v21  ;;  %v25288_v43 = vld [vmem:[#allocation90_spill] sm:$0xff]  ;;  %v25289_v17 = vld [vmem:[#allocation69_spill] sm:$0xff] }
 0x3f5   : > { %15886 = vmatprep.mubr.msk.bf16.mxu1 %vm1151_vm3, %v21722_v53  ;;  %25283 = vst [vmem:[#allocation64_spill] sm:$0xff] %v22069_v24  ;;  %v6839_v41 = vpop.f32.mrb[239].mxu0 }
 0x3f6   : > { %v22074_v56 = vpop.f32.mrb[240].mxu0 }
 0x3f7   : > { %v5935_v13 = vpop.f32.mrb[252].mxu1  ;;  %25285 = vst [vmem:[#allocation125_spill] sm:$0xff] %v22074_v56  ;;  %v6844_v53 = vpop.f32.mrb[241].mxu0 }
 0x3f8   : > { %v5937_v19 = vpop.f32.mrb[253].mxu1  ;;  %v6249_v34 = vadd.f32 %v25286_v9, %v5935_v13  ;;  %11112 = vperm.xlu0 %17800, %v11057_v32   ;;  %v22078_v45 = vpop.f32.mrb[242].mxu0  ;;  %v18311_v13 = vld [vmem:[%s19201_s13 + $0x30] sm:$0xff]  }
 0x3f9   : > { %16961 = vmatmul.mubr.msk.bf16.vlgmr.msra.gmra.mrb[92].mxu0 %vm1617_vm2, %v10668_v14  ;;  %v5938_v55 = vpop.f32.mrb[254].mxu1  ;;  %25287 = vst [vmem:[#allocation67_spill] sm:$0xff] %v22078_v45  ;;  %v6847_v41 = vpop.f32.mrb[243].mxu0  ;;  %v11058_v19 = vsel %vm524_vm11, 1, %v21997_v21  ;;  %v25294_v45 = vld [vmem:[#allocation66_spill] sm:$0xff] }
 0x3fa   : > { %v5940_v52 = vpop.f32.mrb[255].mxu1  ;;  %v22081_v15 = vadd.f32 %v6249_v34, %v25288_v43  ;;  %v6252_v33 = vadd.f32 %v25289_v17, %v5938_v55  ;;  %v22088_v14 = vpop.permute.xlu1 %4531  ;;  %v10673_v34 = vshll.u32 %v18311_v13, 16  ;;  %v10669_v43 = vshrl.u32 %v22035_v51, 16 }
 0x3fb   : > { %25291 = vst [vmem:[#allocation69_spill] sm:$0xff] %v22088_v14  ;;  %v18492_v52 = vld [vmem:[#allocation16 + $0x68] sm:$0xff] }
 0x3fc   : > { %v22086_v9 = vpop.f32.mrb[244].mxu0  ;;  %8028 = vmatmul.mubr.bf16.gmra.mrb[104].mxu1 %v21764_v11  ;;  %v22092_v32 = vadd.f32 %v6252_v33, %v21656_v26  ;;  %11115 = vperm.xlu0 %17800, %v11058_v19   ;;  %vm525_vm12 = vcmp.lt.f32.partialorder %v18492_v52, 15.0  ;;  %v10675_v41 = vrot.slane %v10673_v34, 1  ;;  %v10677_v26 = vshrl.u32 %v18311_v13, 16  ;;  %v25296_v34 = vld [vmem:[#allocation88_spill] sm:$0xff] }
 0x3fd   : > { %25290 = vst [vmem:[#allocation90_spill] sm:$0xff] %v22086_v9  ;;  %v6852_v53 = vpop.f32.mrb[245].mxu0  ;;  %15887 = vmatprep.mubr.msk.bf16.mxu1 %vm1151_vm3, %v21773_v40  ;;  %v11059_v11 = vsel %vm525_vm12, 1, %v21997_v21  ;;  %v10681_v33 = vshll.u32 %v22095_v27, 16  ;;  %v10671_v9 = vor.u32 %v10669_v43, %v10667_v36 }
 0x3fe   : > { %25292 = vst [vmem:[#allocation126_spill] sm:$0xff] %v22092_v32  ;;  %v22099_v55 = vpop.f32.mrb[246].mxu0  ;;  %v10679_v40 = vor.u32 %v10677_v26, %v10675_v41  ;;  %v22106_v51 = vpop.permute.xlu1 %4534 }
 0x3ff   : > { %25293 = vst [vmem:[#allocation127_spill] sm:$0xff] %v22099_v55  ;;  %v6855_v17 = vpop.f32.mrb[247].mxu0  ;;  %v5943_v53 = vpop.f32.mrb[0].mxu1  ;;  %v10683_v19 = vrot.slane %v10681_v33, 1  ;;  %v10676_v52 = vsel %vm7534_vm0, %v10671_v9, %v10675_v41  ;;  %v18493_v55 = vld [vmem:[#allocation16 + $0x70] sm:$0xff]  ;;  %25295 = vst [vmem:[#allocation66_spill] sm:$0xff] %v22106_v51 }
 0x400   : > { %v5945_v24 = vpop.f32.mrb[1].mxu1  ;;  %v6257_v3 = vadd.f32 %v25294_v45, %v5943_v53  ;;  %11118 = vperm.xlu0 %17800, %v11059_v11   ;;  %vm526_vm13 = vcmp.lt.f32.partialorder %v18493_v55, 15.0  ;;  %16964 = vmatprep.mubr.msk.bf16.mxu0 %vm1617_vm2, %v10676_v52  ;;  %v18495_v33 = vld [vmem:[#allocation16 + $0x80] sm:$0xff] }
 0x401   : > { %v5946_v56 = vpop.f32.mrb[2].mxu1  ;;  %v10684_v36 = vsel %vm7534_vm0, %v10679_v40, %v10683_v19  ;;  %v11060_v45 = vsel %vm526_vm13, 1, %v21997_v21  ;;  %vm528_vm15 = vcmp.lt.f32.partialorder %v18495_v33, 15.0  ;;  %v25302_v40 = vld [vmem:[#allocation73_spill] sm:$0xff] }
 0x402   : > { %v5948_v17 = vpop.f32.mrb[3].mxu1  ;;  %v22109_v13 = vadd.f32 %v6257_v3, %v25296_v34  ;;  %v6260_v32 = vadd.f32 %v25297_v4, %v5946_v56  ;;  %16965 = vmatmul.mubr.msk.bf16.gmra.mrb[96].mxu0 %vm1617_vm2, %v10684_v36  ;;  %v18494_v3 = vld [vmem:[#allocation16 + $0x78] sm:$0xff]  ;;  %v22127_v41 = vpop.permute.xlu1 %4537  ;;  %v11062_v36 = vsel %vm528_vm15, 1, %v21997_v21 }
 0x403   : > { %vm527_vm14 = vcmp.lt.f32.partialorder %v18494_v3, 15.0  ;;  %25300 = vst [vmem:[#allocation128_spill] sm:$0xff] %v22127_v41  ;;  %v18319_v17 = vld [vmem:[%s19201_s13 + $0x40] sm:$0xff]   ;;  %v22145_v3 = vld [vmem:[%s19201_s13 + $0x48] sm:$0xff]  }
 0x404   : > { %v22114_v24 = vpop.f32.mrb[248].mxu0  ;;  %8036 = vmatmul.mubr.bf16.gmra.mrb[108].mxu1 %v21812_v8  ;;  %v22120_v9 = vadd.f32 %v6260_v32, %v21653_v7  ;;  %11121 = vperm.xlu0 %17800, %v11060_v45   ;;  %v11061_v43 = vsel %vm527_vm14, 1, %v21997_v21  ;;  %v25301_v7 = vld [vmem:[#allocation71_spill] sm:$0xff] }
 0x405   : > { %25298 = vst [vmem:[#allocation88_spill] sm:$0xff] %v22114_v24  ;;  %v6860_v55 = vpop.f32.mrb[249].mxu0  ;;  %15888 = vmatprep.mubr.msk.bf16.mxu1 %vm1151_vm3, %v21821_v48 }
 0x406   : > { %v22124_v4 = vpop.f32.mrb[250].mxu0 }
 0x407   : > { %25299 = vst [vmem:[#allocation68_spill] sm:$0xff] %v22124_v4  ;;  %v6863_v56 = vpop.f32.mrb[251].mxu0  ;;  %v5951_v11 = vpop.f32.mrb[4].mxu1 }
 0x408   : > { %v5953_v8 = vpop.f32.mrb[5].mxu1  ;;  %v6265_v32 = vadd.f32 %v25301_v7, %v5951_v11  ;;  %11124 = vperm.xlu0 %17800, %v11061_v43   ;;  %v10689_v56 = vshll.u32 %v18319_v17, 16  ;;  %v18496_v43 = vld [vmem:[#allocation16 + $0x88] sm:$0xff]  ;;  %v10685_v11 = vshrl.u32 %v22095_v27, 16 }
 0x409   : > { %v5954_v26 = vpop.f32.mrb[6].mxu1  ;;  %vm529_vm4 = vcmp.lt.f32.partialorder %v18496_v43, 15.0  ;;  %v22152_v8 = vpop.permute.xlu1 %4540 }
 0x40a   : > { %v5956_v48 = vpop.f32.mrb[7].mxu1  ;;  %v22131_v53 = vadd.f32 %v6265_v32, %v21688_v49  ;;  %v6268_v52 = vadd.f32 %v25302_v40, %v5954_v26  ;;  %25307 = vst [vmem:[#allocation131_spill] sm:$0xff] %v22152_v8  ;;  %v10691_v7 = vrot.slane %v10689_v56, 1  ;;  %v10693_v32 = vshrl.u32 %v18319_v17, 16  ;;  %v7371_v17 = vld [vmem:[%s19209_s21 + $0x110] sm:$0x11] }
 0x40b   : > { %v10697_v26 = vshll.u32 %v22145_v3, 16  ;;  %v25309_v48 = vld [vmem:[#allocation70_spill] sm:$0xff] }
 0x40c   : > { %v22135_v34 = vpop.f32.mrb[252].mxu0  ;;  %8044 = vmatmul.mubr.bf16.gmra.mrb[112].mxu1 %v21854_v29  ;;  %v22140_v45 = vadd.f32 %v6268_v52, %v21701_v47  ;;  %11127 = vperm.xlu0 %17800, %v11062_v36   ;;  %v11063_v47 = vsel %vm529_vm4, 1, %v21997_v21  ;;  %v10695_v36 = vor.u32 %v10693_v32, %v10691_v7 }
 0x40d   : > { %25303 = vst [vmem:[#allocation71_spill] sm:$0xff] %v22135_v34  ;;  %v22142_v55 = vpop.f32.mrb[253].mxu0  ;;  %15889 = vmatprep.mubr.msk.bf16.mxu1 %vm1151_vm3, %v21860_v38  ;;  %v10687_v38 = vor.u32 %v10685_v11, %v10683_v19  ;;  %v10699_v43 = vrot.slane %v10697_v26, 1  ;;  %v25310_v34 = vld [vmem:[#allocation93_spill] sm:$0xff]  ;;  %v18497_v19 = vld [vmem:[#allocation16 + $0x90] sm:$0xff]  ;;  %v22168_v11 = vpop.permute.xlu1 %4543 }
 0x40e   : > { %25304 = vst [vmem:[#allocation73_spill] sm:$0xff] %v22140_v45  ;;  %25305 = vst [vmem:[#allocation129_spill] sm:$0xff] %v22142_v55  ;;  %v22149_v49 = vpop.f32.mrb[254].mxu0  ;;  %v25311_v55 = vld [vmem:[#allocation72_spill] sm:$0xff]  ;;  %vm530_vm5 = vcmp.lt.f32.partialorder %v18497_v19, 15.0 }
 0x40f   : > { %25306 = vst [vmem:[#allocation130_spill] sm:$0xff] %v22149_v49  ;;  %v22154_v29 = vpop.f32.mrb[255].mxu0  ;;  %v5959_v33 = vpop.f32.mrb[8].mxu1  ;;  %v10692_v27 = vsel %vm7534_vm0, %v10687_v38, %v10691_v7  ;;  %v10700_v24 = vsel %vm7534_vm0, %v10695_v36, %v10699_v43  ;;  %25312 = vst [vmem:[#allocation70_spill] sm:$0xff] %v22168_v11 }
 0x410   : > { %25308 = vst [vmem:[#allocation132_spill] sm:$0xff] %v22154_v29  ;;  %v6273_v40 = vadd.f32 %v25309_v48, %v5959_v33  ;;  %v5961_v52 = vpop.f32.mrb[9].mxu1  ;;  %11130 = vperm.xlu0 %17800, %v11063_v47   ;;  %16968 = vmatprep.mubr.msk.bf16.mxu0 %vm1617_vm2, %v10692_v27 }
 0x411   : > { %v5962_v49 = vpop.f32.mrb[10].mxu1  ;;  %16969 = vmatmul.mubr.msk.bf16.gmra.mrb[100].mxu0 %vm1617_vm2, %v10700_v24  ;;  %v18498_v24 = vld [vmem:[#allocation16 + $0x98] sm:$0xff]  ;;  %v18499_v52 = vld [vmem:[#allocation16 + $0xa0] sm:$0xff]  ;;  %v22190_v36 = vpop.permute.xlu1 %4546 }
 0x412   : > { %v22161_v29 = vadd.f32 %v6273_v40, %v25310_v34  ;;  %v6276_v4 = vadd.f32 %v25311_v55, %v5962_v49  ;;  %v5964_v56 = vpop.f32.mrb[11].mxu1  ;;  %v11064_v34 = vsel %vm530_vm5, 1, %v21997_v21  ;;  %v15866_v49 = vcombine.high %v7371_v17, %v7371_v17  ;;  %v22186_v40 = vld [vmem:[%s19201_s13 + $0x10] sm:$0xff]   ;;  %25318 = vst [vmem:[#allocation134_spill] sm:$0xff] %v22190_v36 }
 0x413   : > { %vm531_vm6 = vcmp.lt.f32.partialorder %v18498_v24, 15.0  ;;  %vm532_vm7 = vcmp.lt.f32.partialorder %v18499_v52, 15.0  ;;  %v25319_v56 = vld [vmem:[#allocation98_spill] sm:$0xff] }
 0x414   : > { %v22171_v47 = vadd.f32 %v6276_v4, %v21695_v35  ;;  %8052 = vmatmul.mubr.bf16.gmra.mrb[116].mxu1 %v21896_v31  ;;  %v22175_v55 = vpop.f32.mrb[0].mxu0  ;;  %11133 = vperm.xlu0 %17800, %v11064_v34   ;;  %v11065_v7 = vsel %vm531_vm6, 1, %v21997_v21  ;;  %v25315_v31 = vld [vmem:[#allocation80_spill] sm:$0xff]  ;;  %v7795_v48 = vshll.u32 %v15866_v49, 16  ;;  %v15865_v49 = vcombine.low %v7371_v17, %v7371_v17 }
 0x415   : > { %25313 = vst [vmem:[#allocation93_spill] sm:$0xff] %v22175_v55  ;;  %15890 = vmatprep.mubr.msk.bf16.mxu1 %vm1151_vm3, %v21902_v20  ;;  %v22180_v35 = vpop.f32.mrb[1].mxu0  ;;  %v25321_v34 = vld [vmem:[#allocation84_spill] sm:$0xff] }
 0x416   : > { %25314 = vst [vmem:[#allocation72_spill] sm:$0xff] %v22180_v35  ;;  %v22183_v33 = vpop.f32.mrb[2].mxu0 }
 0x417   : > { %v5967_v32 = vpop.f32.mrb[12].mxu1  ;;  %25316 = vst [vmem:[#allocation80_spill] sm:$0xff] %v22183_v33  ;;  %v22188_v20 = vpop.f32.mrb[3].mxu0 }
 0x418   : > { %v5969_v4 = vpop.f32.mrb[13].mxu1  ;;  %v6281_v26 = vadd.f32 %v25315_v31, %v5967_v32  ;;  %11136 = vperm.xlu0 %17800, %v11065_v7   ;;  %25317 = vst [vmem:[#allocation133_spill] sm:$0xff] %v22188_v20  ;;  %v18327_v32 = vld [vmem:[%s19201_s13 + $0x50] sm:$0xff]   ;;  %v22203_v31 = vld [vmem:[%s19201_s13 + $0x58] sm:$0xff]   ;;  %v22214_v20 = vpop.permute.xlu1 %4549 }
 0x419   : > { %v5970_v38 = vpop.f32.mrb[14].mxu1  ;;  %v11066_v4 = vsel %vm532_vm7, 1, %v21997_v21  ;;  %v10705_v52 = vshll.u32 %v18327_v32, 16  ;;  %25323 = vst [vmem:[#allocation135_spill] sm:$0xff] %v22214_v20  ;;  %vm4596_vm7 = vcmp.eq.s32.totalorder %v21806_v1, 1  ;;  %v25370_v1 = vld [vmem:[#allocation52_spill] sm:$0xff] }
 0x41a   : > { %v5972_v27 = vpop.f32.mrb[15].mxu1  ;;  %v22193_v19 = vadd.f32 %v6281_v26, %v25319_v56  ;;  %v6284_v24 = vadd.f32 %v25321_v34, %v5970_v38  ;;  %v22208_v26 = vld [vmem:[%s19201_s13 + $0x18] sm:$0xff]   ;;  %v9395_v38 = vshll.u32 %v22186_v40, 16  ;;  %v18500_v56 = vld [vmem:[#allocation16 + $0xa8] sm:$0xff]  ;;  %v10709_v34 = vshrl.u32 %v18327_v32, 16 }
 0x41b   : > { %v7797_v27 = vrot.slane %v7795_v48, 1  ;;  %vm533_vm8 = vcmp.lt.f32.partialorder %v18500_v56, 15.0  ;;  %v9393_v32 = vshrl.u32 %v22186_v40, 16  ;;  %v18501_v40 = vld [vmem:[#allocation16 + $0xb0] sm:$0xff] }
 0x41c   : > { %25320 = vst [vmem:[#allocation98_spill] sm:$0xff] %v22193_v19  ;;  %8060 = vmatmul.mubr.bf16.gmra.mrb[120].mxu1 %v21935_v30  ;;  %v22200_v7 = vadd.f32 %v6284_v24, %v21748_v25  ;;  %11139 = vperm.xlu0 %17800, %v11066_v4   ;;  %v10701_v30 = vshrl.u32 %v22145_v3, 16  ;;  %v11067_v17 = vsel %vm533_vm8, 1, %v21997_v21  ;;  %v10707_v25 = vrot.slane %v10705_v52, 1 }
 0x41d   : > { %15891 = vmatprep.mubr.msk.bf16.mxu1 %vm1151_vm3, %v21941_v39  ;;  %v10713_v24 = vshll.u32 %v22203_v31, 16  ;;  %v25324_v39 = vld [vmem:[#allocation79_spill] sm:$0xff]  ;;  %v7798_v3 = vsel %vm7534_vm0, %v21977_v50, %v7797_v27  ;;  %v9400_v52 = vshll.u32 %v22208_v26, 16  ;;  %vm534_vm9 = vcmp.lt.f32.partialorder %v18501_v40, 15.0 }
 0x41e   : > { %25322 = vst [vmem:[#allocation84_spill] sm:$0xff] %v22200_v7  ;;  %v10703_v55 = vor.u32 %v10701_v30, %v10699_v43  ;;  %v7787_v7 = vshll.u32 %v15865_v49, 16  ;;  %v10711_v4 = vor.u32 %v10709_v34, %v10707_v25  ;;  %v25325_v30 = vld [vmem:[#allocation97_spill] sm:$0xff]  ;;  %v9397_v34 = vrot.slane %v9395_v38, 1  ;;  %v18266_v50 = vld [vmem:[%s19201_s13 + $0x20] sm:$0xff]  }
 0x41f   : > { %v5975_v33 = vpop.f32.mrb[16].mxu1  ;;  %v22217_v19 = vrot.slane %v10713_v24, 1  ;;  %v25328_v27 = vld [vmem:[#allocation99_spill] sm:$0xff]  ;;  %vm4599_vm8 = vcmp.eq.s32.totalorder %v21930_v0, 1 }
 0x420   : > { %v6289_v48 = vadd.f32 %v25324_v39, %v5975_v33  ;;  %v5977_v35 = vpop.f32.mrb[17].mxu1  ;;  %11142 = vperm.xlu0 %17800, %v11067_v17   ;;  %v10708_v43 = vsel %vm7534_vm0, %v10703_v55, %v10707_v25  ;;  %v11068_v17 = vsel %vm534_vm9, 1, %v21997_v21  ;;  %v22238_v25 = vpop.f32.mrb[4].mxu0  ;;  %v7789_v38 = vrot.slane %v7787_v7, 1  ;;  %v22242_v39 = vld [vmem:[%s19201_s13 + $0x28] sm:$0xff]  }
 0x421   : > { %v5978_v56 = vpop.f32.mrb[18].mxu1  ;;  %v25327_v35 = vld [vmem:[#allocation82_spill] sm:$0xff]  ;;  %v10716_v24 = vsel %vm7534_vm0, %v10711_v4, %v22217_v19  ;;  %16972 = vmatprep.mubr.msk.bf16.mxu0 %vm1617_vm2, %v10708_v43  ;;  %v22244_v4 = vpop.permute.xlu1 %4552  ;;  %v9402_v43 = vrot.slane %v9400_v52, 1  ;;  %v9416_v52 = vshll.u32 %v22242_v39, 16 }
 0x422   : > { %v22225_v45 = vadd.f32 %v6289_v48, %v25325_v30  ;;  %v6292_v33 = vadd.f32 %v25327_v35, %v5978_v56  ;;  %v5980_v49 = vpop.f32.mrb[19].mxu1  ;;  %16973 = vmatmul.mubr.msk.bf16.gmra.mrb[104].mxu0 %vm1617_vm2, %v10716_v24  ;;  %25330 = vst [vmem:[#allocation82_spill] sm:$0xff] %v22238_v25  ;;  %v18502_v48 = vld [vmem:[#allocation16 + $0xb8] sm:$0xff]  ;;  %25331 = vst [vmem:[#allocation99_spill] sm:$0xff] %v22244_v4  ;;  %v9398_v56 = vor.u32 %v9397_v34, %v9393_v32  ;;  %v18503_v34 = vld [vmem:[#allocation16 + $0xc0] sm:$0xff] }
 0x423   : > { %vm535_vm1 = vcmp.lt.f32.partialorder %v18502_v48, 15.0  ;;  %v22248_v49 = vpop.f32.mrb[5].mxu0  ;;  %v9412_v32 = vshrl.u32 %v18266_v50, 16  ;;  %vm536_vm10 = vcmp.lt.f32.partialorder %v18503_v34, 15.0  ;;  %v22270_v34 = vld [vmem:[%s19201_s13 + $0x68] sm:$0xff]  }
 0x424   : > { %25326 = vst [vmem:[#allocation79_spill] sm:$0xff] %v22225_v45  ;;  %v22234_v55 = vadd.f32 %v6292_v33, %v25328_v27  ;;  %8068 = vmatmul.mubr.bf16.gmra.mrb[124].mxu1 %v21975_v5  ;;  %11145 = vperm.xlu0 %17800, %v11068_v17   ;;  %v11069_v30 = vsel %vm535_vm1, 1, %v21997_v21  ;;  %v9404_v5 = vshrl.u32 %v22208_v26, 16  ;;  %v9408_v33 = vshll.u32 %v18266_v50, 16  ;;  %25332 = vst [vmem:[#allocation136_spill] sm:$0xff] %v22248_v49  ;;  %v22251_v40 = vpop.f32.mrb[6].mxu0 }
 0x425   : > { %15892 = vmatprep.mubr.msk.bf16.mxu1 %vm1151_vm3, %v7798_v3  ;;  %v25333_v3 = vld [vmem:[#allocation92_spill] sm:$0xff]  ;;  %v7790_v17 = vsel %vm7534_vm0, %v21993_v37, %v7789_v38  ;;  %v22256_v26 = vpop.f32.mrb[7].mxu0  ;;  %v18335_v37 = vld [vmem:[%s19201_s13 + $0x60] sm:$0xff]   ;;  %v11070_v25 = vsel %vm536_vm10, 1, %v21997_v21  ;;  %vm4597_vm10 = vcmp.eq.s32.totalorder %v21857_v10, 1 }
 0x426   : > { %25329 = vst [vmem:[#allocation97_spill] sm:$0xff] %v22234_v55  ;;  %25334 = vst [vmem:[#allocation92_spill] sm:$0xff] %v22251_v40  ;;  %v9406_v38 = vor.u32 %v9404_v5, %v9402_v43  ;;  %v9410_v50 = vrot.slane %v9408_v33, 1  ;;  %v22277_v5 = vpop.permute.xlu1 %4555  ;;  %v18267_v55 = vld [vmem:[#allocation10 + $0x280] sm:$0xff]  }
 0x427   : > { %v5983_v35 = vpop.f32.mrb[20].mxu1  ;;  %25335 = vst [vmem:[#allocation137_spill] sm:$0xff] %v22256_v26  ;;  %25339 = vst [vmem:[#allocation139_spill] sm:$0xff] %v22277_v5 }
 0x428   : > { %v5985_v7 = vpop.f32.mrb[21].mxu1  ;;  %v6297_v24 = vadd.f32 %v25333_v3, %v5983_v35  ;;  %11148 = vperm.xlu0 %17800, %v11069_v30   ;;  %v9403_v35 = vsel %vm7534_vm0, %v9398_v56, %v9402_v43  ;;  %v25337_v3 = vld [vmem:[#allocation95_spill] sm:$0xff]  ;;  %v18269_v30 = vld [vmem:[%s19201_s13 + $0x30] sm:$0xff]   ;;  %v9414_v56 = vor.u32 %v9412_v32, %v9410_v50  ;;  %v10717_v43 = vshrl.u32 %v22203_v31, 16 }
 0x429   : > { %v5986_v27 = vpop.f32.mrb[22].mxu1 }
 0x42a   : > { %v5988_v48 = vpop.f32.mrb[23].mxu1  ;;  %v22260_v7 = vadd.f32 %v6297_v24, %v21781_v46  ;;  %v6300_v40 = vadd.f32 %v25337_v3, %v5986_v27  ;;  %v9418_v46 = vrot.slane %v9416_v52, 1  ;;  %v22274_v24 = vld [vmem:[%s19201_s13 + $0x38] sm:$0xff]   ;;  %v18504_v27 = vld [vmem:[#allocation16 + $0xc8] sm:$0xff]  ;;  %v10719_v32 = vor.u32 %v10717_v43, %v22217_v19 }
 0x42b   : > { %v10721_v48 = vshll.u32 %v18335_v37, 16  ;;  %vm537_vm11 = vcmp.lt.f32.partialorder %v18504_v27, 15.0  ;;  %v25340_v52 = vld [vmem:[#allocation91_spill] sm:$0xff]  ;;  %v9432_v45 = vshll.u32 %v22274_v24, 16  ;;  %v25343_v43 = vld [vmem:[#allocation94_spill] sm:$0xff] }
 0x42c   : > { %25336 = vst [vmem:[#allocation138_spill] sm:$0xff] %v22260_v7  ;;  %8076 = vmatmul.mubr.bf16.gmra.mrb[128].mxu1 %v7790_v17  ;;  %v22267_v26 = vadd.f32 %v6300_v40, %v21797_v61  ;;  %11151 = vperm.xlu0 %17800, %v11070_v25   ;;  %v11071_v33 = vsel %vm537_vm11, 1, %v21997_v21  ;;  %v10725_v40 = vshrl.u32 %v18335_v37, 16  ;;  %v10729_v17 = vshll.u32 %v22270_v34, 16  ;;  %v25341_v19 = vld [vmem:[#allocation103_spill] sm:$0xff] }
 0x42d   : > { %16920 = vmatprep.mubr.msk.bf16.mxu1 %vm1617_vm2, %v9403_v35  ;;  %v10723_v61 = vrot.slane %v10721_v48, 1  ;;  %v9411_v35 = vsel %vm7534_vm0, %v9406_v38, %v9410_v50  ;;  %v9419_v48 = vsel %vm7534_vm0, %v9414_v56, %v9418_v46  ;;  %v9420_v37 = vshrl.u32 %v22242_v39, 16  ;;  %v18273_v56 = vld [vmem:[%s19201_s13 + $0x40] sm:$0xff]   ;;  %v18505_v39 = vld [vmem:[#allocation16 + $0xd0] sm:$0xff] }
 0x42e   : > { %25338 = vst [vmem:[#allocation95_spill] sm:$0xff] %v22267_v26  ;;  %v9424_v26 = vshll.u32 %v18269_v30, 16  ;;  %v22284_v31 = vrot.slane %v10729_v17, 1  ;;  %vm538_vm12 = vcmp.lt.f32.partialorder %v18505_v39, 15.0  ;;  %vm24881_vm11 = vcmp.eq.s32.totalorder %v21969_v57, 1 }
 0x42f   : > { %v5991_v3 = vpop.f32.mrb[24].mxu1  ;;  %v10727_v27 = vor.u32 %v10725_v40, %v10723_v61  ;;  %v10724_v38 = vsel %vm7534_vm0, %v10719_v32, %v10723_v61  ;;  %v9428_v40 = vshrl.u32 %v18269_v30, 16  ;;  %v11072_v30 = vsel %vm538_vm12, 1, %v21997_v21  ;;  %v22306_v61 = vpop.f32.mrb[8].mxu0 }
 0x430   : > { %v6305_v49 = vadd.f32 %v25340_v52, %v5991_v3  ;;  %v5993_v25 = vpop.f32.mrb[25].mxu1  ;;  %11154 = vperm.xlu0 %17800, %v11071_v33   ;;  %16976 = vmatprep.mubr.msk.bf16.mxu0 %vm1617_vm2, %v10724_v38  ;;  %v22299_v33 = vpop.permute.xlu1 %4558  ;;  %25346 = vst [vmem:[#allocation140_spill] sm:$0xff] %v22306_v61  ;;  %v9422_v32 = vor.u32 %v9420_v37, %v9418_v46  ;;  %v18506_v38 = vld [vmem:[#allocation16 + $0xd8] sm:$0xff]  ;;  %vm24882_vm12 = vcmp.eq.s32.totalorder %v21891_v62, 1 }
 0x431   : > { %v5994_v7 = vpop.f32.mrb[26].mxu1  ;;  %v10732_v17 = vsel %vm7534_vm0, %v10727_v27, %v22284_v31  ;;  %25344 = vst [vmem:[#allocation103_spill] sm:$0xff] %v22299_v33  ;;  %v18270_v25 = vld [vmem:[#allocation10 + $0x288] sm:$0xff]   ;;  %vm539_vm13 = vcmp.lt.f32.partialorder %v18506_v38, 15.0  ;;  %v18507_v38 = vld [vmem:[#allocation16 + $0xe0] sm:$0xff] }
 0x432   : > { %v22291_v50 = vadd.f32 %v6305_v49, %v25341_v19  ;;  %v6308_v3 = vadd.f32 %v25343_v43, %v5994_v7  ;;  %v5996_v52 = vpop.f32.mrb[27].mxu1  ;;  %16977 = vmatmul.mubr.msk.bf16.gmra.mrb[108].mxu0 %vm1617_vm2, %v10732_v17  ;;  %v9426_v7 = vrot.slane %v9424_v26, 1  ;;  %v22310_v27 = vld [vmem:[%s19201_s13 + $0x48] sm:$0xff]   ;;  %v9434_v19 = vrot.slane %v9432_v45, 1 }
 0x433   : > { %v9436_v26 = vshrl.u32 %v22274_v24, 16  ;;  %v9440_v43 = vshll.u32 %v18273_v56, 16  ;;  %v18271_v45 = vld [vmem:[#allocation10 + $0x290] sm:$0xff]   ;;  %vm540_vm14 = vcmp.lt.f32.partialorder %v18507_v38, 15.0 }
 0x434   : > { %25342 = vst [vmem:[#allocation91_spill] sm:$0xff] %v22291_v50  ;;  %v22302_v49 = vadd.f32 %v6308_v3, %v21792_v2  ;;  %16921 = vmatmul.mubr.msk.bf16.vlgmr.msra.gmra.mrb[132].mxu1 %vm1617_vm2, %v9411_v35  ;;  %v9430_v2 = vor.u32 %v9428_v40, %v9426_v7  ;;  %11157 = vperm.xlu0 %17800, %v11072_v30   ;;  %v22314_v3 = vpop.f32.mrb[9].mxu0  ;;  %v9444_v40 = vshrl.u32 %v18273_v56, 16  ;;  %v9448_v30 = vshll.u32 %v22310_v27, 16  ;;  %v18277_v50 = vld [vmem:[#allocation10 + $0x2a0] sm:$0xff]  }
 0x435   : > { %10406 = vmatpush1.bf16.msra.mxu1 %v18267_v55  ;;  %16924 = vmatprep.mubr.msk.bf16.mxu1 %vm1617_vm2, %v9419_v48  ;;  %25347 = vst [vmem:[#allocation141_spill] sm:$0xff] %v22314_v3  ;;  %v11073_v55 = vsel %vm539_vm13, 1, %v21997_v21  ;;  %v25348_v48 = vld [vmem:[#allocation102_spill] sm:$0xff]  ;;  %v22318_v52 = vpop.f32.mrb[10].mxu0  ;;  %v9427_v39 = vsel %vm7534_vm0, %v9422_v32, %v9426_v7  ;;  %v25353_v32 = vld [vmem:[#allocation105_spill] sm:$0xff]  ;;  %v9442_v61 = vrot.slane %v9440_v43, 1 }
 0x436   : > { %25345 = vst [vmem:[#allocation94_spill] sm:$0xff] %v22302_v49  ;;  %10407 = vmatprep.subr.bf16.mxu1 %v21997_v21  ;;  %25349 = vst [vmem:[#allocation102_spill] sm:$0xff] %v22318_v52  ;;  %v22322_v24 = vpop.f32.mrb[11].mxu0  ;;  %v9438_v52 = vor.u32 %v9436_v26, %v9434_v19  ;;  %v11074_v38 = vsel %vm540_vm14, 1, %v21997_v21  ;;  %v9450_v26 = vrot.slane %v9448_v30, 1  ;;  %v22348_v43 = vld [vmem:[%s19201_s13 + $0x58] sm:$0xff]  }
 0x437   : > { %v5999_v35 = vpop.f32.mrb[28].mxu1  ;;  %25350 = vst [vmem:[#allocation142_spill] sm:$0xff] %v22322_v24  ;;  %v22334_v24 = vpop.permute.xlu0 %4498  ;;  %v25356_v3 = vld [vmem:[#allocation96_spill] sm:$0xff]  ;;  %vm24887_vm14 = vcmp.eq.s32.totalorder %v22042_v18, 1 }
 0x438   : > { %v6001_v46 = vpop.f32.mrb[29].mxu1  ;;  %v6313_v37 = vadd.f32 %v25348_v48, %v5999_v35  ;;  %v9435_v48 = vsel %vm7534_vm0, %v9430_v2, %v9434_v19  ;;  %11160 = vperm.xlu0 %17800, %v11073_v55   ;;  %25354 = vst [vmem:[#allocation105_spill] sm:$0xff] %v22334_v24  ;;  %v18274_v55 = vld [vmem:[#allocation10 + $0x298] sm:$0xff]   ;;  %v9446_v19 = vor.u32 %v9444_v40, %v9442_v61  ;;  %vm4595_vm4 = vcmp.eq.s32.totalorder %v25356_v3, 1 }
 0x439   : > { %v6002_v17 = vpop.f32.mrb[30].mxu1  ;;  %10408 = vmatpush1.bf16.msra.mxu1 %v18270_v25  ;;  %v22324_v46 = vpop.permute.xlu1 %4561  ;;  %v18343_v25 = vld [vmem:[%s19201_s13 + $0x70] sm:$0xff]   ;;  %vm4593_vm5 = vcmp.eq.s32.totalorder %v22334_v24, 1 }
 0x43a   : > { %25351 = vst [vmem:[#allocation143_spill] sm:$0xff] %v22324_v46  ;;  %v6004_v35 = vpop.f32.mrb[31].mxu1  ;;  %10409 = vmatprep.subr.bf16.mxu1 %v21997_v21  ;;  %v22329_v7 = vadd.f32 %v6313_v37, %v21827_v42  ;;  %v6316_v56 = vadd.f32 %v25353_v32, %v6002_v17  ;;  %v22344_v42 = vld [vmem:[%s19201_s13 + $0x78] sm:$0xff]   ;;  %v10737_v37 = vshll.u32 %v18343_v25, 16  ;;  %v18508_v17 = vld [vmem:[#allocation16 + $0xe8] sm:$0xff]  ;;  %v10741_v32 = vshrl.u32 %v18343_v25, 16 }
 0x43b   : > { %v22338_v35 = vld [vmem:[%s19201_s13 + $0x50] sm:$0xff]   ;;  %vm541_vm15 = vcmp.lt.f32.partialorder %v18508_v17, 15.0 }
 0x43c   : > { %25352 = vst [vmem:[#allocation144_spill] sm:$0xff] %v22329_v7  ;;  %16925 = vmatmul.mubr.msk.bf16.gmra.mrb[136].mxu1 %vm1617_vm2, %v9427_v39  ;;  %v22341_v2 = vadd.f32 %v6316_v56, %v21841_v12  ;;  %v10733_v39 = vshrl.u32 %v22270_v34, 16  ;;  %11163 = vperm.xlu0 %17800, %v11074_v38   ;;  %v10739_v12 = vrot.slane %v10737_v37, 1  ;;  %v10745_v56 = vshll.u32 %v22344_v42, 16  ;;  %v25358_v17 = vld [vmem:[#allocation100_spill] sm:$0xff] }
 0x43d   : > { %10410 = vmatpush1.bf16.msra.mxu1 %v18271_v45  ;;  %16928 = vmatprep.mubr.msk.bf16.mxu1 %vm1617_vm2, %v9435_v48  ;;  %v9443_v48 = vsel %vm7534_vm0, %v9438_v52, %v9442_v61  ;;  %v11075_v40 = vsel %vm541_vm15, 1, %v21997_v21  ;;  %v9456_v38 = vshll.u32 %v22338_v35, 16  ;;  %v9451_v61 = vsel %vm7534_vm0, %v9446_v19, %v9450_v26  ;;  %v18359_v18 = vld [vmem:[%s19201_s13 + $0x90] sm:$0xff]  }
 0x43e   : > { %25355 = vst [vmem:[#allocation145_spill] sm:$0xff] %v22341_v2  ;;  %10411 = vmatprep.subr.bf16.mxu1 %v21997_v21  ;;  %v10735_v30 = vor.u32 %v10733_v39, %v22284_v31  ;;  %v22357_v2 = vpop.permute.xlu1 %4564  ;;  %v10743_v25 = vor.u32 %v10741_v32, %v10739_v12  ;;  %v22361_v37 = vrot.slane %v10745_v56, 1  ;;  %v9452_v52 = vshrl.u32 %v22310_v27, 16  ;;  %v25360_v32 = vld [vmem:[#allocation104_spill] sm:$0xff] }
 0x43f   : > { %v6007_v45 = vpop.f32.mrb[32].mxu1  ;;  %25357 = vst [vmem:[#allocation146_spill] sm:$0xff] %v22357_v2  ;;  %v9464_v31 = vshll.u32 %v22348_v43, 16  ;;  %v9460_v19 = vshrl.u32 %v22338_v35, 16  ;;  %v9458_v35 = vrot.slane %v9456_v38, 1  ;;  %vm4603_vm15 = vcmp.eq.s32.totalorder %v22071_v23, 1 }
 0x440   : > { %v6321_v34 = vadd.f32 %v25358_v17, %v6007_v45  ;;  %v6009_v7 = vpop.f32.mrb[33].mxu1  ;;  %v10740_v39 = vsel %vm7534_vm0, %v10735_v30, %v10739_v12  ;;  %v22367_v45 = vpop.permute.xlu0 %4501  ;;  %11166 = vperm.xlu0 %17800, %v11075_v40   ;;  %v10748_v27 = vsel %vm7534_vm0, %v10743_v25, %v22361_v37  ;;  %v22382_v12 = vld [vmem:[%s19201_s13 + $0x68] sm:$0xff]  }
 0x441   : > { %v6010_v49 = vpop.f32.mrb[34].mxu1  ;;  %10412 = vmatpush1.bf16.msra.mxu1 %v18274_v55  ;;  %25359 = vst [vmem:[#allocation100_spill] sm:$0xff] %v22367_v45  ;;  %v22375_v55 = vld [vmem:[%s19201_s13 + $0x60] sm:$0xff]   ;;  %16980 = vmatprep.mubr.msk.bf16.mxu0 %vm1617_vm2, %v10740_v39  ;;  %v22392_v30 = vpop.f32.mrb[12].mxu0  ;;  %vm4594_vm9 = vcmp.eq.s32.totalorder %v22367_v45, 1  ;;  %v9454_v39 = vor.u32 %v9452_v52, %v9450_v26  ;;  %v9468_v26 = vshrl.u32 %v22348_v43, 16 }
 0x442   : > { %v22370_v7 = vadd.f32 %v6321_v34, %v21818_v60  ;;  %v6324_v56 = vadd.f32 %v25360_v32, %v6010_v49  ;;  %v6012_v17 = vpop.f32.mrb[35].mxu1  ;;  %10413 = vmatprep.subr.bf16.mxu1 %v21997_v21  ;;  %v18509_v60 = vld [vmem:[#allocation16 + $0xf0] sm:$0xff]  ;;  %16981 = vmatmul.mubr.msk.bf16.gmra.mrb[112].mxu0 %vm1617_vm2, %v10748_v27  ;;  %25362 = vst [vmem:[#allocation147_spill] sm:$0xff] %v22392_v30  ;;  %v25363_v34 = vld [vmem:[#allocation45_spill] sm:$0xff]  ;;  %v22403_v32 = vpop.permute.xlu1 %4567  ;;  %v9472_v27 = vshll.u32 %v22375_v55, 16  ;;  %v25369_v30 = vld [vmem:[#allocation51_spill] sm:$0xff] }
 0x443   : > { %vm542_vm6 = vcmp.lt.f32.partialorder %v18509_v60, 15.0  ;;  %v4627_v25 = vsel %vm4595_vm4, %v25363_v34, 0.0  ;;  %25365 = vst [vmem:[#allocation45_spill] sm:$0xff] %v22403_v32  ;;  %v9466_v17 = vrot.slane %v9464_v31, 1  ;;  %v14997_v52 = vld [vmem:[#allocation15] sm:$0xff]  ;;  %v25367_v31 = vld [vmem:[#allocation47_spill] sm:$0xff] }
 0x444   : > { %v22387_v49 = vadd.f32 %v6324_v56, %v21835_v44  ;;  %16929 = vmatmul.mubr.msk.bf16.gmra.mrb[140].mxu1 %vm1617_vm2, %v9443_v48  ;;  %v11076_v40 = vsel %vm542_vm6, 1, %v21997_v21  ;;  %v18281_v44 = vld [vmem:[#allocation10 + $0x2a8] sm:$0xff]   ;;  %v25364_v48 = vld [vmem:[#allocation46_spill] sm:$0xff]  ;;  %v9462_v56 = vor.u32 %v9460_v19, %v9458_v35  ;;  %v18510_v34 = vld [vmem:[#allocation16 + $0xf8] sm:$0xff]  ;;  %v4628_v24 = vsel %vm4596_vm7, %v25367_v31, 0.0 }
 0x445   : > { %16932 = vmatprep.mubr.msk.bf16.mxu1 %vm1617_vm2, %v9451_v61  ;;  %10414 = vmatpush1.bf16.msra.mxu1 %v18277_v50  ;;  %v4625_v38 = vsel %vm4593_vm5, %v25364_v48, 0.0  ;;  %v9480_v61 = vshll.u32 %v22382_v12, 16  ;;  %v22409_v50 = vpop.f32.mrb[13].mxu0  ;;  %vm543_vm1 = vcmp.lt.f32.partialorder %v18510_v34, 15.0  ;;  %v18284_v31 = vld [vmem:[#allocation10 + $0x2b0] sm:$0xff]   ;;  %v9470_v45 = vor.u32 %v9468_v26, %v9466_v17 }
 0x446   : > { %25361 = vst [vmem:[#allocation104_spill] sm:$0xff] %v22387_v49  ;;  %10415 = vmatprep.subr.bf16.mxu1 %v21997_v21  ;;  %11169 = vperm.xlu0 %17800, %v11076_v40   ;;  %25366 = vst [vmem:[#allocation46_spill] sm:$0xff] %v22409_v50  ;;  %v9476_v40 = vshrl.u32 %v22375_v55, 16  ;;  %v22416_v3 = vpop.f32.mrb[14].mxu0  ;;  %v11077_v43 = vsel %vm543_vm1, 1, %v21997_v21  ;;  %v4626_v50 = vsel %vm4594_vm9, %v25369_v30, 0.0 }
 0x447   : > { %v16842_v60 = vpop.f32.mrb[36].mxu1  ;;  %25368 = vst [vmem:[#allocation47_spill] sm:$0xff] %v22416_v3  ;;  %v22428_v55 = vsel %vm4599_vm8, %v25370_v1, 0.0  ;;  %v22431_v3 = vld [vmem:[%s19201_s13 + $0x78] sm:$0xff]   ;;  %v22433_v49 = vpop.f32.mrb[15].mxu0  ;;  %11172 = vperm.xlu1 %17801, %v11077_v43   ;;  %v9474_v1 = vrot.slane %v9472_v27, 1 }
 0x448   : > { %v7060_v48 = vadd.f32 %v16842_v60, %v21849_v59  ;;  %v7051_v19 = vpop.f32.mrb[37].mxu1  ;;  %v9459_v60 = vsel %vm7534_vm0, %v9454_v39, %v9458_v35  ;;  %25371 = vst [vmem:[#allocation51_spill] sm:$0xff] %v22433_v49  ;;  %v9467_v39 = vsel %vm7534_vm0, %v9462_v56, %v9466_v17  ;;  %v25372_v43 = vld [vmem:[#allocation107_spill] sm:$0xff]  ;;  %v22451_v56 = vld [vmem:[%s19201_s13 + $0x70] sm:$0xff]   ;;  %v9496_v26 = vshll.u32 %v22431_v3, 16 }
 0x449   : > { %v7052_v34 = vadd.f32 %v7051_v19, %v21815_v54  ;;  %v16843_v59 = vpop.f32.mrb[38].mxu1  ;;  %10416 = vmatpush1.bf16.msra.mxu1 %v18281_v44  ;;  %v18351_v44 = vld [vmem:[%s19201_s13 + $0x80] sm:$0xff]   ;;  %v22454_v27 = vld [vmem:[%s19201_s13 + $0x88] sm:$0xff]   ;;  %v25375_v49 = vld [vmem:[#allocation89_spill] sm:$0xff]  ;;  %vm24891_vm6 = vcmp.eq.s32.totalorder %v22088_v14, 1  ;;  %vm24893_vm1 = vcmp.eq.s32.totalorder %v22106_v51, 1 }
 0x44a   : > { %v7180_v54 = vadd.f32 %v7060_v48, %v21913_v63  ;;  %v7063_v30 = vadd.f32 %v16843_v59, %v21868_v22  ;;  %v7054_v35 = vpop.f32.mrb[39].mxu1  ;;  %10417 = vmatprep.subr.bf16.mxu1 %v21997_v21  ;;  %15000 = vperm.xlu0 %17800, %v14997_v52   ;;  %v22444_v63 = vrot.slane %v9480_v61, 1  ;;  %v25374_v22 = vld [vmem:[#allocation74_spill] sm:$0xff]  ;;  %v9478_v21 = vor.u32 %v9476_v40, %v9474_v1  ;;  %v18295_v14 = vld [vmem:[%s19201_s13 + $0x90] ss:$0 sps:$4 sm:$0x11]  }
 0x44b   : > { %v7178_v19 = vadd.f32 %v7052_v34, %v21873_v6  ;;  %v7055_v0 = vadd.f32 %v7054_v35, %v25372_v43  ;;  %v10753_v52 = vshll.u32 %v18351_v44, 16  ;;  %vm4601_vm13 = vcmp.eq.s32.totalorder %v25375_v49, 1  ;;  %v25377_v34 = vld [vmem:[#allocation110_spill] sm:$0xff]  ;;  %v25381_v43 = vld [vmem:[#allocation113_spill] sm:$0xff]  ;;  %v25402_v49 = vld [vmem:[#allocation31_spill] sm:$0xff] }
 0x44c   : > { %v22446_v48 = vadd.f32 %v7180_v54, %v4627_v25  ;;  %v7181_v59 = vadd.f32 %v7063_v30, %v25374_v22  ;;  %16933 = vmatmul.mubr.msk.bf16.gmra.mrb[144].mxu1 %vm1617_vm2, %v9459_v60  ;;  %v18288_v25 = vld [vmem:[#allocation10 + $0x2b8] sm:$0xff]   ;;  %v10749_v61 = vshrl.u32 %v22344_v42, 16  ;;  %v18511_v60 = vld [vmem:[#allocation3] sm:$0xff]  ;;  %v10757_v54 = vshrl.u32 %v18351_v44, 16  ;;  %v22468_v30 = vpop.permute.xlu1 %4570 }
 0x44d   : > { %v22457_v6 = vadd.f32 %v7178_v19, %v4625_v38  ;;  %v7179_v17 = vadd.f32 %v7055_v0, %v25377_v34  ;;  %16936 = vmatprep.mubr.msk.bf16.mxu1 %vm1617_vm2, %v9467_v39  ;;  %10418 = vmatpush1.bf16.msra.mxu1 %v18284_v31  ;;  %v10755_v38 = vrot.slane %v10753_v52, 1  ;;  %v10761_v0 = vshll.u32 %v22454_v27, 16  ;;  %25379 = vst [vmem:[#allocation110_spill] sm:$0xff] %v22468_v30  ;;  %v22475_v19 = vld [vmem:[%s19201_s13 + $0x80] sm:$0xff]  }
 0x44e   : > { %25373 = vst [vmem:[#allocation52_spill] sm:$0xff] %v22446_v48  ;;  %v22465_v40 = vadd.f32 %v7181_v59, %v4628_v24  ;;  %10419 = vmatprep.subr.bf16.mxu1 %v18511_v60  ;;  %v9475_v39 = vsel %vm7534_vm0, %v9470_v45, %v9474_v1  ;;  %v9484_v42 = vshrl.u32 %v22382_v12, 16  ;;  %v10751_v24 = vor.u32 %v10749_v61, %v22361_v37  ;;  %v18291_v1 = vld [vmem:[#allocation10 + $0x2c0] sm:$0xff]   ;;  %v25383_v61 = vld [vmem:[#allocation75_spill] sm:$0xff] }
 0x44f   : > { %25376 = vst [vmem:[#allocation107_spill] sm:$0xff] %v22457_v6  ;;  %v22470_v31 = vadd.f32 %v7179_v17, %v4626_v50  ;;  %v16846_v35 = vpop.f32.mrb[40].mxu1  ;;  %v9488_v44 = vshll.u32 %v22451_v56, 16  ;;  %v10759_v52 = vor.u32 %v10757_v54, %v10755_v38  ;;  %v22480_v34 = vrot.slane %v10761_v0, 1 }
 0x450   : > { %25378 = vst [vmem:[#allocation74_spill] sm:$0xff] %v22465_v40  ;;  %v7076_v22 = vadd.f32 %v16846_v35, %v25381_v43  ;;  %v7067_v59 = vpop.f32.mrb[41].mxu1  ;;  %v25382_v40 = vld [vmem:[#allocation109_spill] sm:$0xff]  ;;  %v9483_v45 = vsel %vm7534_vm0, %v9478_v21, %v22444_v63  ;;  %v9492_v12 = vshrl.u32 %v22451_v56, 16  ;;  %v10756_v37 = vsel %vm7534_vm0, %v10751_v24, %v10755_v38  ;;  %v25384_v43 = vld [vmem:[#allocation114_spill] sm:$0xff] }
 0x451   : > { %25380 = vst [vmem:[#allocation148_spill] sm:$0xff] %v22470_v31  ;;  %v7068_v50 = vadd.f32 %v7067_v59, %v25382_v40  ;;  %v16847_v17 = vpop.f32.mrb[42].mxu1  ;;  %10420 = vmatpush1.bf16.msra.mxu1 %v18288_v25  ;;  %v9498_v0 = vrot.slane %v9496_v26, 1  ;;  %v10764_v40 = vsel %vm7534_vm0, %v10759_v52, %v22480_v34  ;;  %16984 = vmatprep.mubr.msk.bf16.mxu0 %vm1617_vm2, %v10756_v37  ;;  %v25385_v21 = vld [vmem:[#allocation77_spill] sm:$0xff]  ;;  %v25386_v59 = vld [vmem:[#allocation111_spill] sm:$0xff]  ;;  %v9500_v31 = vshrl.u32 %v22431_v3, 16  ;;  %v22510_v3 = vpop.permute.xlu1 %4573 }
 0x452   : > { %v7184_v35 = vadd.f32 %v7076_v22, %v25383_v61  ;;  %v7079_v48 = vadd.f32 %v16847_v17, %v25384_v43  ;;  %v7070_v54 = vpop.f32.mrb[43].mxu1  ;;  %10421 = vmatprep.subr.bf16.mxu1 %v18511_v60  ;;  %v9504_v38 = vshll.u32 %v22475_v19, 16  ;;  %16985 = vmatmul.mubr.msk.bf16.gmra.mrb[116].mxu0 %vm1617_vm2, %v10764_v40  ;;  %v25388_v26 = vld [vmem:[#allocation49_spill] sm:$0xff]  ;;  %v25389_v52 = vld [vmem:[#allocation87_spill] sm:$0xff]  ;;  %v22508_v61 = vpop.f32.mrb[16].mxu0  ;;  %25390 = vst [vmem:[#allocation109_spill] sm:$0xff] %v22510_v3 }
 0x453   : > { %v7182_v25 = vadd.f32 %v7068_v50, %v25385_v21  ;;  %v7071_v56 = vadd.f32 %v7070_v54, %v25386_v59  ;;  %v4629_v22 = vsel %vm4597_vm10, %v25388_v26, 0.0  ;;  %v9490_v50 = vrot.slane %v9488_v44, 1  ;;  %v22506_v37 = vld [vmem:[%s19201_s13 + $0x88] sm:$0xff]   ;;  %v25392_v54 = vld [vmem:[#allocation50_spill] sm:$0xff] }
 0x454   : > { %v22498_v24 = vadd.f32 %v7184_v35, %v22428_v55  ;;  %v7185_v17 = vadd.f32 %v7079_v48, %v25389_v52  ;;  %16937 = vmatmul.mubr.msk.bf16.gmra.mrb[148].mxu1 %vm1617_vm2, %v9475_v39  ;;  %v4632_v55 = vsel %vm24881_vm11, %v25392_v54, 0.0  ;;  %v25393_v35 = vld [vmem:[#allocation118_spill] sm:$0xff]  ;;  %v9486_v21 = vor.u32 %v9484_v42, %v22444_v63  ;;  %v18297_v48 = vld [vmem:[#allocation10 + $0x2c8] sm:$0xff]   ;;  %v22529_v42 = vpop.f32.mrb[17].mxu0 }
 0x455   : > { %v22512_v43 = vadd.f32 %v7182_v25, %v4629_v22  ;;  %v7183_v40 = vadd.f32 %v7071_v56, %v25393_v35  ;;  %16940 = vmatprep.mubr.msk.bf16.mxu1 %vm1617_vm2, %v9483_v45  ;;  %10422 = vmatpush1.bf16.msra.mxu1 %v18291_v1  ;;  %v25395_v44 = vld [vmem:[#allocation26_spill] sm:$0xff]  ;;  %v9494_v59 = vor.u32 %v9492_v12, %v9490_v50  ;;  %v9506_v52 = vrot.slane %v9504_v38, 1  ;;  %v25397_v45 = vld [vmem:[#allocation117_spill] sm:$0xff] }
 0x456   : > { %25387 = vst [vmem:[#allocation113_spill] sm:$0xff] %v22498_v24  ;;  %v22521_v39 = vadd.f32 %v7185_v17, %v4632_v55  ;;  %v4630_v25 = vsel %vm24882_vm12, %v25395_v44, 0.0  ;;  %10423 = vmatprep.subr.bf16.mxu1 %v18511_v60  ;;  %v9502_v56 = vor.u32 %v9500_v31, %v9498_v0  ;;  %v9508_v63 = vshrl.u32 %v22475_v19, 16  ;;  %v25398_v17 = vld [vmem:[#allocation27_spill] sm:$0xff]  ;;  %v22538_v31 = vpop.f32.mrb[18].mxu0  ;;  %v25399_v19 = vld [vmem:[#allocation29_spill] sm:$0xff] }
 0x457   : > { %25391 = vst [vmem:[#allocation75_spill] sm:$0xff] %v22512_v43  ;;  %v22526_v26 = vadd.f32 %v7183_v40, %v4630_v25  ;;  %v16850_v22 = vpop.f32.mrb[44].mxu1  ;;  %vm24894_vm11 = vcmp.eq.s32.totalorder %v22152_v8, 1  ;;  %v4633_v60 = vsel %vm4601_vm13, %v25398_v17, 0.0  ;;  %v9512_v54 = vshll.u32 %v22506_v37, 16  ;;  %v25400_v55 = vld [vmem:[#allocation115_spill] sm:$0xff] }
 0x458   : > { %25394 = vst [vmem:[#allocation114_spill] sm:$0xff] %v22521_v39  ;;  %v7092_v1 = vadd.f32 %v16850_v22, %v25397_v45  ;;  %v7083_v12 = vpop.f32.mrb[45].mxu1  ;;  %v4635_v38 = vsel %vm4603_vm15, %v25399_v19, 0.0  ;;  %vm24892_vm12 = vcmp.eq.s32.totalorder %v22168_v11, 1  ;;  %v25401_v44 = vld [vmem:[#allocation28_spill] sm:$0xff]  ;;  %v9491_v22 = vsel %vm7534_vm0, %v9486_v21, %v9490_v50  ;;  %v22552_v17 = vpop.f32.mrb[19].mxu0 }
 0x459   : > { %25396 = vst [vmem:[#allocation77_spill] sm:$0xff] %v22526_v26  ;;  %v7084_v35 = vadd.f32 %v7083_v12, %v25400_v55  ;;  %v16851_v40 = vpop.f32.mrb[46].mxu1  ;;  %v4634_v25 = vsel %vm24887_vm14, %v25401_v44, 0.0  ;;  %10424 = vmatpush1.bf16.msra.mxu1 %v18297_v48  ;;  %v22550_v45 = vld [vmem:[%s19209_s21 + $0x34] ss:$8 sps:$4 sm:$0xff]   ;;  %v4636_v19 = vsel %vm24891_vm6, %v25402_v49, 0.0  ;;  %v9499_v44 = vsel %vm7534_vm0, %v9494_v59, %v9498_v0  ;;  %v22562_v50 = vpop.permute.xlu1 %4576 }
 0x45a   : > { %v7188_v23 = vadd.f32 %v7092_v1, %v22055_v16  ;;  %v25403_v12 = vld [vmem:[#allocation59_spill] sm:$0xff]  ;;  %v7086_v62 = vpop.f32.mrb[47].mxu1  ;;  %vm4606_vm14 = vcmp.eq.s32.totalorder %v22127_v41, 1  ;;  %25404 = vst [vmem:[#allocation111_spill] sm:$0xff] %v22562_v50  ;;  %v25405_v48 = vld [vmem:[#allocation76_spill] sm:$0xff]  ;;  %v9507_v49 = vsel %vm7534_vm0, %v9502_v56, %v9506_v52  ;;  %v9510_v16 = vor.u32 %v9508_v63, %v9506_v52  ;;  %v25408_v39 = vld [vmem:[#allocation65_spill] sm:$0xff] }
 0x45b   : > { %v7095_v55 = vadd.f32 %v16851_v40, %v25403_v12  ;;  %v7186_v21 = vadd.f32 %v7084_v35, %v22022_v28  ;;  %v7087_v57 = vadd.f32 %v7086_v62, %v25405_v48  ;;  %v9514_v0 = vrot.slane %v9512_v54, 1  ;;  %v18360_v59 = vld [vmem:[%s19201_s13 + $0x98] ss:$0 sps:$4 sm:$0x11]   ;;  %v22582_v52 = vld [vmem:[%s19209_s21 + $0x44] ss:$8 sps:$4 sm:$0xff]  }
 0x45c   : > { %v22568_v1 = vadd.f32 %v7188_v23, %v4635_v38  ;;  %16941 = vmatmul.mubr.msk.bf16.gmra.mrb[152].mxu1 %vm1617_vm2, %v9491_v22  ;;  %v10769_v12 = vshll.u32 %v18359_v18, 16  ;;  %v10032_v62 = vshll.u32 %v22550_v45, 16  ;;  %v10765_v56 = vshrl.u32 %v22454_v27, 16  ;;  %v25411_v22 = vld [vmem:[#allocation121_spill] sm:$0xff]  ;;  %v22726_v8 = vld [vmem:[%s19209_s21 + $0x60] ss:$8 sps:$4 sm:$0xff]  }
 0x45d   : > { %v7189_v40 = vadd.f32 %v7095_v55, %v22063_v58  ;;  %v22573_v10 = vadd.f32 %v7186_v21, %v4633_v60  ;;  %v7187_v28 = vadd.f32 %v7087_v57, %v25408_v39  ;;  %16944 = vmatprep.mubr.msk.bf16.mxu1 %vm1617_vm2, %v9499_v44  ;;  %v10773_v63 = vshrl.u32 %v18359_v18, 16  ;;  %v22592_v44 = vld [vmem:[%s19209_s21 + $0x30] ss:$8 sps:$4 sm:$0xff]   ;;  %v22594_v48 = vpop.permute.xlu1 %4579 }
 0x45e   : > { %25406 = vst [vmem:[#allocation49_spill] sm:$0xff] %v22568_v1  ;;  %v10771_v58 = vrot.slane %v10769_v12, 1  ;;  %v10777_v54 = vshll.u32 %v18360_v59, 16  ;;  %vm24901_vm6 = vcmp.eq.s32.totalorder %v22190_v36, 1  ;;  %v9516_v57 = vshrl.u32 %v22506_v37, 16  ;;  %25412 = vst [vmem:[#allocation26_spill] sm:$0xff] %v22594_v48 }
 0x45f   : > { %25407 = vst [vmem:[#allocation87_spill] sm:$0xff] %v22573_v10  ;;  %v22579_v23 = vadd.f32 %v7189_v40, %v4636_v19  ;;  %v22585_v60 = vadd.f32 %v7187_v28, %v4634_v25  ;;  %v16854_v38 = vpop.f32.mrb[48].mxu1  ;;  %v9520_v39 = vshll.u32 %v18295_v14, 16  ;;  %v10767_v35 = vor.u32 %v10765_v56, %v22480_v34  ;;  %v25413_v40 = vld [vmem:[#allocation61_spill] sm:$0xff]  ;;  %v25414_v28 = vld [vmem:[#allocation58_spill] sm:$0xff]  ;;  %v25500_v1 = vld [vmem:[#allocation136_spill] sm:$0xff] }
 0x460   : > { %v7108_v55 = vadd.f32 %v16854_v38, %v25411_v22  ;;  %v7099_v27 = vpop.f32.mrb[49].mxu1  ;;  %v9515_v19 = vsel %vm7534_vm0, %v9510_v16, %v9514_v0  ;;  %v10775_v21 = vor.u32 %v10773_v63, %v10771_v58  ;;  %v10779_v18 = vrot.slane %v10777_v54, 1  ;;  %v25415_v54 = vld [vmem:[#allocation53_spill] sm:$0xff] }
 0x461   : > { %25409 = vst [vmem:[#allocation50_spill] sm:$0xff] %v22579_v23  ;;  %25410 = vst [vmem:[#allocation118_spill] sm:$0xff] %v22585_v60  ;;  %v7100_v25 = vadd.f32 %v7099_v27, %v25413_v40  ;;  %v16855_v59 = vpop.f32.mrb[50].mxu1  ;;  %v10030_v12 = vshrl.u32 %v22550_v45, 16  ;;  %v10034_v37 = vrot.slane %v10032_v62, 1  ;;  %v10772_v14 = vsel %vm7534_vm0, %v10767_v35, %v10771_v58  ;;  %v25416_v45 = vld [vmem:[#allocation55_spill] sm:$0xff] }
 0x462   : > { %v7192_v34 = vadd.f32 %v7108_v55, %v22109_v13  ;;  %v7111_v56 = vadd.f32 %v16855_v59, %v25414_v28  ;;  %v7102_v16 = vpop.f32.mrb[51].mxu1  ;;  %v10037_v38 = vshll.u32 %v22582_v52, 16  ;;  %v10780_v63 = vsel %vm7534_vm0, %v10775_v21, %v10779_v18  ;;  %16988 = vmatprep.mubr.msk.bf16.mxu0 %vm1617_vm2, %v10772_v14  ;;  %v25417_v58 = vld [vmem:[#allocation119_spill] sm:$0xff]  ;;  %v25418_v55 = vld [vmem:[#allocation56_spill] sm:$0xff]  ;;  %v22624_v14 = vpop.f32.mrb[20].mxu0 }
 0x463   : > { %v4637_v22 = vsel %vm24893_vm1, %v25415_v54, 0.0  ;;  %v4639_v62 = vsel %vm24894_vm11, %v25416_v45, 0.0  ;;  %v7190_v13 = vadd.f32 %v7100_v25, %v22081_v15  ;;  %v7103_v35 = vadd.f32 %v7102_v16, %v25417_v58  ;;  %16989 = vmatmul.mubr.msk.bf16.gmra.mrb[120].mxu0 %vm1617_vm2, %v10780_v63  ;;  %v22621_v40 = vld [vmem:[%s19209_s21 + $0x40] ss:$8 sps:$4 sm:$0xff]   ;;  %v18342_v23 = vld [vmem:[%s19209_s21 + $0xd4] ss:$8 sps:$4 sm:$0xff]  }
 0x464   : > { %v4640_v27 = vsel %vm24892_vm12, %v25418_v55, 0.0  ;;  %v22616_v21 = vadd.f32 %v7192_v34, %v4639_v62  ;;  %v7193_v18 = vadd.f32 %v7111_v56, %v22120_v9  ;;  %16945 = vmatmul.mubr.msk.bf16.gmra.mrb[156].mxu1 %vm1617_vm2, %v9507_v49  ;;  %v10020_v59 = vshll.u32 %v22592_v44, 16  ;;  %v25421_v25 = vld [vmem:[#allocation126_spill] sm:$0xff] }
 0x465   : > { %v22626_v15 = vadd.f32 %v7190_v13, %v4637_v22  ;;  %v7191_v28 = vadd.f32 %v7103_v35, %v25421_v25  ;;  %v9518_v16 = vor.u32 %v9516_v57, %v9514_v0  ;;  %v9522_v63 = vrot.slane %v9520_v39, 1  ;;  %16948 = vmatprep.mubr.msk.bf16.mxu1 %vm1617_vm2, %v9515_v19  ;;  %v22631_v34 = vld [vmem:[%s19209_s21 + $0x54] ss:$8 sps:$4 sm:$0xff]   ;;  %v22641_v0 = vpop.permute.xlu1 %4582 }
 0x466   : > { %25419 = vst [vmem:[#allocation117_spill] sm:$0xff] %v22616_v21  ;;  %v25422_v54 = vld [vmem:[#allocation54_spill] sm:$0xff]  ;;  %v22636_v49 = vadd.f32 %v7193_v18, %v4640_v27  ;;  %v10035_v56 = vor.u32 %v10034_v37, %v10030_v12  ;;  %v10039_v45 = vrot.slane %v10037_v38, 1  ;;  %vm24902_vm12 = vcmp.eq.s32.totalorder %v22214_v20, 1  ;;  %25424 = vst [vmem:[#allocation115_spill] sm:$0xff] %v22641_v0  ;;  %v22648_v37 = vpop.f32.mrb[21].mxu0 }
 0x467   : > { %25420 = vst [vmem:[#allocation27_spill] sm:$0xff] %v22626_v15  ;;  %v4638_v9 = vsel %vm4606_vm14, %v25422_v54, 0.0  ;;  %vm24910_vm1 = vcmp.eq.s32.totalorder %v22244_v4, 1  ;;  %vm24900_vm11 = vcmp.eq.s32.totalorder %v22277_v5, 1  ;;  %v16858_v39 = vpop.f32.mrb[52].mxu1  ;;  %v25426_v19 = vld [vmem:[#allocation122_spill] sm:$0xff]  ;;  %v9523_v27 = vsel %vm7534_vm0, %v9518_v16, %v9522_v63 }
 0x468   : > { %25423 = vst [vmem:[#allocation29_spill] sm:$0xff] %v22636_v49  ;;  %v22643_v57 = vadd.f32 %v7191_v28, %v4638_v9  ;;  %v7124_v22 = vadd.f32 %v16858_v39, %v25426_v19  ;;  %v7115_v62 = vpop.f32.mrb[53].mxu1  ;;  %v10018_v13 = vshrl.u32 %v22592_v44, 16  ;;  %v10022_v58 = vrot.slane %v10020_v59, 1  ;;  %v25427_v38 = vld [vmem:[#allocation60_spill] sm:$0xff]  ;;  %v22654_v28 = vpop.f32.mrb[22].mxu0 }
 0x469   : > { %v10025_v12 = vshll.u32 %v22621_v40, 16  ;;  %v7116_v35 = vadd.f32 %v7115_v62, %v25427_v38  ;;  %v16859_v55 = vpop.f32.mrb[54].mxu1  ;;  %v10049_v18 = vshrl.u32 %v22582_v52, 16  ;;  %v10053_v25 = vshll.u32 %v22631_v34, 16  ;;  %v25428_v54 = vld [vmem:[#allocation32_spill] sm:$0xff]  ;;  %v25429_v9 = vld [vmem:[#allocation63_spill] sm:$0xff] }
 0x46a   : > { %25425 = vst [vmem:[#allocation28_spill] sm:$0xff] %v22643_v57  ;;  %v4641_v44 = vsel %vm24901_vm6, %v25428_v54, 0.0  ;;  %v7196_v59 = vadd.f32 %v7124_v22, %v22161_v29  ;;  %v7127_v39 = vadd.f32 %v16859_v55, %v25429_v9  ;;  %v7118_v19 = vpop.f32.mrb[55].mxu1  ;;  %v10040_v62 = vsel %vm7534_vm0, %v10035_v56, %v10039_v45  ;;  %v22662_v38 = vpop.f32.mrb[23].mxu0  ;;  %v25430_v16 = vld [vmem:[#allocation33_spill] sm:$0xff]  ;;  %v25431_v63 = vld [vmem:[#allocation34_spill] sm:$0xff] }
 0x46b   : > { %v4643_v52 = vsel %vm24910_vm1, %v25430_v16, 0.0  ;;  %v4644_v41 = vsel %vm24900_vm11, %v25431_v63, 0.0  ;;  %v7194_v54 = vadd.f32 %v7116_v35, %v22131_v53  ;;  %v25432_v29 = vld [vmem:[#allocation78_spill] sm:$0xff]  ;;  %v10023_v56 = vor.u32 %v10022_v58, %v10018_v13  ;;  %v25435_v16 = vld [vmem:[#allocation73_spill] sm:$0xff]  ;;  %v25436_v35 = vld [vmem:[#allocation35_spill] sm:$0xff] }
 0x46c   : > { %v7119_v22 = vadd.f32 %v7118_v19, %v25432_v29  ;;  %v22672_v55 = vadd.f32 %v7196_v59, %v4643_v52  ;;  %v7197_v9 = vadd.f32 %v7127_v39, %v22171_v47  ;;  %16949 = vmatmul.mubr.msk.bf16.gmra.mrb[160].mxu1 %vm1617_vm2, %v9523_v27  ;;  %v10027_v36 = vrot.slane %v10025_v12, 1  ;;  %v22681_v63 = vld [vmem:[%s19209_s21 + $0x50] ss:$8 sps:$4 sm:$0xff]   ;;  %v22689_v47 = vld [vmem:[%s19209_s21 + $0x64] ss:$8 sps:$4 sm:$0xff]   ;;  %v22696_v12 = vpop.permute.xlu1 %4585 }
 0x46d   : > { %v22676_v11 = vadd.f32 %v7194_v54, %v4641_v44  ;;  %16071 = vmatprep.mubr.msk.bf16.mxu1 %vm1151_vm3, %v10040_v62  ;;  %v10051_v5 = vor.u32 %v10049_v18, %v10039_v45  ;;  %v10055_v53 = vrot.slane %v10053_v25, 1  ;;  %v4642_v59 = vsel %vm24902_vm12, %v25436_v35, 0.0  ;;  %25439 = vst [vmem:[#allocation121_spill] sm:$0xff] %v22696_v12  ;;  %v25440_v45 = vld [vmem:[#allocation124_spill] sm:$0xff]  ;;  %v25442_v54 = vld [vmem:[#allocation79_spill] sm:$0xff]  ;;  %v25450_v20 = vld [vmem:[#allocation97_spill] sm:$0xff] }
 0x46e   : > { %25433 = vst [vmem:[#allocation31_spill] sm:$0xff] %v22672_v55  ;;  %v7195_v4 = vadd.f32 %v7119_v22, %v25435_v16  ;;  %v22686_v19 = vadd.f32 %v7197_v9, %v4644_v41  ;;  %vm24908_vm2 = vcmp.eq.s32.totalorder %v22299_v33, 1  ;;  %vm24909_vm11 = vcmp.eq.s32.totalorder %v22357_v2, 1  ;;  %v25441_v41 = vld [vmem:[#allocation83_spill] sm:$0xff]  ;;  %v25443_v22 = vld [vmem:[#allocation62_spill] sm:$0xff]  ;;  %v25463_v2 = vld [vmem:[#allocation40_spill] sm:$0xff] }
 0x46f   : > { %25434 = vst [vmem:[#allocation59_spill] sm:$0xff] %v22676_v11  ;;  %v16862_v58 = vpop.f32.mrb[56].mxu1  ;;  %vm24907_vm6 = vcmp.eq.s32.totalorder %v22403_v32, 1  ;;  %v10028_v25 = vsel %vm7534_vm0, %v10023_v56, %v10027_v36  ;;  %v10041_v62 = vshrl.u32 %v22621_v40, 16  ;;  %v10056_v52 = vsel %vm7534_vm0, %v10051_v5, %v10055_v53  ;;  %v22708_v56 = vpop.f32.mrb[24].mxu0  ;;  %v25444_v40 = vld [vmem:[#allocation36_spill] sm:$0xff] }
 0x470   : > { %25437 = vst [vmem:[#allocation76_spill] sm:$0xff] %v22686_v19  ;;  %v22692_v13 = vadd.f32 %v7195_v4, %v4642_v59  ;;  %v7140_v27 = vadd.f32 %v16862_v58, %v25440_v45  ;;  %v7131_v18 = vpop.f32.mrb[57].mxu1  ;;  %v10045_v4 = vshll.u32 %v22681_v63, 16  ;;  %v10065_v35 = vshrl.u32 %v22631_v34, 16  ;;  %v25445_v5 = vld [vmem:[#allocation98_spill] sm:$0xff]  ;;  %v25448_v34 = vld [vmem:[#allocation48_spill] sm:$0xff] }
 0x471   : > { %v7132_v44 = vadd.f32 %v7131_v18, %v25441_v41  ;;  %v16863_v39 = vpop.f32.mrb[58].mxu1  ;;  %v10069_v59 = vshll.u32 %v22689_v47, 16  ;;  %vm4614_vm12 = vcmp.eq.s32.totalorder %v22324_v46, 1  ;;  %v4647_v58 = vsel %vm24909_vm11, %v25444_v40, 0.0  ;;  %v25446_v18 = vld [vmem:[#allocation86_spill] sm:$0xff]  ;;  %v25447_v41 = vld [vmem:[#allocation57_spill] sm:$0xff] }
 0x472   : > { %25438 = vst [vmem:[#allocation65_spill] sm:$0xff] %v22692_v13  ;;  %v7200_v29 = vadd.f32 %v7140_v27, %v25442_v54  ;;  %v7143_v9 = vadd.f32 %v16863_v39, %v25443_v22  ;;  %v7134_v16 = vpop.f32.mrb[59].mxu1  ;;  %v4645_v39 = vsel %vm24908_vm2, %v25447_v41, 0.0  ;;  %v4648_v54 = vsel %vm24907_vm6, %v25448_v34, 0.0  ;;  %v22733_v41 = vld [vmem:[%s19209_s21 + $0x74] ss:$8 sps:$4 sm:$0xff]  }
 0x473   : > { %v7198_v45 = vadd.f32 %v7132_v44, %v25445_v5  ;;  %v7135_v27 = vadd.f32 %v7134_v16, %v25446_v18  ;;  %v25452_v44 = vld [vmem:[#allocation84_spill] sm:$0xff]  ;;  %v10047_v16 = vrot.slane %v10045_v4, 1  ;;  %v10043_v18 = vor.u32 %v10041_v62, %v10027_v36  ;;  %v25453_v33 = vld [vmem:[#allocation38_spill] sm:$0xff]  ;;  %v22747_v62 = vpop.f32.mrb[25].mxu0 }
 0x474   : > { %v22722_v22 = vadd.f32 %v7200_v29, %v4647_v58  ;;  %v7201_v51 = vadd.f32 %v7143_v9, %v25450_v20  ;;  %10438 = vmatmul.mubr.bf16.vlgmr.msra.gmra.mrb[164].mxu1 %v10028_v25  ;;  %v4646_v29 = vsel %vm4614_vm12, %v25453_v33, 0.0  ;;  %v22738_v58 = vpop.permute.xlu1 %4588  ;;  %v10067_v25 = vor.u32 %v10065_v35, %v10055_v53  ;;  %v25457_v33 = vld [vmem:[#allocation125_spill] sm:$0xff]  ;;  %v18339_v11 = vld [vmem:[%s19209_s21 + $0xc4] ss:$8 sps:$4 sm:$0xff]  }
 0x475   : > { %v22728_v40 = vadd.f32 %v7198_v45, %v4645_v39  ;;  %v7199_v5 = vadd.f32 %v7135_v27, %v25452_v44  ;;  %16072 = vmatprep.mubr.msk.bf16.mxu1 %vm1151_vm3, %v10056_v52  ;;  %25454 = vst [vmem:[#allocation53_spill] sm:$0xff] %v22738_v58  ;;  %v10071_v9 = vrot.slane %v10069_v59, 1  ;;  %vm24917_vm6 = vcmp.eq.s32.totalorder %v22468_v30, 1  ;;  %v25458_v35 = vld [vmem:[#allocation81_spill] sm:$0xff]  ;;  %v22757_v44 = vpop.f32.mrb[26].mxu0  ;;  %v25464_v30 = vld [vmem:[#allocation138_spill] sm:$0xff] }
 0x476   : > { %25449 = vst [vmem:[#allocation61_spill] sm:$0xff] %v22722_v22  ;;  %v22740_v20 = vadd.f32 %v7201_v51, %v4648_v54  ;;  %vm24919_vm2 = vcmp.eq.s32.totalorder %v22510_v3, 1  ;;  %vm24918_vm11 = vcmp.eq.s32.totalorder %v22562_v50, 1  ;;  %vm24916_vm1 = vcmp.eq.s32.totalorder %v22594_v48, 1  ;;  %v25465_v22 = vld [vmem:[#allocation64_spill] sm:$0xff] }
 0x477   : > { %25451 = vst [vmem:[#allocation58_spill] sm:$0xff] %v22728_v40  ;;  %v22745_v4 = vadd.f32 %v7199_v5, %v4646_v29  ;;  %v16866_v36 = vpop.f32.mrb[60].mxu1  ;;  %v10057_v51 = vshrl.u32 %v22681_v63, 16  ;;  %v10061_v53 = vshll.u32 %v22726_v8, 16  ;;  %v10048_v39 = vsel %vm7534_vm0, %v10043_v18, %v10047_v16  ;;  %v25459_v5 = vld [vmem:[#allocation30_spill] sm:$0xff]  ;;  %v25461_v63 = vld [vmem:[#allocation67_spill] sm:$0xff] }
 0x478   : > { %25455 = vst [vmem:[#allocation55_spill] sm:$0xff] %v22740_v20  ;;  %v7156_v52 = vadd.f32 %v16866_v36, %v25457_v33  ;;  %v7147_v45 = vpop.f32.mrb[61].mxu1  ;;  %v10081_v34 = vshrl.u32 %v22689_v47, 16  ;;  %v10085_v54 = vshll.u32 %v22733_v41, 16  ;;  %v4649_v29 = vsel %vm24917_vm6, %v25459_v5, 0.0  ;;  %v25460_v36 = vld [vmem:[#allocation91_spill] sm:$0xff]  ;;  %v22778_v40 = vpop.permute.xlu1 %4591 }
 0x479   : > { %25456 = vst [vmem:[#allocation119_spill] sm:$0xff] %v22745_v4  ;;  %v7148_v59 = vadd.f32 %v7147_v45, %v25458_v35  ;;  %v16867_v27 = vpop.f32.mrb[62].mxu1  ;;  %v10072_v45 = vsel %vm7534_vm0, %v10067_v25, %v10071_v9  ;;  %v22765_v35 = vpop.f32.mrb[27].mxu0  ;;  %v25462_v18 = vld [vmem:[#allocation39_spill] sm:$0xff]  ;;  %v4652_v20 = vsel %vm24916_vm1, %v25463_v2, 0.0  ;;  %v10063_v25 = vrot.slane %v10061_v53, 1 }
 0x47a   : > { %v7204_v33 = vadd.f32 %v7156_v52, %v25460_v36  ;;  %v7159_v46 = vadd.f32 %v16867_v27, %v25461_v63  ;;  %v7150_v32 = vpop.f32.mrb[63].mxu1  ;;  %v4651_v47 = vsel %vm24918_vm11, %v25462_v18, 0.0  ;;  %v25467_v36 = vld [vmem:[#allocation94_spill] sm:$0xff]  ;;  %v10059_v4 = vor.u32 %v10057_v51, %v10047_v16  ;;  %25468 = vst [vmem:[#allocation126_spill] sm:$0xff] %v22778_v40  ;;  %v25470_v18 = vld [vmem:[#allocation95_spill] sm:$0xff]  ;;  %v25483_v48 = vld [vmem:[#allocation104_spill] sm:$0xff] }
 0x47b   : > { %v7202_v5 = vadd.f32 %v7148_v59, %v25464_v30  ;;  %v7151_v52 = vadd.f32 %v7150_v32, %v25465_v22  ;;  %v22785_v2 = vld [vmem:[%s19209_s21 + $0x70] ss:$8 sps:$4 sm:$0xff]   ;;  %v10083_v30 = vor.u32 %v10081_v34, %v10071_v9  ;;  %v10087_v59 = vrot.slane %v10085_v54, 1  ;;  %v22793_v53 = vld [vmem:[%s19209_s21 + $0x84] ss:$8 sps:$4 sm:$0xff]  }
 0x47c   : > { %v22775_v27 = vadd.f32 %v7204_v33, %v4651_v47  ;;  %v7205_v63 = vadd.f32 %v7159_v46, %v25467_v36  ;;  %10446 = vmatmul.mubr.bf16.gmra.mrb[168].mxu1 %v10048_v39  ;;  %v25471_v32 = vld [vmem:[#allocation37_spill] sm:$0xff]  ;;  %vm4621_vm1 = vcmp.eq.s32.totalorder %v22641_v0, 1  ;;  %v22798_v39 = vpop.f32.mrb[28].mxu0  ;;  %vm4623_vm6 = vcmp.eq.s32.totalorder %v22738_v58, 1  ;;  %v25474_v9 = vld [vmem:[#allocation88_spill] sm:$0xff] }
 0x47d   : > { %v22780_v50 = vadd.f32 %v7202_v5, %v4649_v29  ;;  %v7203_v19 = vadd.f32 %v7151_v52, %v25470_v18  ;;  %16073 = vmatprep.mubr.msk.bf16.mxu1 %vm1151_vm3, %v10072_v45  ;;  %v4650_v22 = vsel %vm24919_vm2, %v25471_v32, 0.0  ;;  %vm4624_vm11 = vcmp.eq.s32.totalorder %v22778_v40, 1  ;;  %v9184_v52 = vpop.f32.mrb[29].mxu0  ;;  %v25486_v40 = vld [vmem:[#allocation43_spill] sm:$0xff]  ;;  %v18332_v55 = vld [vmem:[%s19209_s21 + $0xb0] ss:$8 sps:$4 sm:$0xff]  }
 0x47e   : > { %25466 = vst [vmem:[#allocation56_spill] sm:$0xff] %v22775_v27  ;;  %v22790_v46 = vadd.f32 %v7205_v63, %v4652_v20  ;;  %v10064_v29 = vsel %vm7534_vm0, %v10059_v4, %v10063_v25  ;;  %v25475_v20 = vld [vmem:[#allocation90_spill] sm:$0xff]  ;;  %v10073_v47 = vshrl.u32 %v22726_v8, 16  ;;  %v10088_v5 = vsel %vm7534_vm0, %v10083_v30, %v10087_v59  ;;  %v25476_v63 = vld [vmem:[#allocation68_spill] sm:$0xff]  ;;  %v22812_v4 = vpop.f32.mrb[30].mxu0 }
 0x47f   : > { %25469 = vst [vmem:[#allocation54_spill] sm:$0xff] %v22780_v50  ;;  %v22796_v16 = vadd.f32 %v7203_v19, %v4650_v22  ;;  %v16870_v51 = vpop.f32.mrb[64].mxu1  ;;  %v10077_v19 = vshll.u32 %v22785_v2, 16  ;;  %v10097_v22 = vshrl.u32 %v22733_v41, 16  ;;  %vm24926_vm2 = vcmp.eq.s32.totalorder %v22696_v12, 1  ;;  %v25478_v30 = vld [vmem:[#allocation144_spill] sm:$0xff] }
 0x480   : > { %25472 = vst [vmem:[#allocation122_spill] sm:$0xff] %v22790_v46  ;;  %v7172_v34 = vadd.f32 %v16870_v51, %v25474_v9  ;;  %v7163_v54 = vpop.f32.mrb[65].mxu1  ;;  %v10101_v51 = vshll.u32 %v22793_v53, 16  ;;  %v25477_v9 = vld [vmem:[#allocation42_spill] sm:$0xff]  ;;  %v25481_v52 = vld [vmem:[#allocation44_spill] sm:$0xff] }
 0x481   : > { %25473 = vst [vmem:[#allocation60_spill] sm:$0xff] %v22796_v16  ;;  %v7164_v33 = vadd.f32 %v7163_v54, %v25475_v20  ;;  %v16871_v45 = vpop.f32.mrb[66].mxu1  ;;  %v4655_v8 = vsel %vm4623_vm6, %v25477_v9, 0.0  ;;  %v25479_v20 = vld [vmem:[#allocation127_spill] sm:$0xff]  ;;  %v18334_v46 = vld [vmem:[%s19209_s21 + $0xb4] ss:$8 sps:$4 sm:$0xff]  }
 0x482   : > { %v7208_v36 = vadd.f32 %v7172_v34, %v22370_v7  ;;  %v7175_v18 = vadd.f32 %v16871_v45, %v25476_v63  ;;  %v7166_v32 = vpop.f32.mrb[67].mxu1  ;;  %v9187_v34 = vpop.f32.mrb[31].mxu0  ;;  %v25480_v45 = vld [vmem:[#allocation41_spill] sm:$0xff]  ;;  %v4656_v63 = vsel %vm4624_vm11, %v25481_v52, 0.0  ;;  %v25493_v27 = vld [vmem:[#allocation72_spill] sm:$0xff] }
 0x483   : > { %v7206_v54 = vadd.f32 %v7164_v33, %v25478_v30  ;;  %v7167_v7 = vadd.f32 %v7166_v32, %v25479_v20  ;;  %v4653_v41 = vsel %vm4621_vm1, %v25480_v45, 0.0  ;;  %v22829_v9 = vpop.f32.mrb[32].mxu0  ;;  %v25485_v32 = vld [vmem:[#allocation145_spill] sm:$0xff]  ;;  %v10079_v20 = vrot.slane %v10077_v19, 1  ;;  %v18321_v45 = vld [vmem:[%s19209_s21 + $0x80] ss:$8 sps:$4 sm:$0xff]  }
 0x484   : > { %v22826_v3 = vadd.f32 %v7208_v36, %v4655_v8  ;;  %v7209_v58 = vadd.f32 %v7175_v18, %v25483_v48  ;;  %10454 = vmatmul.mubr.bf16.gmra.mrb[172].mxu1 %v10064_v29  ;;  %v10075_v34 = vor.u32 %v10073_v47, %v10063_v25  ;;  %v9192_v0 = vpop.f32.mrb[33].mxu0  ;;  %v4654_v36 = vsel %vm24926_vm2, %v25486_v40, 0.0  ;;  %v18326_v18 = vld [vmem:[%s19209_s21 + $0x94] ss:$8 sps:$4 sm:$0xff]  }
 0x485   : > { %v22831_v33 = vadd.f32 %v7206_v54, %v4653_v41  ;;  %v7207_v30 = vadd.f32 %v7167_v7, %v25485_v32  ;;  %16074 = vmatprep.mubr.msk.bf16.mxu1 %vm1151_vm3, %v10088_v5  ;;  %v10099_v48 = vor.u32 %v10097_v22, %v10087_v59  ;;  %v10103_v29 = vrot.slane %v10101_v51, 1  ;;  %v25489_v41 = vld [vmem:[#allocation129_spill] sm:$0xff]  ;;  %v22849_v40 = vpop.f32.mrb[34].mxu0 }
 0x486   : > { %25482 = vst [vmem:[#allocation32_spill] sm:$0xff] %v22826_v3  ;;  %v22839_v8 = vadd.f32 %v7209_v58, %v4656_v63  ;;  %v10089_v25 = vshrl.u32 %v22785_v2, 16  ;;  %v10080_v0 = vsel %vm7534_vm0, %v10075_v34, %v10079_v20  ;;  %v10093_v47 = vshll.u32 %v18321_v45, 16  ;;  %v25490_v58 = vld [vmem:[#allocation132_spill] sm:$0xff] }
 0x487   : > { %25484 = vst [vmem:[#allocation63_spill] sm:$0xff] %v22831_v33  ;;  %v22842_v52 = vadd.f32 %v7207_v30, %v4654_v36  ;;  %v7957_v54 = vpop.f32.mrb[68].mxu1  ;;  %v10104_v51 = vsel %vm7534_vm0, %v10099_v48, %v10103_v29  ;;  %v10113_v63 = vshrl.u32 %v22793_v53, 16  ;;  %v10117_v32 = vshll.u32 %v18326_v18, 16  ;;  %v9195_v30 = vpop.f32.mrb[35].mxu0  ;;  %v25491_v53 = vld [vmem:[#allocation71_spill] sm:$0xff] }
 0x488   : > { %25487 = vst [vmem:[#allocation33_spill] sm:$0xff] %v22839_v8  ;;  %v22845_v7 = vadd.f32 %v25489_v41, %v7957_v54  ;;  %v7959_v19 = vpop.f32.mrb[69].mxu1  ;;  %v22856_v36 = vpop.f32.mrb[36].mxu0  ;;  %v10095_v54 = vrot.slane %v10093_v47, 1  ;;  %v10091_v34 = vor.u32 %v10089_v25, %v10079_v20  ;;  %v18324_v41 = vld [vmem:[%s19209_s21 + $0x90] ss:$8 sps:$4 sm:$0xff]  }
 0x489   : > { %25488 = vst [vmem:[#allocation34_spill] sm:$0xff] %v22842_v52  ;;  %v7960_v5 = vpop.f32.mrb[70].mxu1  ;;  %v9200_v2 = vpop.f32.mrb[37].mxu0  ;;  %v10109_v20 = vshll.u32 %v18324_v41, 16  ;;  %v10121_v50 = vshrl.u32 %v18324_v41, 16 }
 0x48a   : > { %v22852_v59 = vadd.f32 %v25490_v58, %v7960_v5  ;;  %v7962_v22 = vpop.f32.mrb[71].mxu1  ;;  %v22860_v19 = vpop.f32.mrb[38].mxu0  ;;  %v10115_v5 = vor.u32 %v10113_v63, %v10103_v29  ;;  %v10119_v58 = vrot.slane %v10117_v32, 1  ;;  %v10105_v2 = vshrl.u32 %v18321_v45, 16 }
 0x48b   : > { %v18331_v22 = vld [vmem:[%s19209_s21 + $0xa4] ss:$8 sps:$4 sm:$0xff]   ;;  %v9203_v12 = vpop.f32.mrb[39].mxu0  ;;  %v10096_v47 = vsel %vm7534_vm0, %v10091_v34, %v10095_v54  ;;  %v10129_v63 = vshrl.u32 %v18326_v18, 16  ;;  %v10111_v45 = vrot.slane %v10109_v20, 1 }
 0x48c   : > { %10462 = vmatmul.mubr.bf16.gmra.mrb[176].mxu1 %v10080_v0  ;;  %v22863_v8 = vpop.f32.mrb[40].mxu0  ;;  %v10120_v12 = vsel %vm7534_vm0, %v10115_v5, %v10119_v58  ;;  %v10133_v32 = vshll.u32 %v18331_v22, 16  ;;  %v10107_v34 = vor.u32 %v10105_v2, %v10095_v54  ;;  %v25494_v2 = vld [vmem:[#allocation133_spill] sm:$0xff] }
 0x48d   : > { %16075 = vmatprep.mubr.msk.bf16.mxu1 %vm1151_vm3, %v10104_v51  ;;  %v9208_v25 = vpop.f32.mrb[41].mxu0  ;;  %v25492_v51 = vld [vmem:[#allocation130_spill] sm:$0xff] }
 0x48e   : > { %v22873_v33 = vpop.f32.mrb[42].mxu0  ;;  %v10112_v20 = vsel %vm7534_vm0, %v10107_v34, %v10111_v45  ;;  %v10123_v34 = vor.u32 %v10121_v50, %v10111_v45  ;;  %v10141_v45 = vshll.u32 %v18332_v55, 16 }
 0x48f   : > { %v7965_v48 = vpop.f32.mrb[72].mxu1 }
 0x490   : > { %v22866_v30 = vadd.f32 %v25491_v53, %v7965_v48  ;;  %v7967_v3 = vpop.f32.mrb[73].mxu1  ;;  %v9211_v48 = vpop.f32.mrb[43].mxu0  ;;  %v18329_v53 = vld [vmem:[%s19209_s21 + $0xa0] ss:$8 sps:$4 sm:$0xff]  }
 0x491   : > { %v7968_v0 = vpop.f32.mrb[74].mxu1  ;;  %v22875_v3 = vpop.f32.mrb[44].mxu0 }
 0x492   : > { %v22870_v52 = vadd.f32 %v25492_v51, %v7968_v0  ;;  %v7970_v29 = vpop.f32.mrb[75].mxu1  ;;  %v9216_v25 = vpop.f32.mrb[45].mxu0  ;;  %v10131_v0 = vor.u32 %v10129_v63, %v10119_v58  ;;  %v10135_v51 = vrot.slane %v10133_v32, 1 }
 0x493   : > { %v22880_v29 = vpop.f32.mrb[46].mxu0  ;;  %v10145_v25 = vshrl.u32 %v18331_v22, 16  ;;  %v25496_v22 = vld [vmem:[#allocation93_spill] sm:$0xff] }
 0x494   : > { %10470 = vmatmul.mubr.bf16.gmra.mrb[180].mxu1 %v10096_v47  ;;  %v9219_v18 = vpop.f32.mrb[47].mxu0  ;;  %v10136_v32 = vsel %vm7534_vm0, %v10131_v0, %v10135_v51 }
 0x495   : > { %16076 = vmatprep.mubr.msk.bf16.mxu1 %vm1151_vm3, %v10120_v12  ;;  %v10125_v12 = vshll.u32 %v18329_v53, 16  ;;  %v22886_v54 = vpop.f32.mrb[48].mxu0  ;;  %v10149_v18 = vshll.u32 %v18334_v46, 16 }
 0x497   : > { %v7973_v5 = vpop.f32.mrb[76].mxu1 }
 0x498   : > { %v22883_v16 = vadd.f32 %v25493_v27, %v7973_v5  ;;  %v7975_v48 = vpop.f32.mrb[77].mxu1  ;;  %v9224_v27 = vpop.f32.mrb[49].mxu0 }
 0x499   : > { %v7976_v47 = vpop.f32.mrb[78].mxu1  ;;  %v22892_v5 = vpop.f32.mrb[50].mxu0  ;;  %v10127_v48 = vrot.slane %v10125_v12, 1  ;;  %v10137_v12 = vshrl.u32 %v18329_v53, 16 }
 0x49a   : > { %v22889_v58 = vadd.f32 %v25494_v2, %v7976_v47  ;;  %v7978_v63 = vpop.f32.mrb[79].mxu1  ;;  %v9227_v41 = vpop.f32.mrb[51].mxu0  ;;  %v10147_v47 = vor.u32 %v10145_v25, %v10135_v51  ;;  %v10151_v2 = vrot.slane %v10149_v18, 1  ;;  %v10161_v18 = vshrl.u32 %v18334_v46, 16 }
 0x49b   : > { %v22896_v13 = vpop.f32.mrb[52].mxu0  ;;  %v10128_v50 = vsel %vm7534_vm0, %v10123_v34, %v10127_v48  ;;  %v10139_v53 = vor.u32 %v10137_v12, %v10127_v48  ;;  %v18337_v34 = vld [vmem:[%s19209_s21 + $0xc0] ss:$8 sps:$4 sm:$0xff]  }
 0x49c   : > { %10478 = vmatmul.mubr.bf16.gmra.mrb[184].mxu1 %v10112_v20  ;;  %v9232_v63 = vpop.f32.mrb[53].mxu0  ;;  %v10152_v25 = vsel %vm7534_vm0, %v10147_v47, %v10151_v2  ;;  %v10157_v12 = vshll.u32 %v18337_v34, 16 }
 0x49d   : > { %16077 = vmatprep.mubr.msk.bf16.mxu1 %vm1151_vm3, %v10136_v32  ;;  %v22899_v0 = vpop.f32.mrb[54].mxu0  ;;  %v25497_v32 = vld [vmem:[#allocation80_spill] sm:$0xff]  ;;  %v10165_v63 = vshll.u32 %v18339_v11, 16 }
 0x49e   : > { %25495 = vst [vmem:[#allocation78_spill] sm:$0xff] %v22899_v0  ;;  %v9235_v20 = vpop.f32.mrb[55].mxu0  ;;  %v10159_v24 = vrot.slane %v10157_v12, 1  ;;  %v10169_v12 = vshrl.u32 %v18337_v34, 16 }
 0x49f   : > { %v7981_v49 = vpop.f32.mrb[80].mxu1  ;;  %v22909_v15 = vpop.f32.mrb[56].mxu0 }
 0x4a0   : > { %v22902_v27 = vadd.f32 %v25496_v22, %v7981_v49  ;;  %v7983_v21 = vpop.f32.mrb[81].mxu1  ;;  %v9240_v49 = vpop.f32.mrb[57].mxu0  ;;  %v10143_v22 = vrot.slane %v10141_v45, 1  ;;  %v10153_v45 = vshrl.u32 %v18332_v55, 16 }
 0x4a1   : > { %v7984_v41 = vpop.f32.mrb[82].mxu1  ;;  %v22911_v21 = vpop.f32.mrb[58].mxu0 }
 0x4a2   : > { %v22906_v57 = vadd.f32 %v25497_v32, %v7984_v41  ;;  %v7986_v51 = vpop.f32.mrb[83].mxu1  ;;  %25498 = vst [vmem:[#allocation73_spill] sm:$0xff] %v22911_v21  ;;  %v9243_v20 = vpop.f32.mrb[59].mxu0  ;;  %v10163_v41 = vor.u32 %v10161_v18, %v10151_v2  ;;  %v10167_v32 = vrot.slane %v10165_v63, 1  ;;  %v10144_v48 = vsel %vm7534_vm0, %v10139_v53, %v10143_v22  ;;  %v25502_v2 = vld [vmem:[#allocation137_spill] sm:$0xff] }
 0x4a3   : > { %v22916_v51 = vpop.f32.mrb[60].mxu0  ;;  %v10155_v55 = vor.u32 %v10153_v45, %v10143_v22  ;;  %v18340_v53 = vld [vmem:[%s19209_s21 + $0xd0] ss:$8 sps:$4 sm:$0xff]  }
 0x4a4   : > { %10486 = vmatmul.mubr.bf16.gmra.mrb[188].mxu1 %v10128_v50  ;;  %25499 = vst [vmem:[#allocation35_spill] sm:$0xff] %v22916_v51  ;;  %v9248_v46 = vpop.f32.mrb[61].mxu0  ;;  %v10168_v20 = vsel %vm7534_vm0, %v10163_v41, %v10167_v32  ;;  %v10173_v45 = vshll.u32 %v18340_v53, 16  ;;  %v18350_v51 = vld [vmem:[%s19209_s21 + $0xf4] ss:$8 sps:$4 sm:$0xff]  }
 0x4a5   : > { %16078 = vmatprep.mubr.msk.bf16.mxu1 %vm1151_vm3, %v10152_v25  ;;  %v22921_v50 = vpop.f32.mrb[62].mxu0  ;;  %v10177_v46 = vshrl.u32 %v18339_v11, 16  ;;  %v25506_v11 = vld [vmem:[#allocation82_spill] sm:$0xff]  ;;  %v10160_v22 = vsel %vm7534_vm0, %v10155_v55, %v10159_v24  ;;  %v10171_v55 = vor.u32 %v10169_v12, %v10159_v24 }
 0x4a6   : > { %25501 = vst [vmem:[#allocation124_spill] sm:$0xff] %v22921_v50  ;;  %v9251_v25 = vpop.f32.mrb[63].mxu0 }
 0x4a7   : > { %v7989_v47 = vpop.f32.mrb[84].mxu1  ;;  %v10179_v25 = vor.u32 %v10177_v46, %v10167_v32  ;;  %v25508_v32 = vld [vmem:[#allocation92_spill] sm:$0xff] }
 0x4a8   : > { %v22919_v60 = vadd.f32 %v25500_v1, %v7989_v47  ;;  %v7991_v49 = vpop.f32.mrb[85].mxu1  ;;  %v10181_v1 = vshll.u32 %v18342_v23, 16  ;;  %v22928_v47 = vpop.f32.mrb[64].mxu0 }
 0x4a9   : > { %v7992_v10 = vpop.f32.mrb[86].mxu1  ;;  %25503 = vst [vmem:[#allocation83_spill] sm:$0xff] %v22928_v47  ;;  %v9256_v49 = vpop.f32.mrb[65].mxu0 }
 0x4aa   : > { %v22925_v18 = vadd.f32 %v25502_v2, %v7992_v10  ;;  %v7994_v63 = vpop.f32.mrb[87].mxu1  ;;  %v22932_v26 = vpop.f32.mrb[66].mxu0  ;;  %v10183_v43 = vrot.slane %v10181_v1, 1  ;;  %v18347_v10 = vld [vmem:[%s19209_s21 + $0xe4] ss:$8 sps:$4 sm:$0xff]  }
 0x4ab   : > { %25504 = vst [vmem:[#allocation79_spill] sm:$0xff] %v22932_v26  ;;  %v9259_v2 = vpop.f32.mrb[67].mxu0  ;;  %v18345_v26 = vld [vmem:[%s19209_s21 + $0xe0] ss:$8 sps:$4 sm:$0xff]  }
 0x4ac   : > { %10494 = vmatmul.mubr.bf16.gmra.mrb[192].mxu1 %v10144_v48  ;;  %v22935_v6 = vpop.f32.mrb[68].mxu0  ;;  %v10184_v2 = vsel %vm7534_vm0, %v10179_v25, %v10183_v43  ;;  %v25511_v25 = vld [vmem:[#allocation141_spill] sm:$0xff]  ;;  %v10189_v24 = vshll.u32 %v18345_v26, 16 }
 0x4ad   : > { %16079 = vmatprep.mubr.msk.bf16.mxu1 %vm1151_vm3, %v10168_v20  ;;  %25505 = vst [vmem:[#allocation62_spill] sm:$0xff] %v22935_v6  ;;  %v9264_v48 = vpop.f32.mrb[69].mxu0  ;;  %v10193_v6 = vshrl.u32 %v18342_v23, 16 }
 0x4ae   : > { %v22941_v20 = vpop.f32.mrb[70].mxu0  ;;  %v10175_v48 = vrot.slane %v10173_v45, 1 }
 0x4af   : > { %v7997_v63 = vpop.f32.mrb[88].mxu1  ;;  %25507 = vst [vmem:[#allocation36_spill] sm:$0xff] %v22941_v20 }
 0x4b0   : > { %v22938_v41 = vadd.f32 %v25506_v11, %v7997_v63  ;;  %v7999_v50 = vpop.f32.mrb[89].mxu1  ;;  %v10197_v63 = vshll.u32 %v18347_v10, 16  ;;  %v9267_v11 = vpop.f32.mrb[71].mxu0  ;;  %v10176_v45 = vsel %vm7534_vm0, %v10171_v55, %v10175_v48 }
 0x4b1   : > { %v8000_v49 = vpop.f32.mrb[90].mxu1  ;;  %v22947_v50 = vpop.f32.mrb[72].mxu0 }
 0x4b2   : > { %v22944_v46 = vadd.f32 %v25508_v32, %v8000_v49  ;;  %v8002_v1 = vpop.f32.mrb[91].mxu1  ;;  %25509 = vst [vmem:[#allocation98_spill] sm:$0xff] %v22947_v50  ;;  %v9272_v34 = vpop.f32.mrb[73].mxu0  ;;  %v10195_v49 = vor.u32 %v10193_v6, %v10183_v43  ;;  %v10199_v32 = vrot.slane %v10197_v63, 1  ;;  %v10209_v63 = vshrl.u32 %v18347_v10, 16 }
 0x4b3   : > { %v22951_v20 = vpop.f32.mrb[74].mxu0  ;;  %v10185_v34 = vshrl.u32 %v18340_v53, 16  ;;  %v10191_v53 = vrot.slane %v10189_v24, 1  ;;  %v18355_v50 = vld [vmem:[%s19209_s21 + $0x104] ss:$8 sps:$4 sm:$0xff]  }
 0x4b4   : > { %10502 = vmatmul.mubr.bf16.gmra.mrb[196].mxu1 %v10160_v22  ;;  %25510 = vst [vmem:[#allocation86_spill] sm:$0xff] %v22951_v20  ;;  %v9275_v1 = vpop.f32.mrb[75].mxu0  ;;  %v10200_v43 = vsel %vm7534_vm0, %v10195_v49, %v10199_v32 }
 0x4b5   : > { %16080 = vmatprep.mubr.msk.bf16.mxu1 %vm1151_vm3, %v10184_v2  ;;  %v22957_v0 = vpop.f32.mrb[76].mxu0  ;;  %v25514_v2 = vld [vmem:[#allocation142_spill] sm:$0xff]  ;;  %v10187_v55 = vor.u32 %v10185_v34, %v10175_v48 }
 0x4b6   : > { %25513 = vst [vmem:[#allocation48_spill] sm:$0xff] %v22957_v0  ;;  %v9280_v12 = vpop.f32.mrb[77].mxu0 }
 0x4b7   : > { %v8005_v47 = vpop.f32.mrb[92].mxu1  ;;  %v22964_v1 = vpop.f32.mrb[78].mxu0  ;;  %v18348_v12 = vld [vmem:[%s19209_s21 + $0xf0] ss:$8 sps:$4 sm:$0xff]   ;;  %v10192_v24 = vsel %vm7534_vm0, %v10187_v55, %v10191_v53 }
 0x4b8   : > { %v22955_v23 = vadd.f32 %v25511_v25, %v8005_v47  ;;  %v8007_v11 = vpop.f32.mrb[93].mxu1  ;;  %v10213_v47 = vshll.u32 %v18350_v51, 16  ;;  %25516 = vst [vmem:[#allocation84_spill] sm:$0xff] %v22964_v1  ;;  %v9283_v25 = vpop.f32.mrb[79].mxu0  ;;  %v10201_v1 = vshrl.u32 %v18345_v26, 16 }
 0x4b9   : > { %v8008_v22 = vpop.f32.mrb[94].mxu1  ;;  %v22966_v11 = vpop.f32.mrb[80].mxu0 }
 0x4ba   : > { %25512 = vst [vmem:[#allocation57_spill] sm:$0xff] %v22955_v23  ;;  %v22961_v20 = vadd.f32 %v25514_v2, %v8008_v22  ;;  %v8010_v6 = vpop.f32.mrb[95].mxu1  ;;  %25517 = vst [vmem:[#allocation38_spill] sm:$0xff] %v22966_v11  ;;  %v9288_v0 = vpop.f32.mrb[81].mxu0  ;;  %v10211_v22 = vor.u32 %v10209_v63, %v10199_v32  ;;  %v10215_v2 = vrot.slane %v10213_v47, 1  ;;  %v10225_v47 = vshrl.u32 %v18350_v51, 16 }
 0x4bb   : > { %v22971_v6 = vpop.f32.mrb[82].mxu0  ;;  %v25521_v0 = vld [vmem:[#allocation102_spill] sm:$0xff]  ;;  %v10203_v55 = vor.u32 %v10201_v1, %v10191_v53 }
 0x4bc   : > { %25515 = vst [vmem:[#allocation97_spill] sm:$0xff] %v22961_v20  ;;  %10510 = vmatmul.mubr.bf16.gmra.mrb[200].mxu1 %v10176_v45  ;;  %25518 = vst [vmem:[#allocation125_spill] sm:$0xff] %v22971_v6  ;;  %v9291_v10 = vpop.f32.mrb[83].mxu0  ;;  %v25519_v20 = vld [vmem:[#allocation140_spill] sm:$0xff]  ;;  %v10216_v63 = vsel %vm7534_vm0, %v10211_v22, %v10215_v2  ;;  %v18353_v6 = vld [vmem:[%s19209_s21 + $0x100] ss:$8 sps:$4 sm:$0xff]  }
 0x4bd   : > { %16081 = vmatprep.mubr.msk.bf16.mxu1 %vm1151_vm3, %v10200_v43  ;;  %v10205_v43 = vshll.u32 %v18348_v12, 16  ;;  %v22977_v48 = vpop.f32.mrb[84].mxu0  ;;  %v10229_v10 = vshll.u32 %v18355_v50, 16  ;;  %v18358_v11 = vld [vmem:[%s19209_s21 + $0x114] ss:$8 sps:$4 sm:$0xff]   ;;  %v10221_v1 = vshll.u32 %v18353_v6, 16 }
 0x4be   : > { %25520 = vst [vmem:[#allocation81_spill] sm:$0xff] %v22977_v48  ;;  %v25526_v51 = vld [vmem:[#allocation46_spill] sm:$0xff] }
 0x4bf   : > { %v8013_v49 = vpop.f32.mrb[96].mxu1 }
 0x4c0   : > { %v22974_v23 = vadd.f32 %v25519_v20, %v8013_v49  ;;  %v8015_v25 = vpop.f32.mrb[97].mxu1  ;;  %v9296_v20 = vpop.f32.mrb[85].mxu0 }
 0x4c1   : > { %v8016_v45 = vpop.f32.mrb[98].mxu1  ;;  %v22983_v49 = vpop.f32.mrb[86].mxu0  ;;  %v10207_v25 = vrot.slane %v10205_v43, 1  ;;  %v10217_v43 = vshrl.u32 %v18348_v12, 16 }
 0x4c2   : > { %v22980_v32 = vadd.f32 %v25521_v0, %v8016_v45  ;;  %v8018_v34 = vpop.f32.mrb[99].mxu1  ;;  %25523 = vst [vmem:[#allocation91_spill] sm:$0xff] %v22983_v49  ;;  %v9299_v26 = vpop.f32.mrb[87].mxu0  ;;  %v10227_v45 = vor.u32 %v10225_v47, %v10215_v2  ;;  %v10231_v0 = vrot.slane %v10229_v10, 1 }
 0x4c3   : > { %v25528_v26 = vld [vmem:[#allocation51_spill] sm:$0xff]  ;;  %v10219_v12 = vor.u32 %v10217_v43, %v10207_v25 }
 0x4c4   : > { %25522 = vst [vmem:[#allocation30_spill] sm:$0xff] %v22980_v32  ;;  %10518 = vmatmul.mubr.bf16.gmra.mrb[204].mxu1 %v10192_v24  ;;  %v22987_v48 = vpop.f32.mrb[88].mxu0  ;;  %v10232_v10 = vsel %vm7534_vm0, %v10227_v45, %v10231_v0  ;;  %v25534_v45 = vld [vmem:[#allocation147_spill] sm:$0xff] }
 0x4c5   : > { %16082 = vmatprep.mubr.msk.bf16.mxu1 %vm1151_vm3, %v10216_v63  ;;  %25524 = vst [vmem:[#allocation67_spill] sm:$0xff] %v22987_v48  ;;  %v9304_v34 = vpop.f32.mrb[89].mxu0  ;;  %v10208_v63 = vsel %vm7534_vm0, %v10203_v55, %v10207_v25  ;;  %v18356_v55 = vld [vmem:[%s19209_s21 + $0x110] ss:$8 sps:$4 sm:$0xff]   ;;  %v25536_v43 = vld [vmem:[#allocation47_spill] sm:$0xff] }
 0x4c6   : > { %v22990_v22 = vpop.f32.mrb[90].mxu0  ;;  %v10241_v34 = vshrl.u32 %v18355_v50, 16  ;;  %v10237_v25 = vshll.u32 %v18356_v55, 16 }
 0x4c7   : > { %v8021_v32 = vpop.f32.mrb[100].mxu1  ;;  %25525 = vst [vmem:[#allocation39_spill] sm:$0xff] %v22990_v22  ;;  %v9307_v53 = vpop.f32.mrb[91].mxu0  ;;  %v10245_v22 = vshll.u32 %v18358_v11, 16 }
 0x4c8   : > { %v22993_v20 = vadd.f32 %v25526_v51, %v8021_v32  ;;  %v8023_v49 = vpop.f32.mrb[101].mxu1  ;;  %v10243_v53 = vor.u32 %v10241_v34, %v10231_v0  ;;  %v10257_v34 = vshrl.u32 %v18358_v11, 16 }
 0x4c9   : > { %v8024_v24 = vpop.f32.mrb[102].mxu1  ;;  %v10223_v49 = vrot.slane %v10221_v1, 1  ;;  %v10233_v1 = vshrl.u32 %v18353_v6, 16 }
 0x4ca   : > { %25527 = vst [vmem:[#allocation40_spill] sm:$0xff] %v22993_v20  ;;  %v22997_v2 = vadd.f32 %v25528_v26, %v8024_v24  ;;  %v8026_v47 = vpop.f32.mrb[103].mxu1  ;;  %v10247_v24 = vrot.slane %v10245_v22, 1  ;;  %v18363_v26 = vld [vmem:[%s19209_s21 + $0x124] ss:$8 sps:$4 sm:$0xff]   ;;  %v10239_v20 = vrot.slane %v10237_v25, 1 }
 0x4cb   : > { %v10249_v25 = vshrl.u32 %v18356_v55, 16 }
 0x4cc   : > { %25529 = vst [vmem:[#allocation138_spill] sm:$0xff] %v22997_v2  ;;  %v23000_v48 = vpop.f32.mrb[92].mxu0  ;;  %10526 = vmatmul.mubr.bf16.gmra.mrb[208].mxu1 %v10208_v63  ;;  %v10248_v22 = vsel %vm7534_vm0, %v10243_v53, %v10247_v24 }
 0x4cd   : > { %25530 = vst [vmem:[#allocation64_spill] sm:$0xff] %v23000_v48  ;;  %v23002_v32 = vpop.f32.mrb[93].mxu0  ;;  %16083 = vmatprep.mubr.msk.bf16.mxu1 %vm1151_vm3, %v10232_v10  ;;  %v10224_v10 = vsel %vm7534_vm0, %v10219_v12, %v10223_v49 }
 0x4ce   : > { %25531 = vst [vmem:[#allocation94_spill] sm:$0xff] %v23002_v32  ;;  %v23006_v51 = vpop.f32.mrb[94].mxu0 }
 0x4cf   : > { %25532 = vst [vmem:[#allocation95_spill] sm:$0xff] %v23006_v51  ;;  %v23009_v47 = vpop.f32.mrb[95].mxu0  ;;  %v8029_v50 = vpop.f32.mrb[104].mxu1  ;;  %v10261_v51 = vshll.u32 %v18363_v26, 16 }
 0x4d0   : > { %25533 = vst [vmem:[#allocation37_spill] sm:$0xff] %v23009_v47  ;;  %v23012_v2 = vadd.f32 %v25534_v45, %v8029_v50  ;;  %v8031_v63 = vpop.f32.mrb[105].mxu1  ;;  %v9854_v47 = vld [vmem:[%s19209_s21 + $0x130] sm:$0x11]  ;;  %v10235_v50 = vor.u32 %v10233_v1, %v10223_v49  ;;  %v18361_v45 = vld [vmem:[%s19209_s21 + $0x120] ss:$8 sps:$4 sm:$0xff]  }
 0x4d1   : > { %v8032_v48 = vpop.f32.mrb[106].mxu1  ;;  %v10259_v63 = vor.u32 %v10257_v34, %v10247_v24  ;;  %v10263_v6 = vrot.slane %v10261_v51, 1  ;;  %v10253_v49 = vshll.u32 %v18361_v45, 16  ;;  %v10273_v34 = vshrl.u32 %v18363_v26, 16 }
 0x4d2   : > { %25535 = vst [vmem:[#allocation88_spill] sm:$0xff] %v23012_v2  ;;  %v23016_v32 = vadd.f32 %v25536_v43, %v8032_v48  ;;  %v8034_v0 = vpop.f32.mrb[107].mxu1  ;;  %v16060_v2 = vcombine.high %v9854_v47, %v9854_v47 }
 0x4d3   : > { %v10240_v0 = vsel %vm7534_vm0, %v10235_v50, %v10239_v20  ;;  %v10275_v55 = vor.u32 %v10273_v34, %v10263_v6 }
 0x4d4   : > { %10534 = vmatmul.mubr.bf16.gmra.mrb[212].mxu1 %v10224_v10 }
 0x4d5   : > { %16084 = vmatprep.mubr.msk.bf16.mxu1 %vm1151_vm3, %v10248_v22  ;;  %v23022_v12 = vpop.f32.mrb[96].mxu0  ;;  %v10264_v22 = vsel %vm7534_vm0, %v10259_v63, %v10263_v6 }
 0x4d6   : > { %25537 = vst [vmem:[#allocation90_spill] sm:$0xff] %v23022_v12  ;;  %v23024_v48 = vpop.f32.mrb[97].mxu0  ;;  %v10277_v12 = vshll.u32 %v16060_v2, 16 }
 0x4d7   : > { %v8037_v21 = vpop.f32.mrb[108].mxu1  ;;  %25538 = vst [vmem:[#allocation68_spill] sm:$0xff] %v23024_v48  ;;  %v23029_v53 = vpop.f32.mrb[98].mxu0 }
 0x4d8   : > { %v23027_v43 = vadd.f32 %v22529_v42, %v8037_v21  ;;  %v8039_v11 = vpop.f32.mrb[109].mxu1  ;;  %25539 = vst [vmem:[#allocation42_spill] sm:$0xff] %v23029_v53  ;;  %v23032_v1 = vpop.f32.mrb[99].mxu0  ;;  %v10255_v42 = vrot.slane %v10253_v49, 1  ;;  %v10251_v21 = vor.u32 %v10249_v25, %v10239_v20  ;;  %v10279_v53 = vrot.slane %v10277_v12, 1 }
 0x4d9   : > { %v8040_v10 = vpop.f32.mrb[110].mxu1  ;;  %25540 = vst [vmem:[#allocation144_spill] sm:$0xff] %v23032_v1  ;;  %v16059_v11 = vcombine.low %v9854_v47, %v9854_v47 }
 0x4da   : > { %v23035_v51 = vadd.f32 %v22552_v17, %v8040_v10  ;;  %v8042_v24 = vpop.f32.mrb[111].mxu1  ;;  %v10265_v10 = vshrl.u32 %v18361_v45, 16 }
 0x4db   : > { %v10256_v24 = vsel %vm7534_vm0, %v10251_v21, %v10255_v42  ;;  %v10269_v63 = vshll.u32 %v16059_v11, 16 }
 0x4dc   : > { %10542 = vmatmul.mubr.bf16.gmra.mrb[216].mxu1 %v10240_v0  ;;  %v10280_v0 = vsel %vm7534_vm0, %v10275_v55, %v10279_v53  ;;  %v10267_v47 = vor.u32 %v10265_v10, %v10255_v42 }
 0x4dd   : > { %16085 = vmatprep.mubr.msk.bf16.mxu1 %vm1151_vm3, %v10264_v22  ;;  %v10271_v20 = vrot.slane %v10269_v63, 1 }
 0x4df   : > { %v8045_v50 = vpop.f32.mrb[112].mxu1 }
 0x4e0   : > { %v23040_v48 = vadd.f32 %v22508_v61, %v8045_v50  ;;  %v8047_v1 = vpop.f32.mrb[113].mxu1 }
 0x4e1   : > { %v8048_v17 = vpop.f32.mrb[114].mxu1  ;;  %v10272_v1 = vsel %vm7534_vm0, %v10267_v47, %v10271_v20 }
 0x4e2   : > { %v23044_v2 = vadd.f32 %v22538_v31, %v8048_v17  ;;  %v8050_v26 = vpop.f32.mrb[115].mxu1 }
 0x4e4   : > { %10550 = vmatmul.mubr.bf16.gmra.mrb[220].mxu1 %v10256_v24  ;;  %v23048_v6 = vpop.f32.mrb[100].mxu0 }
 0x4e5   : > { %16086 = vmatprep.mubr.msk.bf16.mxu1 %vm1151_vm3, %v10280_v0  ;;  %v23050_v12 = vpop.f32.mrb[101].mxu0 }
 0x4e6   : > { %v23055_v49 = vpop.f32.mrb[102].mxu0 }
 0x4e7   : > { %v8053_v61 = vpop.f32.mrb[116].mxu1  ;;  %v23058_v53 = vpop.f32.mrb[103].mxu0 }
 0x4e8   : > { %v23053_v45 = vadd.f32 %v22648_v37, %v8053_v61  ;;  %v8055_v25 = vpop.f32.mrb[117].mxu1 }
 0x4e9   : > { %v8056_v31 = vpop.f32.mrb[118].mxu1 }
 0x4ea   : > { %v23061_v22 = vadd.f32 %v22662_v38, %v8056_v31  ;;  %v8058_v34 = vpop.f32.mrb[119].mxu1 }
 0x4ec   : > { %10558 = vmatmul.mubr.bf16.gmra.mrb[224].mxu1 %v10272_v1 }
 0x4ef   : > { %v8061_v42 = vpop.f32.mrb[120].mxu1 }
 0x4f0   : > { %v23064_v21 = vadd.f32 %v22624_v14, %v8061_v42  ;;  %v8063_v11 = vpop.f32.mrb[121].mxu1 }
 0x4f1   : > { %v8064_v37 = vpop.f32.mrb[122].mxu1 }
 0x4f2   : > { %v23067_v55 = vadd.f32 %v22654_v28, %v8064_v37  ;;  %v8066_v50 = vpop.f32.mrb[123].mxu1 }
 0x4f5   : > { %v23069_v17 = vpop.f32.mrb[104].mxu0 }
 0x4f6   : > { %v23071_v24 = vpop.f32.mrb[105].mxu0 }
 0x4f7   : > { %v8069_v10 = vpop.f32.mrb[124].mxu1  ;;  %v23076_v26 = vpop.f32.mrb[106].mxu0 }
 0x4f8   : > { %v23074_v38 = vadd.f32 %v22747_v62, %v8069_v10  ;;  %v8071_v63 = vpop.f32.mrb[125].mxu1  ;;  %v23078_v14 = vpop.f32.mrb[107].mxu0 }
 0x4f9   : > { %v8072_v0 = vpop.f32.mrb[126].mxu1 }
 0x4fa   : > { %v23081_v20 = vadd.f32 %v22765_v35, %v8072_v0  ;;  %v8074_v28 = vpop.f32.mrb[127].mxu1 }
 0x4ff   : > { %v8077_v47 = vpop.f32.mrb[128].mxu1 }
 0x500   : > { %v23084_v61 = vadd.f32 %v22708_v56, %v8077_v47  ;;  %v8079_v25 = vpop.f32.mrb[129].mxu1 }
 0x501   : > { %v8080_v31 = vpop.f32.mrb[130].mxu1 }
 0x502   : > { %v23087_v1 = vadd.f32 %v22757_v44, %v8080_v31  ;;  %v8082_v62 = vpop.f32.mrb[131].mxu1 }
 0x503   : > { %v23113_v62 = vpop.permute.xlu0 %11082 }
 0x504   : > { %25542 = vst [vmem:[#allocation41_spill] sm:$0xff] %v23113_v62  ;;  %vm24928_vm2 = vcmp.eq.s32.totalorder %v23113_v62, 1 }
 0x505   : > { %v23089_v34 = vpop.f32.mrb[108].mxu0 }
 0x506   : > { %v23091_v11 = vpop.f32.mrb[109].mxu0 }
 0x507   : > { %v16922_v42 = vpop.f32.mrb[132].mxu1  ;;  %v23094_v50 = vpop.f32.mrb[110].mxu0 }
 0x508   : > { %v9639_v37 = vadd.f32 %v16922_v42, %v22829_v9  ;;  %v9630_v35 = vpop.f32.mrb[133].mxu1  ;;  %25541 = vst [vmem:[#allocation127_spill] sm:$0xff] %v23094_v50  ;;  %v23097_v63 = vpop.f32.mrb[111].mxu0  ;;  %v25569_v50 = vld [vmem:[#allocation62_spill] sm:$0xff] }
 0x509   : > { %v9631_v10 = vadd.f32 %v9630_v35, %v22798_v39  ;;  %v16923_v56 = vpop.f32.mrb[134].mxu1 }
 0x50a   : > { %v23100_v0 = vadd.f32 %v9639_v37, %v22866_v30  ;;  %v9642_v44 = vadd.f32 %v16923_v56, %v22849_v40  ;;  %v9633_v28 = vpop.f32.mrb[135].mxu1  ;;  %v23131_v56 = vpop.permute.xlu0 %11085 }
 0x50b   : > { %v23104_v47 = vadd.f32 %v9631_v10, %v22845_v7  ;;  %v9634_v25 = vadd.f32 %v9633_v28, %v22812_v4  ;;  %25543 = vst [vmem:[#allocation44_spill] sm:$0xff] %v23131_v56 }
 0x50c   : > { %v23108_v9 = vadd.f32 %v9642_v44, %v22870_v52 }
 0x50d   : > { %v23111_v31 = vadd.f32 %v9634_v25, %v22852_v59 }
 0x50f   : > { %v16926_v39 = vpop.f32.mrb[136].mxu1 }
 0x510   : > { %v9655_v30 = vadd.f32 %v16926_v39, %v22863_v8  ;;  %v9646_v42 = vpop.f32.mrb[137].mxu1 }
 0x511   : > { %v9647_v40 = vadd.f32 %v9646_v42, %v22856_v36  ;;  %v16927_v37 = vpop.f32.mrb[138].mxu1 }
 0x512   : > { %v23118_v7 = vadd.f32 %v9655_v30, %v22902_v27  ;;  %v9658_v4 = vadd.f32 %v16927_v37, %v22873_v33  ;;  %v9649_v35 = vpop.f32.mrb[139].mxu1  ;;  %v23157_v37 = vpop.permute.xlu0 %11088 }
 0x513   : > { %v23122_v52 = vadd.f32 %v9647_v40, %v22883_v16  ;;  %v9650_v59 = vadd.f32 %v9649_v35, %v22860_v19  ;;  %25548 = vst [vmem:[#allocation132_spill] sm:$0xff] %v23157_v37 }
 0x514   : > { %v23126_v10 = vadd.f32 %v9658_v4, %v22906_v57 }
 0x515   : > { %v23129_v8 = vadd.f32 %v9650_v59, %v22889_v58  ;;  %v23133_v44 = vpop.f32.mrb[112].mxu0 }
 0x516   : > { %25544 = vst [vmem:[#allocation104_spill] sm:$0xff] %v23133_v44  ;;  %v23136_v28 = vpop.f32.mrb[113].mxu0  ;;  %v25564_v44 = vld [vmem:[#allocation40_spill] sm:$0xff] }
 0x517   : > { %v16930_v36 = vpop.f32.mrb[140].mxu1  ;;  %25545 = vst [vmem:[#allocation145_spill] sm:$0xff] %v23136_v28  ;;  %v23139_v19 = vpop.f32.mrb[114].mxu0  ;;  %v25568_v28 = vld [vmem:[#allocation98_spill] sm:$0xff] }
 0x518   : > { %v9671_v27 = vadd.f32 %v16930_v36, %v22886_v54  ;;  %v9662_v33 = vpop.f32.mrb[141].mxu1  ;;  %25546 = vst [vmem:[#allocation43_spill] sm:$0xff] %v23139_v19  ;;  %v23145_v30 = vpop.f32.mrb[115].mxu0  ;;  %v25549_v36 = vld [vmem:[#allocation73_spill] sm:$0xff] }
 0x519   : > { %v9663_v16 = vadd.f32 %v9662_v33, %v22875_v3  ;;  %v16931_v25 = vpop.f32.mrb[142].mxu1  ;;  %25547 = vst [vmem:[#allocation129_spill] sm:$0xff] %v23145_v30 }
 0x51a   : > { %v23142_v57 = vadd.f32 %v9671_v27, %v22938_v41  ;;  %v9674_v58 = vadd.f32 %v16931_v25, %v22892_v5  ;;  %v9665_v39 = vpop.f32.mrb[143].mxu1  ;;  %v23169_v25 = vpop.permute.xlu0 %11091 }
 0x51b   : > { %v23148_v42 = vadd.f32 %v9663_v16, %v22919_v60  ;;  %v9666_v54 = vadd.f32 %v9665_v39, %v22880_v29  ;;  %25552 = vst [vmem:[#allocation71_spill] sm:$0xff] %v23169_v25 }
 0x51c   : > { %v23152_v40 = vadd.f32 %v9674_v58, %v22944_v46  ;;  %v25550_v46 = vld [vmem:[#allocation57_spill] sm:$0xff]  ;;  %v25553_v58 = vld [vmem:[#allocation30_spill] sm:$0xff] }
 0x51d   : > { %v23155_v3 = vadd.f32 %v9666_v54, %v22925_v18  ;;  %v25551_v18 = vld [vmem:[#allocation78_spill] sm:$0xff] }
 0x51f   : > { %v16934_v41 = vpop.f32.mrb[144].mxu1 }
 0x520   : > { %v9687_v4 = vadd.f32 %v16934_v41, %v22909_v15  ;;  %v9678_v5 = vpop.f32.mrb[145].mxu1  ;;  %v25554_v15 = vld [vmem:[#allocation97_spill] sm:$0xff] }
 0x521   : > { %v9679_v35 = vadd.f32 %v9678_v5, %v22896_v13  ;;  %v16935_v59 = vpop.f32.mrb[146].mxu1 }
 0x522   : > { %v23162_v60 = vadd.f32 %v9687_v4, %v22974_v23  ;;  %v9690_v29 = vadd.f32 %v16935_v59, %v25549_v36  ;;  %v9681_v27 = vpop.f32.mrb[147].mxu1  ;;  %v25557_v4 = vld [vmem:[#allocation83_spill] sm:$0xff] }
 0x523   : > { %v23166_v33 = vadd.f32 %v9679_v35, %v25550_v46  ;;  %v9682_v16 = vadd.f32 %v9681_v27, %v25551_v18  ;;  %v25559_v36 = vld [vmem:[#allocation35_spill] sm:$0xff] }
 0x524   : > { %v23172_v39 = vadd.f32 %v9690_v29, %v25553_v58  ;;  %v23187_v29 = vpop.permute.xlu0 %11094  ;;  %v25562_v58 = vld [vmem:[#allocation88_spill] sm:$0xff] }
 0x525   : > { %v23175_v54 = vadd.f32 %v9682_v16, %v25554_v15  ;;  %v23177_v13 = vpop.f32.mrb[116].mxu0  ;;  %25561 = vst [vmem:[#allocation80_spill] sm:$0xff] %v23187_v29  ;;  %v25563_v15 = vld [vmem:[#allocation79_spill] sm:$0xff] }
 0x526   : > { %25555 = vst [vmem:[#allocation130_spill] sm:$0xff] %v23177_v13  ;;  %v23179_v41 = vpop.f32.mrb[117].mxu0 }
 0x527   : > { %v16938_v23 = vpop.f32.mrb[148].mxu1  ;;  %25556 = vst [vmem:[#allocation72_spill] sm:$0xff] %v23179_v41  ;;  %v23182_v35 = vpop.f32.mrb[118].mxu0 }
 0x528   : > { %v9703_v5 = vadd.f32 %v16938_v23, %v25557_v4  ;;  %v9694_v59 = vpop.f32.mrb[149].mxu1  ;;  %25558 = vst [vmem:[#allocation133_spill] sm:$0xff] %v23182_v35  ;;  %v23185_v18 = vpop.f32.mrb[119].mxu0  ;;  %v25565_v23 = vld [vmem:[#allocation124_spill] sm:$0xff] }
 0x529   : > { %v9695_v27 = vadd.f32 %v9694_v59, %v25559_v36  ;;  %v16939_v46 = vpop.f32.mrb[150].mxu1  ;;  %25560 = vst [vmem:[#allocation93_spill] sm:$0xff] %v23185_v18  ;;  %v25566_v59 = vld [vmem:[#allocation138_spill] sm:$0xff]  ;;  %v23203_v30 = vpop.permute.xlu0 %11097 }
 0x52a   : > { %v23190_v16 = vadd.f32 %v9703_v5, %v25562_v58  ;;  %v9706_v13 = vadd.f32 %v16939_v46, %v25563_v15  ;;  %v9697_v19 = vpop.f32.mrb[151].mxu1  ;;  %25567 = vst [vmem:[#allocation136_spill] sm:$0xff] %v23203_v30 }
 0x52b   : > { %v23194_v41 = vadd.f32 %v9695_v27, %v25564_v44  ;;  %v9698_v4 = vadd.f32 %v9697_v19, %v25565_v23  ;;  %v25571_v27 = vld [vmem:[#allocation86_spill] sm:$0xff] }
 0x52c   : > { %v23198_v35 = vadd.f32 %v9706_v13, %v23016_v32  ;;  %v25572_v13 = vld [vmem:[#allocation36_spill] sm:$0xff] }
 0x52d   : > { %v23201_v36 = vadd.f32 %v9698_v4, %v25566_v59 }
 0x52f   : > { %v16942_v18 = vpop.f32.mrb[152].mxu1 }
 0x530   : > { %v9719_v5 = vadd.f32 %v16942_v18, %v25568_v28  ;;  %v9710_v58 = vpop.f32.mrb[153].mxu1  ;;  %v23221_v18 = vpop.permute.xlu0 %11100 }
 0x531   : > { %v9711_v46 = vadd.f32 %v9710_v58, %v25569_v50  ;;  %v16943_v15 = vpop.f32.mrb[154].mxu1  ;;  %25574 = vst [vmem:[#allocation92_spill] sm:$0xff] %v23221_v18  ;;  %v25577_v58 = vld [vmem:[#allocation38_spill] sm:$0xff] }
 0x532   : > { %v23208_v44 = vadd.f32 %v9719_v5, %v23040_v48  ;;  %v9722_v19 = vadd.f32 %v16943_v15, %v25571_v27  ;;  %v9713_v23 = vpop.f32.mrb[155].mxu1 }
 0x533   : > { %v23212_v32 = vadd.f32 %v9711_v46, %v23027_v43  ;;  %v9714_v4 = vadd.f32 %v9713_v23, %v25572_v13  ;;  %v25579_v46 = vld [vmem:[#allocation48_spill] sm:$0xff] }
 0x534   : > { %25570 = vst [vmem:[#allocation137_spill] sm:$0xff] %v23208_v44  ;;  %v23216_v59 = vadd.f32 %v9722_v19, %v23044_v2  ;;  %v25581_v19 = vld [vmem:[#allocation125_spill] sm:$0xff] }
 0x535   : > { %v23219_v28 = vadd.f32 %v9714_v4, %v23035_v51 }
 0x536   : > { %25573 = vst [vmem:[#allocation82_spill] sm:$0xff] %v23216_v59  ;;  %v23223_v50 = vpop.f32.mrb[120].mxu0 }
 0x537   : > { %25575 = vst [vmem:[#allocation141_spill] sm:$0xff] %v23223_v50  ;;  %v16946_v48 = vpop.f32.mrb[156].mxu1  ;;  %v23225_v5 = vpop.f32.mrb[121].mxu0 }
 0x538   : > { %25576 = vst [vmem:[#allocation142_spill] sm:$0xff] %v23225_v5  ;;  %v9735_v15 = vadd.f32 %v16946_v48, %v25577_v58  ;;  %v9726_v27 = vpop.f32.mrb[157].mxu1  ;;  %v23228_v43 = vpop.f32.mrb[122].mxu0  ;;  %v25582_v5 = vld [vmem:[#allocation84_spill] sm:$0xff] }
 0x539   : > { %25578 = vst [vmem:[#allocation140_spill] sm:$0xff] %v23228_v43  ;;  %v9727_v23 = vadd.f32 %v9726_v27, %v25579_v46  ;;  %v16947_v13 = vpop.f32.mrb[158].mxu1  ;;  %v23231_v2 = vpop.f32.mrb[123].mxu0  ;;  %v25585_v43 = vld [vmem:[#allocation67_spill] sm:$0xff] }
 0x53a   : > { %25580 = vst [vmem:[#allocation102_spill] sm:$0xff] %v23231_v2  ;;  %v23234_v51 = vadd.f32 %v9735_v15, %v23064_v21  ;;  %v9738_v4 = vadd.f32 %v16947_v13, %v25581_v19  ;;  %v9729_v59 = vpop.f32.mrb[159].mxu1  ;;  %v23244_v58 = vpop.permute.xlu0 %11103  ;;  %v25586_v2 = vld [vmem:[#allocation81_spill] sm:$0xff] }
 0x53b   : > { %v23238_v50 = vadd.f32 %v9727_v23, %v23053_v45  ;;  %v9730_v44 = vadd.f32 %v9729_v59, %v25582_v5  ;;  %25584 = vst [vmem:[#allocation51_spill] sm:$0xff] %v23244_v58  ;;  %v25588_v23 = vld [vmem:[#allocation39_spill] sm:$0xff] }
 0x53c   : > { %v23242_v48 = vadd.f32 %v9738_v4, %v23067_v55 }
 0x53d   : > { %v23247_v27 = vadd.f32 %v9730_v44, %v23061_v22  ;;  %v25591_v22 = vld [vmem:[#allocation91_spill] sm:$0xff] }
 0x53e   : > { %25583 = vst [vmem:[#allocation46_spill] sm:$0xff] %v23242_v48  ;;  %v23255_v55 = vpop.permute.xlu0 %11106 }
 0x53f   : > { %v16950_v46 = vpop.f32.mrb[160].mxu1  ;;  %25589 = vst [vmem:[#allocation47_spill] sm:$0xff] %v23255_v55 }
 0x540   : > { %v9751_v21 = vadd.f32 %v16950_v46, %v25585_v43  ;;  %v9742_v15 = vpop.f32.mrb[161].mxu1  ;;  %v25592_v46 = vld [vmem:[#allocation94_spill] sm:$0xff] }
 0x541   : > { %v9743_v13 = vadd.f32 %v9742_v15, %v25586_v2  ;;  %v16951_v19 = vpop.f32.mrb[162].mxu1 }
 0x542   : > { %v23252_v45 = vadd.f32 %v9751_v21, %v23084_v61  ;;  %v9754_v59 = vadd.f32 %v16951_v19, %v25588_v23  ;;  %v9745_v5 = vpop.f32.mrb[163].mxu1  ;;  %v23268_v15 = vpop.permute.xlu0 %11109  ;;  %v18366_v23 = vld [vmem:[#allocation12 + $0xc0] sm:$0xff]  }
 0x543   : > { %v23258_v4 = vadd.f32 %v9743_v13, %v23074_v38  ;;  %v9746_v44 = vadd.f32 %v9745_v5, %v25591_v22  ;;  %25593 = vst [vmem:[#allocation57_spill] sm:$0xff] %v23268_v15  ;;  %v25594_v38 = vld [vmem:[#allocation37_spill] sm:$0xff]  ;;  %16992 = vmatprep.subr.bf16.mxu0 %v18366_v23 }
 0x544   : > { %25587 = vst [vmem:[#allocation147_spill] sm:$0xff] %v23252_v45  ;;  %v23262_v48 = vadd.f32 %v9754_v59, %v23087_v1  ;;  %v25595_v5 = vld [vmem:[#allocation101_spill] sm:$0xff]  ;;  %16993 = vmatpush3.bf16.msra.mxu0 %v18366_v23  ;;  %v25596_v59 = vld [vmem:[#allocation107_spill] sm:$0xff] }
 0x545   : > { %25590 = vst [vmem:[#allocation73_spill] sm:$0xff] %v23258_v4  ;;  %v23265_v43 = vadd.f32 %v9746_v44, %v23081_v20  ;;  %vm24927_vm3 = vcmp.eq.s32.totalorder %v25595_v5, 1  ;;  %v25600_v23 = vld [vmem:[#allocation95_spill] sm:$0xff] }
 0x546   : > { %v23282_v44 = vpop.permute.xlu0 %11112 }
 0x547   : > { %v10439_v2 = vpop.f32.mrb[164].mxu1  ;;  %25597 = vst [vmem:[#allocation78_spill] sm:$0xff] %v23282_v44 }
 0x548   : > { %v10888_v61 = vadd.f32 %v25592_v46, %v10439_v2  ;;  %v10441_v21 = vpop.f32.mrb[165].mxu1 }
 0x549   : > { %v10442_v19 = vpop.f32.mrb[166].mxu1 }
 0x54a   : > { %v11014_v45 = vadd.f32 %v10888_v61, %v23104_v47  ;;  %v10891_v13 = vadd.f32 %v25594_v38, %v10442_v19  ;;  %v10444_v4 = vpop.f32.mrb[167].mxu1  ;;  %v25599_v61 = vld [vmem:[#allocation64_spill] sm:$0xff] }
 0x54b   : > { %v25598_v4 = vld [vmem:[#allocation148_spill] sm:$0xff] }
 0x54c   : > { %v11206_v20 = vsel %vm24927_vm3, %v11014_v45, 0.0  ;;  %v11015_v1 = vadd.f32 %v10891_v13, %v23111_v31  ;;  %vm24930_vm3 = vcmp.eq.s32.totalorder %v23131_v56, 1  ;;  %v18374_v56 = vld [vmem:[#allocation12 + $0x118] sm:$0xff]  }
 0x54d   : > { %v23278_v22 = vadd.f32 %v11206_v20, %v25596_v59  ;;  %v23295_v59 = vpop.permute.xlu0 %11115 }
 0x54e   : > { %v11207_v47 = vsel %vm24928_vm2, %v11015_v1, 0.0  ;;  %vm24931_vm2 = vcmp.eq.s32.totalorder %v23157_v37, 1  ;;  %25601 = vst [vmem:[#allocation30_spill] sm:$0xff] %v23295_v59 }
 0x54f   : > { %v23285_v2 = vadd.f32 %v11207_v47, %v25598_v4  ;;  %v10447_v46 = vpop.f32.mrb[168].mxu1  ;;  %v25602_v47 = vld [vmem:[#allocation52_spill] sm:$0xff] }
 0x550   : > { %v10896_v21 = vadd.f32 %v25599_v61, %v10447_v46  ;;  %v10449_v45 = vpop.f32.mrb[169].mxu1  ;;  %v25603_v46 = vld [vmem:[#allocation74_spill] sm:$0xff] }
 0x551   : > { %v10450_v19 = vpop.f32.mrb[170].mxu1  ;;  %v25604_v45 = vld [vmem:[#allocation68_spill] sm:$0xff] }
 0x552   : > { %v11016_v31 = vadd.f32 %v10896_v21, %v23100_v0  ;;  %v10899_v38 = vadd.f32 %v25600_v23, %v10450_v19  ;;  %v10452_v13 = vpop.f32.mrb[171].mxu1 }
 0x554   : > { %v11208_v20 = vsel %vm24930_vm3, %v11016_v31, 0.0  ;;  %v11017_v1 = vadd.f32 %v10899_v38, %v23108_v9  ;;  %v25605_v38 = vld [vmem:[#allocation144_spill] sm:$0xff]  ;;  %vm24935_vm3 = vcmp.eq.s32.totalorder %v23169_v25, 1 }
 0x555   : > { %v23298_v4 = vadd.f32 %v11208_v20, %v25602_v47  ;;  %v23309_v20 = vpop.permute.xlu0 %11118 }
 0x556   : > { %v11209_v0 = vsel %vm24931_vm2, %v11017_v1, 0.0  ;;  %25606 = vst [vmem:[#allocation97_spill] sm:$0xff] %v23309_v20  ;;  %vm24934_vm2 = vcmp.eq.s32.totalorder %v23187_v29, 1  ;;  %v18371_v29 = vld [vmem:[#allocation12 + $0x108] sm:$0xff]  }
 0x557   : > { %v23303_v61 = vadd.f32 %v11209_v0, %v25603_v46  ;;  %v10455_v21 = vpop.f32.mrb[172].mxu1  ;;  %v25607_v0 = vld [vmem:[#allocation75_spill] sm:$0xff] }
 0x558   : > { %v10904_v19 = vadd.f32 %v25604_v45, %v10455_v21  ;;  %v10457_v23 = vpop.f32.mrb[173].mxu1  ;;  %v18370_v21 = vld [vmem:[#allocation12 + $0x100] sm:$0xff]   ;;  %v25608_v45 = vld [vmem:[#allocation77_spill] sm:$0xff] }
 0x559   : > { %v10458_v31 = vpop.f32.mrb[174].mxu1  ;;  %v25609_v23 = vld [vmem:[#allocation90_spill] sm:$0xff]  ;;  %17136 = vmatprep.subr.bf16.mxu1 %v18370_v21 }
 0x55a   : > { %v11018_v9 = vadd.f32 %v10904_v19, %v23122_v52  ;;  %v10907_v13 = vadd.f32 %v25605_v38, %v10458_v31  ;;  %v10460_v62 = vpop.f32.mrb[175].mxu1  ;;  %17137 = vmatpush3.bf16.msra.mxu1 %v18370_v21  ;;  %v25612_v21 = vld [vmem:[#allocation113_spill] sm:$0xff] }
 0x55b   : > { %17138 = vmatprep.subr.bf16.mxu1 %v18371_v29 }
 0x55c   : > { %v11210_v1 = vsel %vm24935_vm3, %v11018_v9, 0.0  ;;  %v11019_v47 = vadd.f32 %v10907_v13, %v23129_v8  ;;  %v23324_v9 = vpop.permute.xlu0 %11121  ;;  %vm24941_vm3 = vcmp.eq.s32.totalorder %v23221_v18, 1  ;;  %v18367_v18 = vld [vmem:[#allocation12 + $0xc8] sm:$0xff]  }
 0x55d   : > { %v23316_v46 = vadd.f32 %v11210_v1, %v25607_v0  ;;  %25610 = vst [vmem:[#allocation83_spill] sm:$0xff] %v23324_v9  ;;  %v25611_v1 = vld [vmem:[#allocation42_spill] sm:$0xff]  ;;  %16994 = vmatprep.subr.bf16.mxu0 %v18367_v18 }
 0x55e   : > { %v11211_v52 = vsel %vm24934_vm2, %v11019_v47, 0.0  ;;  %vm24942_vm2 = vcmp.eq.s32.totalorder %v23203_v30, 1  ;;  %17139 = vmatpush3.bf16.msra.mxu1 %v18371_v29  ;;  %16995 = vmatpush3.bf16.msra.mxu0 %v18367_v18 }
 0x55f   : > { %v23321_v62 = vadd.f32 %v11211_v52, %v25608_v45  ;;  %v10463_v19 = vpop.f32.mrb[176].mxu1  ;;  %v11406_v45 = vmul.f32 %v23285_v2, %v23285_v2 }
 0x560   : > { %v10912_v31 = vadd.f32 %v25609_v23, %v10463_v19  ;;  %v10465_v38 = vpop.f32.mrb[177].mxu1  ;;  %v23340_v23 = vpop.permute.xlu0 %11124 }
 0x561   : > { %v10466_v8 = vpop.f32.mrb[178].mxu1  ;;  %25613 = vst [vmem:[#allocation35_spill] sm:$0xff] %v23340_v23  ;;  %v11407_v38 = vmul.f32 %v23298_v4, %v23298_v4 }
 0x562   : > { %v11020_v13 = vadd.f32 %v10912_v31, %v23118_v7  ;;  %v10915_v0 = vadd.f32 %v25611_v1, %v10466_v8  ;;  %v10468_v25 = vpop.f32.mrb[179].mxu1  ;;  %v11405_v31 = vmul.f32 %v23278_v22, %v23278_v22  ;;  %v25614_v8 = vld [vmem:[#allocation114_spill] sm:$0xff] }
 0x563   : > { %v18373_v25 = vld [vmem:[#allocation12 + $0x110] sm:$0xff]  }
 0x564   : > { %v11212_v47 = vsel %vm24942_vm2, %v11020_v13, 0.0  ;;  %v11021_v52 = vadd.f32 %v10915_v0, %v23126_v10  ;;  %v11366_v10 = vadd.f32 %v23285_v2, %v23278_v22  ;;  %17140 = vmatprep.subr.bf16.mxu1 %v18373_v25  ;;  %vm24943_vm2 = vcmp.eq.s32.totalorder %v23255_v55, 1 }
 0x565   : > { %v23336_v19 = vadd.f32 %v11212_v47, %v25612_v21  ;;  %v11437_v47 = vadd.f32 %v11406_v45, %v11405_v31  ;;  %17141 = vmatpush3.bf16.msra.mxu1 %v18373_v25  ;;  %v25616_v25 = vld [vmem:[#allocation87_spill] sm:$0xff] }
 0x566   : > { %v11213_v7 = vsel %vm24941_vm3, %v11021_v52, 0.0  ;;  %v11367_v52 = vadd.f32 %v11366_v10, %v23298_v4  ;;  %vm24944_vm3 = vcmp.eq.s32.totalorder %v23244_v58, 1  ;;  %17142 = vmatprep.subr.bf16.mxu1 %v18374_v56 }
 0x567   : > { %v23349_v13 = vadd.f32 %v11213_v7, %v25614_v8  ;;  %v10471_v1 = vpop.f32.mrb[180].mxu1  ;;  %v11438_v7 = vadd.f32 %v11437_v47, %v11407_v38  ;;  %v18368_v38 = vld [vmem:[#allocation12 + $0xd0] sm:$0xff]  }
 0x568   : > { %v10920_v29 = vadd.f32 %v23050_v12, %v10471_v1  ;;  %v10473_v0 = vpop.f32.mrb[181].mxu1  ;;  %v11408_v12 = vmul.f32 %v23303_v61, %v23303_v61  ;;  %v25617_v8 = vld [vmem:[#allocation118_spill] sm:$0xff]  ;;  %16996 = vmatprep.subr.bf16.mxu0 %v18368_v38 }
 0x569   : > { %v10474_v21 = vpop.f32.mrb[182].mxu1  ;;  %17143 = vmatpush3.bf16.msra.mxu1 %v18374_v56  ;;  %16997 = vmatpush3.bf16.msra.mxu0 %v18368_v38  ;;  %v11410_v56 = vmul.f32 %v23321_v62, %v23321_v62 }
 0x56a   : > { %v11022_v30 = vadd.f32 %v10920_v29, %v23148_v42  ;;  %v10923_v37 = vadd.f32 %v23058_v53, %v10474_v21  ;;  %v10476_v5 = vpop.f32.mrb[183].mxu1  ;;  %v23362_v42 = vpop.permute.xlu0 %11127  ;;  %v11368_v53 = vadd.f32 %v11367_v52, %v23303_v61 }
 0x56b   : > { %25615 = vst [vmem:[#allocation88_spill] sm:$0xff] %v23362_v42  ;;  %v11409_v5 = vmul.f32 %v23316_v46, %v23316_v46 }
 0x56c   : > { %v11214_v45 = vsel %vm24944_vm3, %v11022_v30, 0.0  ;;  %v11023_v31 = vadd.f32 %v10923_v37, %v23155_v3  ;;  %v18376_v3 = vld [vmem:[#allocation12 + $0x120] sm:$0xff]   ;;  %v11439_v37 = vadd.f32 %v11438_v7, %v11408_v12  ;;  %v11369_v18 = vadd.f32 %v11368_v53, %v23316_v46  ;;  %v18377_v53 = vld [vmem:[#allocation12 + $0x128] sm:$0xff]  }
 0x56d   : > { %v23368_v10 = vadd.f32 %v11214_v45, %v25616_v25  ;;  %17144 = vmatprep.subr.bf16.mxu1 %v18376_v3  ;;  %v18369_v45 = vld [vmem:[#allocation12 + $0xd8] sm:$0xff]   ;;  %vm24945_vm3 = vcmp.eq.s32.totalorder %v23282_v44, 1 }
 0x56e   : > { %v11215_v30 = vsel %vm24943_vm2, %v11023_v31, 0.0  ;;  %v11440_v52 = vadd.f32 %v11439_v37, %v11409_v5  ;;  %17145 = vmatpush3.bf16.msra.mxu1 %v18376_v3  ;;  %vm24946_vm2 = vcmp.eq.s32.totalorder %v23268_v15, 1  ;;  %v23382_v25 = vpop.permute.xlu0 %11130  ;;  %v11411_v5 = vmul.f32 %v23336_v19, %v23336_v19  ;;  %16998 = vmatprep.subr.bf16.mxu0 %v18369_v45  ;;  %v25619_v3 = vld [vmem:[#allocation49_spill] sm:$0xff] }
 0x56f   : > { %v23374_v1 = vadd.f32 %v11215_v30, %v25617_v8  ;;  %v10479_v29 = vpop.f32.mrb[184].mxu1  ;;  %25618 = vst [vmem:[#allocation79_spill] sm:$0xff] %v23382_v25  ;;  %16999 = vmatpush3.bf16.msra.mxu0 %v18369_v45  ;;  %17146 = vmatprep.subr.bf16.mxu1 %v18377_v53 }
 0x570   : > { %v10928_v0 = vadd.f32 %v23048_v6, %v10479_v29  ;;  %v10481_v47 = vpop.f32.mrb[185].mxu1  ;;  %v11370_v6 = vadd.f32 %v11369_v18, %v23321_v62  ;;  %v18372_v18 = vld [vmem:[#allocation12 + $0xe0] sm:$0xff]   ;;  %v18379_v29 = vld [vmem:[#allocation12 + $0x130] sm:$0xff]  }
 0x571   : > { %v10482_v21 = vpop.f32.mrb[186].mxu1  ;;  %v25620_v47 = vld [vmem:[#allocation50_spill] sm:$0xff]  ;;  %17000 = vmatprep.subr.bf16.mxu0 %v18372_v18 }
 0x572   : > { %v11024_v7 = vadd.f32 %v10928_v0, %v23142_v57  ;;  %v10931_v12 = vadd.f32 %v23055_v49, %v10482_v21  ;;  %v10484_v31 = vpop.f32.mrb[187].mxu1  ;;  %v11441_v49 = vadd.f32 %v11440_v52, %v11410_v56  ;;  %v11371_v57 = vadd.f32 %v11370_v6, %v23336_v19  ;;  %17147 = vmatpush3.bf16.msra.mxu1 %v18377_v53  ;;  %v18375_v6 = vld [vmem:[#allocation12 + $0xe8] sm:$0xff]  }
 0x573   : > { %17001 = vmatpush3.bf16.msra.mxu0 %v18372_v18  ;;  %17148 = vmatprep.subr.bf16.mxu1 %v18379_v29  ;;  %v11413_v31 = vmul.f32 %v23368_v10, %v23368_v10 }
 0x574   : > { %v11216_v38 = vsel %vm24946_vm2, %v11024_v7, 0.0  ;;  %v11025_v30 = vadd.f32 %v10931_v12, %v23152_v40  ;;  %v11442_v0 = vadd.f32 %v11441_v49, %v11411_v5  ;;  %v11412_v40 = vmul.f32 %v23349_v13, %v23349_v13  ;;  %v23403_v7 = vpop.permute.xlu0 %11133  ;;  %v18380_v49 = vld [vmem:[#allocation12 + $0x138] sm:$0xff]   ;;  %17002 = vmatprep.subr.bf16.mxu0 %v18375_v6 }
 0x575   : > { %v23393_v37 = vadd.f32 %v11216_v38, %v25619_v3  ;;  %25621 = vst [vmem:[#allocation40_spill] sm:$0xff] %v23403_v7  ;;  %v11372_v12 = vadd.f32 %v11371_v57, %v23349_v13  ;;  %vm24947_vm2 = vcmp.eq.s32.totalorder %v23309_v20, 1 }
 0x576   : > { %v11217_v8 = vsel %vm24945_vm3, %v11025_v30, 0.0  ;;  %17149 = vmatpush3.bf16.msra.mxu1 %v18379_v29  ;;  %vm24948_vm3 = vcmp.eq.s32.totalorder %v23295_v59, 1 }
 0x577   : > { %v23400_v21 = vadd.f32 %v11217_v8, %v25620_v47  ;;  %v10487_v45 = vpop.f32.mrb[188].mxu1  ;;  %v11373_v3 = vadd.f32 %v11372_v12, %v23368_v10  ;;  %17003 = vmatpush3.bf16.msra.mxu0 %v18375_v6  ;;  %17150 = vmatprep.subr.bf16.mxu1 %v18380_v49  ;;  %v25622_v8 = vld [vmem:[#allocation27_spill] sm:$0xff] }
 0x578   : > { %v10936_v52 = vadd.f32 %v23071_v24, %v10487_v45  ;;  %v10489_v56 = vpop.f32.mrb[189].mxu1  ;;  %v11443_v24 = vadd.f32 %v11442_v0, %v11412_v40  ;;  %v18378_v0 = vld [vmem:[#allocation12 + $0xf0] sm:$0xff]   ;;  %v23423_v47 = vpop.permute.xlu0 %11136  ;;  %v11415_v45 = vmul.f32 %v23393_v37, %v23393_v37 }
 0x579   : > { %v10490_v53 = vpop.f32.mrb[190].mxu1  ;;  %25623 = vst [vmem:[#allocation124_spill] sm:$0xff] %v23423_v47  ;;  %17004 = vmatprep.subr.bf16.mxu0 %v18378_v0 }
 0x57a   : > { %v11026_v5 = vadd.f32 %v10936_v52, %v23166_v33  ;;  %v10939_v38 = vadd.f32 %v23078_v14, %v10490_v53  ;;  %v10492_v30 = vpop.f32.mrb[191].mxu1  ;;  %v11444_v33 = vadd.f32 %v11443_v24, %v11413_v31  ;;  %v11414_v14 = vmul.f32 %v23374_v1, %v23374_v1  ;;  %17151 = vmatpush3.bf16.msra.mxu1 %v18380_v49  ;;  %v25624_v52 = vld [vmem:[#allocation28_spill] sm:$0xff]  ;;  %v18381_v31 = vld [vmem:[#allocation12 + $0xf8] sm:$0xff]  }
 0x57b   : > { %17005 = vmatpush3.bf16.msra.mxu0 %v18378_v0 }
 0x57c   : > { %v11218_v57 = vsel %vm24948_vm3, %v11026_v5, 0.0  ;;  %v11027_v18 = vadd.f32 %v10939_v38, %v23175_v54  ;;  %v11374_v54 = vadd.f32 %v11373_v3, %v23374_v1  ;;  %v11445_v5 = vadd.f32 %v11444_v33, %v11414_v14  ;;  %17006 = vmatprep.subr.bf16.mxu0 %v18381_v31  ;;  %v23442_v14 = vpop.permute.xlu0 %11139 }
 0x57d   : > { %v23419_v29 = vadd.f32 %v11218_v57, %v25622_v8  ;;  %vm24949_vm3 = vcmp.eq.s32.totalorder %v23340_v23, 1  ;;  %25625 = vst [vmem:[#allocation138_spill] sm:$0xff] %v23442_v14  ;;  %v25626_v8 = vld [vmem:[#allocation117_spill] sm:$0xff] }
 0x57e   : > { %v11219_v40 = vsel %vm24947_vm2, %v11027_v18, 0.0  ;;  %v11375_v38 = vadd.f32 %v11374_v54, %v23393_v37  ;;  %vm24950_vm2 = vcmp.eq.s32.totalorder %v23324_v9, 1  ;;  %v11446_v57 = vadd.f32 %v11445_v5, %v11415_v45  ;;  %v23452_v54 = vld [vmem:[#allocation12] sm:$0xff]  }
 0x57f   : > { %v23429_v56 = vadd.f32 %v11219_v40, %v25624_v52  ;;  %v10495_v12 = vpop.f32.mrb[192].mxu1  ;;  %v11416_v18 = vmul.f32 %v23400_v21, %v23400_v21  ;;  %17007 = vmatpush3.bf16.msra.mxu0 %v18381_v31  ;;  %v25627_v52 = vld [vmem:[#allocation29_spill] sm:$0xff] }
 0x580   : > { %v10944_v53 = vadd.f32 %v23069_v17, %v10495_v12  ;;  %v10497_v6 = vpop.f32.mrb[193].mxu1  ;;  %17040 = vmatprep.subr.bf16.mxu0 %v23452_v54 }
 0x581   : > { %v10498_v30 = vpop.f32.mrb[194].mxu1  ;;  %v11447_v45 = vadd.f32 %v11446_v57, %v11416_v18  ;;  %v23465_v57 = vpop.permute.xlu0 %11142 }
 0x582   : > { %v11028_v49 = vadd.f32 %v10944_v53, %v23162_v60  ;;  %v10947_v24 = vadd.f32 %v23076_v26, %v10498_v30  ;;  %v10500_v3 = vpop.f32.mrb[195].mxu1  ;;  %v11376_v60 = vadd.f32 %v11375_v38, %v23400_v21  ;;  %v11417_v26 = vmul.f32 %v23419_v29, %v23419_v29  ;;  %25628 = vst [vmem:[#allocation98_spill] sm:$0xff] %v23465_v57 }
 0x583   : > { %v11418_v38 = vmul.f32 %v23429_v56, %v23429_v56 }
 0x584   : > { %v11220_v17 = vsel %vm24950_vm2, %v11028_v49, 0.0  ;;  %v11029_v33 = vadd.f32 %v10947_v24, %v23172_v39  ;;  %v11377_v39 = vadd.f32 %v11376_v60, %v23419_v29  ;;  %v11448_v5 = vadd.f32 %v11447_v45, %v11417_v26  ;;  %v25629_v60 = vld [vmem:[#allocation59_spill] sm:$0xff] }
 0x585   : > { %v23448_v0 = vadd.f32 %v11220_v17, %v25626_v8  ;;  %vm24951_vm2 = vcmp.eq.s32.totalorder %v23382_v25, 1 }
 0x586   : > { %v11221_v40 = vsel %vm24949_vm3, %v11029_v33, 0.0  ;;  %vm24952_vm3 = vcmp.eq.s32.totalorder %v23362_v42, 1  ;;  %v11378_v18 = vadd.f32 %v11377_v39, %v23429_v56  ;;  %v25630_v39 = vld [vmem:[#allocation65_spill] sm:$0xff] }
 0x587   : > { %v23456_v12 = vadd.f32 %v11221_v40, %v25627_v52  ;;  %v10503_v31 = vpop.f32.mrb[196].mxu1 }
 0x588   : > { %v10952_v53 = vadd.f32 %v23091_v11, %v10503_v31  ;;  %v10505_v6 = vpop.f32.mrb[197].mxu1  ;;  %v11419_v11 = vmul.f32 %v23448_v0, %v23448_v0 }
 0x589   : > { %v10506_v30 = vpop.f32.mrb[198].mxu1  ;;  %v11420_v45 = vmul.f32 %v23456_v12, %v23456_v12  ;;  %v23486_v6 = vpop.permute.xlu0 %11145 }
 0x58a   : > { %v11030_v49 = vadd.f32 %v10952_v53, %v23194_v41  ;;  %v10955_v24 = vadd.f32 %v23097_v63, %v10506_v30  ;;  %v10508_v3 = vpop.f32.mrb[199].mxu1  ;;  %v11449_v41 = vadd.f32 %v11448_v5, %v11418_v38  ;;  %v11379_v63 = vadd.f32 %v11378_v18, %v23448_v0  ;;  %25631 = vst [vmem:[#allocation62_spill] sm:$0xff] %v23486_v6 }
 0x58c   : > { %v11222_v17 = vsel %vm24952_vm3, %v11030_v49, 0.0  ;;  %v11031_v33 = vadd.f32 %v10955_v24, %v23201_v36  ;;  %v11450_v40 = vadd.f32 %v11449_v41, %v11419_v11  ;;  %v11380_v5 = vadd.f32 %v11379_v63, %v23456_v12  ;;  %v25632_v24 = vld [vmem:[#allocation127_spill] sm:$0xff] }
 0x58d   : > { %v23476_v26 = vadd.f32 %v11222_v17, %v25629_v60  ;;  %vm24953_vm3 = vcmp.eq.s32.totalorder %v23423_v47, 1 }
 0x58e   : > { %v11223_v8 = vsel %vm24951_vm2, %v11031_v33, 0.0  ;;  %vm24954_vm2 = vcmp.eq.s32.totalorder %v23403_v7, 1  ;;  %v11451_v11 = vadd.f32 %v11450_v40, %v11420_v45  ;;  %v23506_v40 = vpop.permute.xlu0 %11148 }
 0x58f   : > { %v23483_v52 = vadd.f32 %v11223_v8, %v25630_v39  ;;  %v10511_v31 = vpop.f32.mrb[200].mxu1  ;;  %v11421_v38 = vmul.f32 %v23476_v26, %v23476_v26  ;;  %v11381_v17 = vadd.f32 %v11380_v5, %v23476_v26  ;;  %25634 = vst [vmem:[#allocation86_spill] sm:$0xff] %v23506_v40 }
 0x590   : > { %v10960_v36 = vadd.f32 %v23089_v34, %v10511_v31  ;;  %v10513_v53 = vpop.f32.mrb[201].mxu1 }
 0x591   : > { %v10514_v30 = vpop.f32.mrb[202].mxu1  ;;  %v11452_v41 = vadd.f32 %v11451_v11, %v11421_v38  ;;  %v11422_v63 = vmul.f32 %v23483_v52, %v23483_v52  ;;  %v11382_v45 = vadd.f32 %v11381_v17, %v23483_v52  ;;  %v25636_v53 = vld [vmem:[#allocation145_spill] sm:$0xff] }
 0x592   : > { %v11032_v49 = vadd.f32 %v10960_v36, %v23190_v16  ;;  %v10963_v3 = vadd.f32 %v25632_v24, %v10514_v30  ;;  %v10516_v18 = vpop.f32.mrb[203].mxu1  ;;  %v25633_v16 = vld [vmem:[#allocation31_spill] sm:$0xff] }
 0x593   : > { %v11453_v30 = vadd.f32 %v11452_v41, %v11422_v63  ;;  %v25637_v18 = vld [vmem:[#allocation129_spill] sm:$0xff]  ;;  %v23525_v41 = vpop.permute.xlu0 %11151  ;;  %v25639_v63 = vld [vmem:[#allocation58_spill] sm:$0xff] }
 0x594   : > { %v11224_v34 = vsel %vm24954_vm2, %v11032_v49, 0.0  ;;  %v11033_v33 = vadd.f32 %v10963_v3, %v23198_v35  ;;  %v25635_v35 = vld [vmem:[#allocation76_spill] sm:$0xff]  ;;  %vm24955_vm2 = vcmp.eq.s32.totalorder %v23465_v57, 1  ;;  %25638 = vst [vmem:[#allocation36_spill] sm:$0xff] %v23525_v41 }
 0x595   : > { %v23502_v60 = vadd.f32 %v11224_v34, %v25633_v16 }
 0x596   : > { %v11225_v8 = vsel %vm24953_vm3, %v11033_v33, 0.0  ;;  %vm24956_vm3 = vcmp.eq.s32.totalorder %v23442_v14, 1 }
 0x597   : > { %v11423_v39 = vmul.f32 %v23502_v60, %v23502_v60  ;;  %v23512_v31 = vadd.f32 %v11225_v8, %v25635_v35  ;;  %v10519_v36 = vpop.f32.mrb[204].mxu1  ;;  %v11383_v49 = vadd.f32 %v11382_v45, %v23502_v60 }
 0x598   : > { %v10968_v5 = vadd.f32 %v25636_v53, %v10519_v36  ;;  %v10521_v38 = vpop.f32.mrb[205].mxu1 }
 0x599   : > { %v10522_v24 = vpop.f32.mrb[206].mxu1  ;;  %v11454_v17 = vadd.f32 %v11453_v30, %v11423_v39  ;;  %v11424_v33 = vmul.f32 %v23512_v31, %v23512_v31  ;;  %v23539_v30 = vld [vmem:[#allocation12 + $0x40] sm:$0xff]  }
 0x59a   : > { %v11034_v3 = vadd.f32 %v10968_v5, %v23212_v32  ;;  %v10971_v11 = vadd.f32 %v25637_v18, %v10522_v24  ;;  %v10524_v34 = vpop.f32.mrb[207].mxu1  ;;  %v11384_v32 = vadd.f32 %v11383_v49, %v23512_v31  ;;  %v25640_v5 = vld [vmem:[#allocation119_spill] sm:$0xff]  ;;  %v25641_v24 = vld [vmem:[#allocation104_spill] sm:$0xff]  ;;  %17184 = vmatprep.subr.bf16.mxu1 %v23539_v30 }
 0x59b   : > { %v11455_v35 = vadd.f32 %v11454_v17, %v11424_v33  ;;  %v25642_v33 = vld [vmem:[#allocation137_spill] sm:$0xff] }
 0x59c   : > { %v11226_v16 = vsel %vm24956_vm3, %v11034_v3, 0.0  ;;  %v11035_v8 = vadd.f32 %v10971_v11, %v23219_v28  ;;  %vm24960_vm3 = vcmp.eq.s32.totalorder %v23506_v40, 1 }
 0x59d   : > { %v23529_v45 = vadd.f32 %v11226_v16, %v25639_v63 }
 0x59e   : > { %v11227_v39 = vsel %vm24955_vm2, %v11035_v8, 0.0  ;;  %v25643_v8 = vld [vmem:[#allocation43_spill] sm:$0xff]  ;;  %vm24961_vm2 = vcmp.eq.s32.totalorder %v23486_v6, 1 }
 0x59f   : > { %v11385_v36 = vadd.f32 %v11384_v32, %v23529_v45  ;;  %v11425_v53 = vmul.f32 %v23529_v45, %v23529_v45  ;;  %v23537_v28 = vadd.f32 %v11227_v39, %v25640_v5  ;;  %v10527_v38 = vpop.f32.mrb[208].mxu1  ;;  %v23549_v39 = vpop.permute.xlu0 %11154 }
 0x5a0   : > { %v10976_v49 = vadd.f32 %v25641_v24, %v10527_v38  ;;  %v10529_v3 = vpop.f32.mrb[209].mxu1  ;;  %25644 = vst [vmem:[#allocation38_spill] sm:$0xff] %v23549_v39  ;;  %v25646_v38 = vld [vmem:[#allocation61_spill] sm:$0xff] }
 0x5a1   : > { %v11456_v18 = vadd.f32 %v11455_v35, %v11425_v53  ;;  %v11386_v11 = vadd.f32 %v11385_v36, %v23537_v28  ;;  %v11426_v34 = vmul.f32 %v23537_v28, %v23537_v28  ;;  %v10530_v17 = vpop.f32.mrb[210].mxu1  ;;  %v25645_v36 = vld [vmem:[#allocation82_spill] sm:$0xff] }
 0x5a2   : > { %v11036_v16 = vadd.f32 %v10976_v49, %v25642_v33  ;;  %v10979_v32 = vadd.f32 %v25643_v8, %v10530_v17  ;;  %v10532_v63 = vpop.f32.mrb[211].mxu1  ;;  %v25647_v33 = vld [vmem:[#allocation55_spill] sm:$0xff] }
 0x5a3   : > { %v11457_v5 = vadd.f32 %v11456_v18, %v11426_v34 }
 0x5a4   : > { %v11228_v35 = vsel %vm24961_vm2, %v11036_v16, 0.0  ;;  %v11037_v53 = vadd.f32 %v10979_v32, %v25645_v36  ;;  %v23566_v16 = vld [vmem:[#allocation3] sm:$0xff]  ;;  %v25648_v32 = vld [vmem:[#allocation72_spill] sm:$0xff]  ;;  %v23570_v36 = vpop.permute.xlu0 %11157  ;;  %vm24966_vm2 = vcmp.eq.s32.totalorder %v23549_v39, 1 }
 0x5a5   : > { %v23556_v24 = vadd.f32 %v11228_v35, %v25646_v38  ;;  %25649 = vst [vmem:[#allocation48_spill] sm:$0xff] %v23570_v36 }
 0x5a6   : > { %v11229_v49 = vsel %vm24960_vm3, %v11037_v53, 0.0  ;;  %vm24967_vm3 = vcmp.eq.s32.totalorder %v23525_v41, 1 }
 0x5a7   : > { %v11387_v3 = vadd.f32 %v11386_v11, %v23556_v24  ;;  %v11427_v17 = vmul.f32 %v23556_v24, %v23556_v24  ;;  %v23564_v18 = vadd.f32 %v11229_v49, %v25647_v33  ;;  %v10535_v34 = vpop.f32.mrb[212].mxu1  ;;  %v25650_v33 = vld [vmem:[#allocation93_spill] sm:$0xff] }
 0x5a8   : > { %v10984_v63 = vadd.f32 %v25648_v32, %v10535_v34  ;;  %v10537_v35 = vpop.f32.mrb[213].mxu1  ;;  %v24962_v34 = vshrl.u32 %v23566_v16, 16  ;;  %v25651_v32 = vshll.u32 %v23566_v16, 16 }
 0x5a9   : > { %v11458_v38 = vadd.f32 %v11457_v5, %v11427_v17  ;;  %v11388_v53 = vadd.f32 %v11387_v3, %v23564_v18  ;;  %v11428_v11 = vmul.f32 %v23564_v18, %v23564_v18  ;;  %v10538_v57 = vpop.f32.mrb[214].mxu1  ;;  %v25652_v17 = vld [vmem:[#allocation54_spill] sm:$0xff] }
 0x5aa   : > { %v11038_v49 = vadd.f32 %v10984_v63, %v23238_v50  ;;  %v10987_v40 = vadd.f32 %v25650_v33, %v10538_v57  ;;  %v10540_v14 = vpop.f32.mrb[215].mxu1  ;;  %v13986_v35 = vrot.slane %v25651_v32, 1  ;;  %v23594_v63 = vpop.permute.xlu0 %11160  ;;  %v25655_v33 = vld [vmem:[#allocation130_spill] sm:$0xff] }
 0x5ab   : > { %v11459_v8 = vadd.f32 %v11458_v38, %v11428_v11  ;;  %25653 = vst [vmem:[#allocation125_spill] sm:$0xff] %v23594_v63 }
 0x5ac   : > { %v11230_v5 = vsel %vm24967_vm3, %v11038_v49, 0.0  ;;  %v11039_v3 = vadd.f32 %v10987_v40, %v23247_v27  ;;  %v23590_v14 = vor.u32 %v13986_v35, %v24962_v34  ;;  %v25654_v27 = vld [vmem:[#allocation60_spill] sm:$0xff]  ;;  %vm24971_vm3 = vcmp.eq.s32.totalorder %v23594_v63, 1 }
 0x5ad   : > { %v23586_v50 = vadd.f32 %v11230_v5, %v25652_v17 }
 0x5ae   : > { %v11231_v57 = vsel %vm24966_vm2, %v11039_v3, 0.0  ;;  %vm24972_vm2 = vcmp.eq.s32.totalorder %v23570_v36, 1 }
 0x5af   : > { %v11389_v38 = vadd.f32 %v11388_v53, %v23586_v50  ;;  %v11429_v11 = vmul.f32 %v23586_v50, %v23586_v50  ;;  %v23600_v40 = vadd.f32 %v11231_v57, %v25654_v27  ;;  %v10543_v49 = vpop.f32.mrb[216].mxu1  ;;  %v25656_v53 = vld [vmem:[#allocation133_spill] sm:$0xff] }
 0x5b0   : > { %v10992_v32 = vadd.f32 %v25655_v33, %v10543_v49  ;;  %v10545_v5 = vpop.f32.mrb[217].mxu1  ;;  %v25657_v49 = vld [vmem:[#allocation46_spill] sm:$0xff] }
 0x5b1   : > { %v11460_v17 = vadd.f32 %v11459_v8, %v11429_v11  ;;  %v11390_v35 = vadd.f32 %v11389_v38, %v23600_v40  ;;  %v11430_v3 = vmul.f32 %v23600_v40, %v23600_v40  ;;  %v10546_v34 = vpop.f32.mrb[218].mxu1  ;;  %v23613_v8 = vpop.permute.xlu0 %11163  ;;  %v25659_v38 = vld [vmem:[#allocation56_spill] sm:$0xff] }
 0x5b2   : > { %v11040_v39 = vadd.f32 %v10992_v32, %v23234_v51  ;;  %v10995_v41 = vadd.f32 %v25656_v53, %v10546_v34  ;;  %v10548_v6 = vpop.f32.mrb[219].mxu1  ;;  %25658 = vst [vmem:[#allocation84_spill] sm:$0xff] %v23613_v8  ;;  %v25660_v32 = vld [vmem:[#allocation122_spill] sm:$0xff] }
 0x5b3   : > { %v11461_v57 = vadd.f32 %v11460_v17, %v11430_v3 }
 0x5b4   : > { %v11232_v27 = vsel %vm24972_vm2, %v11040_v39, 0.0  ;;  %v11041_v33 = vadd.f32 %v10995_v41, %v25657_v49  ;;  %v25661_v41 = vld [vmem:[#allocation142_spill] sm:$0xff] }
 0x5b5   : > { %v23616_v11 = vadd.f32 %v11232_v27, %v25659_v38 }
 0x5b6   : > { %v11233_v51 = vsel %vm24971_vm3, %v11041_v33, 0.0  ;;  %v25662_v33 = vld [vmem:[#allocation73_spill] sm:$0xff]  ;;  %vm24976_vm3 = vcmp.eq.s32.totalorder %v23613_v8, 1  ;;  %v25671_v8 = vld [vmem:[#allocation140_spill] sm:$0xff] }
 0x5b7   : > { %v11391_v6 = vadd.f32 %v11390_v35, %v23616_v11  ;;  %v11431_v34 = vmul.f32 %v23616_v11, %v23616_v11  ;;  %v23624_v5 = vadd.f32 %v11233_v51, %v25660_v32  ;;  %v10551_v39 = vpop.f32.mrb[220].mxu1  ;;  %v25663_v35 = vld [vmem:[#allocation102_spill] sm:$0xff]  ;;  %v23633_v51 = vpop.permute.xlu0 %11166 }
 0x5b8   : > { %v11000_v17 = vadd.f32 %v25661_v41, %v10551_v39  ;;  %v10553_v3 = vpop.f32.mrb[221].mxu1  ;;  %25664 = vst [vmem:[#allocation67_spill] sm:$0xff] %v23633_v51  ;;  %vm24975_vm2 = vcmp.eq.s32.totalorder %v23633_v51, 1 }
 0x5b9   : > { %v11462_v53 = vadd.f32 %v11461_v57, %v11431_v34  ;;  %v11392_v49 = vadd.f32 %v11391_v6, %v23624_v5  ;;  %v11432_v27 = vmul.f32 %v23624_v5, %v23624_v5  ;;  %v10554_v38 = vpop.f32.mrb[222].mxu1  ;;  %v25665_v6 = vld [vmem:[#allocation63_spill] sm:$0xff]  ;;  %v25666_v3 = vld [vmem:[#allocation34_spill] sm:$0xff] }
 0x5ba   : > { %v11042_v63 = vadd.f32 %v11000_v17, %v25662_v33  ;;  %v11003_v36 = vadd.f32 %v25663_v35, %v10554_v38  ;;  %v10556_v25 = vpop.f32.mrb[223].mxu1 }
 0x5bb   : > { %v11463_v32 = vadd.f32 %v11462_v53, %v11432_v27 }
 0x5bc   : > { %v11234_v39 = vsel %vm24976_vm3, %v11042_v63, 0.0  ;;  %v11043_v57 = vadd.f32 %v11003_v36, %v23265_v43  ;;  %v25667_v63 = vld [vmem:[#allocation141_spill] sm:$0xff]  ;;  %v23651_v36 = vpop.permute.xlu0 %11169 }
 0x5bd   : > { %v23640_v34 = vadd.f32 %v11234_v39, %v25665_v6  ;;  %25668 = vst [vmem:[#allocation81_spill] sm:$0xff] %v23651_v36  ;;  %v25670_v6 = vld [vmem:[#allocation147_spill] sm:$0xff] }
 0x5be   : > { %v11235_v41 = vsel %vm24975_vm2, %v11043_v57, 0.0  ;;  %vm11204_vm2 = vcmp.eq.s32.totalorder %v23651_v36, 1 }
 0x5bf   : > { %v11393_v25 = vadd.f32 %v11392_v49, %v23640_v34  ;;  %v11433_v17 = vmul.f32 %v23640_v34, %v23640_v34  ;;  %v23648_v53 = vadd.f32 %v11235_v41, %v25666_v3  ;;  %v10559_v27 = vpop.f32.mrb[224].mxu1  ;;  %v23656_v49 = vpop.permute.xlu1 %11172 }
 0x5c0   : > { %v11008_v38 = vadd.f32 %v25667_v63, %v10559_v27  ;;  %v10561_v43 = vpop.f32.mrb[225].mxu1  ;;  %25669 = vst [vmem:[#allocation39_spill] sm:$0xff] %v23656_v49  ;;  %vm24985_vm3 = vcmp.eq.s32.totalorder %v23656_v49, 1 }
 0x5c1   : > { %v11464_v33 = vadd.f32 %v11463_v32, %v11433_v17  ;;  %v11394_v35 = vadd.f32 %v11393_v25, %v23648_v53  ;;  %v11434_v39 = vmul.f32 %v23648_v53, %v23648_v53  ;;  %v10562_v57 = vpop.f32.mrb[226].mxu1  ;;  %v25672_v25 = vld [vmem:[#allocation32_spill] sm:$0xff] }
 0x5c2   : > { %v11044_v51 = vadd.f32 %v11008_v38, %v25670_v6  ;;  %v11011_v41 = vadd.f32 %v25671_v8, %v10562_v57  ;;  %v10564_v3 = vpop.f32.mrb[227].mxu1  ;;  %v25673_v57 = vld [vmem:[#allocation33_spill] sm:$0xff] }
 0x5c3   : > { %v11465_v27 = vadd.f32 %v11464_v33, %v11434_v39 }
 0x5c4   : > { %v11236_v63 = vsel %vm11204_vm2, %v11044_v51, 0.0  ;;  %v11045_v32 = vadd.f32 %v11011_v41, %v23262_v48 }
 0x5c5   : > { %v23666_v17 = vadd.f32 %v11236_v63, %v25672_v25 }
 0x5c6   : > { %v11237_v43 = vsel %vm24985_vm3, %v11045_v32, 0.0  ;;  %vm11663_vm3 = vsmask.f32 256 }
 0x5c7   : > { %v11395_v38 = vadd.f32 %v11394_v35, %v23666_v17  ;;  %v11435_v8 = vmul.f32 %v23666_v17, %v23666_v17  ;;  %v11301_v33 = vadd.f32 %v11237_v43, %v25673_v57  ;;  %v23699_v57 = vld [vmem:[#allocation3 + $0x8] sm:$0x80] }
 0x5c9   : > { %v11466_v39 = vadd.f32 %v11465_v27, %v11435_v8  ;;  %v11396_v6 = vadd.f32 %v11395_v38, %v11301_v33  ;;  %v11436_v51 = vmul.f32 %v11301_v33, %v11301_v33 }
 0x5cb   : > { %v11397_v3 = vrot.slane %v11396_v6, 4  ;;  %v11467_v48 = vadd.f32 %v11466_v39, %v11436_v51 }
 0x5cd   : > { %v11398_v41 = vadd.f32 %v11397_v3, %v11396_v6  ;;  %v11468_v36 = vrot.slane %v11467_v48, 4 }
 0x5cf   : > { %v11399_v47 = vrot.slane %v11398_v41, 2  ;;  %v11469_v63 = vadd.f32 %v11468_v36, %v11467_v48 }
 0x5d1   : > { %v11400_v25 = vadd.f32 %v11399_v47, %v11398_v41  ;;  %v11470_v42 = vrot.slane %v11469_v63, 2 }
 0x5d3   : > { %v11401_v49 = vrot.slane %v11400_v25, 1  ;;  %v11471_v32 = vadd.f32 %v11470_v42, %v11469_v63 }
 0x5d5   : > { %v11402_v7 = vadd.f32 %v11401_v49, %v11400_v25  ;;  %v11472_v35 = vrot.slane %v11471_v32, 1 }
 0x5d7   : > { %v23674_v20 = vmul.f32 0.00390625, %v11402_v7  ;;  %v11473_v23 = vadd.f32 %v11472_v35, %v11471_v32 }
 0x5d9   : > { %v11474_v59 = vmul.f32 0.00390625, %v11473_v23  ;;  %v11475_v27 = vmul.f32 %v23674_v20, %v23674_v20  ;;  %v11507_v43 = vsub.f32 %v23666_v17, %v23674_v20  ;;  %v11508_v38 = vsub.f32 %v11301_v33, %v23674_v20 }
 0x5da   : > { %v11497_v42 = vsub.f32 %v23529_v45, %v23674_v20  ;;  %v11498_v7 = vsub.f32 %v23537_v28, %v23674_v20  ;;  %v11499_v23 = vsub.f32 %v23556_v24, %v23674_v20  ;;  %v11500_v47 = vsub.f32 %v23564_v18, %v23674_v20 }
 0x5db   : > { %v11476_v8 = vsub.f32 %v11474_v59, %v11475_v27  ;;  %v11501_v49 = vsub.f32 %v23586_v50, %v23674_v20  ;;  %v11502_v59 = vsub.f32 %v23600_v40, %v23674_v20  ;;  %v11503_v17 = vsub.f32 %v23616_v11, %v23674_v20 }
 0x5dc   : > { %v11504_v45 = vsub.f32 %v23624_v5, %v23674_v20  ;;  %v11505_v28 = vsub.f32 %v23640_v34, %v23674_v20  ;;  %v11506_v24 = vsub.f32 %v23648_v53, %v23674_v20  ;;  %v11665_v18 = vshrl.u32 %v23699_v57, 16 }
 0x5dd   : > { %v11509_v36 = vadd.f32 1e-05, %v11476_v8  ;;  %v11477_v50 = vsub.f32 %v23278_v22, %v23674_v20  ;;  %v11478_v40 = vsub.f32 %v23285_v2, %v23674_v20  ;;  %v11479_v11 = vsub.f32 %v23298_v4, %v23674_v20 }
 0x5de   : > { %v11480_v5 = vsub.f32 %v23303_v61, %v23674_v20  ;;  %v11481_v34 = vsub.f32 %v23316_v46, %v23674_v20  ;;  %v11482_v53 = vsub.f32 %v23321_v62, %v23674_v20  ;;  %v11483_v33 = vsub.f32 %v23336_v19, %v23674_v20 }
 0x5df   : > { %18438 = vrsqrt.f32 %v11509_v36  ;;  %v11484_v22 = vsub.f32 %v23349_v13, %v23674_v20  ;;  %v11485_v2 = vsub.f32 %v23368_v10, %v23674_v20  ;;  %v11486_v4 = vsub.f32 %v23374_v1, %v23674_v20 }
 0x5e0   : > { %v11487_v61 = vsub.f32 %v23393_v37, %v23674_v20  ;;  %v11488_v46 = vsub.f32 %v23400_v21, %v23674_v20  ;;  %v11489_v62 = vsub.f32 %v23419_v29, %v23674_v20  ;;  %v11490_v19 = vsub.f32 %v23429_v56, %v23674_v20 }
 0x5e1   : > { %v11491_v13 = vsub.f32 %v23448_v0, %v23674_v20  ;;  %v11492_v10 = vsub.f32 %v23456_v12, %v23674_v20  ;;  %v11493_v1 = vsub.f32 %v23476_v26, %v23674_v20  ;;  %v11494_v37 = vsub.f32 %v23483_v52, %v23674_v20 }
 0x5e2   : > { %v11495_v21 = vsub.f32 %v23502_v60, %v23674_v20  ;;  %v11496_v29 = vsub.f32 %v23512_v31, %v23674_v20 }
 0x5e9   : > { %v18439_v39 = vpop.eup %18438 }
 0x5ea   : > { %v11541_v56 = vmul.f32 %v18439_v39, %v11507_v43  ;;  %v11542_v6 = vmul.f32 %v18439_v39, %v11508_v38  ;;  %v23744_v51 = vmul.f32 %v18439_v39, %v11477_v50  ;;  %v23746_v0 = vmul.f32 %v18439_v39, %v11478_v40 }
 0x5eb   : > { %v23748_v12 = vmul.f32 %v18439_v39, %v11479_v11  ;;  %v23750_v3 = vmul.f32 %v18439_v39, %v11480_v5  ;;  %v23752_v26 = vmul.f32 %v18439_v39, %v11481_v34  ;;  %v11516_v48 = vmul.f32 %v18439_v39, %v11482_v53 }
 0x5ec   : > { %v11573_v52 = vmax.f32 %v11541_v56, 0.0  ;;  %v11574_v41 = vmax.f32 %v11542_v6, 0.0  ;;  %v11517_v63 = vmul.f32 %v18439_v39, %v11483_v33  ;;  %v11518_v60 = vmul.f32 %v18439_v39, %v11484_v22 }
 0x5ed   : > { %v11519_v25 = vmul.f32 %v18439_v39, %v11485_v2  ;;  %v11520_v32 = vmul.f32 %v18439_v39, %v11486_v4  ;;  %v11521_v20 = vmul.f32 %v18439_v39, %v11487_v61  ;;  %v11522_v31 = vmul.f32 %v18439_v39, %v11488_v46 }
 0x5ee   : > { %v23754_v35 = vpack.c.bf16 %v11574_v41, %v11573_v52  ;;  %v11523_v27 = vmul.f32 %v18439_v39, %v11489_v62  ;;  %v11524_v43 = vmul.f32 %v18439_v39, %v11490_v19  ;;  %v11525_v38 = vmul.f32 %v18439_v39, %v11491_v13 }
 0x5ef   : > { %v11526_v8 = vmul.f32 %v18439_v39, %v11492_v10  ;;  %v11527_v36 = vmul.f32 %v18439_v39, %v11493_v1  ;;  %v11528_v50 = vmul.f32 %v18439_v39, %v11494_v37  ;;  %v11529_v40 = vmul.f32 %v18439_v39, %v11495_v21 }
 0x5f0   : > { %11610 = vst [vmem:[#allocation3 + $0x88] sm:$0xff] %v23754_v35  ;;  %v11530_v11 = vmul.f32 %v18439_v39, %v11496_v29  ;;  %v11531_v5 = vmul.f32 %v18439_v39, %v11497_v42  ;;  %v11532_v34 = vmul.f32 %v18439_v39, %v11498_v7  ;;  %v11533_v53 = vmul.f32 %v18439_v39, %v11499_v23 }
 0x5f1   : > { %v11534_v33 = vmul.f32 %v18439_v39, %v11500_v47  ;;  %v11535_v22 = vmul.f32 %v18439_v39, %v11501_v49  ;;  %v11536_v2 = vmul.f32 %v18439_v39, %v11502_v59  ;;  %v11537_v4 = vmul.f32 %v18439_v39, %v11503_v17 }
 0x5f2   : > { %v11538_v61 = vmul.f32 %v18439_v39, %v11504_v45  ;;  %v11539_v46 = vmul.f32 %v18439_v39, %v11505_v28  ;;  %v11540_v56 = vmul.f32 %v18439_v39, %v11506_v24  ;;  %v11543_v62 = vmax.f32 %v23744_v51, 0.0 }
 0x5f3   : > { %v11544_v19 = vmax.f32 %v23746_v0, 0.0  ;;  %v11545_v13 = vmax.f32 %v23748_v12, 0.0  ;;  %v11546_v10 = vmax.f32 %v23750_v3, 0.0  ;;  %v11547_v1 = vmax.f32 %v23752_v26, 0.0 }
 0x5f4   : > { %v11548_v42 = vmax.f32 %v11516_v48, 0.0  ;;  %v11549_v7 = vmax.f32 %v11517_v63, 0.0  ;;  %v11550_v23 = vmax.f32 %v11518_v60, 0.0  ;;  %v11551_v47 = vmax.f32 %v11519_v25, 0.0 }
 0x5f5   : > { %v11552_v49 = vmax.f32 %v11520_v32, 0.0  ;;  %v11553_v59 = vmax.f32 %v11521_v20, 0.0  ;;  %v11554_v17 = vmax.f32 %v11522_v31, 0.0  ;;  %v11555_v45 = vmax.f32 %v11523_v27, 0.0 }
 0x5f6   : > { %v11556_v28 = vmax.f32 %v11524_v43, 0.0  ;;  %v11557_v24 = vmax.f32 %v11525_v38, 0.0  ;;  %v11558_v39 = vmax.f32 %v11526_v8, 0.0  ;;  %v11559_v37 = vmax.f32 %v11527_v36, 0.0  ;;  %v18387_v8 = vld [vmem:[#allocation12 + $0x48] sm:$0xff]  }
 0x5f7   : > { %v11560_v21 = vmax.f32 %v11528_v50, 0.0  ;;  %v11561_v29 = vmax.f32 %v11529_v40, 0.0  ;;  %v11562_v6 = vmax.f32 %v11530_v11, 0.0  ;;  %v11563_v51 = vmax.f32 %v11531_v5, 0.0 }
 0x5f8   : > { %v11564_v0 = vmax.f32 %v11532_v34, 0.0  ;;  %v11565_v12 = vmax.f32 %v11533_v53, 0.0  ;;  %v11566_v3 = vmax.f32 %v11534_v33, 0.0  ;;  %v11567_v26 = vmax.f32 %v11535_v22, 0.0 }
 0x5f9   : > { %v11568_v48 = vmax.f32 %v11536_v2, 0.0  ;;  %v11569_v52 = vmax.f32 %v11537_v4, 0.0  ;;  %v11570_v41 = vmax.f32 %v11538_v61, 0.0  ;;  %v11571_v63 = vmax.f32 %v11539_v46, 0.0  ;;  %v18389_v46 = vld [vmem:[#allocation12 + $0x50] sm:$0xff]  }
 0x5fa   : > { %v11572_v60 = vmax.f32 %v11540_v56, 0.0  ;;  %v23762_v25 = vpack.c.bf16 %v11544_v19, %v11543_v62  ;;  %v23764_v32 = vpack.c.bf16 %v11546_v10, %v11545_v13  ;;  %v23766_v20 = vpack.c.bf16 %v11548_v42, %v11547_v1 }
 0x5fb   : > { %v23768_v31 = vpack.c.bf16 %v11550_v23, %v11549_v7  ;;  %v23770_v27 = vpack.c.bf16 %v11552_v49, %v11551_v47  ;;  %v23772_v43 = vpack.c.bf16 %v11554_v17, %v11553_v59  ;;  %v23774_v38 = vpack.c.bf16 %v11556_v28, %v11555_v45  ;;  %v18383_v49 = vld [vmem:[#allocation12 + $0x8] sm:$0xff]   ;;  %v18390_v17 = vld [vmem:[#allocation12 + $0x58] sm:$0xff]  }
 0x5fc   : > { %v23776_v36 = vpack.c.bf16 %v11558_v39, %v11557_v24  ;;  %v23778_v50 = vpack.c.bf16 %v11560_v21, %v11559_v37  ;;  %v23780_v40 = vpack.c.bf16 %v11562_v6, %v11561_v29  ;;  %v23782_v11 = vpack.c.bf16 %v11564_v0, %v11563_v51  ;;  %11595 = vst [vmem:[#allocation3 + $0x10] sm:$0xff] %v23762_v25  ;;  %v18384_v37 = vld [vmem:[#allocation12 + $0x10] sm:$0xff]   ;;  %v18392_v6 = vld [vmem:[#allocation12 + $0x60] sm:$0xff]  }
 0x5fd   : > { %11596 = vst [vmem:[#allocation3 + $0x18] sm:$0xff] %v23764_v32  ;;  %11597 = vst [vmem:[#allocation3 + $0x20] sm:$0xff] %v23766_v20  ;;  %17152 = vmatprep.mubr.bf16.mxu1 %v23762_v25  ;;  %v23788_v5 = vpack.c.bf16 %v11566_v3, %v11565_v12  ;;  %v23790_v34 = vpack.c.bf16 %v11568_v48, %v11567_v26  ;;  %v23792_v53 = vpack.c.bf16 %v11570_v41, %v11569_v52  ;;  %v18385_v12 = vld [vmem:[#allocation12 + $0x18] sm:$0xff]   ;;  %v18393_v26 = vld [vmem:[#allocation12 + $0x68] sm:$0xff]  }
 0x5fe   : > { %v23794_v33 = vpack.c.bf16 %v11572_v60, %v11571_v63  ;;  %11598 = vst [vmem:[#allocation3 + $0x28] sm:$0xff] %v23768_v31  ;;  %11599 = vst [vmem:[#allocation3 + $0x30] sm:$0xff] %v23770_v27  ;;  %17153 = vmatmul.mubr.bf16.vlgmr.msra.gmra.mrb[228].mxu1 %v23764_v32  ;;  %v11669_v22 = vshrl.u32 %v23762_v25, 16  ;;  %v11677_v2 = vshrl.u32 %v23764_v32, 16  ;;  %v11667_v4 = vrot.slane %v11665_v18, 7  ;;  %v18388_v60 = vld [vmem:[#allocation12 + $0x20] sm:$0xff]  }
 0x5ff   : > { %25674 = vst [vmem:[#allocation91_spill] sm:$0xff] %v23788_v5  ;;  %25675 = vst [vmem:[#allocation94_spill] sm:$0xff] %v23790_v34  ;;  %17156 = vmatprep.mubr.bf16.mxu1 %v23766_v20  ;;  %17185 = vmatpush3.bf16.msra.mxu1 %v23539_v30  ;;  %v11685_v61 = vshrl.u32 %v23766_v20, 16  ;;  %v11672_v62 = vshll.u32 %v23762_v25, 16  ;;  %v11680_v30 = vshll.u32 %v23764_v32, 16  ;;  %v11688_v10 = vshll.u32 %v23766_v20, 16 }
 0x600   : > { %11600 = vst [vmem:[#allocation3 + $0x38] sm:$0xff] %v23772_v43  ;;  %11601 = vst [vmem:[#allocation3 + $0x40] sm:$0xff] %v23774_v38  ;;  %17186 = vmatprep.subr.bf16.mxu1 %v18387_v8  ;;  %v11671_v56 = vrot.slane %v11669_v22, 7  ;;  %v11679_v19 = vrot.slane %v11677_v2, 7  ;;  %v11693_v1 = vshrl.u32 %v23768_v31, 16  ;;  %v11701_v18 = vshrl.u32 %v23770_v27, 16 }
 0x601   : > { %11602 = vst [vmem:[#allocation3 + $0x48] sm:$0xff] %v23776_v36  ;;  %11603 = vst [vmem:[#allocation3 + $0x50] sm:$0xff] %v23778_v50  ;;  %v11687_v13 = vrot.slane %v11685_v61, 7  ;;  %v11696_v24 = vshll.u32 %v23768_v31, 16  ;;  %v11704_v39 = vshll.u32 %v23770_v27, 16  ;;  %v11709_v29 = vshrl.u32 %v23772_v43, 16 }
 0x602   : > { %11604 = vst [vmem:[#allocation3 + $0x58] sm:$0xff] %v23780_v40  ;;  %11605 = vst [vmem:[#allocation3 + $0x60] sm:$0xff] %v23782_v11  ;;  %v23820_v42 = vor.u32 %v11672_v62, %v11671_v56  ;;  %v23822_v57 = vor.u32 %v11680_v30, %v11679_v19  ;;  %v11695_v59 = vrot.slane %v11693_v1, 7  ;;  %v11703_v28 = vrot.slane %v11701_v18, 7  ;;  %v18395_v2 = vld [vmem:[#allocation12 + $0x70] sm:$0xff]  }
 0x603   : > { %11606 = vst [vmem:[#allocation3 + $0x68] sm:$0xff] %v23788_v5  ;;  %11607 = vst [vmem:[#allocation3 + $0x70] sm:$0xff] %v23790_v34  ;;  %17187 = vmatpush3.bf16.msra.mxu1 %v18387_v8  ;;  %v11690_v7 = vor.u32 %v11688_v10, %v11687_v13  ;;  %v11717_v0 = vshrl.u32 %v23774_v38, 16  ;;  %v11711_v3 = vrot.slane %v11709_v29, 7  ;;  %v11712_v41 = vshll.u32 %v23772_v43, 16  ;;  %v18396_v10 = vld [vmem:[#allocation12 + $0x78] sm:$0xff]  }
 0x604   : > { %11608 = vst [vmem:[#allocation3 + $0x78] sm:$0xff] %v23792_v53  ;;  %11609 = vst [vmem:[#allocation3 + $0x80] sm:$0xff] %v23794_v33  ;;  %17188 = vmatprep.subr.bf16.mxu1 %v18389_v46  ;;  %v11675_v23 = vsel %vm11663_vm3, %v11667_v4, %v23820_v42  ;;  %v23829_v47 = vsel %vm11663_vm3, %v11671_v56, %v23822_v57  ;;  %v11698_v21 = vor.u32 %v11696_v24, %v11695_v59  ;;  %v23880_v29 = vld [vmem:[#allocation12 + $0x1c0] sm:$0xff]  }
 0x605   : > { %25676 = vst [vmem:[#allocation37_spill] sm:$0xff] %v23822_v57  ;;  %17008 = vmatprep.mubr.bf16.mxu0 %v11675_v23  ;;  %v23834_v45 = vsel %vm11663_vm3, %v11679_v19, %v11690_v7  ;;  %v11706_v51 = vor.u32 %v11704_v39, %v11703_v28  ;;  %v11719_v52 = vrot.slane %v11717_v0, 7  ;;  %v11720_v63 = vshll.u32 %v23774_v38, 16  ;;  %v18391_v19 = vld [vmem:[#allocation12 + $0x28] sm:$0xff]   ;;  %v18394_v39 = vld [vmem:[#allocation12 + $0x30] sm:$0xff]  }
 0x606   : > { %17157 = vmatmul.mubr.bf16.gmra.mrb[232].mxu1 %v23768_v31  ;;  %17009 = vmatmul.mubr.bf16.vlgmr.msra.gmra.mrb[124].mxu0 %v23829_v47  ;;  %v11714_v8 = vor.u32 %v11712_v41, %v11711_v3  ;;  %v11725_v22 = vshrl.u32 %v23776_v36, 16  ;;  %v11733_v61 = vshrl.u32 %v23778_v50, 16  ;;  %v11749_v56 = vshrl.u32 %v23782_v11, 16 }
 0x607   : > { %17160 = vmatprep.mubr.bf16.mxu1 %v23770_v27  ;;  %17012 = vmatprep.mubr.bf16.mxu0 %v23834_v45  ;;  %v23849_v48 = vsel %vm11663_vm3, %v11695_v59, %v11706_v51  ;;  %v11722_v4 = vor.u32 %v11720_v63, %v11719_v52  ;;  %v11757_v62 = vshrl.u32 %v23788_v5, 16  ;;  %v11728_v23 = vshll.u32 %v23776_v36, 16 }
 0x608   : > { %17041 = vmatpush3.bf16.msra.mxu0 %v23452_v54  ;;  %17189 = vmatpush3.bf16.msra.mxu1 %v18389_v46  ;;  %v23844_v54 = vsel %vm11663_vm3, %v11687_v13, %v11698_v21  ;;  %v11741_v46 = vshrl.u32 %v23780_v40, 16  ;;  %v23861_v30 = vsel %vm11663_vm3, %v11703_v28, %v11714_v8  ;;  %v23864_v13 = vrot.slane %v11725_v22, 7 }
 0x609   : > { %17042 = vmatprep.subr.bf16.mxu0 %v18383_v49  ;;  %17190 = vmatprep.subr.bf16.mxu1 %v18390_v17  ;;  %v23868_v1 = vsel %vm11663_vm3, %v11711_v3, %v11722_v4  ;;  %v11735_v18 = vrot.slane %v11733_v61, 7  ;;  %v11765_v59 = vshrl.u32 %v23790_v34, 16  ;;  %v11744_v28 = vshll.u32 %v23780_v40, 16 }
 0x60a   : > { %25677 = vst [vmem:[#allocation107_spill] sm:$0xff] %v23864_v13  ;;  %v11743_v7 = vrot.slane %v11741_v46, 7  ;;  %v23876_v24 = vrot.slane %v11757_v62, 7  ;;  %v11752_v21 = vshll.u32 %v23782_v11, 16  ;;  %v11760_v0 = vshll.u32 %v23788_v5, 16  ;;  %v23906_v46 = vld [vmem:[#allocation12 + $0x180] sm:$0xff]  }
 0x60b   : > { %v23883_v3 = vrot.slane %v11765_v59, 7  ;;  %v11781_v63 = vshrl.u32 %v23794_v33, 16  ;;  %v11768_v22 = vshll.u32 %v23790_v34, 16  ;;  %v23910_v62 = vld [vmem:[#allocation3 + $0x60] sm:$0xff]  ;;  %v23922_v59 = vld [vmem:[#allocation3 + $0x68] sm:$0xff] }
 0x60c   : > { %17043 = vmatpush3.bf16.msra.mxu0 %v18383_v49  ;;  %17191 = vmatpush3.bf16.msra.mxu1 %v18390_v17  ;;  %v11751_v49 = vrot.slane %v11749_v56, 7  ;;  %v11736_v17 = vshll.u32 %v23778_v50, 16  ;;  %v11746_v51 = vor.u32 %v11744_v28, %v11743_v7  ;;  %v11762_v41 = vor.u32 %v11760_v0, %v23876_v24  ;;  %v23908_v56 = vld [vmem:[#allocation3 + $0x58] sm:$0xff]  ;;  %25680 = vst [vmem:[#allocation95_spill] sm:$0xff] %v23910_v62  ;;  %v23937_v0 = vld [vmem:[#allocation3 + $0x20] sm:$0xff] }
 0x60d   : > { %17044 = vmatprep.subr.bf16.mxu0 %v18384_v37  ;;  %17192 = vmatprep.subr.bf16.mxu1 %v18392_v6  ;;  %v23926_v28 = vld [vmem:[#allocation3 + $0x18] sm:$0xff]  ;;  %25683 = vst [vmem:[#allocation68_spill] sm:$0xff] %v23937_v0  ;;  %v13640_v55 = vshll.u32 %v23937_v0, 16 }
 0x60e   : > { %17161 = vmatmul.mubr.bf16.gmra.mrb[236].mxu1 %v23772_v43  ;;  %17013 = vmatmul.mubr.bf16.gmra.mrb[128].mxu0 %v23844_v54  ;;  %v23903_v61 = vsel %vm11663_vm3, %v11735_v18, %v11746_v51  ;;  %v23935_v51 = vld [vmem:[#allocation3 + $0x70] sm:$0xff] }
 0x60f   : > { %17164 = vmatprep.mubr.bf16.mxu1 %v23774_v38  ;;  %17016 = vmatprep.mubr.bf16.mxu0 %v23849_v48  ;;  %25679 = vst [vmem:[#allocation64_spill] sm:$0xff] %v23903_v61  ;;  %v23985_v57 = vrot.slane %v13640_v55, 1 }
 0x610   : > { %17045 = vmatpush3.bf16.msra.mxu0 %v18384_v37  ;;  %17193 = vmatpush3.bf16.msra.mxu1 %v18392_v6  ;;  %v11730_v37 = vor.u32 %v11728_v23, %v23864_v13  ;;  %v11738_v6 = vor.u32 %v11736_v17, %v11735_v18  ;;  %v23924_v17 = vld [vmem:[#allocation3 + $0x10] sm:$0xff]  ;;  %v25685_v18 = vshll.u32 %v23908_v56, 16 }
 0x611   : > { %17046 = vmatprep.subr.bf16.mxu0 %v18385_v12  ;;  %17194 = vmatprep.subr.bf16.mxu1 %v18393_v26  ;;  %25682 = vst [vmem:[#allocation74_spill] sm:$0xff] %v23924_v17 }
 0x612   : > { %v23889_v8 = vsel %vm11663_vm3, %v11719_v52, %v11730_v37  ;;  %v23899_v4 = vsel %vm11663_vm3, %v23864_v13, %v11738_v6  ;;  %v23929_v37 = vsel %vm11663_vm3, %v11751_v49, %v11762_v41  ;;  %v23943_v41 = vld [vmem:[#allocation3 + $0x78] sm:$0xff]  ;;  %v23950_v6 = vld [vmem:[#allocation3 + $0x88] sm:$0xff]  ;;  %v13636_v52 = vshrl.u32 %v23926_v28, 16 }
 0x613   : > { %v13698_v15 = vrot.slane %v25685_v18, 1 }
 0x614   : > { %17047 = vmatpush3.bf16.msra.mxu0 %v18385_v12  ;;  %17195 = vmatpush3.bf16.msra.mxu1 %v18393_v26  ;;  %v11754_v12 = vor.u32 %v11752_v21, %v11751_v49  ;;  %v11773_v26 = vshrl.u32 %v23792_v53, 16  ;;  %v23931_v21 = vrot.slane %v11781_v63, 7  ;;  %v23945_v63 = vld [vmem:[#allocation3 + $0x80] sm:$0xff]  ;;  %v13632_v49 = vshll.u32 %v23926_v28, 16 }
 0x615   : > { %17048 = vmatprep.subr.bf16.mxu0 %v18388_v60  ;;  %17196 = vmatprep.subr.bf16.mxu1 %v18395_v2  ;;  %v25689_v28 = vshrl.u32 %v23908_v56, 16 }
 0x616   : > { %17165 = vmatmul.mubr.bf16.gmra.mrb[240].mxu1 %v23776_v36  ;;  %17017 = vmatmul.mubr.bf16.gmra.mrb[132].mxu0 %v23861_v30  ;;  %v23919_v23 = vrot.slane %v11773_v26, 7  ;;  %v23977_v26 = vrot.slane %v13632_v49, 1 }
 0x617   : > { %17168 = vmatprep.mubr.bf16.mxu1 %v23778_v50  ;;  %17020 = vmatprep.mubr.bf16.mxu0 %v23868_v1  ;;  %v13702_v18 = vor.u32 %v13698_v15, %v25689_v28 }
 0x618   : > { %17049 = vmatpush3.bf16.msra.mxu0 %v18388_v60  ;;  %17197 = vmatpush3.bf16.msra.mxu1 %v18395_v2  ;;  %v18397_v60 = vld [vmem:[#allocation12 + $0x38] sm:$0xff]   ;;  %v23894_v2 = vld [vmem:[#allocation3 + $0x50] sm:$0xff] }
 0x619   : > { %17050 = vmatprep.subr.bf16.mxu0 %v18391_v19  ;;  %17198 = vmatprep.subr.bf16.mxu1 %v18396_v10  ;;  %25678 = vst [vmem:[#allocation148_spill] sm:$0xff] %v23894_v2  ;;  %v25684_v44 = vshll.u32 %v23894_v2, 16 }
 0x61b   : > { %v13690_v58 = vrot.slane %v25684_v44, 1  ;;  %v25687_v44 = vshrl.u32 %v23894_v2, 16 }
 0x61c   : > { %17051 = vmatpush3.bf16.msra.mxu0 %v18391_v19  ;;  %17199 = vmatpush3.bf16.msra.mxu1 %v18396_v10  ;;  %v23914_v19 = vsel %vm11663_vm3, %v11743_v7, %v11754_v12  ;;  %v23917_v10 = vor.u32 %v11768_v22, %v23883_v3  ;;  %v13627_v12 = vshll.u32 %v23924_v17, 16 }
 0x61d   : > { %17052 = vmatprep.subr.bf16.mxu0 %v18394_v39  ;;  %17232 = vmatprep.subr.bf16.mxu1 %v23880_v29  ;;  %25681 = vst [vmem:[#allocation52_spill] sm:$0xff] %v23914_v19  ;;  %v13694_v17 = vor.u32 %v13690_v58, %v25687_v44  ;;  %v25692_v44 = vshrl.u32 %v23922_v59, 16 }
 0x61e   : > { %17169 = vmatmul.mubr.bf16.gmra.mrb[244].mxu1 %v23780_v40  ;;  %17021 = vmatmul.mubr.bf16.gmra.mrb[136].mxu0 %v23889_v8  ;;  %v23969_v7 = vrot.slane %v13627_v12, 1  ;;  %v25688_v12 = vshll.u32 %v23922_v59, 16 }
 0x61f   : > { %17172 = vmatprep.mubr.bf16.mxu1 %v23782_v11  ;;  %17024 = vmatprep.mubr.bf16.mxu0 %v23899_v4 }
 0x620   : > { %17053 = vmatpush3.bf16.msra.mxu0 %v18394_v39  ;;  %v13579_v39 = vld [vmem:[#allocation3 + $0x48] sm:$0xff]  ;;  %v13714_v13 = vrot.slane %v25688_v12, 1  ;;  %v25693_v12 = vshll.u32 %v23943_v41, 16 }
 0x621   : > { %17054 = vmatprep.subr.bf16.mxu0 %v18397_v60  ;;  %v13680_v9 = vshll.u32 %v13579_v39, 16 }
 0x622   : > { %v13718_v2 = vor.u32 %v13714_v13, %v25692_v44  ;;  %v13730_v55 = vrot.slane %v25693_v12, 1  ;;  %v25696_v44 = vshrl.u32 %v23943_v41, 16 }
 0x623   : > { %v23979_v22 = vrot.slane %v13680_v9, 1  ;;  %v23994_v9 = vsel %vm7534_vm0, %v13694_v17, %v13698_v15 }
 0x624   : > { %17055 = vmatpush3.bf16.msra.mxu0 %v18397_v60  ;;  %v25686_v60 = vshll.u32 %v23910_v62, 16  ;;  %v13734_v12 = vor.u32 %v13730_v55, %v25696_v44 }
 0x625   : > { %17088 = vmatprep.subr.bf16.mxu0 %v23906_v46 }
 0x626   : > { %17173 = vmatmul.mubr.bf16.gmra.mrb[248].mxu1 %v23788_v5  ;;  %17025 = vmatmul.mubr.bf16.gmra.mrb[140].mxu0 %v23903_v61  ;;  %v13706_v0 = vrot.slane %v25686_v60, 1  ;;  %v13684_v61 = vshrl.u32 %v13579_v39, 16 }
 0x627   : > { %17176 = vmatprep.mubr.bf16.mxu1 %v23790_v34  ;;  %17028 = vmatprep.mubr.bf16.mxu0 %v23914_v19  ;;  %v25690_v34 = vshrl.u32 %v23910_v62, 16  ;;  %v25691_v19 = vshll.u32 %v23935_v51, 16 }
 0x628   : > { %v24001_v5 = vsel %vm7534_vm0, %v13702_v18, %v13706_v0  ;;  %v13686_v15 = vor.u32 %v13684_v61, %v23979_v22  ;;  %v24028_v61 = vsel %vm7534_vm0, %v23590_v14, %v23969_v7 }
 0x629   : > { %v13710_v60 = vor.u32 %v13706_v0, %v25690_v34  ;;  %v13722_v49 = vrot.slane %v25691_v19, 1  ;;  %v25694_v34 = vshrl.u32 %v23935_v51, 16  ;;  %v25695_v19 = vshll.u32 %v23945_v63, 16 }
 0x62a   : > { %v25697_v0 = vshll.u32 %v23950_v6, 16 }
 0x62b   : > { %v24004_v28 = vsel %vm7534_vm0, %v13710_v60, %v13714_v13  ;;  %v13726_v62 = vor.u32 %v13722_v49, %v25694_v34  ;;  %v13738_v39 = vrot.slane %v25695_v19, 1  ;;  %v24012_v17 = vsel %vm7534_vm0, %v13718_v2, %v13722_v49 }
 0x62c   : > { %v13746_v18 = vrot.slane %v25697_v0, 1  ;;  %v25698_v60 = vshrl.u32 %v23945_v63, 16  ;;  %v14245_v2 = vor.u32 %v13636_v52, %v23977_v26  ;;  %v24034_v49 = vsel %vm11663_vm3, %v23876_v24, %v23917_v10  ;;  %v11611_v0 = vld [vmem:[#allocation3] sm:$0x80] }
 0x62d   : > { %v24019_v13 = vsel %vm7534_vm0, %v13726_v62, %v13730_v55  ;;  %v24038_v62 = vsel %vm7534_vm0, %v13734_v12, %v13738_v39  ;;  %v25700_v55 = vshrl.u32 %v23950_v6, 16  ;;  %v25701_v52 = vshll.u32 %v23792_v53, 16 }
 0x62e   : > { %v24023_v34 = vor.u32 %v13738_v39, %v25698_v60  ;;  %17177 = vmatmul.mubr.bf16.gmra.mrb[252].mxu1 %v23792_v53  ;;  %17029 = vmatmul.mubr.bf16.gmra.mrb[144].mxu0 %v23929_v37  ;;  %v24052_v24 = vsel %vm7534_vm0, %v14245_v2, %v23985_v57  ;;  %v25702_v39 = vshll.u32 %v23794_v33, 16  ;;  %v24062_v12 = vsel %vm7534_vm0, %v13686_v15, %v13690_v58 }
 0x62f   : > { %v24042_v19 = vor.u32 %v13746_v18, %v25700_v55  ;;  %17180 = vmatprep.mubr.bf16.mxu1 %v23794_v33  ;;  %17032 = vmatprep.mubr.bf16.mxu0 %v24034_v49  ;;  %v11778_v10 = vor.u32 %v25701_v52, %v23919_v23  ;;  %v25703_v2 = vshrl.u32 %v23754_v35, 16  ;;  %v11792_v58 = vshll.u32 %v23754_v35, 16 }
 0x630   : > { %25699 = vst [vmem:[#allocation144_spill] sm:$0xff] %v24023_v34  ;;  %v24048_v14 = vsel %vm7534_vm0, %v24023_v34, %v13746_v18  ;;  %v11786_v44 = vor.u32 %v25702_v39, %v23931_v21  ;;  %v12022_v18 = vshrl.u32 %v11611_v0, 16  ;;  %v25705_v0 = vshll.u32 %v23566_v16, 16 }
 0x631   : > { %v24066_v60 = vsel %vm11663_vm3, %v23883_v3, %v11778_v10  ;;  %v11791_v55 = vrot.slane %v25703_v2, 7  ;;  %v25704_v3 = vshrl.u32 %v23566_v16, 16 }
 0x632   : > { %v24074_v52 = vsel %vm11663_vm3, %v23919_v23, %v11786_v44  ;;  %v12024_v15 = vrot.slane %v12022_v18, 7  ;;  %v18403_v23 = vld [vmem:[#allocation12 + $0x1c8] sm:$0xff]  }
 0x633   : > { %v12028_v10 = vrot.slane %v25704_v3, 7  ;;  %v11794_v39 = vor.u32 %v11792_v58, %v11791_v55  ;;  %v18406_v55 = vld [vmem:[#allocation12 + $0x1d8] sm:$0xff]  }
 0x634   : > { %v18412_v58 = vld [vmem:[#allocation12 + $0x1f8] sm:$0xff]  }
 0x635   : > { %v24083_v2 = vor.u32 %v25705_v0, %v12028_v10  ;;  %v11795_v44 = vsel %vm11663_vm3, %v23931_v21, %v11794_v39  ;;  %v12033_v18 = vsel %vm11663_vm3, %v12028_v10, %v23820_v42  ;;  %v18401_v21 = vld [vmem:[#allocation12 + $0x198] sm:$0xff]   ;;  %v18409_v42 = vld [vmem:[#allocation12 + $0x1e8] sm:$0xff]   ;;  %v18414_v10 = vld [vmem:[#allocation12 + $0x140] sm:$0xff]  }
 0x636   : > { %17181 = vmatmul.mubr.bf16.gmra.mrb[0].mxu1 %v23754_v35  ;;  %17033 = vmatmul.mubr.bf16.gmra.mrb[148].mxu0 %v24066_v60  ;;  %v18405_v35 = vld [vmem:[#allocation12 + $0x1d0] sm:$0xff]   ;;  %v18413_v3 = vld [vmem:[#allocation12 + $0x1b8] sm:$0xff]   ;;  %v25707_v0 = vld [vmem:[#allocation64_spill] sm:$0xff] }
 0x637   : > { %17200 = vmatprep.mubr.bf16.mxu1 %v23566_v16  ;;  %17036 = vmatprep.mubr.bf16.mxu0 %v24074_v52  ;;  %v12032_v34 = vsel %vm11663_vm3, %v12024_v15, %v24083_v2  ;;  %v18399_v16 = vld [vmem:[#allocation12 + $0x188] sm:$0xff]   ;;  %v18410_v15 = vld [vmem:[#allocation12 + $0x1b0] sm:$0xff]   ;;  %v25706_v39 = vld [vmem:[#allocation91_spill] sm:$0xff] }
 0x63e   : > { %17201 = vmatmul.mubr.bf16.vlgmr.msra.gmra.mrb[228].mxu1 %v23762_v25  ;;  %17037 = vmatmul.mubr.bf16.gmra.mrb[152].mxu0 %v11795_v44  ;;  %v18400_v25 = vld [vmem:[#allocation12 + $0x190] sm:$0xff]   ;;  %v25710_v44 = vld [vmem:[#allocation37_spill] sm:$0xff] }
 0x63f   : > { %17204 = vmatprep.mubr.bf16.mxu1 %v23764_v32  ;;  %17056 = vmatprep.mubr.bf16.mxu0 %v12032_v34  ;;  %v18407_v34 = vld [vmem:[#allocation12 + $0x1a8] sm:$0xff]  }
 0x640   : > { %17233 = vmatpush3.bf16.msra.mxu1 %v23880_v29  ;;  %v18408_v29 = vld [vmem:[#allocation12 + $0x1e0] sm:$0xff]  }
 0x641   : > { %17234 = vmatprep.subr.bf16.mxu1 %v18403_v23 }
 0x644   : > { %17235 = vmatpush3.bf16.msra.mxu1 %v18403_v23  ;;  %v25709_v23 = vld [vmem:[#allocation52_spill] sm:$0xff] }
 0x645   : > { %17236 = vmatprep.subr.bf16.mxu1 %v18405_v35 }
 0x646   : > { %17205 = vmatmul.mubr.bf16.gmra.mrb[232].mxu1 %v23766_v20  ;;  %17057 = vmatmul.mubr.bf16.vlgmr.msra.gmra.mrb[124].mxu0 %v12033_v18 }
 0x647   : > { %17208 = vmatprep.mubr.bf16.mxu1 %v23768_v31  ;;  %17060 = vmatprep.mubr.bf16.mxu0 %v23829_v47  ;;  %v18404_v47 = vld [vmem:[#allocation12 + $0x1a0] sm:$0xff]  }
 0x648   : > { %17089 = vmatpush3.bf16.msra.mxu0 %v23906_v46  ;;  %17237 = vmatpush3.bf16.msra.mxu1 %v18405_v35  ;;  %v18411_v46 = vld [vmem:[#allocation12 + $0x1f0] sm:$0xff]  }
 0x649   : > { %17090 = vmatprep.subr.bf16.mxu0 %v18399_v16  ;;  %17238 = vmatprep.subr.bf16.mxu1 %v18406_v55 }
 0x64c   : > { %17091 = vmatpush3.bf16.msra.mxu0 %v18399_v16  ;;  %17239 = vmatpush3.bf16.msra.mxu1 %v18406_v55  ;;  %v25717_v16 = vld [vmem:[#allocation95_spill] sm:$0xff] }
 0x64d   : > { %17092 = vmatprep.subr.bf16.mxu0 %v18400_v25  ;;  %17240 = vmatprep.subr.bf16.mxu1 %v18408_v29  ;;  %v25718_v18 = vshrl.u32 %v25717_v16, 16 }
 0x64e   : > { %17209 = vmatmul.mubr.bf16.gmra.mrb[236].mxu1 %v23770_v27  ;;  %17061 = vmatmul.mubr.bf16.gmra.mrb[128].mxu0 %v23834_v45 }
 0x64f   : > { %17212 = vmatprep.mubr.bf16.mxu1 %v23772_v43  ;;  %17064 = vmatprep.mubr.bf16.mxu0 %v23844_v54 }
 0x650   : > { %17093 = vmatpush3.bf16.msra.mxu0 %v18400_v25  ;;  %17241 = vmatpush3.bf16.msra.mxu1 %v18408_v29  ;;  %v25719_v25 = vshrl.u32 %v23922_v59, 16  ;;  %v18422_v29 = vld [vmem:[#allocation12 + $0x80] sm:$0xff]  }
 0x651   : > { %17094 = vmatprep.subr.bf16.mxu0 %v18401_v21  ;;  %17242 = vmatprep.subr.bf16.mxu1 %v18409_v42 }
 0x654   : > { %17095 = vmatpush3.bf16.msra.mxu0 %v18401_v21  ;;  %17243 = vmatpush3.bf16.msra.mxu1 %v18409_v42  ;;  %v25720_v21 = vshll.u32 %v25717_v16, 16 }
 0x655   : > { %17096 = vmatprep.subr.bf16.mxu0 %v18404_v47  ;;  %17244 = vmatprep.subr.bf16.mxu1 %v18411_v46 }
 0x656   : > { %17213 = vmatmul.mubr.bf16.gmra.mrb[240].mxu1 %v23774_v38  ;;  %17065 = vmatmul.mubr.bf16.gmra.mrb[132].mxu0 %v23849_v48 }
 0x657   : > { %17216 = vmatprep.mubr.bf16.mxu1 %v23776_v36  ;;  %17068 = vmatprep.mubr.bf16.mxu0 %v23861_v30 }
 0x658   : > { %17097 = vmatpush3.bf16.msra.mxu0 %v18404_v47  ;;  %17245 = vmatpush3.bf16.msra.mxu1 %v18411_v46  ;;  %v25721_v47 = vshll.u32 %v23922_v59, 16 }
 0x659   : > { %17098 = vmatprep.subr.bf16.mxu0 %v18407_v34  ;;  %17246 = vmatprep.subr.bf16.mxu1 %v18412_v58 }
 0x65c   : > { %17099 = vmatpush3.bf16.msra.mxu0 %v18407_v34  ;;  %17247 = vmatpush3.bf16.msra.mxu1 %v18412_v58  ;;  %v25722_v58 = vshrl.u32 %v23935_v51, 16 }
 0x65d   : > { %17100 = vmatprep.subr.bf16.mxu0 %v18410_v15 }
 0x65e   : > { %17217 = vmatmul.mubr.bf16.gmra.mrb[244].mxu1 %v23778_v50  ;;  %17069 = vmatmul.mubr.bf16.gmra.mrb[136].mxu0 %v23868_v1  ;;  %v25708_v50 = vld [vmem:[#allocation94_spill] sm:$0xff] }
 0x65f   : > { %17220 = vmatprep.mubr.bf16.mxu1 %v23780_v40  ;;  %17072 = vmatprep.mubr.bf16.mxu0 %v23889_v8  ;;  %v12245_v40 = vld [vmem:[#allocation3 + $0x10] sm:$0x80] }
 0x660   : > { %17101 = vmatpush3.bf16.msra.mxu0 %v18410_v15  ;;  %v12374_v15 = vrot.slane %v25722_v58, 7 }
 0x661   : > { %17102 = vmatprep.subr.bf16.mxu0 %v18413_v3 }
 0x664   : > { %17103 = vmatpush3.bf16.msra.mxu0 %v18413_v3 }
 0x665   : > { %17280 = vmatprep.subr.bf16.mxu0 %v18414_v10 }
 0x666   : > { %17221 = vmatmul.mubr.bf16.gmra.mrb[248].mxu1 %v23782_v11  ;;  %17073 = vmatmul.mubr.bf16.gmra.mrb[140].mxu0 %v23899_v4  ;;  %v12280_v11 = vshrl.u32 %v12245_v40, 16 }
 0x667   : > { %17224 = vmatprep.mubr.bf16.mxu1 %v25706_v39  ;;  %17076 = vmatprep.mubr.bf16.mxu0 %v25707_v0 }
 0x668   : > { %v12282_v4 = vrot.slane %v12280_v11, 7  ;;  %v25726_v11 = vshrl.u32 %v23945_v63, 16 }
 0x66e   : > { %17225 = vmatmul.mubr.bf16.gmra.mrb[252].mxu1 %v25708_v50  ;;  %17077 = vmatmul.mubr.bf16.gmra.mrb[144].mxu0 %v25709_v23  ;;  %v25725_v50 = vshll.u32 %v23943_v41, 16 }
 0x66f   : > { %17228 = vmatprep.mubr.bf16.mxu1 %v23792_v53  ;;  %17080 = vmatprep.mubr.bf16.mxu0 %v23929_v37  ;;  %v12290_v53 = vsel %vm11663_vm3, %v12282_v4, %v25710_v44  ;;  %v18415_v37 = vld [vmem:[#allocation12 + $0x148] sm:$0xff]   ;;  %v12390_v4 = vrot.slane %v25726_v11, 7  ;;  %v18430_v11 = vld [vmem:[#allocation12 + $0x200] sm:$0xff]  }
 0x676   : > { %17229 = vmatmul.mubr.bf16.gmra.mrb[0].mxu1 %v23794_v33  ;;  %17081 = vmatmul.mubr.bf16.gmra.mrb[148].mxu0 %v24034_v49  ;;  %v25715_v49 = vshll.u32 %v23908_v56, 16 }
 0x677   : > { %17248 = vmatprep.mubr.bf16.mxu1 %v23764_v32  ;;  %17084 = vmatprep.mubr.bf16.mxu0 %v24066_v60  ;;  %v18416_v32 = vld [vmem:[#allocation12 + $0x150] sm:$0xff]  }
 0x67e   : > { %17249 = vmatmul.mubr.bf16.vlgmr.msra.gmra.mrb[228].mxu1 %v23766_v20  ;;  %17085 = vmatmul.mubr.bf16.gmra.mrb[152].mxu0 %v24074_v52  ;;  %v18417_v20 = vld [vmem:[#allocation12 + $0x158] sm:$0xff]  }
 0x67f   : > { %17252 = vmatprep.mubr.bf16.mxu1 %v23768_v31  ;;  %17104 = vmatprep.mubr.bf16.mxu0 %v12290_v53  ;;  %v18418_v31 = vld [vmem:[#allocation12 + $0x160] sm:$0xff]   ;;  %v18421_v52 = vld [vmem:[#allocation12 + $0x178] sm:$0xff]   ;;  %v25727_v53 = vshrl.u32 %v23950_v6, 16 }
 0x686   : > { %17253 = vmatmul.mubr.bf16.gmra.mrb[232].mxu1 %v23770_v27  ;;  %17105 = vmatmul.mubr.bf16.vlgmr.msra.gmra.mrb[124].mxu0 %v23834_v45  ;;  %v18419_v27 = vld [vmem:[#allocation12 + $0x168] sm:$0xff]  }
 0x687   : > { %17256 = vmatprep.mubr.bf16.mxu1 %v23772_v43  ;;  %17108 = vmatprep.mubr.bf16.mxu0 %v23844_v54  ;;  %v25711_v43 = vld [vmem:[#allocation148_spill] sm:$0xff]  ;;  %v18420_v54 = vld [vmem:[#allocation12 + $0x170] sm:$0xff]  }
 0x688   : > { %17281 = vmatpush3.bf16.msra.mxu0 %v18414_v10  ;;  %v25712_v33 = vshrl.u32 %v25711_v43, 16  ;;  %v25723_v10 = vshrl.u32 %v23943_v41, 16 }
 0x689   : > { %17282 = vmatprep.subr.bf16.mxu0 %v18415_v37 }
 0x68a   : > { %v12342_v45 = vrot.slane %v25712_v33, 7  ;;  %v12382_v39 = vrot.slane %v25723_v10, 7  ;;  %v25730_v33 = vld [vmem:[#allocation74_spill] sm:$0xff] }
 0x68c   : > { %17283 = vmatpush3.bf16.msra.mxu0 %v18415_v37  ;;  %v12385_v23 = vor.u32 %v25725_v50, %v12382_v39  ;;  %v12398_v37 = vrot.slane %v25727_v53, 7 }
 0x68d   : > { %17284 = vmatprep.subr.bf16.mxu0 %v18416_v32 }
 0x68e   : > { %17257 = vmatmul.mubr.bf16.gmra.mrb[236].mxu1 %v23774_v38  ;;  %17109 = vmatmul.mubr.bf16.gmra.mrb[128].mxu0 %v23849_v48  ;;  %v25713_v38 = vshrl.u32 %v23908_v56, 16  ;;  %v25714_v48 = vshll.u32 %v25711_v43, 16  ;;  %v12386_v44 = vsel %vm11663_vm3, %v12374_v15, %v12385_v23  ;;  %v18428_v23 = vld [vmem:[#allocation12 + $0xb0] sm:$0xff]  }
 0x68f   : > { %17260 = vmatprep.mubr.bf16.mxu1 %v23776_v36  ;;  %17112 = vmatprep.mubr.bf16.mxu0 %v23861_v30 }
 0x690   : > { %17285 = vmatpush3.bf16.msra.mxu0 %v18416_v32  ;;  %v12350_v36 = vrot.slane %v25713_v38, 7  ;;  %v12345_v30 = vor.u32 %v25714_v48, %v12342_v45  ;;  %v25729_v32 = vshll.u32 %v23950_v6, 16  ;;  %v25731_v48 = vld [vmem:[#allocation68_spill] sm:$0xff] }
 0x691   : > { %17286 = vmatprep.subr.bf16.mxu0 %v18417_v20 }
 0x692   : > { %v12353_v60 = vor.u32 %v25715_v49, %v12350_v36 }
 0x694   : > { %17287 = vmatpush3.bf16.msra.mxu0 %v18417_v20  ;;  %v12354_v55 = vsel %vm11663_vm3, %v12342_v45, %v12353_v60  ;;  %v12401_v20 = vor.u32 %v25729_v32, %v12398_v37  ;;  %v13625_v45 = vshrl.u32 %v25730_v33, 16  ;;  %v18434_v32 = vld [vmem:[#allocation12 + $0x220] sm:$0xff]  }
 0x695   : > { %17288 = vmatprep.subr.bf16.mxu0 %v18418_v31 }
 0x696   : > { %17261 = vmatmul.mubr.bf16.gmra.mrb[240].mxu1 %v25711_v43  ;;  %17113 = vmatmul.mubr.bf16.gmra.mrb[132].mxu0 %v23868_v1  ;;  %v25716_v1 = vld [vmem:[#allocation107_spill] sm:$0xff]  ;;  %v12402_v43 = vsel %vm11663_vm3, %v12390_v4, %v12401_v20  ;;  %v13630_v38 = vor.u32 %v23969_v7, %v13625_v45  ;;  %v18423_v7 = vld [vmem:[#allocation12 + $0x88] sm:$0xff]   ;;  %v18436_v20 = vld [vmem:[#allocation12 + $0x230] sm:$0xff]  }
 0x697   : > { %17264 = vmatprep.mubr.bf16.mxu1 %v23908_v56  ;;  %17116 = vmatprep.mubr.bf16.mxu0 %v23889_v8  ;;  %v12346_v35 = vsel %vm11663_vm3, %v25716_v1, %v12345_v30  ;;  %v12358_v8 = vrot.slane %v25718_v18, 7  ;;  %v12366_v56 = vrot.slane %v25719_v25, 7  ;;  %v13644_v30 = vshrl.u32 %v25731_v48, 16  ;;  %v13578_v18 = vld [vmem:[#allocation3 + $0x40] sm:$0xff] }
 0x698   : > { %17289 = vmatpush3.bf16.msra.mxu0 %v18418_v31  ;;  %v18424_v25 = vld [vmem:[#allocation12 + $0x90] sm:$0xff]  }
 0x699   : > { %17290 = vmatprep.subr.bf16.mxu0 %v18419_v27  ;;  %v12361_v42 = vor.u32 %v25720_v21, %v12358_v8  ;;  %v12369_v46 = vor.u32 %v25721_v47, %v12366_v56  ;;  %v13646_v60 = vor.u32 %v13644_v30, %v23985_v57  ;;  %v13672_v21 = vshll.u32 %v13578_v18, 16  ;;  %v18425_v47 = vld [vmem:[#allocation12 + $0x98] sm:$0xff]  }
 0x69b   : > { %v12362_v34 = vsel %vm11663_vm3, %v12350_v36, %v12361_v42  ;;  %v12370_v3 = vsel %vm11663_vm3, %v12358_v8, %v12369_v46  ;;  %v13575_v36 = vld [vmem:[#allocation3 + $0x28] sm:$0xff] }
 0x69c   : > { %17291 = vmatpush3.bf16.msra.mxu0 %v18419_v27  ;;  %v24185_v27 = vld [vmem:[#allocation3] sm:$0xff]  ;;  %v13648_v49 = vshll.u32 %v13575_v36, 16 }
 0x69d   : > { %17292 = vmatprep.subr.bf16.mxu0 %v18420_v54 }
 0x69e   : > { %17265 = vmatmul.mubr.bf16.gmra.mrb[244].mxu1 %v25717_v16  ;;  %17117 = vmatmul.mubr.bf16.gmra.mrb[136].mxu0 %v12346_v35  ;;  %v13650_v1 = vrot.slane %v13648_v49, 1  ;;  %v13577_v35 = vld [vmem:[#allocation3 + $0x38] sm:$0xff] }
 0x69f   : > { %17268 = vmatprep.mubr.bf16.mxu1 %v23922_v59  ;;  %17120 = vmatprep.mubr.bf16.mxu0 %v12354_v55  ;;  %v25724_v59 = vshll.u32 %v23935_v51, 16  ;;  %v13664_v55 = vshll.u32 %v13577_v35, 16  ;;  %v13668_v58 = vshrl.u32 %v13577_v35, 16 }
 0x6a0   : > { %17293 = vmatpush3.bf16.msra.mxu0 %v18420_v54  ;;  %v13576_v54 = vld [vmem:[#allocation3 + $0x30] sm:$0xff] }
 0x6a1   : > { %17294 = vmatprep.subr.bf16.mxu0 %v18421_v52  ;;  %v12377_v0 = vor.u32 %v25724_v59, %v12374_v15  ;;  %v13660_v8 = vshrl.u32 %v13576_v54, 16  ;;  %v13666_v42 = vrot.slane %v13664_v55, 1  ;;  %v13676_v15 = vshrl.u32 %v13578_v18, 16  ;;  %v18427_v59 = vld [vmem:[#allocation12 + $0xa8] sm:$0xff]  }
 0x6a3   : > { %v12378_v40 = vsel %vm11663_vm3, %v12366_v56, %v12377_v0  ;;  %v13670_v10 = vor.u32 %v13668_v58, %v13666_v42 }
 0x6a4   : > { %17295 = vmatpush3.bf16.msra.mxu0 %v18421_v52  ;;  %v13656_v52 = vshll.u32 %v13576_v54, 16 }
 0x6a5   : > { %17328 = vmatprep.subr.bf16.mxu0 %v18422_v29 }
 0x6a6   : > { %17269 = vmatmul.mubr.bf16.gmra.mrb[248].mxu1 %v23935_v51  ;;  %17121 = vmatmul.mubr.bf16.gmra.mrb[140].mxu0 %v12362_v34  ;;  %v25728_v51 = vshll.u32 %v23945_v63, 16  ;;  %v13658_v16 = vrot.slane %v13656_v52, 1 }
 0x6a7   : > { %17272 = vmatprep.mubr.bf16.mxu1 %v23943_v41  ;;  %17124 = vmatprep.mubr.bf16.mxu0 %v12370_v3  ;;  %v18426_v3 = vld [vmem:[#allocation12 + $0xa0] sm:$0xff]  }
 0x6a8   : > { %v12393_v41 = vor.u32 %v25728_v51, %v12390_v4  ;;  %v13662_v56 = vor.u32 %v13660_v8, %v13658_v16  ;;  %v18432_v51 = vld [vmem:[#allocation12 + $0x210] sm:$0xff]  }
 0x6aa   : > { %v12394_v31 = vsel %vm11663_vm3, %v12382_v39, %v12393_v41  ;;  %v24210_v34 = vsel %vm7534_vm0, %v13662_v56, %v13666_v42  ;;  %v18433_v41 = vld [vmem:[#allocation12 + $0x218] sm:$0xff]  }
 0x6ae   : > { %17273 = vmatmul.mubr.bf16.gmra.mrb[252].mxu1 %v23945_v63  ;;  %17125 = vmatmul.mubr.bf16.gmra.mrb[144].mxu0 %v12378_v40  ;;  %v12410_v63 = vsel %vm11663_vm3, %v12398_v37, %v24083_v2  ;;  %v24202_v2 = vsel %vm7534_vm0, %v13646_v60, %v13650_v1  ;;  %v18429_v40 = vld [vmem:[#allocation12 + $0xb8] sm:$0xff]   ;;  %v18431_v37 = vld [vmem:[#allocation12 + $0x208] sm:$0xff]  }
 0x6af   : > { %17276 = vmatprep.mubr.bf16.mxu1 %v23950_v6  ;;  %17128 = vmatprep.mubr.bf16.mxu0 %v12386_v44  ;;  %v24195_v6 = vsel %vm7534_vm0, %v13630_v38, %v23977_v26  ;;  %v13652_v26 = vshrl.u32 %v13575_v36, 16  ;;  %v25732_v38 = vld [vmem:[#allocation144_spill] sm:$0xff] }
 0x6b1   : > { %v13654_v57 = vor.u32 %v13652_v26, %v13650_v1 }
 0x6b3   : > { %v24206_v46 = vsel %vm7534_vm0, %v13654_v57, %v13658_v16 }
 0x6b6   : > { %17277 = vmatmul.mubr.bf16.gmra.mrb[0].mxu1 %v24185_v27  ;;  %17129 = vmatmul.mubr.bf16.gmra.mrb[148].mxu0 %v12394_v31  ;;  %v18437_v31 = vld [vmem:[#allocation12 + $0x238] sm:$0xff]  }
 0x6b7   : > { %17132 = vmatprep.mubr.bf16.mxu0 %v12402_v43  ;;  %v13587_v43 = vld [vmem:[#allocation3 + $0x88] sm:$0x1] }
 0x6b8   : > { %v13990_v33 = vshll.u32 %v13587_v43, 16 }
 0x6ba   : > { %v13992_v45 = vrot.slane %v13990_v33, 1 }
 0x6be   : > { %17133 = vmatmul.mubr.bf16.gmra.mrb[152].mxu0 %v12410_v63  ;;  %v13993_v63 = vsel %vm7534_vm0, %v25732_v38, %v13992_v45 }
 0x6bf   : > { %17296 = vmatprep.mubr.bf16.mxu0 %v24195_v6 }
 0x6c6   : > { %17297 = vmatmul.mubr.bf16.vlgmr.msra.gmra.mrb[156].mxu0 %v24052_v24 }
 0x6c7   : > { %17300 = vmatprep.mubr.bf16.mxu0 %v24202_v2  ;;  %17329 = vmatpush3.bf16.msra.mxu0 %v18422_v29  ;;  %v13674_v29 = vrot.slane %v13672_v21, 1 }
 0x6c8   : > { %17330 = vmatprep.subr.bf16.mxu0 %v18423_v7 }
 0x6c9   : > { %v13678_v39 = vor.u32 %v13676_v15, %v13674_v29  ;;  %v24214_v0 = vsel %vm7534_vm0, %v13670_v10, %v13674_v29 }
 0x6cb   : > { %17331 = vmatpush3.bf16.msra.mxu0 %v18423_v7  ;;  %v24219_v50 = vsel %vm7534_vm0, %v13678_v39, %v23979_v22  ;;  %v13606_v22 = vld [vmem:[#allocation3 + $0x90] sm:$0x1] }
 0x6cc   : > { %17332 = vmatprep.subr.bf16.mxu0 %v18424_v25  ;;  %v13752_v4 = vshll.u32 %v13606_v22, 16  ;;  %v25741_v22 = vld [vmem:[#allocation112_spill] sm:$0xff] }
 0x6ce   : > { %17301 = vmatmul.mubr.bf16.gmra.mrb[160].mxu0 %v24206_v46  ;;  %v13754_v44 = vrot.slane %v13752_v4, 1 }
 0x6cf   : > { %17304 = vmatprep.mubr.bf16.mxu0 %v24210_v34  ;;  %17333 = vmatpush3.bf16.msra.mxu0 %v18424_v25 }
 0x6d0   : > { %17334 = vmatprep.subr.bf16.mxu0 %v18425_v47  ;;  %v13755_v53 = vsel %vm7534_vm0, %v24042_v19, %v13754_v44 }
 0x6d3   : > { %17335 = vmatpush3.bf16.msra.mxu0 %v18425_v47 }
 0x6d4   : > { %17336 = vmatprep.subr.bf16.mxu0 %v18426_v3 }
 0x6d6   : > { %17305 = vmatmul.mubr.bf16.gmra.mrb[164].mxu0 %v24214_v0 }
 0x6d7   : > { %17308 = vmatprep.mubr.bf16.mxu0 %v24219_v50  ;;  %17337 = vmatpush3.bf16.msra.mxu0 %v18426_v3 }
 0x6d8   : > { %17338 = vmatprep.subr.bf16.mxu0 %v18427_v59 }
 0x6db   : > { %17339 = vmatpush3.bf16.msra.mxu0 %v18427_v59 }
 0x6dc   : > { %17340 = vmatprep.subr.bf16.mxu0 %v18428_v23 }
 0x6de   : > { %17309 = vmatmul.mubr.bf16.gmra.mrb[168].mxu0 %v24062_v12 }
 0x6df   : > { %17312 = vmatprep.mubr.bf16.mxu0 %v23994_v9  ;;  %17341 = vmatpush3.bf16.msra.mxu0 %v18428_v23 }
 0x6e0   : > { %17342 = vmatprep.subr.bf16.mxu0 %v18429_v40 }
 0x6e3   : > { %17343 = vmatpush3.bf16.msra.mxu0 %v18429_v40 }
 0x6e4   : > { %17376 = vmatprep.subr.bf16.mxu0 %v18430_v11 }
 0x6e6   : > { %17313 = vmatmul.mubr.bf16.gmra.mrb[172].mxu0 %v24001_v5 }
 0x6e7   : > { %17316 = vmatprep.mubr.bf16.mxu0 %v24004_v28 }
 0x6ee   : > { %17317 = vmatmul.mubr.bf16.gmra.mrb[176].mxu0 %v24012_v17 }
 0x6ef   : > { %17320 = vmatprep.mubr.bf16.mxu0 %v24019_v13 }
 0x6f6   : > { %17321 = vmatmul.mubr.bf16.gmra.mrb[180].mxu0 %v24038_v62 }
 0x6f7   : > { %17324 = vmatprep.mubr.bf16.mxu0 %v24048_v14 }
 0x6fe   : > { %17325 = vmatmul.mubr.bf16.gmra.mrb[184].mxu0 %v13755_v53 }
 0x6ff   : > { %17344 = vmatprep.mubr.bf16.mxu0 %v24028_v61  ;;  %v18435_v61 = vld [vmem:[#allocation12 + $0x228] sm:$0xff]  }
 0x706   : > { %17345 = vmatmul.mubr.bf16.vlgmr.msra.gmra.mrb[156].mxu0 %v24195_v6 }
 0x707   : > { %17348 = vmatprep.mubr.bf16.mxu0 %v24052_v24  ;;  %17377 = vmatpush3.bf16.msra.mxu0 %v18430_v11 }
 0x708   : > { %17378 = vmatprep.subr.bf16.mxu0 %v18431_v37 }
 0x70b   : > { %17379 = vmatpush3.bf16.msra.mxu0 %v18431_v37 }
 0x70c   : > { %17380 = vmatprep.subr.bf16.mxu0 %v18432_v51 }
 0x70e   : > { %17349 = vmatmul.mubr.bf16.gmra.mrb[160].mxu0 %v24202_v2 }
 0x70f   : > { %17352 = vmatprep.mubr.bf16.mxu0 %v24206_v46  ;;  %17381 = vmatpush3.bf16.msra.mxu0 %v18432_v51 }
 0x710   : > { %17382 = vmatprep.subr.bf16.mxu0 %v18433_v41 }
 0x713   : > { %17383 = vmatpush3.bf16.msra.mxu0 %v18433_v41 }
 0x714   : > { %17384 = vmatprep.subr.bf16.mxu0 %v18434_v32 }
 0x716   : > { %17353 = vmatmul.mubr.bf16.gmra.mrb[164].mxu0 %v24210_v34 }
 0x717   : > { %17356 = vmatprep.mubr.bf16.mxu0 %v24214_v0  ;;  %17385 = vmatpush3.bf16.msra.mxu0 %v18434_v32 }
 0x718   : > { %17386 = vmatprep.subr.bf16.mxu0 %v18435_v61 }
 0x71b   : > { %17387 = vmatpush3.bf16.msra.mxu0 %v18435_v61 }
 0x71c   : > { %17388 = vmatprep.subr.bf16.mxu0 %v18436_v20 }
 0x71e   : > { %17357 = vmatmul.mubr.bf16.gmra.mrb[168].mxu0 %v24219_v50 }
 0x71f   : > { %17360 = vmatprep.mubr.bf16.mxu0 %v24062_v12  ;;  %17389 = vmatpush3.bf16.msra.mxu0 %v18436_v20 }
 0x720   : > { %17390 = vmatprep.subr.bf16.mxu0 %v18437_v31 }
 0x723   : > { %17391 = vmatpush3.bf16.msra.mxu0 %v18437_v31 }
 0x726   : > { %17361 = vmatmul.mubr.bf16.gmra.mrb[172].mxu0 %v23994_v9 }
 0x727   : > { %17364 = vmatprep.mubr.bf16.mxu0 %v24001_v5 }
 0x72e   : > { %17365 = vmatmul.mubr.bf16.gmra.mrb[176].mxu0 %v24004_v28 }
 0x72f   : > { %17368 = vmatprep.mubr.bf16.mxu0 %v24012_v17 }
 0x736   : > { %17369 = vmatmul.mubr.bf16.gmra.mrb[180].mxu0 %v24019_v13 }
 0x737   : > { %17372 = vmatprep.mubr.bf16.mxu0 %v24038_v62 }
 0x73e   : > { %17373 = vmatmul.mubr.bf16.gmra.mrb[184].mxu0 %v13993_v63 }
 0x73f   : > { %17392 = vmatprep.mubr.bf16.mxu0 %v24052_v24  ;;  %v14221_v24 = vld [vmem:[#allocation3 + $0x98] sm:$0x1] }
 0x746   : > { %17393 = vmatmul.mubr.bf16.vlgmr.msra.gmra.mrb[156].mxu0 %v24202_v2 }
 0x747   : > { %17396 = vmatprep.mubr.bf16.mxu0 %v24206_v46 }
 0x74e   : > { %17397 = vmatmul.mubr.bf16.gmra.mrb[160].mxu0 %v24210_v34 }
 0x74f   : > { %17400 = vmatprep.mubr.bf16.mxu0 %v24214_v0 }
 0x751   : > { %v17250_v36 = vpop.f32.mrb[228].mxu1 }
 0x752   : > { %v13316_v6 = vpop.f32.mrb[229].mxu1 }
 0x753   : > { %v17251_v54 = vpop.f32.mrb[230].mxu1 }
 0x754   : > { %v13319_v48 = vpop.f32.mrb[231].mxu1 }
 0x756   : > { %17401 = vmatmul.mubr.bf16.gmra.mrb[164].mxu0 %v24219_v50 }
 0x757   : > { %17404 = vmatprep.mubr.bf16.mxu0 %v24062_v12 }
 0x759   : > { %v17254_v30 = vpop.f32.mrb[232].mxu1  ;;  %v17106_v49 = vpop.f32.mrb[124].mxu0 }
 0x75a   : > { %v13332_v60 = vpop.f32.mrb[233].mxu1  ;;  %v12670_v52 = vsel %vm4595_vm4, %v17106_v49, 0.0  ;;  %v12509_v1 = vpop.f32.mrb[125].mxu0  ;;  %v14359_v49 = vshll.u32 %v24185_v27, 16 }
 0x75b   : > { %v17255_v7 = vpop.f32.mrb[234].mxu1  ;;  %v24258_v35 = vadd.f32 %v17250_v36, %v12670_v52  ;;  %v12668_v16 = vsel %vm4593_vm5, %v12509_v1, 0.0  ;;  %v17107_v26 = vpop.f32.mrb[126].mxu0  ;;  %vm25742_vm5 = vcmp.eq.s32.totalorder %v25741_v22, 1 }
 0x75c   : > { %v13335_v18 = vpop.f32.mrb[235].mxu1  ;;  %v24262_v8 = vadd.f32 %v13316_v6, %v12668_v16  ;;  %v12671_v12 = vsel %vm4596_vm7, %v17107_v26, 0.0  ;;  %v12512_v25 = vpop.f32.mrb[127].mxu0 }
 0x75d   : > { %v24266_v57 = vadd.f32 %v17251_v54, %v12671_v12  ;;  %v12669_v21 = vsel %vm4594_vm9, %v12512_v25, 0.0  ;;  %v25747_v54 = vld [vmem:[#allocation123_spill] sm:$0xff]  ;;  %v25751_v12 = vld [vmem:[#allocation66_spill] sm:$0xff] }
 0x75e   : > { %v24270_v42 = vadd.f32 %v13319_v48, %v12669_v21  ;;  %17405 = vmatmul.mubr.bf16.gmra.mrb[168].mxu0 %v23994_v9  ;;  %v25739_v9 = vld [vmem:[#allocation120_spill] sm:$0xff]  ;;  %v14363_v21 = vshrl.u32 %v24185_v27, 16 }
 0x75f   : > { %17408 = vmatprep.mubr.bf16.mxu0 %v24001_v5  ;;  %vm25740_vm4 = vcmp.eq.s32.totalorder %v25739_v9, 1 }
 0x761   : > { %v17258_v47 = vpop.f32.mrb[236].mxu1  ;;  %v17110_v46 = vpop.f32.mrb[128].mxu0 }
 0x762   : > { %v13348_v34 = vpop.f32.mrb[237].mxu1  ;;  %v12674_v58 = vsel %vm4599_vm8, %v17110_v46, 0.0  ;;  %v12525_v15 = vpop.f32.mrb[129].mxu0  ;;  %vm25748_vm8 = vcmp.eq.s32.totalorder %v25747_v54, 1  ;;  %v25753_v46 = vld [vmem:[#allocation70_spill] sm:$0xff] }
 0x763   : > { %v17259_v3 = vpop.f32.mrb[238].mxu1  ;;  %v24276_v10 = vadd.f32 %v17254_v30, %v12674_v58  ;;  %v12672_v59 = vsel %vm4597_vm10, %v12525_v15, 0.0  ;;  %v17111_v0 = vpop.f32.mrb[130].mxu0  ;;  %vm25752_vm10 = vcmp.eq.s32.totalorder %v25751_v12, 1  ;;  %v25768_v12 = vld [vmem:[#allocation45_spill] sm:$0xff] }
 0x764   : > { %v13351_v50 = vpop.f32.mrb[239].mxu1  ;;  %v24280_v23 = vadd.f32 %v13332_v60, %v12672_v59  ;;  %v12675_v5 = vsel %vm25740_vm4, %v17111_v0, 0.0  ;;  %v12528_v40 = vpop.f32.mrb[131].mxu0 }
 0x765   : > { %v24284_v11 = vadd.f32 %v17255_v7, %v12675_v5  ;;  %v12673_v4 = vsel %vm25742_vm5, %v12528_v40, 0.0  ;;  %v25749_v7 = vld [vmem:[#allocation131_spill] sm:$0xff] }
 0x766   : > { %v24288_v44 = vadd.f32 %v13335_v18, %v12673_v4  ;;  %17409 = vmatmul.mubr.bf16.gmra.mrb[172].mxu0 %v24004_v28  ;;  %v25745_v28 = vld [vmem:[#allocation69_spill] sm:$0xff]  ;;  %vm25750_vm9 = vcmp.eq.s32.totalorder %v25749_v7, 1  ;;  %v14361_v18 = vrot.slane %v14359_v49, 1  ;;  %v25756_v40 = vld [vmem:[#allocation99_spill] sm:$0xff]  ;;  %v25764_v49 = vld [vmem:[#allocation146_spill] sm:$0xff] }
 0x767   : > { %17412 = vmatprep.mubr.bf16.mxu0 %v24012_v17  ;;  %vm25746_vm7 = vcmp.eq.s32.totalorder %v25745_v28, 1  ;;  %vm25765_vm5 = vcmp.eq.s32.totalorder %v25764_v49, 1  ;;  %v25766_v7 = vld [vmem:[#allocation103_spill] sm:$0xff] }
 0x768   : > { %v14362_v59 = vsel %vm7534_vm0, %v24042_v19, %v14361_v18  ;;  %v14365_v27 = vor.u32 %v14363_v21, %v14361_v18 }
 0x769   : > { %v17262_v53 = vpop.f32.mrb[240].mxu1  ;;  %v17114_v37 = vpop.f32.mrb[132].mxu0 }
 0x76a   : > { %v13364_v51 = vpop.f32.mrb[241].mxu1  ;;  %v12678_v32 = vsel %vm4603_vm15, %v17114_v37, 0.0  ;;  %v12541_v61 = vpop.f32.mrb[133].mxu0  ;;  %vm25757_vm15 = vcmp.eq.s32.totalorder %v25756_v40, 1 }
 0x76b   : > { %v17263_v20 = vpop.f32.mrb[242].mxu1  ;;  %v24294_v31 = vadd.f32 %v17258_v47, %v12678_v32  ;;  %v12676_v33 = vsel %vm4601_vm13, %v12541_v61, 0.0  ;;  %v17115_v45 = vpop.f32.mrb[134].mxu0  ;;  %vm25754_vm13 = vcmp.eq.s32.totalorder %v25753_v46, 1 }
 0x76c   : > { %v13367_v38 = vpop.f32.mrb[243].mxu1  ;;  %v24298_v63 = vadd.f32 %v13348_v34, %v12676_v33  ;;  %v12679_v17 = vsel %vm25746_vm7, %v17115_v45, 0.0  ;;  %v12544_v36 = vpop.f32.mrb[135].mxu0  ;;  %vm25769_vm7 = vcmp.eq.s32.totalorder %v25768_v12, 1 }
 0x76d   : > { %v24302_v6 = vadd.f32 %v17259_v3, %v12679_v17  ;;  %v12677_v48 = vsel %vm25748_vm8, %v12544_v36, 0.0 }
 0x76e   : > { %v24306_v30 = vadd.f32 %v13351_v50, %v12677_v48  ;;  %17413 = vmatmul.mubr.bf16.gmra.mrb[176].mxu0 %v24019_v13 }
 0x76f   : > { %17416 = vmatprep.mubr.bf16.mxu0 %v24038_v62  ;;  %v14367_v62 = vshll.u32 %v14221_v24, 16 }
 0x771   : > { %v17266_v60 = vpop.f32.mrb[244].mxu1  ;;  %v17118_v52 = vpop.f32.mrb[136].mxu0  ;;  %v14369_v0 = vrot.slane %v14367_v62, 1 }
 0x772   : > { %v13380_v1 = vpop.f32.mrb[245].mxu1  ;;  %v12682_v2 = vsel %vm25750_vm9, %v17118_v52, 0.0  ;;  %v12557_v16 = vpop.f32.mrb[137].mxu0 }
 0x773   : > { %v17267_v26 = vpop.f32.mrb[246].mxu1  ;;  %v24313_v55 = vadd.f32 %v17262_v53, %v12682_v2  ;;  %v12680_v25 = vsel %vm25752_vm10, %v12557_v16, 0.0  ;;  %v17119_v13 = vpop.f32.mrb[138].mxu0  ;;  %v14370_v19 = vsel %vm7534_vm0, %v14365_v27, %v14369_v0  ;;  %vm25767_vm0 = vcmp.eq.s32.totalorder %v25766_v7, 1 }
 0x774   : > { %v13383_v56 = vpop.f32.mrb[247].mxu1  ;;  %v24318_v47 = vadd.f32 %v13364_v51, %v12680_v25  ;;  %v12683_v34 = vsel %vm25754_vm13, %v17119_v13, 0.0  ;;  %v12560_v29 = vpop.f32.mrb[139].mxu0  ;;  %v25758_v51 = vld [vmem:[#allocation134_spill] sm:$0xff] }
 0x775   : > { %v24322_v58 = vadd.f32 %v17263_v20, %v12683_v34  ;;  %v12681_v3 = vsel %vm4606_vm14, %v12560_v29, 0.0  ;;  %vm25759_vm14 = vcmp.eq.s32.totalorder %v25758_v51, 1  ;;  %v25760_v20 = vld [vmem:[#allocation139_spill] sm:$0xff] }
 0x776   : > { %v24326_v39 = vadd.f32 %v13367_v38, %v12681_v3  ;;  %17417 = vmatmul.mubr.bf16.gmra.mrb[180].mxu0 %v24048_v14  ;;  %vm25761_vm3 = vcmp.eq.s32.totalorder %v25760_v20, 1  ;;  %v25762_v38 = vld [vmem:[#allocation135_spill] sm:$0xff] }
 0x777   : > { %17420 = vmatprep.mubr.bf16.mxu0 %v14362_v59  ;;  %vm25763_vm4 = vcmp.eq.s32.totalorder %v25762_v38, 1  ;;  %v25771_v3 = vld [vmem:[#allocation111_spill] sm:$0xff] }
 0x778   : > { %vm25772_vm8 = vcmp.eq.s32.totalorder %v25771_v3, 1 }
 0x779   : > { %v17270_v50 = vpop.f32.mrb[248].mxu1  ;;  %v17122_v9 = vpop.f32.mrb[140].mxu0 }
 0x77a   : > { %v13396_v5 = vpop.f32.mrb[249].mxu1  ;;  %v12686_v22 = vsel %vm25757_vm15, %v17122_v9, 0.0  ;;  %v12573_v4 = vpop.f32.mrb[141].mxu0  ;;  %v25773_v9 = vld [vmem:[#allocation110_spill] sm:$0xff] }
 0x77b   : > { %v17271_v53 = vpop.f32.mrb[250].mxu1  ;;  %v24333_v37 = vadd.f32 %v17266_v60, %v12686_v22  ;;  %v12684_v41 = vsel %vm25759_vm14, %v12573_v4, 0.0  ;;  %v17123_v14 = vpop.f32.mrb[142].mxu0  ;;  %vm25774_vm9 = vcmp.eq.s32.totalorder %v25773_v9, 1 }
 0x77c   : > { %v13399_v32 = vpop.f32.mrb[251].mxu1  ;;  %v24338_v61 = vadd.f32 %v13380_v1, %v12684_v41  ;;  %v12687_v43 = vsel %vm25761_vm3, %v17123_v14, 0.0  ;;  %v12576_v33 = vpop.f32.mrb[143].mxu0 }
 0x77d   : > { %v24342_v45 = vadd.f32 %v17267_v26, %v12687_v43  ;;  %v12685_v28 = vsel %vm25763_vm4, %v12576_v33, 0.0 }
 0x77e   : > { %v24346_v17 = vadd.f32 %v13383_v56, %v12685_v28  ;;  %17421 = vmatmul.mubr.bf16.gmra.mrb[184].mxu0 %v14370_v19 }
 0x781   : > { %v17274_v36 = vpop.f32.mrb[252].mxu1  ;;  %v17126_v54 = vpop.f32.mrb[144].mxu0 }
 0x782   : > { %v13412_v48 = vpop.f32.mrb[253].mxu1  ;;  %v12690_v60 = vsel %vm25765_vm5, %v17126_v54, 0.0  ;;  %v12589_v24 = vpop.f32.mrb[145].mxu0  ;;  %v25794_v54 = vld [vmem:[#allocation71_spill] sm:$0xff] }
 0x783   : > { %v17275_v52 = vpop.f32.mrb[254].mxu1  ;;  %v24350_v1 = vadd.f32 %v17270_v50, %v12690_v60  ;;  %v12688_v2 = vsel %vm25767_vm0, %v12589_v24, 0.0  ;;  %v17127_v16 = vpop.f32.mrb[146].mxu0  ;;  %vm25795_vm3 = vcmp.eq.s32.totalorder %v25794_v54, 1 }
 0x784   : > { %v13415_v26 = vpop.f32.mrb[255].mxu1  ;;  %v24354_v18 = vadd.f32 %v13396_v5, %v12688_v2  ;;  %v12691_v25 = vsel %vm25769_vm7, %v17127_v16, 0.0  ;;  %v12592_v13 = vpop.f32.mrb[147].mxu0  ;;  %v25782_v16 = vld [vmem:[#allocation121_spill] sm:$0xff] }
 0x785   : > { %v24358_v56 = vadd.f32 %v17271_v53, %v12691_v25  ;;  %v12689_v62 = vsel %vm4614_vm12, %v12592_v13, 0.0  ;;  %v25775_v53 = vld [vmem:[#allocation26_spill] sm:$0xff]  ;;  %vm25783_vm13 = vcmp.eq.s32.totalorder %v25782_v16, 1  ;;  %v25784_v13 = vld [vmem:[#allocation44_spill] sm:$0xff] }
 0x786   : > { %v24362_v46 = vadd.f32 %v13399_v32, %v12689_v62  ;;  %vm25776_vm12 = vcmp.eq.s32.totalorder %v25775_v53, 1  ;;  %v25777_v32 = vld [vmem:[#allocation109_spill] sm:$0xff]  ;;  %v25796_v16 = vld [vmem:[#allocation92_spill] sm:$0xff] }
 0x787   : > { %vm25778_vm10 = vcmp.eq.s32.totalorder %v25777_v32, 1  ;;  %vm25797_vm4 = vcmp.eq.s32.totalorder %v25796_v16, 1 }
 0x789   : > { %v17278_v34 = vpop.f32.mrb[0].mxu1  ;;  %v17130_v29 = vpop.f32.mrb[148].mxu0 }
 0x78a   : > { %v13428_v15 = vpop.f32.mrb[1].mxu1  ;;  %v12694_v59 = vsel %vm25772_vm8, %v17130_v29, 0.0  ;;  %v12605_v27 = vpop.f32.mrb[149].mxu0  ;;  %v25786_v29 = vld [vmem:[#allocation101_spill] sm:$0xff] }
 0x78b   : > { %v17279_v0 = vpop.f32.mrb[2].mxu1  ;;  %v24366_v50 = vadd.f32 %v17274_v36, %v12694_v59  ;;  %v12692_v5 = vsel %vm25774_vm9, %v12605_v27, 0.0  ;;  %v17131_v40 = vpop.f32.mrb[150].mxu0  ;;  %v25788_v27 = vld [vmem:[#allocation132_spill] sm:$0xff] }
 0x78c   : > { %v13431_v22 = vpop.f32.mrb[3].mxu1  ;;  %v24370_v4 = vadd.f32 %v13412_v48, %v12692_v5  ;;  %v12695_v51 = vsel %vm25776_vm12, %v17131_v40, 0.0  ;;  %v12608_v41 = vpop.f32.mrb[151].mxu0  ;;  %v25790_v40 = vld [vmem:[#allocation41_spill] sm:$0xff] }
 0x78d   : > { %v24374_v14 = vadd.f32 %v17275_v52, %v12695_v51  ;;  %v12693_v19 = vsel %vm25778_vm10, %v12608_v41, 0.0  ;;  %vm25791_vm15 = vcmp.eq.s32.totalorder %v25790_v40, 1 }
 0x78e   : > { %v24378_v20 = vadd.f32 %v13415_v26, %v12693_v19 }
 0x791   : > { %v17134_v43 = vpop.f32.mrb[152].mxu0 }
 0x792   : > { %v12698_v38 = vsel %vm4623_vm6, %v17134_v43, 0.0  ;;  %v12621_v28 = vpop.f32.mrb[153].mxu0  ;;  %vm25785_vm6 = vcmp.eq.s32.totalorder %v25784_v13, 1  ;;  %v25792_v43 = vld [vmem:[#allocation136_spill] sm:$0xff] }
 0x793   : > { %v24382_v36 = vadd.f32 %v17278_v34, %v12698_v38  ;;  %v12696_v48 = vsel %vm4621_vm1, %v12621_v28, 0.0  ;;  %v17135_v49 = vpop.f32.mrb[154].mxu0  ;;  %vm25787_vm1 = vcmp.eq.s32.totalorder %v25786_v29, 1  ;;  %vm25793_vm14 = vcmp.eq.s32.totalorder %v25792_v43, 1 }
 0x794   : > { %v24386_v60 = vadd.f32 %v13428_v15, %v12696_v48  ;;  %v12699_v52 = vsel %vm4624_vm11, %v17135_v49, 0.0  ;;  %v12624_v7 = vpop.f32.mrb[155].mxu0  ;;  %vm25789_vm11 = vcmp.eq.s32.totalorder %v25788_v27, 1 }
 0x795   : > { %v24390_v2 = vadd.f32 %v17279_v0, %v12699_v52  ;;  %v12697_v26 = vsel %vm25783_vm13, %v12624_v7, 0.0 }
 0x796   : > { %v24394_v12 = vadd.f32 %v13431_v22, %v12697_v26 }
 0x819   : > { %v17394_v25 = vpop.f32.mrb[156].mxu0 }
 0x81a   : > { %v14630_v21 = vsel %vm25785_vm6, %v17394_v25, 0.0  ;;  %v14469_v62 = vpop.f32.mrb[157].mxu0 }
 0x81b   : > { %v24399_v34 = vadd.f32 %v14630_v21, %v24258_v35  ;;  %v14628_v15 = vsel %vm25787_vm1, %v14469_v62, 0.0  ;;  %v17395_v3 = vpop.f32.mrb[158].mxu0  ;;  %v25798_v21 = vld [vmem:[#allocation80_spill] sm:$0xff] }
 0x81c   : > { %v24404_v59 = vadd.f32 %v14628_v15, %v24262_v8  ;;  %v14631_v0 = vsel %vm25789_vm11, %v17395_v3, 0.0  ;;  %v14472_v9 = vpop.f32.mrb[159].mxu0  ;;  %vm25799_vm5 = vcmp.eq.s32.totalorder %v25798_v21, 1 }
 0x81d   : > { %v24409_v5 = vadd.f32 %v14631_v0, %v24266_v57  ;;  %v14629_v22 = vsel %vm25791_vm15, %v14472_v9, 0.0  ;;  %v14828_v57 = vmul.f32 %v24399_v34, %v24399_v34 }
 0x81e   : > { %v24414_v35 = vadd.f32 %v14629_v22, %v24270_v42  ;;  %v14826_v53 = vmul.f32 %v24404_v59, %v24404_v59 }
 0x81f   : > { %v14829_v38 = vmul.f32 %v24409_v5, %v24409_v5 }
 0x820   : > { %v14788_v8 = vadd.f32 %v24414_v35, %v24404_v59  ;;  %v14827_v51 = vmul.f32 %v24414_v35, %v24414_v35 }
 0x821   : > { %v17398_v41 = vpop.f32.mrb[160].mxu0 }
 0x822   : > { %v14789_v32 = vadd.f32 %v14788_v8, %v24399_v34  ;;  %v14858_v19 = vadd.f32 %v14827_v51, %v14826_v53  ;;  %v14634_v42 = vsel %vm25793_vm14, %v17398_v41, 0.0  ;;  %v14485_v33 = vpop.f32.mrb[161].mxu0  ;;  %v25800_v53 = vld [vmem:[#allocation57_spill] sm:$0xff] }
 0x823   : > { %v24430_v28 = vadd.f32 %v14634_v42, %v24276_v10  ;;  %v14632_v48 = vsel %vm25795_vm3, %v14485_v33, 0.0  ;;  %v17399_v49 = vpop.f32.mrb[162].mxu0  ;;  %vm25801_vm0 = vcmp.eq.s32.totalorder %v25800_v53, 1 }
 0x824   : > { %v14859_v24 = vadd.f32 %v14858_v19, %v14828_v57  ;;  %v24435_v52 = vadd.f32 %v14632_v48, %v24280_v23  ;;  %v14790_v7 = vadd.f32 %v14789_v32, %v24409_v5  ;;  %v14635_v26 = vsel %vm25797_vm4, %v17399_v49, 0.0  ;;  %v14488_v25 = vpop.f32.mrb[163].mxu0  ;;  %v25802_v57 = vld [vmem:[#allocation51_spill] sm:$0xff] }
 0x825   : > { %v24441_v13 = vadd.f32 %v14635_v26, %v24284_v11  ;;  %v14633_v10 = vsel %vm25799_vm5, %v14488_v25, 0.0  ;;  %v14832_v9 = vmul.f32 %v24430_v28, %v24430_v28  ;;  %vm25803_vm7 = vcmp.eq.s32.totalorder %v25802_v57, 1 }
 0x826   : > { %v14791_v62 = vadd.f32 %v14790_v7, %v24435_v52  ;;  %v14830_v29 = vmul.f32 %v24435_v52, %v24435_v52  ;;  %v14860_v15 = vadd.f32 %v14859_v24, %v14829_v38  ;;  %v24449_v23 = vadd.f32 %v14633_v10, %v24288_v44  ;;  %v25804_v38 = vld [vmem:[#allocation78_spill] sm:$0xff]  ;;  %v25806_v24 = vld [vmem:[#allocation47_spill] sm:$0xff] }
 0x827   : > { %v14833_v44 = vmul.f32 %v24441_v13, %v24441_v13  ;;  %vm25805_vm8 = vcmp.eq.s32.totalorder %v25804_v38, 1  ;;  %vm25807_vm9 = vcmp.eq.s32.totalorder %v25806_v24, 1 }
 0x828   : > { %v14861_v3 = vadd.f32 %v14860_v15, %v14830_v29  ;;  %v14792_v27 = vadd.f32 %v14791_v62, %v24449_v23  ;;  %v14831_v0 = vmul.f32 %v24449_v23, %v24449_v23 }
 0x829   : > { %v17402_v11 = vpop.f32.mrb[164].mxu0 }
 0x82a   : > { %v14793_v40 = vadd.f32 %v14792_v27, %v24430_v28  ;;  %v14862_v22 = vadd.f32 %v14861_v3, %v14831_v0  ;;  %v14638_v8 = vsel %vm25801_vm0, %v17402_v11, 0.0  ;;  %v14501_v51 = vpop.f32.mrb[165].mxu0  ;;  %v25808_v3 = vld [vmem:[#allocation83_spill] sm:$0xff] }
 0x82b   : > { %v24462_v41 = vadd.f32 %v14638_v8, %v24294_v31  ;;  %v14636_v32 = vsel %vm25803_vm7, %v14501_v51, 0.0  ;;  %v17403_v19 = vpop.f32.mrb[166].mxu0  ;;  %vm25809_vm12 = vcmp.eq.s32.totalorder %v25808_v3, 1 }
 0x82c   : > { %v14863_v43 = vadd.f32 %v14862_v22, %v14832_v9  ;;  %v24467_v42 = vadd.f32 %v14636_v32, %v24298_v63  ;;  %v14794_v33 = vadd.f32 %v14793_v40, %v24441_v13  ;;  %v14639_v54 = vsel %vm25805_vm8, %v17403_v19, 0.0  ;;  %v14504_v48 = vpop.f32.mrb[167].mxu0  ;;  %v25810_v9 = vld [vmem:[#allocation30_spill] sm:$0xff] }
 0x82d   : > { %v24473_v49 = vadd.f32 %v14639_v54, %v24302_v6  ;;  %v14637_v31 = vsel %vm25807_vm9, %v14504_v48, 0.0  ;;  %v14836_v62 = vmul.f32 %v24462_v41, %v24462_v41  ;;  %vm25811_vm10 = vcmp.eq.s32.totalorder %v25810_v9, 1 }
 0x82e   : > { %v14795_v7 = vadd.f32 %v14794_v33, %v24467_v42  ;;  %v14834_v16 = vmul.f32 %v24467_v42, %v24467_v42  ;;  %v14864_v26 = vadd.f32 %v14863_v43, %v14833_v44  ;;  %v24481_v63 = vadd.f32 %v14637_v31, %v24306_v30  ;;  %v25812_v44 = vld [vmem:[#allocation35_spill] sm:$0xff]  ;;  %v25814_v43 = vld [vmem:[#allocation97_spill] sm:$0xff] }
 0x82f   : > { %v14837_v30 = vmul.f32 %v24473_v49, %v24473_v49  ;;  %vm25813_vm13 = vcmp.eq.s32.totalorder %v25812_v44, 1  ;;  %vm25815_vm6 = vcmp.eq.s32.totalorder %v25814_v43, 1 }
 0x830   : > { %v14865_v25 = vadd.f32 %v14864_v26, %v14834_v16  ;;  %v14796_v21 = vadd.f32 %v14795_v7, %v24481_v63  ;;  %v14835_v10 = vmul.f32 %v24481_v63, %v24481_v63 }
 0x831   : > { %v17406_v6 = vpop.f32.mrb[168].mxu0 }
 0x832   : > { %v14797_v29 = vadd.f32 %v14796_v21, %v24462_v41  ;;  %v14866_v15 = vadd.f32 %v14865_v25, %v14835_v10  ;;  %v14642_v27 = vsel %vm25809_vm12, %v17406_v6, 0.0  ;;  %v14517_v0 = vpop.f32.mrb[169].mxu0  ;;  %v25816_v25 = vld [vmem:[#allocation40_spill] sm:$0xff] }
 0x833   : > { %v24494_v11 = vadd.f32 %v14642_v27, %v24313_v55  ;;  %v14640_v40 = vsel %vm25811_vm10, %v14517_v0, 0.0  ;;  %v17407_v22 = vpop.f32.mrb[170].mxu0  ;;  %vm25817_vm1 = vcmp.eq.s32.totalorder %v25816_v25, 1 }
 0x834   : > { %v14867_v53 = vadd.f32 %v14866_v15, %v14836_v62  ;;  %v24499_v8 = vadd.f32 %v14640_v40, %v24318_v47  ;;  %v14798_v51 = vadd.f32 %v14797_v29, %v24473_v49  ;;  %v14643_v57 = vsel %vm25813_vm13, %v17407_v22, 0.0  ;;  %v14520_v32 = vpop.f32.mrb[171].mxu0  ;;  %v25818_v62 = vld [vmem:[#allocation88_spill] sm:$0xff] }
 0x835   : > { %v24505_v19 = vadd.f32 %v14643_v57, %v24322_v58  ;;  %v14641_v55 = vsel %vm25815_vm6, %v14520_v32, 0.0  ;;  %v14840_v7 = vmul.f32 %v24494_v11, %v24494_v11  ;;  %vm25819_vm11 = vcmp.eq.s32.totalorder %v25818_v62, 1  ;;  %v25828_v62 = vld [vmem:[#allocation86_spill] sm:$0xff] }
 0x836   : > { %v14799_v33 = vadd.f32 %v14798_v51, %v24499_v8  ;;  %v14838_v38 = vmul.f32 %v24499_v8, %v24499_v8  ;;  %v14868_v54 = vadd.f32 %v14867_v53, %v14837_v30  ;;  %v24513_v47 = vadd.f32 %v14641_v55, %v24326_v39  ;;  %v25820_v30 = vld [vmem:[#allocation124_spill] sm:$0xff]  ;;  %v25822_v53 = vld [vmem:[#allocation79_spill] sm:$0xff] }
 0x837   : > { %v14841_v39 = vmul.f32 %v24505_v19, %v24505_v19  ;;  %vm25821_vm15 = vcmp.eq.s32.totalorder %v25820_v30, 1  ;;  %vm25823_vm14 = vcmp.eq.s32.totalorder %v25822_v53, 1  ;;  %vm25829_vm5 = vcmp.eq.s32.totalorder %v25828_v62, 1 }
 0x838   : > { %v14869_v48 = vadd.f32 %v14868_v54, %v14838_v38  ;;  %v14800_v24 = vadd.f32 %v14799_v33, %v24513_v47  ;;  %v14839_v31 = vmul.f32 %v24513_v47, %v24513_v47 }
 0x839   : > { %v17410_v58 = vpop.f32.mrb[172].mxu0 }
 0x83a   : > { %v14801_v16 = vadd.f32 %v14800_v24, %v24494_v11  ;;  %v14870_v26 = vadd.f32 %v14869_v48, %v14839_v31  ;;  %v14646_v21 = vsel %vm25817_vm1, %v17410_v58, 0.0  ;;  %v14533_v10 = vpop.f32.mrb[173].mxu0  ;;  %v25824_v48 = vld [vmem:[#allocation62_spill] sm:$0xff]  ;;  %v24555_v58 = vld [vmem:[#allocation13] sm:$0xff] }
 0x83b   : > { %v24526_v6 = vadd.f32 %v14646_v21, %v24333_v37  ;;  %v14644_v29 = vsel %vm25819_vm11, %v14533_v10, 0.0  ;;  %v17411_v15 = vpop.f32.mrb[174].mxu0  ;;  %vm25825_vm3 = vcmp.eq.s32.totalorder %v25824_v48, 1  ;;  %16630 = vmatprep.mubr.f32.mxu1 %v24555_v58 }
 0x83c   : > { %v14871_v3 = vadd.f32 %v14870_v26, %v14840_v7  ;;  %v24531_v27 = vadd.f32 %v14644_v29, %v24338_v61  ;;  %v14802_v0 = vadd.f32 %v14801_v16, %v24505_v19  ;;  %v14647_v9 = vsel %vm25821_vm15, %v17411_v15, 0.0  ;;  %v14536_v40 = vpop.f32.mrb[175].mxu0  ;;  %v25826_v16 = vld [vmem:[#allocation138_spill] sm:$0xff] }
 0x83d   : > { %v24537_v22 = vadd.f32 %v14647_v9, %v24342_v45  ;;  %v14645_v37 = vsel %vm25823_vm14, %v14536_v40, 0.0  ;;  %v14844_v33 = vmul.f32 %v24526_v6, %v24526_v6  ;;  %vm25827_vm4 = vcmp.eq.s32.totalorder %v25826_v16, 1  ;;  %v25836_v16 = vld [vmem:[#allocation125_spill] sm:$0xff] }
 0x83e   : > { %v14803_v51 = vadd.f32 %v14802_v0, %v24531_v27  ;;  %v14842_v44 = vmul.f32 %v24531_v27, %v24531_v27  ;;  %v14872_v57 = vadd.f32 %v14871_v3, %v14841_v39  ;;  %v24545_v61 = vadd.f32 %v14645_v37, %v24346_v17 }
 0x83f   : > { %v14845_v17 = vmul.f32 %v24537_v22, %v24537_v22  ;;  %vm25837_vm9 = vcmp.eq.s32.totalorder %v25836_v16, 1 }
 0x840   : > { %v14873_v32 = vadd.f32 %v14872_v57, %v14842_v44  ;;  %v14804_v43 = vadd.f32 %v14803_v51, %v24545_v61  ;;  %v14843_v55 = vmul.f32 %v24545_v61, %v24545_v61 }
 0x841   : > { %v17414_v45 = vpop.f32.mrb[176].mxu0 }
 0x842   : > { %v14805_v38 = vadd.f32 %v14804_v43, %v24526_v6  ;;  %v14874_v54 = vadd.f32 %v14873_v32, %v14843_v55  ;;  %v14650_v24 = vsel %vm25825_vm3, %v17414_v45, 0.0  ;;  %v14549_v31 = vpop.f32.mrb[177].mxu0  ;;  %v25832_v43 = vld [vmem:[#allocation48_spill] sm:$0xff] }
 0x843   : > { %v24560_v7 = vadd.f32 %v14650_v24, %v24350_v1  ;;  %v14648_v26 = vsel %vm25827_vm4, %v14549_v31, 0.0  ;;  %v17415_v25 = vpop.f32.mrb[178].mxu0  ;;  %v25830_v1 = vld [vmem:[#allocation98_spill] sm:$0xff]  ;;  %vm25833_vm7 = vcmp.eq.s32.totalorder %v25832_v43, 1 }
 0x844   : > { %v14875_v21 = vadd.f32 %v14874_v54, %v14844_v33  ;;  %v24566_v10 = vadd.f32 %v14648_v26, %v24354_v18  ;;  %v14806_v39 = vadd.f32 %v14805_v38, %v24537_v22  ;;  %v14651_v29 = vsel %vm25829_vm5, %v17415_v25, 0.0  ;;  %v14552_v15 = vpop.f32.mrb[179].mxu0  ;;  %v25834_v38 = vld [vmem:[#allocation36_spill] sm:$0xff] }
 0x845   : > { %v24572_v3 = vadd.f32 %v14651_v29, %v24358_v56  ;;  %vm25831_vm0 = vcmp.eq.s32.totalorder %v25830_v1, 1  ;;  %v14848_v44 = vmul.f32 %v24560_v7, %v24560_v7  ;;  %vm25835_vm8 = vcmp.eq.s32.totalorder %v25834_v38, 1  ;;  %v25843_v38 = vld [vmem:[#allocation39_spill] sm:$0xff] }
 0x846   : > { %v14649_v0 = vsel %vm25831_vm0, %v14552_v15, 0.0  ;;  %v14807_v30 = vadd.f32 %v14806_v39, %v24566_v10  ;;  %v14846_v9 = vmul.f32 %v24566_v10, %v24566_v10  ;;  %v14876_v40 = vadd.f32 %v14875_v21, %v14845_v17  ;;  %v25838_v39 = vld [vmem:[#allocation38_spill] sm:$0xff] }
 0x847   : > { %v24580_v18 = vadd.f32 %v14649_v0, %v24362_v46  ;;  %v14849_v46 = vmul.f32 %v24572_v3, %v24572_v3  ;;  %vm25839_vm12 = vcmp.eq.s32.totalorder %v25838_v39, 1  ;;  %vm25844_vm13 = vcmp.eq.s32.totalorder %v25843_v38, 1 }
 0x848   : > { %v14877_v53 = vadd.f32 %v14876_v40, %v14846_v9 }
 0x849   : > { %v14808_v37 = vadd.f32 %v14807_v30, %v24580_v18  ;;  %v14847_v51 = vmul.f32 %v24580_v18, %v24580_v18  ;;  %v17418_v56 = vpop.f32.mrb[180].mxu0 }
 0x84a   : > { %v14654_v55 = vsel %vm25833_vm7, %v17418_v56, 0.0  ;;  %v14565_v45 = vpop.f32.mrb[181].mxu0 }
 0x84b   : > { %v14809_v57 = vadd.f32 %v14808_v37, %v24560_v7  ;;  %v14878_v32 = vadd.f32 %v14877_v53, %v14847_v51  ;;  %v24593_v33 = vadd.f32 %v14654_v55, %v24366_v50  ;;  %v14652_v54 = vsel %vm25835_vm8, %v14565_v45, 0.0  ;;  %v17419_v48 = vpop.f32.mrb[182].mxu0 }
 0x84c   : > { %v24598_v31 = vadd.f32 %v14652_v54, %v24370_v4  ;;  %v14655_v26 = vsel %vm25837_vm9, %v17419_v48, 0.0  ;;  %v14568_v25 = vpop.f32.mrb[183].mxu0 }
 0x84d   : > { %v14879_v24 = vadd.f32 %v14878_v32, %v14848_v44  ;;  %v14810_v17 = vadd.f32 %v14809_v57, %v24572_v3  ;;  %v24604_v21 = vadd.f32 %v14655_v26, %v24374_v14  ;;  %v14653_v50 = vsel %vm25839_vm12, %v14568_v25, 0.0  ;;  %v25841_v57 = vld [vmem:[#allocation84_spill] sm:$0xff] }
 0x84e   : > { %v14850_v29 = vmul.f32 %v24598_v31, %v24598_v31  ;;  %v24612_v4 = vadd.f32 %v14653_v50, %v24378_v20  ;;  %v14852_v9 = vmul.f32 %v24593_v33, %v24593_v33  ;;  %vm25842_vm10 = vcmp.eq.s32.totalorder %v25841_v57, 1 }
 0x84f   : > { %v14811_v62 = vadd.f32 %v14810_v17, %v24598_v31  ;;  %v14880_v15 = vadd.f32 %v14879_v24, %v14849_v46  ;;  %v14853_v20 = vmul.f32 %v24604_v21, %v24604_v21  ;;  %v25845_v17 = vld [vmem:[#allocation67_spill] sm:$0xff] }
 0x850   : > { %v14851_v30 = vmul.f32 %v24612_v4, %v24612_v4 }
 0x851   : > { %v14881_v1 = vadd.f32 %v14880_v15, %v14850_v29  ;;  %v14812_v0 = vadd.f32 %v14811_v62, %v24612_v4  ;;  %v17422_v14 = vpop.f32.mrb[184].mxu0 }
 0x852   : > { %v14658_v51 = vsel %vm11204_vm2, %v17422_v14, 0.0  ;;  %v14581_v56 = vpop.f32.mrb[185].mxu0  ;;  %vm25846_vm2 = vcmp.eq.s32.totalorder %v25845_v17, 1 }
 0x853   : > { %v14813_v40 = vadd.f32 %v14812_v0, %v24593_v33  ;;  %v14882_v53 = vadd.f32 %v14881_v1, %v14851_v30  ;;  %v24625_v44 = vadd.f32 %v14658_v51, %v24382_v36  ;;  %v14656_v32 = vsel %vm25842_vm10, %v14581_v56, 0.0  ;;  %v17423_v43 = vpop.f32.mrb[186].mxu0 }
 0x854   : > { %v24630_v45 = vadd.f32 %v14656_v32, %v24386_v60  ;;  %v14659_v54 = vsel %vm25844_vm13, %v17423_v43, 0.0  ;;  %v14584_v48 = vpop.f32.mrb[187].mxu0 }
 0x855   : > { %v14883_v55 = vadd.f32 %v14882_v53, %v14852_v9  ;;  %v14814_v46 = vadd.f32 %v14813_v40, %v24604_v21  ;;  %v24636_v24 = vadd.f32 %v14659_v54, %v24390_v2  ;;  %v14657_v36 = vsel %vm25846_vm2, %v14584_v48, 0.0 }
 0x856   : > { %v14854_v26 = vmul.f32 %v24630_v45, %v24630_v45  ;;  %v24644_v60 = vadd.f32 %v14657_v36, %v24394_v12  ;;  %v14856_v2 = vmul.f32 %v24625_v44, %v24625_v44 }
 0x857   : > { %v14815_v16 = vadd.f32 %v14814_v46, %v24630_v45  ;;  %v14884_v25 = vadd.f32 %v14883_v55, %v14853_v20  ;;  %v14857_v1 = vmul.f32 %v24636_v24, %v24636_v24 }
 0x858   : > { %v14855_v62 = vmul.f32 %v24644_v60, %v24644_v60 }
 0x859   : > { %v14885_v39 = vadd.f32 %v14884_v25, %v14854_v26  ;;  %v14816_v50 = vadd.f32 %v14815_v16, %v24644_v60 }
 0x85b   : > { %v14817_v29 = vadd.f32 %v14816_v50, %v24625_v44  ;;  %v14886_v15 = vadd.f32 %v14885_v39, %v14855_v62 }
 0x85d   : > { %v14818_v0 = vadd.f32 %v14817_v29, %v24636_v24  ;;  %v14887_v30 = vadd.f32 %v14886_v15, %v14856_v2 }
 0x85f   : > { %v14819_v12 = vrot.slane %v14818_v0, 4  ;;  %v14888_v14 = vadd.f32 %v14887_v30, %v14857_v1 }
 0x861   : > { %v14820_v9 = vadd.f32 %v14819_v12, %v14818_v0  ;;  %v14889_v40 = vrot.slane %v14888_v14, 4 }
 0x863   : > { %v14821_v53 = vrot.slane %v14820_v9, 2  ;;  %v14890_v37 = vadd.f32 %v14889_v40, %v14888_v14 }
 0x865   : > { %v14822_v51 = vadd.f32 %v14821_v53, %v14820_v9  ;;  %v14891_v56 = vrot.slane %v14890_v37, 2 }
 0x867   : > { %v14823_v20 = vrot.slane %v14822_v51, 1  ;;  %v14892_v57 = vadd.f32 %v14891_v56, %v14890_v37 }
 0x869   : > { %v14824_v32 = vadd.f32 %v14823_v20, %v14822_v51  ;;  %v14893_v43 = vrot.slane %v14892_v57, 1 }
 0x86b   : > { %v24655_v55 = vmul.f32 0.00390625, %v14824_v32  ;;  %v14894_v46 = vadd.f32 %v14893_v43, %v14892_v57 }
 0x86d   : > { %v14895_v38 = vmul.f32 0.00390625, %v14894_v46  ;;  %v14896_v54 = vmul.f32 %v24655_v55, %v24655_v55  ;;  %v14927_v48 = vsub.f32 %v24644_v60, %v24655_v55  ;;  %v14907_v36 = vsub.f32 %v24481_v63, %v24655_v55 }
 0x86e   : > { %v14909_v16 = vsub.f32 %v24473_v49, %v24655_v55  ;;  %v14910_v25 = vsub.f32 %v24499_v8, %v24655_v55  ;;  %v14911_v39 = vsub.f32 %v24513_v47, %v24655_v55  ;;  %v14912_v50 = vsub.f32 %v24494_v11, %v24655_v55 }
 0x86f   : > { %v14897_v17 = vsub.f32 %v14895_v38, %v14896_v54  ;;  %v14913_v62 = vsub.f32 %v24505_v19, %v24655_v55  ;;  %v14914_v2 = vsub.f32 %v24531_v27, %v24655_v55  ;;  %v14915_v63 = vsub.f32 %v24545_v61, %v24655_v55 }
 0x870   : > { %v14916_v49 = vsub.f32 %v24526_v6, %v24655_v55  ;;  %v14917_v8 = vsub.f32 %v24537_v22, %v24655_v55  ;;  %v14918_v47 = vsub.f32 %v24566_v10, %v24655_v55  ;;  %v14919_v11 = vsub.f32 %v24580_v18, %v24655_v55 }
 0x871   : > { %v14930_v26 = vadd.f32 1e-05, %v14897_v17  ;;  %v14920_v19 = vsub.f32 %v24560_v7, %v24655_v55  ;;  %v14921_v27 = vsub.f32 %v24572_v3, %v24655_v55  ;;  %v14922_v61 = vsub.f32 %v24598_v31, %v24655_v55 }
 0x872   : > { %v14923_v6 = vsub.f32 %v24612_v4, %v24655_v55  ;;  %v14924_v22 = vsub.f32 %v24593_v33, %v24655_v55  ;;  %v14925_v29 = vsub.f32 %v24604_v21, %v24655_v55  ;;  %v14926_v15 = vsub.f32 %v24630_v45, %v24655_v55 }
 0x873   : > { %18440 = vrsqrt.f32 %v14930_v26  ;;  %v14928_v1 = vsub.f32 %v24625_v44, %v24655_v55  ;;  %v14898_v30 = vsub.f32 %v24404_v59, %v24655_v55  ;;  %v14899_v12 = vsub.f32 %v24414_v35, %v24655_v55  ;;  %v15001_v44 = vpop.permute.xlu0 %15000 }
 0x874   : > { %v14900_v14 = vsub.f32 %v24399_v34, %v24655_v55  ;;  %v14901_v9 = vsub.f32 %v24409_v5, %v24655_v55  ;;  %v14902_v40 = vsub.f32 %v24435_v52, %v24655_v55  ;;  %v14903_v53 = vsub.f32 %v24449_v23, %v24655_v55 }
 0x875   : > { %v14904_v59 = vsub.f32 %v24430_v28, %v24655_v55  ;;  %v14905_v35 = vsub.f32 %v24441_v13, %v24655_v55  ;;  %v14906_v34 = vsub.f32 %v24467_v42, %v24655_v55  ;;  %v14908_v5 = vsub.f32 %v24462_v41, %v24655_v55 }
 0x87d   : > { %v24715_v37 = vpop.eup %18440 }
 0x87e   : > { %v14932_v51 = vmul.f32 %v24715_v37, %v14898_v30  ;;  %v14933_v52 = vmul.f32 %v24715_v37, %v14899_v12  ;;  %v14934_v23 = vmul.f32 %v24715_v37, %v14900_v14  ;;  %v14935_v56 = vmul.f32 %v24715_v37, %v14901_v9 }
 0x87f   : > { %v14936_v20 = vmul.f32 %v24715_v37, %v14902_v40  ;;  %v14937_v28 = vmul.f32 %v24715_v37, %v14903_v53  ;;  %v14938_v13 = vmul.f32 %v24715_v37, %v14904_v59  ;;  %v14939_v57 = vmul.f32 %v24715_v37, %v14905_v35 }
 0x880   : > { %v14940_v42 = vmul.f32 %v24715_v37, %v14906_v34  ;;  %v14941_v41 = vmul.f32 %v24715_v37, %v14907_v36  ;;  %v14942_v32 = vmul.f32 %v24715_v37, %v14908_v5  ;;  %v14943_v43 = vmul.f32 %v24715_v37, %v14909_v16 }
 0x881   : > { %v14944_v46 = vmul.f32 %v24715_v37, %v14910_v25  ;;  %v14945_v38 = vmul.f32 %v24715_v37, %v14911_v39  ;;  %v24740_v54 = vmul.f32 %v24715_v37, %v14912_v50  ;;  %v24743_v17 = vmul.f32 %v24715_v37, %v14913_v62 }
 0x882   : > { %v14948_v26 = vmul.f32 %v24715_v37, %v14914_v2  ;;  %v14949_v30 = vmul.f32 %v24715_v37, %v14915_v63  ;;  %v14964_v12 = vmax.f32 %v14932_v51, 0.0  ;;  %v14965_v36 = vmax.f32 %v14933_v52, 0.0 }
 0x883   : > { %v14966_v14 = vmax.f32 %v14934_v23, 0.0  ;;  %v14967_v9 = vmax.f32 %v14935_v56, 0.0  ;;  %v14968_v40 = vmax.f32 %v14936_v20, 0.0  ;;  %v14969_v16 = vmax.f32 %v14937_v28, 0.0 }
 0x884   : > { %v14970_v53 = vmax.f32 %v14938_v13, 0.0  ;;  %v14971_v25 = vmax.f32 %v14939_v57, 0.0  ;;  %v14972_v59 = vmax.f32 %v14940_v42, 0.0  ;;  %v14973_v39 = vmax.f32 %v14941_v41, 0.0 }
 0x885   : > { %v14974_v35 = vmax.f32 %v14942_v32, 0.0  ;;  %v14975_v50 = vmax.f32 %v14943_v43, 0.0  ;;  %v14976_v34 = vmax.f32 %v14944_v46, 0.0  ;;  %v14977_v5 = vmax.f32 %v14945_v38, 0.0 }
 0x886   : > { %v14978_v62 = vmax.f32 %v24740_v54, 0.0  ;;  %v14979_v2 = vmax.f32 %v24743_v17, 0.0  ;;  %v14980_v0 = vmax.f32 %v14948_v26, 0.0  ;;  %v14981_v63 = vmax.f32 %v14949_v30, 0.0 }
 0x887   : > { %v17426_v51 = vpack.c.bf16 %v14965_v36, %v14964_v12  ;;  %v14950_v52 = vmul.f32 %v24715_v37, %v14916_v49  ;;  %v14951_v23 = vmul.f32 %v24715_v37, %v14917_v8  ;;  %v17430_v56 = vpack.c.bf16 %v14967_v9, %v14966_v14 }
 0x888   : > { %v17424_v20 = vpack.c.bf16 %v14981_v63, %v14980_v0  ;;  %v14952_v28 = vmul.f32 %v24715_v37, %v14918_v47  ;;  %v14953_v13 = vmul.f32 %v24715_v37, %v14919_v11  ;;  %v17434_v57 = vpack.c.bf16 %v14969_v16, %v14968_v40 }
 0x889   : > { %v14982_v42 = vmax.f32 %v14950_v52, 0.0  ;;  %v14983_v41 = vmax.f32 %v14951_v23, 0.0  ;;  %v14954_v49 = vmul.f32 %v24715_v37, %v14920_v19  ;;  %v14955_v10 = vmul.f32 %v24715_v37, %v14921_v27 }
 0x88a   : > { %17425 = vmatprep.subr.bf16.mxu1 %v17424_v20  ;;  %v14984_v8 = vmax.f32 %v14952_v28, 0.0  ;;  %v14985_v47 = vmax.f32 %v14953_v13, 0.0  ;;  %v17438_v0 = vpack.c.bf16 %v14971_v25, %v14970_v53  ;;  %v14956_v18 = vmul.f32 %v24715_v37, %v14922_v61 }
 0x88b   : > { %17427 = vmatpush3.bf16.xpose.msra.mxu1 %v17426_v51  ;;  %v17428_v11 = vpack.c.bf16 %v14983_v41, %v14982_v42  ;;  %v14986_v32 = vmax.f32 %v14954_v49, 0.0  ;;  %v14987_v7 = vmax.f32 %v14955_v10, 0.0  ;;  %v14957_v3 = vmul.f32 %v24715_v37, %v14923_v6 }
 0x88c   : > { %v17432_v19 = vpack.c.bf16 %v14985_v47, %v14984_v8  ;;  %v14988_v27 = vmax.f32 %v14956_v18, 0.0  ;;  %v17442_v43 = vpack.c.bf16 %v14973_v39, %v14972_v59  ;;  %v14958_v46 = vmul.f32 %v24715_v37, %v14924_v22 }
 0x88d   : > { %17429 = vmatprep.subr.bf16.mxu1 %v17428_v11  ;;  %v17436_v31 = vpack.c.bf16 %v14987_v7, %v14986_v32  ;;  %v14989_v61 = vmax.f32 %v14957_v3, 0.0  ;;  %v14959_v38 = vmul.f32 %v24715_v37, %v14925_v29  ;;  %v17446_v54 = vpack.c.bf16 %v14975_v50, %v14974_v35 }
 0x88e   : > { %v14990_v4 = vmax.f32 %v14958_v46, 0.0  ;;  %v14960_v6 = vmul.f32 %v24715_v37, %v14926_v15  ;;  %v14961_v33 = vmul.f32 %v24715_v37, %v14927_v48  ;;  %v17450_v22 = vpack.c.bf16 %v14977_v5, %v14976_v34 }
 0x88f   : > { %v17440_v17 = vpack.c.bf16 %v14989_v61, %v14988_v27  ;;  %v14991_v26 = vmax.f32 %v14959_v38, 0.0  ;;  %v14962_v21 = vmul.f32 %v24715_v37, %v14928_v1  ;;  %v25847_v29 = vsub.f32 %v24636_v24, %v24655_v55 }
 0x890   : > { %v14992_v30 = vmax.f32 %v14960_v6, 0.0  ;;  %v14993_v15 = vmax.f32 %v14961_v33, 0.0  ;;  %v17454_v12 = vpack.c.bf16 %v14979_v2, %v14978_v62 }
 0x891   : > { %v14963_v45 = vmul.f32 %v24715_v37, %v25847_v29  ;;  %v17444_v36 = vpack.c.bf16 %v14991_v26, %v14990_v4  ;;  %v14994_v60 = vmax.f32 %v14962_v21, 0.0 }
 0x892   : > { %v17448_v48 = vpack.c.bf16 %v14993_v15, %v14992_v30 }
 0x893   : > { %v14995_v14 = vmax.f32 %v14963_v45, 0.0  ;;  %17431 = vmatpush3.bf16.xpose.msra.mxu1 %v17430_v56 }
 0x894   : > { %17433 = vmatprep.subr.bf16.mxu1 %v17432_v19 }
 0x895   : > { %v17452_v9 = vpack.c.bf16 %v14995_v14, %v14994_v60 }
 0x89b   : > { %17435 = vmatpush3.bf16.xpose.msra.mxu1 %v17434_v57 }
 0x89c   : > { %17437 = vmatprep.subr.bf16.mxu1 %v17436_v31 }
 0x8a3   : > { %17439 = vmatpush3.bf16.xpose.msra.mxu1 %v17438_v0 }
 0x8a4   : > { %17441 = vmatprep.subr.bf16.mxu1 %v17440_v17 }
 0x8ab   : > { %17443 = vmatpush3.bf16.xpose.msra.mxu1 %v17442_v43 }
 0x8ac   : > { %17445 = vmatprep.subr.bf16.mxu1 %v17444_v36 }
 0x8b3   : > { %17447 = vmatpush3.bf16.xpose.msra.mxu1 %v17446_v54 }
 0x8b4   : > { %17449 = vmatprep.subr.bf16.mxu1 %v17448_v48 }
 0x8bb   : > { %17451 = vmatpush3.bf16.xpose.msra.mxu1 %v17450_v22 }
 0x8bc   : > { %17453 = vmatprep.subr.bf16.mxu1 %v17452_v9 }
 0x8c3   : > { %17455 = vmatpush3.bf16.xpose.msra.mxu1 %v17454_v12 }
 0x8ca   : > { %16631 = vmatmul.mubr.f32.vlgmr.msra.gmra.mrb[4].mxu1 %v24555_v58 }
 0x99d   : > { %v15069_v24 = vpop.f32.mrb[4].mxu1 }
 0x99e   : > { %v15070_v55 = vadd.f32 %v15069_v24, %v15001_v44  ;;  %v15071_v1 = vpop.f32.mrb[5].mxu1 }
 0x99f   : > { %v15072_v37 = vadd.f32 %v15071_v1, %v15001_v44 }
 0x9a0   : > { %15074 = vst [vmem:[%s446_s16] sm:$0xff] %v15070_v55 }
 0x9a1   : > { %15075 = vst [vmem:[%s446_s16 + $0x8] sm:$0xff] %v15072_v37 }
 0x9a2   : > { %18755 = shalt.err (!%p18752_p3)
}
 0x9a3   : > { %s18756_s23 = scalar_lea.hbm %s24805_s3, 256  ;;  %s18760_s13 = scalar_lea.hbm %s24857_s8, 512 }
 0x9a4   : > { %p18757_p12 = scmp.ne.s32.totalorder %s24805_s3, %s18756_s23  ;;  %p18761_p0 = scmp.lt.u32.totalorder %s24805_s3, %s24857_s8 }
 0x9a5   : > { %p18762_p5 = scmp.lt.u32.totalorder %s18760_s13, %s18756_s23  ;;  %p18764_p4 = scmp.lt.u32.totalorder %s18756_s23, %s24805_s3 }
 0x9a6   : > { %p18758_p1 = pnand %p18757_p12, %p25848_p10 }
 0x9a7   : > { %p18763_p2 = por %p18762_p5, %p18761_p0 }
 0x9a8   : > { %p18759_p13 = pneg %p18758_p1 }
 0x9a9   : > { %p18765_p6 = por %p18764_p4, %p18763_p2 }
 0x9ab   : > { %p18766_p7 = pnand %p18765_p6, %p18759_p13 }
 0x9ad   : > { %18769 = shalt.err (!%p18766_p7)
}
 0x9ae   : > { %17711 = dma.vmem_to_hbm [thread:$0]  (%p25848_p10), %s24807_s19, 256, %s24805_s3, %s15077_s11  }
 0x9af PF: > { %s15103_s18 = sand.u32 1, %s18816_s27   ;;  %p25849_p9 = scmp.ne.s32.totalorder %s25022_s17, 0 }
 0x9b0   : > { %p25850_p8 = scmp.ge.s32.totalorder %s18828_s30, 2  ;;  %s15104_s21 = scalar_lea.sflag [#allocation6], %s15103_s18 }
 0x9b2   : > { %p17740_p11 = pnand %p25850_p8, %p25849_p9 }
 0x9b4   : > { %18811 = dma.done.wait (!%p17740_p11), %s15104_s21, 256  }
 0x9b5   : > { %18813 = vsyncadd (!%p17740_p11), %s15104_s21, 4294967040  ;;  %p27_p3 = scmp.ge.s32.totalorder %s19077_s24, 4   ;;  %s25851_s27 = smov %s18820_s28 }
 0x9b6   : > { %s25852_s28 = smov %s18824_s29  ;;  %s25853_s29 = smov %s19088_s15 }
 0x9b7   : > { %s25854_s30 = smov %s19077_s24  ;;  %29 = sbr.rel (!%p27_p3) target bundleno = 17 (0x11), region = 158 }
 0x9be   :  { %15109 = vsyncpa [#allocation5], 1 }
 0x9bf   :  { %15111 = vsyncpa [#allocation5 + $0x1], 1 }
 0x9c0   :  { %15112 = vsyncpa [#allocation8], 1 }
 0x9c1   :  { %15114 = vsyncpa [#allocation8 + $0x1], 1 }
 0x9c2   :  { %15115 = vsyncpa [#allocation11], 1 }
 0x9c3   :  { %15116 = vsyncpa [#allocation14], 1 }
 0x9c4   :  { %15117 = vsyncpa [#allocation17], 1 }
 0x9c5   :  { %15118 = vsyncpa [#allocation6], 1 }
 0x9c6   :  { %15120 = vsyncpa [#allocation6 + $0x1], 1 }

</bundles_post_ra>
